<compile_context>
chip_gen: v6e
topology: v6e:2x2x1
jax: 0.10.0
libtpu: 0.0.40
codegen_flags: <defaults>
</compile_context>

<pallas_src>
import functools
import math

import jax
import jax.numpy as jnp
from jax.experimental import pallas as pl
from jax.experimental.pallas import tpu as pltpu

NEG_SLOPE = 0.01   # nn.LeakyReLU default
LN_EPS = 1e-5      # nn.LayerNorm default
WN_EPS = 1e-8      # WeightNormalizedLinear.weight_norm eps


def _leaky(y):
    return jnp.where(y >= 0, y, NEG_SLOPE * y)


def _mm_nt(a, b):
    # a: (M, K), b: (N, K) -> a @ b.T ; bf16 inputs, f32 accumulation on the MXU.
    return jax.lax.dot_general(a, b, (((1,), (1,)), ((), ())),
                               preferred_element_type=jnp.float32)


# ---------------------------------------------------------------------------
# Fused BlockCls kernel.  One grid step processes `bt` batch elements.
# ---------------------------------------------------------------------------
def fused_block_kernel(x_ref, xcls_ref, bias_ref, hmask_ref,
                       w0_ref, wq_ref, bq_ref, wkv_ref, bkv_ref,
                       wc_ref, bc_ref, w2_ref, g_ref, beta_ref,
                       o_ref, *, num_heads, bt, lq):
    N = x_ref.shape[1]
    E = x_ref.shape[2]
    E2 = 2 * E

    # Weights arrive pre-normalized / pre-folded and already bf16 (no per-step casts).
    w0 = w0_ref[...]        # (E, E)    fc0
    wq = wq_ref[...]        # (2E, E)   q proj (rows E:2E are zero)
    bq = bq_ref[...]        # (1, 2E)   f32
    wkv = wkv_ref[...]      # (2E, E)   fused k/v proj
    bkv = bkv_ref[...]      # (1, 2E)   f32
    wc = wc_ref[...]        # (E, 2E)   out_proj folded into fc1_cls (lanes :E zero)
    bc = bc_ref[...]        # (1, E)    f32
    w2 = w2_ref[...]        # (E, E)    fc2_cls
    hmask = hmask_ref[...]  # (nh, 2E)  f32 block-diagonal head mask, tiled twice

    # ---- x = act(fc0(x)) on the whole (bt*N, E) slab (x already bf16) --------------
    x2 = x_ref[...].reshape(bt * N, E)
    xh = _leaky(_mm_nt(x2, w0))                                   # (bt*N, E) f32
    xh16 = xh.astype(jnp.bfloat16)

    # ---- fused K/V in-projection ----------------------------------------------------
    kv = _mm_nt(xh16, wkv) + bkv                                  # (bt*N, 2E) f32
    kv3 = kv.reshape(bt, N, E2).astype(jnp.bfloat16)              # lanes :E = k, E: = v

    # ---- Q projection (zero-padded 2E container, 1/sqrt(hd) pre-folded) -------------
    xcls = xcls_ref[...]                                          # (bt, lq, E) f32
    q = _mm_nt(xcls.reshape(bt * lq, E).astype(jnp.bfloat16), wq) + bq   # (bt*lq, 2E)
    qh = (q.reshape(bt, lq, 1, E2) * hmask[None, None, :, :]
          ).reshape(bt, lq * num_heads, E2).astype(jnp.bfloat16)

    # ---- scores + masked softmax (all heads / batch elements of the tile) -----------
    s = jnp.einsum('bqe,bke->bqk', qh, kv3,
                   preferred_element_type=jnp.float32)            # (bt, lq*nh, N)
    s = s + bias_ref[...]                                         # precomputed additive bias
    s = s - jnp.max(s, axis=-1, keepdims=True)
    p = jnp.exp(s)
    p = p * pl.reciprocal(jnp.sum(p, axis=-1, keepdims=True), approx=True)

    # ---- context: lanes E:2E hold p@v; lanes :E hold p@k (killed by wc zero lanes) ---
    c = jnp.einsum('bqk,bke->bqe', p.astype(jnp.bfloat16), kv3,
                   preferred_element_type=jnp.float32)            # (bt, lq*nh, 2E)
    ctx = jnp.sum(c.reshape(bt, lq, num_heads, E2) * hmask[None, None, :, :],
                  axis=2)                                         # (bt, lq, 2E)

    # ---- out_proj folded into fc1_cls, residual + LayerNorm, fc2_cls -----------------
    h1 = _leaky(_mm_nt(ctx.reshape(bt * lq, E2).astype(jnp.bfloat16), wc) + bc)
    t = h1 + xcls.reshape(bt * lq, E)                             # residual = original x_cls
    mu = jnp.mean(t, axis=-1, keepdims=True)
    tc = t - mu
    var = jnp.mean(tc * tc, axis=-1, keepdims=True)
    y = tc * jax.lax.rsqrt(var + LN_EPS) * g_ref[...] + beta_ref[...]
    out = _leaky(_mm_nt(y.astype(jnp.bfloat16), w2))              # (bt*lq, E)

    o_ref[...] = out.reshape(bt, lq, E).astype(o_ref.dtype)


def _const_spec(shape):
    zeros = (0,) * len(shape)
    return pl.BlockSpec(shape, lambda i, z=zeros: z)


def _pick_block_b(B, N, Lq, E, nh, vmem_budget_bytes):
    """Largest divisor of B whose per-tile activation footprint fits the budget,
    preferring an even grid (>= 2 tiles) so v7x's two TensorCores both get work."""
    # Rough per-batch-element VMEM bytes inside one grid step:
    #   x tile (bf16, double-buffered) ~ 4*N*E; xh f32+bf16 ~ 6*N*E;
    #   kv (2E wide) f32+bf16 ~ 12*N*E; scores/probs ~ 12*nh*Lq*N; cls path ~ 64*Lq*E.
    per_b = 22 * N * E + 12 * nh * Lq * N + 64 * Lq * E
    cap = max(1, vmem_budget_bytes // max(per_b, 1))
    divisors = [d for d in range(1, B + 1) if B % d == 0]
    feasible = [d for d in divisors if d <= cap] or [1]
    even_grid = [d for d in feasible if (B // d) >= 2 and (B // d) % 2 == 0]
    multi_tile = [d for d in feasible if (B // d) >= 2]
    pool = even_grid or multi_tile or feasible
    return max(pool)


# ---------------------------------------------------------------------------
# BlockCls.forward
# ---------------------------------------------------------------------------
def block_cls_forward(params, x, x_cls, src_key_padding_mask=None,
                      block_b=None, vmem_limit_bytes=None):
    B, N, E = x.shape
    Lq = x_cls.shape[1]
    nh = params["num_heads"]
    H = params["w_fc0"].shape[0]
    if H != E:
        raise ValueError("BlockCls forward requires hidden == embed_dim")
    if E % nh != 0:
        raise ValueError("embed_dim must be divisible by num_heads")
    hd = E // nh

    # Per-generation VMEM limit (v5e/v6e 128 MiB, v7x 64 MiB per TC); keep 25% headroom.
    if vmem_limit_bytes is None:
        try:
            phys = pltpu.get_tpu_info().vmem_capacity_bytes
        except Exception:
            phys = 64 << 20
        vmem_limit_bytes = min((phys * 3) // 4, 96 << 20)

    if block_b is None:
        block_b = _pick_block_b(B, N, Lq, E, nh, vmem_limit_bytes // 2)
    if B % block_b != 0:
        raise ValueError("block_b must divide batch size")

    # ---- one-time weight prep (all in f32, then cast MXU weights to bf16) -----------
    def _wn(w):   # WeightNormalizedLinear: divide each output by ||W_row||+eps
        return w / (jnp.sqrt(jnp.sum(w * w, axis=1, keepdims=True)) + WN_EPS)

    w0n = _wn(params["w_fc0"]).astype(jnp.bfloat16)
    w1n = _wn(params["w_fc1_cls"])                         # f32, used for the fold below
    w2n = _wn(params["w_fc2_cls"]).astype(jnp.bfloat16)

    ipw, ipb = params["in_proj_w"], params["in_proj_b"]
    scale = 1.0 / math.sqrt(hd)
    # Q projection into a zero-padded 2E container (so it contracts against fused kv).
    wq_pad = jnp.concatenate([ipw[:E] * scale,
                              jnp.zeros((E, E), jnp.float32)], axis=0).astype(jnp.bfloat16)
    bq_pad = jnp.concatenate([ipb[:E] * scale,
                              jnp.zeros((E,), jnp.float32)]).reshape(1, 2 * E)
    # Fused K/V projection: output lanes :E = k, E:2E = v.
    w_kv = ipw[E:].astype(jnp.bfloat16)                    # (2E, E)
    b_kv = ipb[E:].reshape(1, 2 * E)

    # Fold attn.out_proj into fc1_cls: h1_pre = ctx @ (W1n @ Wo)^T + W1n @ bo.
    wc = w1n @ params["out_proj_w"]                        # (E, E) f32 fold
    bc = (w1n @ params["out_proj_b"]).reshape(1, E)
    # Pad to consume the 2E-wide ctx (k-lanes get zero weight).
    wc_pad = jnp.concatenate([jnp.zeros((E, E), jnp.float32), wc],
                             axis=1).astype(jnp.bfloat16)  # (E, 2E)

    # Block-diagonal head mask, tiled over the k and v halves of the 2E container.
    hmask = (jnp.arange(E)[None, :] // hd == jnp.arange(nh)[:, None]).astype(jnp.float32)
    hmask_pad = jnp.concatenate([hmask, hmask], axis=1)    # (nh, 2E)

    # Additive attention bias precomputed here (kernel just adds it).
    if src_key_padding_mask is None:
        attn_bias = jnp.zeros((B, 1, N), jnp.float32)
    else:
        attn_bias = jnp.where(src_key_padding_mask.reshape(B, 1, N),
                              jnp.float32(-1e30), jnp.float32(0.0))

    g2 = params["ln_gamma"].reshape(1, E)
    b2 = params["ln_beta"].reshape(1, E)

    x_bf = x.astype(jnp.bfloat16)     # x is only ever consumed as bf16 (fc0 input)

    grid = (B // block_b,)
    out = pl.pallas_call(
        functools.partial(fused_block_kernel, num_heads=nh, bt=block_b, lq=Lq),
        grid=grid,
        in_specs=[
            pl.BlockSpec((block_b, N, E), lambda i: (i, 0, 0)),    # x (bf16)
            pl.BlockSpec((block_b, Lq, E), lambda i: (i, 0, 0)),   # x_cls (f32, residual)
            pl.BlockSpec((block_b, 1, N), lambda i: (i, 0, 0)),    # additive attn bias
            _const_spec((nh, 2 * E)),                              # padded head mask
            _const_spec((E, E)),                                   # fc0 (normalized, bf16)
            _const_spec((2 * E, E)),                               # padded q proj (bf16)
            _const_spec((1, 2 * E)),                               # q bias
            _const_spec((2 * E, E)),                               # fused k/v proj (bf16)
            _const_spec((1, 2 * E)),                               # k/v bias
            _const_spec((E, 2 * E)),                               # out_proj∘fc1_cls (bf16)
            _const_spec((1, E)),                                   # folded bias
            _const_spec((E, E)),                                   # fc2_cls (bf16)
            _const_spec((1, E)),                                   # ln gamma
            _const_spec((1, E)),                                   # ln beta
        ],
        out_specs=pl.BlockSpec((block_b, Lq, E), lambda i: (i, 0, 0)),
        out_shape=jax.ShapeDtypeStruct((B, Lq, E), jnp.float32),
        compiler_params=pltpu.CompilerParams(
            dimension_semantics=("parallel",),
            vmem_limit_bytes=int(vmem_limit_bytes)),
    )(x_bf, x_cls, attn_bias, hmask_pad, w0n, wq_pad, bq_pad, w_kv, b_kv,
      wc_pad, bc, w2n, g2, b2)
    return out


# ---------------------------------------------------------------------------
# deterministic parameter init (mirrors shapes in BlockCls.__init__)
# ---------------------------------------------------------------------------
def init_params(key, embed_dim, num_heads, hidden):
    ks = jax.random.split(key, 6)

    def wn_init(k, out_f, in_f):                      # WeightNormalizedLinear init
        stdv = 1.0 / math.sqrt(in_f)
        return jax.random.uniform(k, (out_f, in_f), jnp.float32, -stdv, stdv)

    def xavier_uniform(k, shape):
        bound = math.sqrt(6.0 / (shape[0] + shape[1]))
        return jax.random.uniform(k, shape, jnp.float32, -bound, bound)

    return {
        "w_fc0": wn_init(ks[0], hidden, embed_dim),
        "w_fc1": wn_init(ks[1], hidden, embed_dim),   # defined in __init__, unused in forward
        "w_fc1_cls": wn_init(ks[2], hidden, embed_dim),
        "w_fc2_cls": wn_init(ks[3], embed_dim, hidden),
        "in_proj_w": xavier_uniform(ks[4], (3 * embed_dim, embed_dim)),
        "in_proj_b": jnp.zeros((3 * embed_dim,), jnp.float32),
        "out_proj_w": wn_init(ks[5], embed_dim, embed_dim),
        "out_proj_b": jnp.zeros((embed_dim,), jnp.float32),
        "ln_gamma": jnp.ones((hidden,), jnp.float32),
        "ln_beta": jnp.zeros((hidden,), jnp.float32),
        "num_heads": num_heads,
    }


# ---------------------------------------------------------------------------
# pure-JAX f32 reference (mirrors the PyTorch math) for correctness checks
# ---------------------------------------------------------------------------
def reference_forward(params, x, x_cls, src_key_padding_mask=None):
    P = jax.lax.Precision.HIGHEST

    def wn_lin(a, w):
        wn = jnp.sqrt(jnp.sum(w ** 2, axis=1)) + WN_EPS
        return jnp.einsum('...i,oi->...o', a, w, precision=P) / wn

    B, N, E = x.shape
    nh = params["num_heads"]
    hd = E // nh
    res = x_cls
    xh = _leaky(wn_lin(x, params["w_fc0"]))

    ipw, ipb = params["in_proj_w"], params["in_proj_b"]
    q = jnp.einsum('ble,oe->blo', x_cls, ipw[:E], precision=P) + ipb[:E]
    k = jnp.einsum('ble,oe->blo', xh, ipw[E:2 * E], precision=P) + ipb[E:2 * E]
    v = jnp.einsum('ble,oe->blo', xh, ipw[2 * E:], precision=P) + ipb[2 * E:]

    def split(t):
        return t.reshape(t.shape[0], t.shape[1], nh, hd).transpose(0, 2, 1, 3)

    qh, kh, vh = split(q), split(k), split(v)
    s = jnp.einsum("bhqd,bhkd->bhqk", qh, kh, precision=P) / math.sqrt(hd)
    if src_key_padding_mask is not None:
        s = jnp.where(src_key_padding_mask[:, None, None, :], -1e30, s)
    p = jax.nn.softmax(s, axis=-1)
    ctx = jnp.einsum("bhqk,bhkd->bhqd", p, vh, precision=P)
    ctx = ctx.transpose(0, 2, 1, 3).reshape(B, -1, E)
    attn = jnp.einsum('ble,oe->blo', ctx, params["out_proj_w"], precision=P) + params["out_proj_b"]

    h1 = _leaky(wn_lin(attn, params["w_fc1_cls"]))
    t = h1 + res
    mean = t.mean(-1, keepdims=True)
    var = ((t - mean) ** 2).mean(-1, keepdims=True)
    t = (t - mean) / jnp.sqrt(var + LN_EPS) * params["ln_gamma"] + params["ln_beta"]
    return _leaky(wn_lin(t, params["w_fc2_cls"]))


def _check(out, ref):
    assert out.shape == ref.shape
    rel = float(jnp.linalg.norm(out - ref) / (jnp.linalg.norm(ref) + 1e-12))
    max_abs = float(jnp.max(jnp.abs(out - ref)))
    # bf16-input / f32-accumulate matmuls (+ approx reciprocal) vs a full-f32 reference.
    assert rel < 5e-2, f"relative L2 error too large: {rel}"
    assert max_abs < 3e-1, f"max abs error too large: {max_abs}"


if __name__ == "__main__":
    embed_dim, num_heads, hidden = 32, 4, 32   # forward requires hidden == embed_dim
    B, N, Lq = 64, 64, 1                       # batch, #points, #class tokens

    key = jax.random.PRNGKey(0)
    kp, kx, kc = jax.random.split(key, 3)
    params = init_params(kp, embed_dim, num_heads, hidden)
    x = jax.random.normal(kx, (B, N, embed_dim), jnp.float32)
    x_cls = jax.random.normal(kc, (B, Lq, embed_dim), jnp.float32)

    # no key-padding mask (auto block_b: B/2 per tile -> grid of 2 "parallel" steps)
    out = block_cls_forward(params, x, x_cls, src_key_padding_mask=None)
    out = jax.block_until_ready(out)
    _check(out, reference_forward(params, x, x_cls, None))

    # with a key-padding mask (last 16 keys of even batch elements masked out)
    kpm = (jnp.arange(N)[None, :] >= (N - 16)) & (jnp.arange(B)[:, None] % 2 == 0)
    out_m = block_cls_forward(params, x, x_cls, src_key_padding_mask=kpm)
    out_m = jax.block_until_ready(out_m)
    _check(out_m, reference_forward(params, x, x_cls, kpm))

    print("KERNEL_OK")
</pallas_src>

<mosaic_0001>
module attributes {stable_mosaic.version = 11 : i64} {
  func.func @fused_block_kernel(%arg0: i32, %arg1: memref<32x64x32xbf16, #tpu.memory_space<vmem>>, %arg2: memref<32x1x32xf32, #tpu.memory_space<vmem>>, %arg3: memref<32x1x64xf32, #tpu.memory_space<vmem>>, %arg4: memref<4x64xf32, #tpu.memory_space<vmem>>, %arg5: memref<32x32xbf16, #tpu.memory_space<vmem>>, %arg6: memref<64x32xbf16, #tpu.memory_space<vmem>>, %arg7: memref<1x64xf32, #tpu.memory_space<vmem>>, %arg8: memref<64x32xbf16, #tpu.memory_space<vmem>>, %arg9: memref<1x64xf32, #tpu.memory_space<vmem>>, %arg10: memref<32x64xbf16, #tpu.memory_space<vmem>>, %arg11: memref<1x32xf32, #tpu.memory_space<vmem>>, %arg12: memref<32x32xbf16, #tpu.memory_space<vmem>>, %arg13: memref<1x32xf32, #tpu.memory_space<vmem>>, %arg14: memref<1x32xf32, #tpu.memory_space<vmem>>, %arg15: memref<32x1x32xf32, #tpu.memory_space<vmem>>) attributes {dimension_semantics = [#tpu.dimension_semantics<parallel>], iteration_bounds = array<i64: 2>, scalar_prefetch = 0 : i64, scratch_operands = 0 : i64, tpu.core_type = #tpu.core_type<tc>, window_params = [{transform_indices = @transform_0, window_bounds = array<i64: 32, 64, 32>}, {transform_indices = @transform_1, window_bounds = array<i64: 32, 1, 32>}, {transform_indices = @transform_2, window_bounds = array<i64: 32, 1, 64>}, {pipeline_mode = #tpu.pipeline_mode<synchronous>, transform_indices = @transform_3, window_bounds = array<i64: 4, 64>}, {pipeline_mode = #tpu.pipeline_mode<synchronous>, transform_indices = @transform_4, window_bounds = array<i64: 32, 32>}, {pipeline_mode = #tpu.pipeline_mode<synchronous>, transform_indices = @transform_5, window_bounds = array<i64: 64, 32>}, {pipeline_mode = #tpu.pipeline_mode<synchronous>, transform_indices = @transform_6, window_bounds = array<i64: 1, 64>}, {pipeline_mode = #tpu.pipeline_mode<synchronous>, transform_indices = @transform_7, window_bounds = array<i64: 64, 32>}, {pipeline_mode = #tpu.pipeline_mode<synchronous>, transform_indices = @transform_8, window_bounds = array<i64: 1, 64>}, {pipeline_mode = #tpu.pipeline_mode<synchronous>, transform_indices = @transform_9, window_bounds = array<i64: 32, 64>}, {pipeline_mode = #tpu.pipeline_mode<synchronous>, transform_indices = @transform_10, window_bounds = array<i64: 1, 32>}, {pipeline_mode = #tpu.pipeline_mode<synchronous>, transform_indices = @transform_11, window_bounds = array<i64: 32, 32>}, {pipeline_mode = #tpu.pipeline_mode<synchronous>, transform_indices = @transform_12, window_bounds = array<i64: 1, 32>}, {pipeline_mode = #tpu.pipeline_mode<synchronous>, transform_indices = @transform_13, window_bounds = array<i64: 1, 32>}, {transform_indices = @transform_14, window_bounds = array<i64: 32, 1, 32>}]} {
    %c0 = arith.constant 0 : index
    %c0_0 = arith.constant 0 : index
    %0 = vector.load %arg5[%c0, %c0_0] : memref<32x32xbf16, #tpu.memory_space<vmem>>, vector<32x32xbf16>
    %c0_1 = arith.constant 0 : index
    %c0_2 = arith.constant 0 : index
    %1 = vector.load %arg6[%c0_1, %c0_2] : memref<64x32xbf16, #tpu.memory_space<vmem>>, vector<64x32xbf16>
    %c0_3 = arith.constant 0 : index
    %c0_4 = arith.constant 0 : index
    %2 = vector.load %arg7[%c0_3, %c0_4] : memref<1x64xf32, #tpu.memory_space<vmem>>, vector<1x64xf32>
    %c0_5 = arith.constant 0 : index
    %c0_6 = arith.constant 0 : index
    %3 = vector.load %arg8[%c0_5, %c0_6] : memref<64x32xbf16, #tpu.memory_space<vmem>>, vector<64x32xbf16>
    %c0_7 = arith.constant 0 : index
    %c0_8 = arith.constant 0 : index
    %4 = vector.load %arg9[%c0_7, %c0_8] : memref<1x64xf32, #tpu.memory_space<vmem>>, vector<1x64xf32>
    %c0_9 = arith.constant 0 : index
    %c0_10 = arith.constant 0 : index
    %5 = vector.load %arg10[%c0_9, %c0_10] : memref<32x64xbf16, #tpu.memory_space<vmem>>, vector<32x64xbf16>
    %c0_11 = arith.constant 0 : index
    %c0_12 = arith.constant 0 : index
    %6 = vector.load %arg11[%c0_11, %c0_12] : memref<1x32xf32, #tpu.memory_space<vmem>>, vector<1x32xf32>
    %c0_13 = arith.constant 0 : index
    %c0_14 = arith.constant 0 : index
    %7 = vector.load %arg12[%c0_13, %c0_14] : memref<32x32xbf16, #tpu.memory_space<vmem>>, vector<32x32xbf16>
    %c0_15 = arith.constant 0 : index
    %c0_16 = arith.constant 0 : index
    %8 = vector.load %arg4[%c0_15, %c0_16] : memref<4x64xf32, #tpu.memory_space<vmem>>, vector<4x64xf32>
    %c0_17 = arith.constant 0 : index
    %c0_18 = arith.constant 0 : index
    %c0_19 = arith.constant 0 : index
    %9 = vector.load %arg1[%c0_17, %c0_18, %c0_19] : memref<32x64x32xbf16, #tpu.memory_space<vmem>>, vector<32x64x32xbf16>
    %10 = vector.shape_cast %9 : vector<32x64x32xbf16> to vector<2048x32xbf16>
    %cst = arith.constant dense<0.000000e+00> : vector<2048x32xf32>
    %11 = tpu.matmul %10, %0, %cst {dimension_numbers = #tpu.dot_dimension_numbers<[1], [1], [0], [0], [0, 0, 1, 0], [], []>} : vector<2048x32xbf16>, vector<32x32xbf16>, vector<2048x32xf32> -> vector<2048x32xf32>
    %cst_20 = arith.constant 0.000000e+00 : f32
    %12 = vector.broadcast %cst_20 : f32 to vector<2048x32xf32>
    %13 = arith.cmpf oge, %11, %12 : vector<2048x32xf32>
    %cst_21 = arith.constant 0.00999999977 : f32
    %14 = vector.broadcast %cst_21 : f32 to vector<2048x32xf32>
    %15 = arith.mulf %14, %11 : vector<2048x32xf32>
    %16 = arith.select %13, %11, %15 : vector<2048x32xi1>, vector<2048x32xf32>
    %17 = arith.truncf %16 : vector<2048x32xf32> to vector<2048x32xbf16>
    %cst_22 = arith.constant dense<0.000000e+00> : vector<2048x64xf32>
    %18 = tpu.matmul %17, %3, %cst_22 {dimension_numbers = #tpu.dot_dimension_numbers<[1], [1], [0], [0], [0, 0, 1, 0], [], []>} : vector<2048x32xbf16>, vector<64x32xbf16>, vector<2048x64xf32> -> vector<2048x64xf32>
    %19 = vector.broadcast %4 : vector<1x64xf32> to vector<2048x64xf32>
    %20 = arith.addf %18, %19 : vector<2048x64xf32>
    %21 = vector.shape_cast %20 : vector<2048x64xf32> to vector<32x64x64xf32>
    %22 = arith.truncf %21 : vector<32x64x64xf32> to vector<32x64x64xbf16>
    %c0_23 = arith.constant 0 : index
    %c0_24 = arith.constant 0 : index
    %c0_25 = arith.constant 0 : index
    %23 = vector.load %arg2[%c0_23, %c0_24, %c0_25] : memref<32x1x32xf32, #tpu.memory_space<vmem>>, vector<32x1x32xf32>
    %24 = vector.shape_cast %23 : vector<32x1x32xf32> to vector<32x32xf32>
    %25 = arith.truncf %24 : vector<32x32xf32> to vector<32x32xbf16>
    %cst_26 = arith.constant dense<0.000000e+00> : vector<32x64xf32>
    %26 = tpu.matmul %25, %1, %cst_26 {dimension_numbers = #tpu.dot_dimension_numbers<[1], [1], [0], [0], [0, 0, 1, 0], [], []>} : vector<32x32xbf16>, vector<64x32xbf16>, vector<32x64xf32> -> vector<32x64xf32>
    %27 = vector.broadcast %2 : vector<1x64xf32> to vector<32x64xf32>
    %28 = arith.addf %26, %27 : vector<32x64xf32>
    %29 = vector.shape_cast %28 : vector<32x64xf32> to vector<32x1x1x64xf32>
    %30 = vector.shape_cast %8 : vector<4x64xf32> to vector<1x1x4x64xf32>
    %31 = vector.broadcast %29 : vector<32x1x1x64xf32> to vector<32x1x4x64xf32>
    %32 = vector.broadcast %30 : vector<1x1x4x64xf32> to vector<32x1x4x64xf32>
    %33 = arith.mulf %31, %32 : vector<32x1x4x64xf32>
    %34 = vector.shape_cast %33 : vector<32x1x4x64xf32> to vector<32x4x64xf32>
    %35 = arith.truncf %34 : vector<32x4x64xf32> to vector<32x4x64xbf16>
    "tpu.trace_start"() <{level = 10 : i32, message = "bqe,bke->bqk"}> : () -> ()
    %cst_27 = arith.constant dense<0.000000e+00> : vector<32x4x64xf32>
    %36 = tpu.matmul %35, %22, %cst_27 {dimension_numbers = #tpu.dot_dimension_numbers<[2], [2], [1], [1], [0, 0, 0, 1, 1, 1], [0], [0]>} : vector<32x4x64xbf16>, vector<32x64x64xbf16>, vector<32x4x64xf32> -> vector<32x4x64xf32>
    "tpu.trace_stop"() : () -> ()
    %c0_28 = arith.constant 0 : index
    %c0_29 = arith.constant 0 : index
    %c0_30 = arith.constant 0 : index
    %37 = vector.load %arg3[%c0_28, %c0_29, %c0_30] : memref<32x1x64xf32, #tpu.memory_space<vmem>>, vector<32x1x64xf32>
    %38 = vector.broadcast %37 : vector<32x1x64xf32> to vector<32x4x64xf32>
    %39 = arith.addf %36, %38 : vector<32x4x64xf32>
    %cst_31 = arith.constant dense<0xFF800000> : vector<32x4xf32>
    %40 = vector.multi_reduction <maximumf>, %39, %cst_31 [2] : vector<32x4x64xf32> to vector<32x4xf32>
    %41 = vector.shape_cast %40 : vector<32x4xf32> to vector<32x4x1xf32>
    %42 = vector.broadcast %41 : vector<32x4x1xf32> to vector<32x4x64xf32>
    %43 = arith.subf %39, %42 : vector<32x4x64xf32>
    %44 = math.exp %43 : vector<32x4x64xf32>
    %cst_32 = arith.constant dense<0.000000e+00> : vector<32x4xf32>
    %45 = vector.multi_reduction <add>, %44, %cst_32 [2] : vector<32x4x64xf32> to vector<32x4xf32>
    %46 = vector.shape_cast %45 : vector<32x4xf32> to vector<32x4x1xf32>
    %47 = tpu.reciprocal %46 {approx = true} : vector<32x4x1xf32> -> vector<32x4x1xf32>
    %48 = vector.broadcast %47 : vector<32x4x1xf32> to vector<32x4x64xf32>
    %49 = arith.mulf %44, %48 : vector<32x4x64xf32>
    %50 = arith.truncf %49 : vector<32x4x64xf32> to vector<32x4x64xbf16>
    "tpu.trace_start"() <{level = 10 : i32, message = "bqk,bke->bqe"}> : () -> ()
    %cst_33 = arith.constant dense<0.000000e+00> : vector<32x4x64xf32>
    %51 = tpu.matmul %50, %22, %cst_33 {dimension_numbers = #tpu.dot_dimension_numbers<[2], [1], [1], [2], [0, 0, 0, 1, 1, 2], [0], [0]>} : vector<32x4x64xbf16>, vector<32x64x64xbf16>, vector<32x4x64xf32> -> vector<32x4x64xf32>
    "tpu.trace_stop"() : () -> ()
    %52 = vector.shape_cast %51 : vector<32x4x64xf32> to vector<32x1x4x64xf32>
    %53 = vector.shape_cast %8 : vector<4x64xf32> to vector<1x1x4x64xf32>
    %54 = vector.broadcast %53 : vector<1x1x4x64xf32> to vector<32x1x4x64xf32>
    %55 = arith.mulf %52, %54 : vector<32x1x4x64xf32>
    %cst_34 = arith.constant dense<0.000000e+00> : vector<32x1x64xf32>
    %56 = vector.multi_reduction <add>, %55, %cst_34 [2] : vector<32x1x4x64xf32> to vector<32x1x64xf32>
    %57 = vector.shape_cast %56 : vector<32x1x64xf32> to vector<32x64xf32>
    %58 = arith.truncf %57 : vector<32x64xf32> to vector<32x64xbf16>
    %cst_35 = arith.constant dense<0.000000e+00> : vector<32x32xf32>
    %59 = tpu.matmul %58, %5, %cst_35 {dimension_numbers = #tpu.dot_dimension_numbers<[1], [1], [0], [0], [0, 0, 1, 0], [], []>} : vector<32x64xbf16>, vector<32x64xbf16>, vector<32x32xf32> -> vector<32x32xf32>
    %60 = vector.broadcast %6 : vector<1x32xf32> to vector<32x32xf32>
    %61 = arith.addf %59, %60 : vector<32x32xf32>
    %cst_36 = arith.constant 0.000000e+00 : f32
    %62 = vector.broadcast %cst_36 : f32 to vector<32x32xf32>
    %63 = arith.cmpf oge, %61, %62 : vector<32x32xf32>
    %cst_37 = arith.constant 0.00999999977 : f32
    %64 = vector.broadcast %cst_37 : f32 to vector<32x32xf32>
    %65 = arith.mulf %64, %61 : vector<32x32xf32>
    %66 = arith.select %63, %61, %65 : vector<32x32xi1>, vector<32x32xf32>
    %67 = vector.shape_cast %23 : vector<32x1x32xf32> to vector<32x32xf32>
    %68 = arith.addf %66, %67 : vector<32x32xf32>
    %cst_38 = arith.constant dense<0.000000e+00> : vector<32xf32>
    %69 = vector.multi_reduction <add>, %68, %cst_38 [1] : vector<32x32xf32> to vector<32xf32>
    %70 = vector.shape_cast %69 : vector<32xf32> to vector<32x1xf32>
    %cst_39 = arith.constant 3.200000e+01 : f32
    %71 = vector.broadcast %cst_39 : f32 to vector<32x1xf32>
    %72 = arith.divf %70, %71 : vector<32x1xf32>
    %73 = vector.broadcast %72 : vector<32x1xf32> to vector<32x32xf32>
    %74 = arith.subf %68, %73 : vector<32x32xf32>
    %75 = arith.mulf %74, %74 : vector<32x32xf32>
    %cst_40 = arith.constant dense<0.000000e+00> : vector<32xf32>
    %76 = vector.multi_reduction <add>, %75, %cst_40 [1] : vector<32x32xf32> to vector<32xf32>
    %77 = vector.shape_cast %76 : vector<32xf32> to vector<32x1xf32>
    %cst_41 = arith.constant 3.200000e+01 : f32
    %78 = vector.broadcast %cst_41 : f32 to vector<32x1xf32>
    %79 = arith.divf %77, %78 : vector<32x1xf32>
    %cst_42 = arith.constant 9.99999974E-6 : f32
    %80 = vector.broadcast %cst_42 : f32 to vector<32x1xf32>
    %81 = arith.addf %79, %80 : vector<32x1xf32>
    %82 = math.rsqrt %81 : vector<32x1xf32>
    %83 = vector.broadcast %82 : vector<32x1xf32> to vector<32x32xf32>
    %84 = arith.mulf %74, %83 : vector<32x32xf32>
    %c0_43 = arith.constant 0 : index
    %c0_44 = arith.constant 0 : index
    %85 = vector.load %arg13[%c0_43, %c0_44] : memref<1x32xf32, #tpu.memory_space<vmem>>, vector<1x32xf32>
    %86 = vector.broadcast %85 : vector<1x32xf32> to vector<32x32xf32>
    %87 = arith.mulf %84, %86 : vector<32x32xf32>
    %c0_45 = arith.constant 0 : index
    %c0_46 = arith.constant 0 : index
    %88 = vector.load %arg14[%c0_45, %c0_46] : memref<1x32xf32, #tpu.memory_space<vmem>>, vector<1x32xf32>
    %89 = vector.broadcast %88 : vector<1x32xf32> to vector<32x32xf32>
    %90 = arith.addf %87, %89 : vector<32x32xf32>
    %91 = arith.truncf %90 : vector<32x32xf32> to vector<32x32xbf16>
    %cst_47 = arith.constant dense<0.000000e+00> : vector<32x32xf32>
    %92 = tpu.matmul %91, %7, %cst_47 {dimension_numbers = #tpu.dot_dimension_numbers<[1], [1], [0], [0], [0, 0, 1, 0], [], []>} : vector<32x32xbf16>, vector<32x32xbf16>, vector<32x32xf32> -> vector<32x32xf32>
    %cst_48 = arith.constant 0.000000e+00 : f32
    %93 = vector.broadcast %cst_48 : f32 to vector<32x32xf32>
    %94 = arith.cmpf oge, %92, %93 : vector<32x32xf32>
    %cst_49 = arith.constant 0.00999999977 : f32
    %95 = vector.broadcast %cst_49 : f32 to vector<32x32xf32>
    %96 = arith.mulf %95, %92 : vector<32x32xf32>
    %97 = arith.select %94, %92, %96 : vector<32x32xi1>, vector<32x32xf32>
    %98 = vector.shape_cast %97 : vector<32x32xf32> to vector<32x1x32xf32>
    %c0_50 = arith.constant 0 : index
    %c0_51 = arith.constant 0 : index
    %c0_52 = arith.constant 0 : index
    %99 = vector.load %arg15[%c0_50, %c0_51, %c0_52] : memref<32x1x32xf32, #tpu.memory_space<vmem>>, vector<32x1x32xf32>
    tpu.vector_store %arg15[%c0_50, %c0_51, %c0_52], %98 {strides = array<i32>} : memref<32x1x32xf32, #tpu.memory_space<vmem>>, vector<32x1x32xf32>,
    return
  }
  func.func @transform_0(%arg0: i32) -> (i32, i32, i32) {
    %c0_i32 = arith.constant 0 : i32
    %c0_i32_0 = arith.constant 0 : i32
    %c0_i32_1 = arith.constant 0 : i32
    return %arg0, %c0_i32, %c0_i32_0 : i32, i32, i32
  }
  func.func @transform_1(%arg0: i32) -> (i32, i32, i32) {
    %c0_i32 = arith.constant 0 : i32
    %c0_i32_0 = arith.constant 0 : i32
    %c0_i32_1 = arith.constant 0 : i32
    return %arg0, %c0_i32, %c0_i32_0 : i32, i32, i32
  }
  func.func @transform_2(%arg0: i32) -> (i32, i32, i32) {
    %c0_i32 = arith.constant 0 : i32
    %c0_i32_0 = arith.constant 0 : i32
    %c0_i32_1 = arith.constant 0 : i32
    return %arg0, %c0_i32, %c0_i32_0 : i32, i32, i32
  }
  func.func @transform_3(%arg0: i32) -> (i32, i32) {
    %c0_i32 = arith.constant 0 : i32
    %c0_i32_0 = arith.constant 0 : i32
    %c0_i32_1 = arith.constant 0 : i32
    return %c0_i32, %c0_i32_0 : i32, i32
  }
  func.func @transform_4(%arg0: i32) -> (i32, i32) {
    %c0_i32 = arith.constant 0 : i32
    %c0_i32_0 = arith.constant 0 : i32
    %c0_i32_1 = arith.constant 0 : i32
    return %c0_i32, %c0_i32_0 : i32, i32
  }
  func.func @transform_5(%arg0: i32) -> (i32, i32) {
    %c0_i32 = arith.constant 0 : i32
    %c0_i32_0 = arith.constant 0 : i32
    %c0_i32_1 = arith.constant 0 : i32
    return %c0_i32, %c0_i32_0 : i32, i32
  }
  func.func @transform_6(%arg0: i32) -> (i32, i32) {
    %c0_i32 = arith.constant 0 : i32
    %c0_i32_0 = arith.constant 0 : i32
    %c0_i32_1 = arith.constant 0 : i32
    return %c0_i32, %c0_i32_0 : i32, i32
  }
  func.func @transform_7(%arg0: i32) -> (i32, i32) {
    %c0_i32 = arith.constant 0 : i32
    %c0_i32_0 = arith.constant 0 : i32
    %c0_i32_1 = arith.constant 0 : i32
    return %c0_i32, %c0_i32_0 : i32, i32
  }
  func.func @transform_8(%arg0: i32) -> (i32, i32) {
    %c0_i32 = arith.constant 0 : i32
    %c0_i32_0 = arith.constant 0 : i32
    %c0_i32_1 = arith.constant 0 : i32
    return %c0_i32, %c0_i32_0 : i32, i32
  }
  func.func @transform_9(%arg0: i32) -> (i32, i32) {
    %c0_i32 = arith.constant 0 : i32
    %c0_i32_0 = arith.constant 0 : i32
    %c0_i32_1 = arith.constant 0 : i32
    return %c0_i32, %c0_i32_0 : i32, i32
  }
  func.func @transform_10(%arg0: i32) -> (i32, i32) {
    %c0_i32 = arith.constant 0 : i32
    %c0_i32_0 = arith.constant 0 : i32
    %c0_i32_1 = arith.constant 0 : i32
    return %c0_i32, %c0_i32_0 : i32, i32
  }
  func.func @transform_11(%arg0: i32) -> (i32, i32) {
    %c0_i32 = arith.constant 0 : i32
    %c0_i32_0 = arith.constant 0 : i32
    %c0_i32_1 = arith.constant 0 : i32
    return %c0_i32, %c0_i32_0 : i32, i32
  }
  func.func @transform_12(%arg0: i32) -> (i32, i32) {
    %c0_i32 = arith.constant 0 : i32
    %c0_i32_0 = arith.constant 0 : i32
    %c0_i32_1 = arith.constant 0 : i32
    return %c0_i32, %c0_i32_0 : i32, i32
  }
  func.func @transform_13(%arg0: i32) -> (i32, i32) {
    %c0_i32 = arith.constant 0 : i32
    %c0_i32_0 = arith.constant 0 : i32
    %c0_i32_1 = arith.constant 0 : i32
    return %c0_i32, %c0_i32_0 : i32, i32
  }
  func.func @transform_14(%arg0: i32) -> (i32, i32, i32) {
    %c0_i32 = arith.constant 0 : i32
    %c0_i32_0 = arith.constant 0 : i32
    %c0_i32_1 = arith.constant 0 : i32
    return %arg0, %c0_i32, %c0_i32_0 : i32, i32, i32
  }
}

</mosaic_0001>

<bundles_post_ra>
// kernel: tpu_custom_call.1
= control target key start
LH: loop header
LB: loop body
LE: loop exit
PB: predicated region body
PF: predicated region fallthrough
CT: control target
= control target key end

     0   :  { %s13919_s29 = smov 0   ;;  %s17265_s0 = inlined_call_operand.vmem [shape: bf16[64,64,32], index: 0, kind: input, shape index: {}]   ;;  %s17266_s1 = inlined_call_operand.vmem [shape: f32[64,1,32], index: 1, kind: input, shape index: {}]   ;;  %s17267_s2 = inlined_call_operand.vmem [shape: f32[64,1,64], index: 2, kind: input, shape index: {}]   ;;  %s17268_s3 = inlined_call_operand.vmem [shape: f32[4,64], index: 3, kind: input, shape index: {}]   ;;  %s17269_s4 = inlined_call_operand.vmem [shape: bf16[32,32], index: 4, kind: input, shape index: {}]   ;;  %s17270_s5 = inlined_call_operand.vmem [shape: bf16[64,32], index: 5, kind: input, shape index: {}]   ;;  %s17271_s6 = inlined_call_operand.vmem [shape: f32[1,64], index: 6, kind: input, shape index: {}]   ;;  %s17272_s7 = inlined_call_operand.vmem [shape: bf16[64,32], index: 7, kind: input, shape index: {}]   ;;  %s17273_s8 = inlined_call_operand.vmem [shape: f32[1,64], index: 8, kind: input, shape index: {}]   ;;  %s17274_s9 = inlined_call_operand.vmem [shape: bf16[32,64], index: 9, kind: input, shape index: {}]   ;;  %s17275_s10 = inlined_call_operand.vmem [shape: f32[1,32], index: 10, kind: input, shape index: {}]   ;;  %s17276_s11 = inlined_call_operand.vmem [shape: bf16[32,32], index: 11, kind: input, shape index: {}]   ;;  %s17277_s12 = inlined_call_operand.vmem [shape: f32[1,32], index: 12, kind: input, shape index: {}]   ;;  %s17278_s13 = inlined_call_operand.vmem [shape: f32[1,32], index: 13, kind: input, shape index: {}]   ;;  %s17279_s14 = inlined_call_operand.vmem [shape: f32[64,1,32], index: 14, kind: output, shape index: {}]  }
   0x1 LB: > { %s11056_s30 = sadd.s32 4294967295, %s13839_s29   ;;  %p11060_p0 = scmp.ge.s32.totalorder %s13839_s29, 1  ;;  %s13839_s29 = sphi %s13919_s29, %s24_s29  }
   0x2   : > { %p434_p1 = scmp.lt.s32.totalorder %s13839_s29, 3 }
   0x4   : > { %p435_p2 = pnand %p11060_p0, %p434_p1 }
   0x6   : > { %438 = sbr.rel (%p435_p2) target bundleno = 2696 (0xa88), region = 76 }
   0xb   : > { %v13516_v0 = vld [vmem:[%s17269_s4 + $0x8] sm:$0xff]   ;;  %vm1449_vm0 = vcmask 261120   ;;  %v13517_v1 = vld [vmem:[%s17269_s4] sm:$0xff]   ;;  %s11061_s19 = sshll.u32 %s11056_s30, 5  ;;  %v13562_v17 = vld [vmem:[%s17272_s7 + $0x18] sm:$0xff]  }
   0xc   : > { %13491 = vmatprep.subr.msk.bf16.mxu0 %vm1449_vm0, %v13516_v0  ;;  %v1838_v2 = vsel %vm1449_vm0, %v13516_v0, 0  ;;  %p489_p3 = scmp.lt.s32.totalorder %s11061_s19, 63  ;;  %v1835_v3 = vsel %vm1449_vm0, %v13517_v1, 0  ;;  %13493 = vmatprep.subr.msk.bf16.mxu1 %vm1449_vm0, %v13562_v17  ;;  %v4213_v19 = vsel %vm1449_vm0, %v13562_v17, 0  ;;  %v13565_v21 = vld [vmem:[%s17272_s7 + $0x10] sm:$0xff]   ;;  %v13568_v25 = vld [vmem:[%s17272_s7 + $0x8] sm:$0xff]  }
   0xd   : > { %12172 = vmatpush3.bf16.xpose.msra.mxu0 %v1838_v2  ;;  %12432 = vmatpush3.bf16.xpose.msra.mxu1 %v4213_v19  ;;  %v4210_v23 = vsel %vm1449_vm0, %v13565_v21, 0  ;;  %v4207_v27 = vsel %vm1449_vm0, %v13568_v25, 0  ;;  %v13571_v30 = vld [vmem:[%s17272_s7] sm:$0xff]   ;;  %v13574_v35 = vld [vmem:[%s17270_s5 + $0x18] sm:$0xff]  }
   0xe   : > { %13492 = vmatprep.subr.msk.bf16.mxu0 %vm1449_vm0, %v13517_v1  ;;  %s17745_s19 = smov (!%p489_p3, %s11061_s19), 63  ;;  %13494 = vmatprep.subr.msk.bf16.mxu1 %vm1449_vm0, %v13565_v21  ;;  %v4204_v32 = vsel %vm1449_vm0, %v13571_v30, 0  ;;  %v5635_v37 = vsel %vm1449_vm0, %v13574_v35, 0 }
   0xf   : > { %s11574_s20 = sshll.u32 %s17745_s19, 5  ;;  %s14259_s30 = scalar_lea.vmem %s17266_s1, %s17745_s19 }
  0x10   : > { %s13942_s23 = scalar_lea.vmem %s17265_s0, %s11574_s20  ;;  %s15748_s16 = scalar_lea.vmem %s17267_s2, %s17745_s19 }
  0x11   : > { %v13518_v4 = vld [vmem:[%s13942_s23] sm:$0xff]   ;;  %v13519_v5 = vld [vmem:[%s13942_s23 + $0x8] sm:$0xff]   ;;  %v13520_v6 = vld [vmem:[%s13942_s23 + $0x10] sm:$0xff]   ;;  %s17172_s28 = scalar_lea.vmem %s17279_s14, %s17745_s19 }
  0x12   : > { %12175 = vmatprep.mubr.msk.bf16.mxu0 %vm1449_vm0, %v13518_v4  ;;  %v13521_v7 = vld [vmem:[%s13942_s23 + $0x18] sm:$0xff]   ;;  %v13522_v8 = vld [vmem:[%s13942_s23 + $0x20] sm:$0xff]   ;;  %v13523_v9 = vld [vmem:[%s13942_s23 + $0x28] sm:$0xff]  }
  0x13   : > { %v13524_v10 = vld [vmem:[%s13942_s23 + $0x30] sm:$0xff]   ;;  %v13525_v11 = vld [vmem:[%s13942_s23 + $0x38] sm:$0xff]   ;;  %v13526_v12 = vld [vmem:[%s13942_s23 + $0x40] sm:$0xff]  }
  0x14   : > { %v13527_v13 = vld [vmem:[%s13942_s23 + $0x48] sm:$0xff]   ;;  %v13528_v14 = vld [vmem:[%s13942_s23 + $0x50] sm:$0xff]   ;;  %v13529_v15 = vld [vmem:[%s13942_s23 + $0x58] sm:$0xff]  }
  0x15   : > { %12174 = vmatpush3.bf16.xpose.msra.mxu0 %v1835_v3  ;;  %v13530_v16 = vld [vmem:[%s13942_s23 + $0x60] sm:$0xff]   ;;  %v13531_v18 = vld [vmem:[%s13942_s23 + $0x68] sm:$0xff]   ;;  %v13532_v20 = vld [vmem:[%s13942_s23 + $0x70] sm:$0xff]   ;;  %12434 = vmatpush3.bf16.xpose.msra.mxu1 %v4210_v23 }
  0x16   : > { %v13533_v22 = vld [vmem:[%s13942_s23 + $0x78] sm:$0xff]   ;;  %v13534_v24 = vld [vmem:[%s13942_s23 + $0x80] sm:$0xff]   ;;  %v13535_v26 = vld [vmem:[%s13942_s23 + $0x88] sm:$0xff]   ;;  %13495 = vmatprep.subr.msk.bf16.mxu1 %vm1449_vm0, %v13568_v25  ;;  %13497 = vmatprep.subr.msk.bf16.mxu0 %vm1449_vm0, %v13574_v35 }
  0x17   : > { %v13536_v28 = vld [vmem:[%s13942_s23 + $0x90] sm:$0xff]   ;;  %v13537_v29 = vld [vmem:[%s13942_s23 + $0x98] sm:$0xff]   ;;  %v13538_v31 = vld [vmem:[%s13942_s23 + $0xa0] sm:$0xff]  }
  0x18   : > { %v13539_v33 = vld [vmem:[%s13942_s23 + $0xa8] sm:$0xff]   ;;  %v13540_v34 = vld [vmem:[%s13942_s23 + $0xb0] sm:$0xff]   ;;  %v13541_v36 = vld [vmem:[%s13942_s23 + $0xb8] sm:$0xff]  }
  0x19   : > { %v13542_v38 = vld [vmem:[%s13942_s23 + $0xc0] sm:$0xff]   ;;  %v13543_v39 = vld [vmem:[%s13942_s23 + $0xc8] sm:$0xff]   ;;  %v13544_v40 = vld [vmem:[%s13942_s23 + $0xd0] sm:$0xff]  }
  0x1a   : > { %v13545_v41 = vld [vmem:[%s13942_s23 + $0xd8] sm:$0xff]   ;;  %v13546_v42 = vld [vmem:[%s13942_s23 + $0xe0] sm:$0xff]   ;;  %v13547_v43 = vld [vmem:[%s13942_s23 + $0xe8] sm:$0xff]  }
  0x1b   : > { %v13548_v44 = vld [vmem:[%s13942_s23 + $0xf0] sm:$0xff]   ;;  %v13549_v45 = vld [vmem:[%s13942_s23 + $0xf8] sm:$0xff]   ;;  %v13550_v46 = vld [vmem:[%s13942_s23 + $0x100] sm:$0xff]  }
  0x1c   : > { %12176 = vmatmul.mubr.msk.bf16.vlgmr.msra.gmra.mxu0 %vm1449_vm0, %v13519_v5  ;;  %v13551_v47 = vld [vmem:[%s13942_s23 + $0x108] sm:$0xff]   ;;  %v13552_v48 = vld [vmem:[%s13942_s23 + $0x110] sm:$0xff]   ;;  %v13553_v49 = vld [vmem:[%s13942_s23 + $0x118] sm:$0xff]  }
  0x1d   : > { %12179 = vmatprep.mubr.msk.bf16.mxu0 %vm1449_vm0, %v13520_v6  ;;  %12436 = vmatpush3.bf16.xpose.msra.mxu1 %v4207_v27  ;;  %v13554_v50 = vld [vmem:[%s13942_s23 + $0x120] sm:$0xff]   ;;  %v13555_v51 = vld [vmem:[%s13942_s23 + $0x128] sm:$0xff]   ;;  %v13556_v52 = vld [vmem:[%s13942_s23 + $0x130] sm:$0xff]  }
  0x1e   : > { %13496 = vmatprep.subr.msk.bf16.mxu1 %vm1449_vm0, %v13571_v30  ;;  %12696 = vmatpush3.bf16.xpose.msra.mxu0 %v5635_v37  ;;  %v13557_v53 = vld [vmem:[%s13942_s23 + $0x138] sm:$0xff]   ;;  %v13558_v54 = vld [vmem:[%s13942_s23 + $0x140] sm:$0xff]   ;;  %v13559_v55 = vld [vmem:[%s13942_s23 + $0x148] sm:$0xff]  }
  0x1f   : > { %v13560_v56 = vld [vmem:[%s13942_s23 + $0x150] sm:$0xff]   ;;  %v13561_v57 = vld [vmem:[%s13942_s23 + $0x158] sm:$0xff]   ;;  %v13563_v58 = vld [vmem:[%s13942_s23 + $0x160] sm:$0xff]  }
  0x20   : > { %v13564_v59 = vld [vmem:[%s13942_s23 + $0x168] sm:$0xff]   ;;  %v13566_v60 = vld [vmem:[%s13942_s23 + $0x170] sm:$0xff]   ;;  %v13567_v61 = vld [vmem:[%s13942_s23 + $0x178] sm:$0xff]  }
  0x21   : > { %v13569_v62 = vld [vmem:[%s13942_s23 + $0x180] sm:$0xff]   ;;  %v13570_v63 = vld [vmem:[%s13942_s23 + $0x188] sm:$0xff]   ;;  %v13572_v0 = vld [vmem:[%s13942_s23 + $0x190] sm:$0xff]  }
  0x22   : > { %v13573_v4 = vld [vmem:[%s13942_s23 + $0x198] sm:$0xff]   ;;  %v13577_v23 = vld [vmem:[%s13942_s23 + $0x1b0] sm:$0xff]  }
  0x23   : > { %v13578_v37 = vld [vmem:[%s13942_s23 + $0x1b8] sm:$0xff]  }
  0x24   : > { %12180 = vmatmul.mubr.msk.bf16.gmra.mxu0 %vm1449_vm0, %v13521_v7  ;;  %v13575_v7 = vld [vmem:[%s13942_s23 + $0x1a0] sm:$0xff]  }
  0x25   : > { %12183 = vmatprep.mubr.msk.bf16.mxu0 %vm1449_vm0, %v13522_v8  ;;  %12438 = vmatpush3.bf16.xpose.msra.mxu1 %v4204_v32 }
  0x2c   : > { %12184 = vmatmul.mubr.msk.bf16.gmra.mxu0 %vm1449_vm0, %v13523_v9 }
  0x2d   : > { %12187 = vmatprep.mubr.msk.bf16.mxu0 %vm1449_vm0, %v13524_v10 }
  0x34   : > { %12188 = vmatmul.mubr.msk.bf16.gmra.mxu0 %vm1449_vm0, %v13525_v11 }
  0x35   : > { %12191 = vmatprep.mubr.msk.bf16.mxu0 %vm1449_vm0, %v13526_v12 }
  0x3c   : > { %12192 = vmatmul.mubr.msk.bf16.gmra.mxu0 %vm1449_vm0, %v13527_v13 }
  0x3d   : > { %12195 = vmatprep.mubr.msk.bf16.mxu0 %vm1449_vm0, %v13528_v14 }
  0x44   : > { %12196 = vmatmul.mubr.msk.bf16.gmra.mxu0 %vm1449_vm0, %v13529_v15 }
  0x45   : > { %12199 = vmatprep.mubr.msk.bf16.mxu0 %vm1449_vm0, %v13530_v16 }
  0x4c   : > { %12200 = vmatmul.mubr.msk.bf16.gmra.mxu0 %vm1449_vm0, %v13531_v18 }
  0x4d   : > { %12203 = vmatprep.mubr.msk.bf16.mxu0 %vm1449_vm0, %v13532_v20  ;;  %v13576_v20 = vld [vmem:[%s13942_s23 + $0x1a8] sm:$0xff]  }
  0x54   : > { %12204 = vmatmul.mubr.msk.bf16.gmra.mxu0 %vm1449_vm0, %v13533_v22 }
  0x55   : > { %12207 = vmatprep.mubr.msk.bf16.mxu0 %vm1449_vm0, %v13534_v24 }
  0x5c   : > { %12208 = vmatmul.mubr.msk.bf16.gmra.mxu0 %vm1449_vm0, %v13535_v26 }
  0x5d   : > { %12211 = vmatprep.mubr.msk.bf16.mxu0 %vm1449_vm0, %v13536_v28 }
  0x64   : > { %12212 = vmatmul.mubr.msk.bf16.gmra.mxu0 %vm1449_vm0, %v13537_v29 }
  0x65   : > { %12215 = vmatprep.mubr.msk.bf16.mxu0 %vm1449_vm0, %v13538_v31 }
  0x6c   : > { %12216 = vmatmul.mubr.msk.bf16.gmra.mxu0 %vm1449_vm0, %v13539_v33 }
  0x6d   : > { %12219 = vmatprep.mubr.msk.bf16.mxu0 %vm1449_vm0, %v13540_v34  ;;  %v13607_v34 = vld [vmem:[%s17270_s5 + $0x10] sm:$0xff]  }
  0x6e   : > { %13498 = vmatprep.subr.msk.bf16.mxu0 %vm1449_vm0, %v13607_v34 }
  0x74   : > { %12220 = vmatmul.mubr.msk.bf16.gmra.mxu0 %vm1449_vm0, %v13541_v36 }
  0x75   : > { %12223 = vmatprep.mubr.msk.bf16.mxu0 %vm1449_vm0, %v13542_v38  ;;  %v5632_v38 = vsel %vm1449_vm0, %v13607_v34, 0 }
  0x76   : > { %12698 = vmatpush3.bf16.xpose.msra.mxu0 %v5632_v38  ;;  %v13586_v38 = vld [vmem:[%s13942_s23 + $0x1f8] sm:$0xff]  }
  0x7c   : > { %12224 = vmatmul.mubr.msk.bf16.gmra.mxu0 %vm1449_vm0, %v13543_v39 }
  0x7d   : > { %12227 = vmatprep.mubr.msk.bf16.mxu0 %vm1449_vm0, %v13544_v40 }
  0x84   : > { %12228 = vmatmul.mubr.msk.bf16.gmra.mxu0 %vm1449_vm0, %v13545_v41  ;;  %v13579_v41 = vld [vmem:[%s13942_s23 + $0x1c0] sm:$0xff]  }
  0x85   : > { %12231 = vmatprep.mubr.msk.bf16.mxu0 %vm1449_vm0, %v13546_v42 }
  0x8c   : > { %12232 = vmatmul.mubr.msk.bf16.gmra.mxu0 %vm1449_vm0, %v13547_v43 }
  0x8d   : > { %12235 = vmatprep.mubr.msk.bf16.mxu0 %vm1449_vm0, %v13548_v44 }
  0x94   : > { %12236 = vmatmul.mubr.msk.bf16.gmra.mxu0 %vm1449_vm0, %v13549_v45 }
  0x95   : > { %12239 = vmatprep.mubr.msk.bf16.mxu0 %vm1449_vm0, %v13550_v46 }
  0x9c   : > { %12240 = vmatmul.mubr.msk.bf16.gmra.mxu0 %vm1449_vm0, %v13551_v47 }
  0x9d   : > { %12243 = vmatprep.mubr.msk.bf16.mxu0 %vm1449_vm0, %v13552_v48 }
  0xa4   : > { %12244 = vmatmul.mubr.msk.bf16.gmra.mxu0 %vm1449_vm0, %v13553_v49 }
  0xa5   : > { %12247 = vmatprep.mubr.msk.bf16.mxu0 %vm1449_vm0, %v13554_v50 }
  0xac   : > { %12248 = vmatmul.mubr.msk.bf16.gmra.mxu0 %vm1449_vm0, %v13555_v51 }
  0xad   : > { %12251 = vmatprep.mubr.msk.bf16.mxu0 %vm1449_vm0, %v13556_v52 }
  0xb4   : > { %12252 = vmatmul.mubr.msk.bf16.gmra.mxu0 %vm1449_vm0, %v13557_v53 }
  0xb5   : > { %12255 = vmatprep.mubr.msk.bf16.mxu0 %vm1449_vm0, %v13558_v54  ;;  %v13580_v54 = vld [vmem:[%s13942_s23 + $0x1c8] sm:$0xff]  }
  0xbc   : > { %12256 = vmatmul.mubr.msk.bf16.gmra.mxu0 %vm1449_vm0, %v13559_v55 }
  0xbd   : > { %12259 = vmatprep.mubr.msk.bf16.mxu0 %vm1449_vm0, %v13560_v56 }
  0xc4   : > { %12260 = vmatmul.mubr.msk.bf16.gmra.mxu0 %vm1449_vm0, %v13561_v57  ;;  %v13581_v57 = vld [vmem:[%s13942_s23 + $0x1d0] sm:$0xff]  }
  0xc5   : > { %12263 = vmatprep.mubr.msk.bf16.mxu0 %vm1449_vm0, %v13563_v58 }
  0xcc   : > { %12264 = vmatmul.mubr.msk.bf16.gmra.mxu0 %vm1449_vm0, %v13564_v59 }
  0xcd   : > { %12267 = vmatprep.mubr.msk.bf16.mxu0 %vm1449_vm0, %v13566_v60 }
  0xd4   : > { %12268 = vmatmul.mubr.msk.bf16.gmra.mxu0 %vm1449_vm0, %v13567_v61 }
  0xd5   : > { %12271 = vmatprep.mubr.msk.bf16.mxu0 %vm1449_vm0, %v13569_v62 }
  0xdc   : > { %v12177_v1 = vpop.f32.mrf.mxu0  ;;  %12272 = vmatmul.mubr.msk.bf16.gmra.mxu0 %vm1449_vm0, %v13570_v63 }
  0xdd   : > { %12275 = vmatprep.mubr.msk.bf16.mxu0 %vm1449_vm0, %v13572_v0  ;;  %v3155_v8 = vmul.f32 0.01, %v12177_v1  ;;  %vm2899_vm3 = vcmp.ge.f32.partialorder %v12177_v1, 0.0 }
  0xde   : > { %v1874_v2 = vpop.f32.mrf.mxu0 }
  0xdf   : > { %v3153_v5 = vmul.f32 0.01, %v1874_v2  ;;  %vm2897_vm2 = vcmp.ge.f32.partialorder %v1874_v2, 0.0  ;;  %v3411_v15 = vsel %vm2899_vm3, %v12177_v1, %v3155_v8 }
  0xe0   : > { %v12178_v3 = vpop.f32.mrf.mxu0 }
  0xe1   : > { %vm2900_vm1 = vcmp.ge.f32.partialorder %v12178_v3, 0.0  ;;  %v3156_v6 = vmul.f32 0.01, %v12178_v3  ;;  %v3409_v13 = vsel %vm2897_vm2, %v1874_v2, %v3153_v5 }
  0xe2   : > { %v1877_v9 = vpop.f32.mrf.mxu0 }
  0xe3   : > { %v3154_v10 = vmul.f32 0.01, %v1877_v9  ;;  %vm2898_vm4 = vcmp.ge.f32.partialorder %v1877_v9, 0.0  ;;  %v3412_v11 = vsel %vm2900_vm1, %v12178_v3, %v3156_v6  ;;  %v13582_v6 = vld [vmem:[%s13942_s23 + $0x1d8] sm:$0xff]  }
  0xe4   : > { %v12181_v12 = vpop.f32.mrf.mxu0  ;;  %12276 = vmatmul.mubr.msk.bf16.gmra.mxu0 %vm1449_vm0, %v13573_v4  ;;  %v3666_v18 = vpack.c.bf16 %v3412_v11, %v3411_v15 }
  0xe5   : > { %v3410_v14 = vsel %vm2898_vm4, %v1877_v9, %v3154_v10  ;;  %12279 = vmatprep.mubr.msk.bf16.mxu0 %vm1449_vm0, %v13575_v7  ;;  %v3159_v24 = vmul.f32 0.01, %v12181_v12  ;;  %vm2903_vm7 = vcmp.ge.f32.partialorder %v12181_v12, 0.0  ;;  %v13583_v9 = vld [vmem:[%s13942_s23 + $0x1e0] sm:$0xff]  }
  0xe6   : > { %v1890_v16 = vpop.f32.mrf.mxu0  ;;  %v3665_v17 = vpack.c.bf16 %v3410_v14, %v3409_v13 }
  0xe7   : > { %v3157_v21 = vmul.f32 0.01, %v1890_v16  ;;  %vm2901_vm6 = vcmp.ge.f32.partialorder %v1890_v16, 0.0  ;;  %v3415_v31 = vsel %vm2903_vm7, %v12181_v12, %v3159_v24 }
  0xe8   : > { %v12182_v19 = vpop.f32.mrf.mxu0  ;;  %12439 = vmatprep.mubr.msk.bf16.mxu1 %vm1449_vm0, %v3665_v17 }
  0xe9   : > { %vm2904_vm5 = vcmp.ge.f32.partialorder %v12182_v19, 0.0  ;;  %v3160_v22 = vmul.f32 0.01, %v12182_v19  ;;  %12440 = vmatmul.mubr.msk.bf16.vlgmr.msra.gmra.mxu1 %vm1449_vm0, %v3666_v18  ;;  %v3413_v29 = vsel %vm2901_vm6, %v1890_v16, %v3157_v21 }
  0xea   : > { %v1893_v25 = vpop.f32.mrf.mxu0 }
  0xeb   : > { %vm2902_vm8 = vcmp.ge.f32.partialorder %v1893_v25, 0.0  ;;  %v3158_v26 = vmul.f32 0.01, %v1893_v25  ;;  %v3416_v27 = vsel %vm2904_vm5, %v12182_v19, %v3160_v22  ;;  %v13584_v22 = vld [vmem:[%s13942_s23 + $0x1e8] sm:$0xff]  }
  0xec   : > { %v12185_v28 = vpop.f32.mrf.mxu0  ;;  %12280 = vmatmul.mubr.msk.bf16.gmra.mxu0 %vm1449_vm0, %v13576_v20  ;;  %v3668_v35 = vpack.c.bf16 %v3416_v27, %v3415_v31 }
  0xed   : > { %v3414_v30 = vsel %vm2902_vm8, %v1893_v25, %v3158_v26  ;;  %12283 = vmatprep.mubr.msk.bf16.mxu0 %vm1449_vm0, %v13577_v23  ;;  %v3163_v42 = vmul.f32 0.01, %v12185_v28  ;;  %vm2907_vm11 = vcmp.ge.f32.partialorder %v12185_v28, 0.0  ;;  %v13585_v25 = vld [vmem:[%s13942_s23 + $0x1f0] sm:$0xff]  }
  0xee   : > { %v3667_v32 = vpack.c.bf16 %v3414_v30, %v3413_v29  ;;  %v1906_v33 = vpop.f32.mrf.mxu0 }
  0xef   : > { %v3161_v39 = vmul.f32 0.01, %v1906_v33  ;;  %vm2905_vm10 = vcmp.ge.f32.partialorder %v1906_v33, 0.0  ;;  %v3419_v49 = vsel %vm2907_vm11, %v12185_v28, %v3163_v42 }
  0xf0   : > { %v12186_v36 = vpop.f32.mrf.mxu0  ;;  %12443 = vmatprep.mubr.msk.bf16.mxu1 %vm1449_vm0, %v3667_v32 }
  0xf1   : > { %vm2908_vm9 = vcmp.ge.f32.partialorder %v12186_v36, 0.0  ;;  %v3164_v40 = vmul.f32 0.01, %v12186_v36  ;;  %12444 = vmatmul.mubr.msk.bf16.gmra.mxu1 %vm1449_vm0, %v3668_v35  ;;  %v3417_v47 = vsel %vm2905_vm10, %v1906_v33, %v3161_v39 }
  0xf2   : > { %v1909_v43 = vpop.f32.mrf.mxu0 }
  0xf3   : > { %vm2906_vm12 = vcmp.ge.f32.partialorder %v1909_v43, 0.0  ;;  %v3162_v44 = vmul.f32 0.01, %v1909_v43  ;;  %v3420_v45 = vsel %vm2908_vm9, %v12186_v36, %v3164_v40 }
  0xf4   : > { %v12189_v46 = vpop.f32.mrf.mxu0  ;;  %12284 = vmatmul.mubr.msk.bf16.gmra.mxu0 %vm1449_vm0, %v13578_v37  ;;  %v3670_v52 = vpack.c.bf16 %v3420_v45, %v3419_v49 }
  0xf5   : > { %v3418_v48 = vsel %vm2906_vm12, %v1909_v43, %v3162_v44  ;;  %12287 = vmatprep.mubr.msk.bf16.mxu0 %vm1449_vm0, %v13579_v41  ;;  %v3167_v58 = vmul.f32 0.01, %v12189_v46  ;;  %vm2911_vm15 = vcmp.ge.f32.partialorder %v12189_v46, 0.0  ;;  %v13587_v41 = vld [vmem:[%s13942_s23 + $0x200] sm:$0xff]  }
  0xf6   : > { %v3669_v50 = vpack.c.bf16 %v3418_v48, %v3417_v47  ;;  %v1922_v51 = vpop.f32.mrf.mxu0 }
  0xf7   : > { %v3165_v55 = vmul.f32 0.01, %v1922_v51  ;;  %vm2909_vm14 = vcmp.ge.f32.partialorder %v1922_v51, 0.0  ;;  %v3423_v1 = vsel %vm2911_vm15, %v12189_v46, %v3167_v58 }
  0xf8   : > { %v12190_v53 = vpop.f32.mrf.mxu0  ;;  %12447 = vmatprep.mubr.msk.bf16.mxu1 %vm1449_vm0, %v3669_v50 }
  0xf9   : > { %vm2912_vm13 = vcmp.ge.f32.partialorder %v12190_v53, 0.0  ;;  %v3168_v56 = vmul.f32 0.01, %v12190_v53  ;;  %12448 = vmatmul.mubr.msk.bf16.gmra.mxu1 %vm1449_vm0, %v3670_v52  ;;  %v3421_v63 = vsel %vm2909_vm14, %v1922_v51, %v3165_v55 }
  0xfa   : > { %v1925_v59 = vpop.f32.mrf.mxu0 }
  0xfb   : > { %vm2910_vm1 = vcmp.ge.f32.partialorder %v1925_v59, 0.0  ;;  %v3166_v60 = vmul.f32 0.01, %v1925_v59  ;;  %v3424_v61 = vsel %vm2912_vm13, %v12190_v53, %v3168_v56 }
  0xfc   : > { %v12193_v62 = vpop.f32.mrf.mxu0  ;;  %12288 = vmatmul.mubr.msk.bf16.gmra.mxu0 %vm1449_vm0, %v13580_v54  ;;  %v3672_v4 = vpack.c.bf16 %v3424_v61, %v3423_v1  ;;  %v13588_v54 = vld [vmem:[%s13942_s23 + $0x208] sm:$0xff]  }
  0xfd   : > { %v3422_v0 = vsel %vm2910_vm1, %v1925_v59, %v3166_v60  ;;  %12291 = vmatprep.mubr.msk.bf16.mxu0 %vm1449_vm0, %v13581_v57  ;;  %v3171_v10 = vmul.f32 0.01, %v12193_v62  ;;  %vm2915_vm4 = vcmp.ge.f32.partialorder %v12193_v62, 0.0  ;;  %v13589_v57 = vld [vmem:[%s13942_s23 + $0x210] sm:$0xff]  }
  0xfe   : > { %v3671_v2 = vpack.c.bf16 %v3422_v0, %v3421_v63  ;;  %v1938_v3 = vpop.f32.mrf.mxu0 }
  0xff   : > { %v3169_v7 = vmul.f32 0.01, %v1938_v3  ;;  %vm2913_vm3 = vcmp.ge.f32.partialorder %v1938_v3, 0.0  ;;  %v3427_v17 = vsel %vm2915_vm4, %v12193_v62, %v3171_v10 }
 0x100   : > { %v12194_v5 = vpop.f32.mrf.mxu0  ;;  %12451 = vmatprep.mubr.msk.bf16.mxu1 %vm1449_vm0, %v3671_v2 }
 0x101   : > { %vm2916_vm2 = vcmp.ge.f32.partialorder %v12194_v5, 0.0  ;;  %v3172_v8 = vmul.f32 0.01, %v12194_v5  ;;  %12452 = vmatmul.mubr.msk.bf16.gmra.mxu1 %vm1449_vm0, %v3672_v4  ;;  %v3425_v15 = vsel %vm2913_vm3, %v1938_v3, %v3169_v7 }
 0x102   : > { %v1941_v11 = vpop.f32.mrf.mxu0 }
 0x103   : > { %vm2914_vm5 = vcmp.ge.f32.partialorder %v1941_v11, 0.0  ;;  %v3170_v12 = vmul.f32 0.01, %v1941_v11  ;;  %v3428_v13 = vsel %vm2916_vm2, %v12194_v5, %v3172_v8 }
 0x104   : > { %v12197_v14 = vpop.f32.mrf.mxu0  ;;  %12292 = vmatmul.mubr.msk.bf16.gmra.mxu0 %vm1449_vm0, %v13582_v6  ;;  %v3674_v20 = vpack.c.bf16 %v3428_v13, %v3427_v17  ;;  %v13590_v6 = vld [vmem:[%s13942_s23 + $0x218] sm:$0xff]  }
 0x105   : > { %v3426_v16 = vsel %vm2914_vm5, %v1941_v11, %v3170_v12  ;;  %12295 = vmatprep.mubr.msk.bf16.mxu0 %vm1449_vm0, %v13583_v9  ;;  %v3175_v26 = vmul.f32 0.01, %v12197_v14  ;;  %vm2919_vm8 = vcmp.ge.f32.partialorder %v12197_v14, 0.0  ;;  %v13591_v9 = vld [vmem:[%s13942_s23 + $0x220] sm:$0xff]  }
 0x106   : > { %v3673_v18 = vpack.c.bf16 %v3426_v16, %v3425_v15  ;;  %v1954_v19 = vpop.f32.mrf.mxu0 }
 0x107   : > { %v3173_v23 = vmul.f32 0.01, %v1954_v19  ;;  %vm2917_vm7 = vcmp.ge.f32.partialorder %v1954_v19, 0.0  ;;  %v3431_v33 = vsel %vm2919_vm8, %v12197_v14, %v3175_v26 }
 0x108   : > { %v12198_v21 = vpop.f32.mrf.mxu0  ;;  %12455 = vmatprep.mubr.msk.bf16.mxu1 %vm1449_vm0, %v3673_v18 }
 0x109   : > { %vm2920_vm6 = vcmp.ge.f32.partialorder %v12198_v21, 0.0  ;;  %v3176_v24 = vmul.f32 0.01, %v12198_v21  ;;  %12456 = vmatmul.mubr.msk.bf16.gmra.mxu1 %vm1449_vm0, %v3674_v20  ;;  %v3429_v31 = vsel %vm2917_vm7, %v1954_v19, %v3173_v23 }
 0x10a   : > { %v1957_v27 = vpop.f32.mrf.mxu0 }
 0x10b   : > { %vm2918_vm9 = vcmp.ge.f32.partialorder %v1957_v27, 0.0  ;;  %v3174_v28 = vmul.f32 0.01, %v1957_v27  ;;  %v3432_v29 = vsel %vm2920_vm6, %v12198_v21, %v3176_v24 }
 0x10c   : > { %v12201_v30 = vpop.f32.mrf.mxu0  ;;  %12296 = vmatmul.mubr.msk.bf16.gmra.mxu0 %vm1449_vm0, %v13584_v22  ;;  %v3676_v36 = vpack.c.bf16 %v3432_v29, %v3431_v33  ;;  %v13592_v22 = vld [vmem:[%s13942_s23 + $0x228] sm:$0xff]  }
 0x10d   : > { %v3430_v32 = vsel %vm2918_vm9, %v1957_v27, %v3174_v28  ;;  %12299 = vmatprep.mubr.msk.bf16.mxu0 %vm1449_vm0, %v13585_v25  ;;  %v3179_v42 = vmul.f32 0.01, %v12201_v30  ;;  %vm2923_vm12 = vcmp.ge.f32.partialorder %v12201_v30, 0.0  ;;  %v13593_v25 = vld [vmem:[%s13942_s23 + $0x230] sm:$0xff]  }
 0x10e   : > { %v3675_v34 = vpack.c.bf16 %v3430_v32, %v3429_v31  ;;  %v1970_v35 = vpop.f32.mrf.mxu0 }
 0x10f   : > { %v3177_v39 = vmul.f32 0.01, %v1970_v35  ;;  %vm2921_vm11 = vcmp.ge.f32.partialorder %v1970_v35, 0.0  ;;  %v3435_v49 = vsel %vm2923_vm12, %v12201_v30, %v3179_v42 }
 0x110   : > { %v12202_v37 = vpop.f32.mrf.mxu0  ;;  %12459 = vmatprep.mubr.msk.bf16.mxu1 %vm1449_vm0, %v3675_v34 }
 0x111   : > { %vm2924_vm10 = vcmp.ge.f32.partialorder %v12202_v37, 0.0  ;;  %v3180_v40 = vmul.f32 0.01, %v12202_v37  ;;  %12460 = vmatmul.mubr.msk.bf16.gmra.mxu1 %vm1449_vm0, %v3676_v36  ;;  %v3433_v47 = vsel %vm2921_vm11, %v1970_v35, %v3177_v39 }
 0x112   : > { %v1973_v43 = vpop.f32.mrf.mxu0 }
 0x113   : > { %vm2922_vm13 = vcmp.ge.f32.partialorder %v1973_v43, 0.0  ;;  %v3178_v44 = vmul.f32 0.01, %v1973_v43  ;;  %v3436_v45 = vsel %vm2924_vm10, %v12202_v37, %v3180_v40 }
 0x114   : > { %v12205_v46 = vpop.f32.mrf.mxu0  ;;  %12300 = vmatmul.mubr.msk.bf16.gmra.mxu0 %vm1449_vm0, %v13586_v38  ;;  %v3678_v52 = vpack.c.bf16 %v3436_v45, %v3435_v49  ;;  %v13594_v38 = vld [vmem:[%s13942_s23 + $0x238] sm:$0xff]  }
 0x115   : > { %v3434_v48 = vsel %vm2922_vm13, %v1973_v43, %v3178_v44  ;;  %12303 = vmatprep.mubr.msk.bf16.mxu0 %vm1449_vm0, %v13587_v41  ;;  %v3183_v58 = vmul.f32 0.01, %v12205_v46  ;;  %vm2927_vm1 = vcmp.ge.f32.partialorder %v12205_v46, 0.0  ;;  %v13595_v41 = vld [vmem:[%s13942_s23 + $0x240] sm:$0xff]  }
 0x116   : > { %v3677_v50 = vpack.c.bf16 %v3434_v48, %v3433_v47  ;;  %v1986_v51 = vpop.f32.mrf.mxu0 }
 0x117   : > { %v3181_v55 = vmul.f32 0.01, %v1986_v51  ;;  %vm2925_vm15 = vcmp.ge.f32.partialorder %v1986_v51, 0.0  ;;  %v3439_v1 = vsel %vm2927_vm1, %v12205_v46, %v3183_v58 }
 0x118   : > { %v12206_v53 = vpop.f32.mrf.mxu0  ;;  %12463 = vmatprep.mubr.msk.bf16.mxu1 %vm1449_vm0, %v3677_v50 }
 0x119   : > { %vm2928_vm14 = vcmp.ge.f32.partialorder %v12206_v53, 0.0  ;;  %v3184_v56 = vmul.f32 0.01, %v12206_v53  ;;  %12464 = vmatmul.mubr.msk.bf16.gmra.mxu1 %vm1449_vm0, %v3678_v52  ;;  %v3437_v63 = vsel %vm2925_vm15, %v1986_v51, %v3181_v55  ;;  %v13597_v55 = vld [vmem:[%s13942_s23 + $0x250] sm:$0xff]  }
 0x11a   : > { %v1989_v59 = vpop.f32.mrf.mxu0 }
 0x11b   : > { %vm2926_vm2 = vcmp.ge.f32.partialorder %v1989_v59, 0.0  ;;  %v3182_v60 = vmul.f32 0.01, %v1989_v59  ;;  %v3440_v61 = vsel %vm2928_vm14, %v12206_v53, %v3184_v56 }
 0x11c   : > { %v12209_v62 = vpop.f32.mrf.mxu0  ;;  %12304 = vmatmul.mubr.msk.bf16.gmra.mxu0 %vm1449_vm0, %v13588_v54  ;;  %v3680_v4 = vpack.c.bf16 %v3440_v61, %v3439_v1  ;;  %v13596_v54 = vld [vmem:[%s13942_s23 + $0x248] sm:$0xff]  }
 0x11d   : > { %v3438_v0 = vsel %vm2926_vm2, %v1989_v59, %v3182_v60  ;;  %12307 = vmatprep.mubr.msk.bf16.mxu0 %vm1449_vm0, %v13589_v57  ;;  %v3187_v10 = vmul.f32 0.01, %v12209_v62  ;;  %vm2931_vm5 = vcmp.ge.f32.partialorder %v12209_v62, 0.0  ;;  %v17280_v60 = vmov 0.0  }
 0x11e   : > { %v3679_v2 = vpack.c.bf16 %v3438_v0, %v3437_v63  ;;  %v2002_v3 = vpop.f32.mrf.mxu0  ;;  %12707 = vmatprep.subr.bf16.mxu1 %v17280_v60 }
 0x11f   : > { %v3185_v7 = vmul.f32 0.01, %v2002_v3  ;;  %vm2929_vm4 = vcmp.ge.f32.partialorder %v2002_v3, 0.0  ;;  %v3443_v17 = vsel %vm2931_vm5, %v12209_v62, %v3187_v10  ;;  %v13599_v10 = vld [vmem:[%s13942_s23 + $0x260] sm:$0xff]  }
 0x120   : > { %v12210_v5 = vpop.f32.mrf.mxu0  ;;  %12467 = vmatprep.mubr.msk.bf16.mxu1 %vm1449_vm0, %v3679_v2 }
 0x121   : > { %vm2932_vm3 = vcmp.ge.f32.partialorder %v12210_v5, 0.0  ;;  %v3188_v8 = vmul.f32 0.01, %v12210_v5  ;;  %12468 = vmatmul.mubr.msk.bf16.gmra.mxu1 %vm1449_vm0, %v3680_v4  ;;  %v3441_v15 = vsel %vm2929_vm4, %v2002_v3, %v3185_v7  ;;  %v13598_v7 = vld [vmem:[%s13942_s23 + $0x258] sm:$0xff]  }
 0x122   : > { %v2005_v11 = vpop.f32.mrf.mxu0 }
 0x123   : > { %vm2930_vm6 = vcmp.ge.f32.partialorder %v2005_v11, 0.0  ;;  %v3186_v12 = vmul.f32 0.01, %v2005_v11  ;;  %v3444_v13 = vsel %vm2932_vm3, %v12210_v5, %v3188_v8 }
 0x124   : > { %v12213_v14 = vpop.f32.mrf.mxu0  ;;  %12308 = vmatmul.mubr.msk.bf16.gmra.mxu0 %vm1449_vm0, %v13590_v6  ;;  %v3682_v20 = vpack.c.bf16 %v3444_v13, %v3443_v17 }
 0x125   : > { %v3442_v16 = vsel %vm2930_vm6, %v2005_v11, %v3186_v12  ;;  %12311 = vmatprep.mubr.msk.bf16.mxu0 %vm1449_vm0, %v13591_v9  ;;  %v3191_v26 = vmul.f32 0.01, %v12213_v14  ;;  %vm2935_vm9 = vcmp.ge.f32.partialorder %v12213_v14, 0.0 }
 0x126   : > { %v3681_v18 = vpack.c.bf16 %v3442_v16, %v3441_v15  ;;  %v2018_v19 = vpop.f32.mrf.mxu0 }
 0x127   : > { %v3189_v23 = vmul.f32 0.01, %v2018_v19  ;;  %vm2933_vm8 = vcmp.ge.f32.partialorder %v2018_v19, 0.0  ;;  %v3447_v33 = vsel %vm2935_vm9, %v12213_v14, %v3191_v26  ;;  %v13601_v26 = vld [vmem:[%s13942_s23 + $0x270] sm:$0xff]  }
 0x128   : > { %v12214_v21 = vpop.f32.mrf.mxu0  ;;  %12471 = vmatprep.mubr.msk.bf16.mxu1 %vm1449_vm0, %v3681_v18 }
 0x129   : > { %vm2936_vm7 = vcmp.ge.f32.partialorder %v12214_v21, 0.0  ;;  %v3192_v24 = vmul.f32 0.01, %v12214_v21  ;;  %12472 = vmatmul.mubr.msk.bf16.gmra.mxu1 %vm1449_vm0, %v3682_v20  ;;  %v3445_v31 = vsel %vm2933_vm8, %v2018_v19, %v3189_v23  ;;  %v13600_v23 = vld [vmem:[%s13942_s23 + $0x268] sm:$0xff]  }
 0x12a   : > { %v2021_v27 = vpop.f32.mrf.mxu0 }
 0x12b   : > { %vm2934_vm10 = vcmp.ge.f32.partialorder %v2021_v27, 0.0  ;;  %v3190_v28 = vmul.f32 0.01, %v2021_v27  ;;  %v3448_v29 = vsel %vm2936_vm7, %v12214_v21, %v3192_v24 }
 0x12c   : > { %v12217_v30 = vpop.f32.mrf.mxu0  ;;  %12312 = vmatmul.mubr.msk.bf16.gmra.mxu0 %vm1449_vm0, %v13592_v22  ;;  %v3684_v36 = vpack.c.bf16 %v3448_v29, %v3447_v33 }
 0x12d   : > { %v3446_v32 = vsel %vm2934_vm10, %v2021_v27, %v3190_v28  ;;  %12315 = vmatprep.mubr.msk.bf16.mxu0 %vm1449_vm0, %v13593_v25  ;;  %v3195_v42 = vmul.f32 0.01, %v12217_v30  ;;  %vm2939_vm13 = vcmp.ge.f32.partialorder %v12217_v30, 0.0 }
 0x12e   : > { %v3683_v34 = vpack.c.bf16 %v3446_v32, %v3445_v31  ;;  %v2034_v35 = vpop.f32.mrf.mxu0 }
 0x12f   : > { %v3193_v39 = vmul.f32 0.01, %v2034_v35  ;;  %vm2937_vm12 = vcmp.ge.f32.partialorder %v2034_v35, 0.0  ;;  %v3451_v49 = vsel %vm2939_vm13, %v12217_v30, %v3195_v42  ;;  %v13603_v42 = vld [vmem:[%s13942_s23 + $0x280] sm:$0xff]  }
 0x130   : > { %v12218_v37 = vpop.f32.mrf.mxu0  ;;  %12475 = vmatprep.mubr.msk.bf16.mxu1 %vm1449_vm0, %v3683_v34 }
 0x131   : > { %vm2940_vm11 = vcmp.ge.f32.partialorder %v12218_v37, 0.0  ;;  %v3196_v40 = vmul.f32 0.01, %v12218_v37  ;;  %12476 = vmatmul.mubr.msk.bf16.gmra.mxu1 %vm1449_vm0, %v3684_v36  ;;  %v3449_v47 = vsel %vm2937_vm12, %v2034_v35, %v3193_v39  ;;  %v13602_v39 = vld [vmem:[%s13942_s23 + $0x278] sm:$0xff]  }
 0x132   : > { %v2037_v43 = vpop.f32.mrf.mxu0 }
 0x133   : > { %vm2938_vm14 = vcmp.ge.f32.partialorder %v2037_v43, 0.0  ;;  %v3194_v44 = vmul.f32 0.01, %v2037_v43  ;;  %v3452_v45 = vsel %vm2940_vm11, %v12218_v37, %v3196_v40 }
 0x134   : > { %v12221_v46 = vpop.f32.mrf.mxu0  ;;  %12316 = vmatmul.mubr.msk.bf16.gmra.mxu0 %vm1449_vm0, %v13594_v38  ;;  %v3686_v52 = vpack.c.bf16 %v3452_v45, %v3451_v49 }
 0x135   : > { %v3450_v48 = vsel %vm2938_vm14, %v2037_v43, %v3194_v44  ;;  %12319 = vmatprep.mubr.msk.bf16.mxu0 %vm1449_vm0, %v13595_v41  ;;  %v3199_v58 = vmul.f32 0.01, %v12221_v46  ;;  %vm2943_vm2 = vcmp.ge.f32.partialorder %v12221_v46, 0.0 }
 0x136   : > { %v3685_v50 = vpack.c.bf16 %v3450_v48, %v3449_v47  ;;  %v2050_v51 = vpop.f32.mrf.mxu0 }
 0x137   : > { %v3197_v56 = vmul.f32 0.01, %v2050_v51  ;;  %vm2941_vm1 = vcmp.ge.f32.partialorder %v2050_v51, 0.0  ;;  %v3455_v2 = vsel %vm2943_vm2, %v12221_v46, %v3199_v58  ;;  %v13605_v58 = vld [vmem:[%s13942_s23 + $0x290] sm:$0xff]  }
 0x138   : > { %v12222_v53 = vpop.f32.mrf.mxu0  ;;  %12479 = vmatprep.mubr.msk.bf16.mxu1 %vm1449_vm0, %v3685_v50 }
 0x139   : > { %vm2944_vm15 = vcmp.ge.f32.partialorder %v12222_v53, 0.0  ;;  %v3200_v57 = vmul.f32 0.01, %v12222_v53  ;;  %12480 = vmatmul.mubr.msk.bf16.gmra.mxu1 %vm1449_vm0, %v3686_v52  ;;  %v3453_v0 = vsel %vm2941_vm1, %v2050_v51, %v3197_v56 }
 0x13a   : > { %v2053_v59 = vpop.f32.mrf.mxu0 }
 0x13b   : > { %vm2942_vm3 = vcmp.ge.f32.partialorder %v2053_v59, 0.0  ;;  %v3198_v61 = vmul.f32 0.01, %v2053_v59  ;;  %v3456_v62 = vsel %vm2944_vm15, %v12222_v53, %v3200_v57 }
 0x13c   : > { %v12225_v63 = vpop.f32.mrf.mxu0  ;;  %12320 = vmatmul.mubr.msk.bf16.gmra.mxu0 %vm1449_vm0, %v13596_v54  ;;  %v3688_v5 = vpack.c.bf16 %v3456_v62, %v3455_v2 }
 0x13d   : > { %v3454_v1 = vsel %vm2942_vm3, %v2053_v59, %v3198_v61  ;;  %12323 = vmatprep.mubr.msk.bf16.mxu0 %vm1449_vm0, %v13597_v55  ;;  %v3203_v11 = vmul.f32 0.01, %v12225_v63  ;;  %vm2947_vm6 = vcmp.ge.f32.partialorder %v12225_v63, 0.0  ;;  %v13604_v55 = vld [vmem:[%s13942_s23 + $0x288] sm:$0xff]  }
 0x13e   : > { %v3687_v3 = vpack.c.bf16 %v3454_v1, %v3453_v0  ;;  %v2066_v4 = vpop.f32.mrf.mxu0 }
 0x13f   : > { %v3201_v8 = vmul.f32 0.01, %v2066_v4  ;;  %vm2945_vm5 = vcmp.ge.f32.partialorder %v2066_v4, 0.0  ;;  %v3459_v18 = vsel %vm2947_vm6, %v12225_v63, %v3203_v11  ;;  %v13608_v11 = vld [vmem:[%s13942_s23 + $0x2a0] sm:$0xff]  }
 0x140   : > { %v12226_v6 = vpop.f32.mrf.mxu0  ;;  %12483 = vmatprep.mubr.msk.bf16.mxu1 %vm1449_vm0, %v3687_v3 }
 0x141   : > { %vm2948_vm4 = vcmp.ge.f32.partialorder %v12226_v6, 0.0  ;;  %v3204_v9 = vmul.f32 0.01, %v12226_v6  ;;  %12484 = vmatmul.mubr.msk.bf16.gmra.mxu1 %vm1449_vm0, %v3688_v5  ;;  %v3457_v16 = vsel %vm2945_vm5, %v2066_v4, %v3201_v8  ;;  %v13606_v8 = vld [vmem:[%s13942_s23 + $0x298] sm:$0xff]  }
 0x142   : > { %v2069_v12 = vpop.f32.mrf.mxu0 }
 0x143   : > { %vm2946_vm7 = vcmp.ge.f32.partialorder %v2069_v12, 0.0  ;;  %v3202_v13 = vmul.f32 0.01, %v2069_v12  ;;  %v3460_v14 = vsel %vm2948_vm4, %v12226_v6, %v3204_v9 }
 0x144   : > { %v12229_v15 = vpop.f32.mrf.mxu0  ;;  %12324 = vmatmul.mubr.msk.bf16.gmra.mxu0 %vm1449_vm0, %v13598_v7  ;;  %v3690_v21 = vpack.c.bf16 %v3460_v14, %v3459_v18 }
 0x145   : > { %v3458_v17 = vsel %vm2946_vm7, %v2069_v12, %v3202_v13  ;;  %12327 = vmatprep.mubr.msk.bf16.mxu0 %vm1449_vm0, %v13599_v10  ;;  %v3207_v27 = vmul.f32 0.01, %v12229_v15  ;;  %vm2951_vm10 = vcmp.ge.f32.partialorder %v12229_v15, 0.0 }
 0x146   : > { %v3689_v19 = vpack.c.bf16 %v3458_v17, %v3457_v16  ;;  %v2082_v20 = vpop.f32.mrf.mxu0 }
 0x147   : > { %v3205_v24 = vmul.f32 0.01, %v2082_v20  ;;  %vm2949_vm9 = vcmp.ge.f32.partialorder %v2082_v20, 0.0  ;;  %v3463_v34 = vsel %vm2951_vm10, %v12229_v15, %v3207_v27  ;;  %v13610_v27 = vld [vmem:[%s13942_s23 + $0x2b0] sm:$0xff]  }
 0x148   : > { %v12230_v22 = vpop.f32.mrf.mxu0  ;;  %12487 = vmatprep.mubr.msk.bf16.mxu1 %vm1449_vm0, %v3689_v19 }
 0x149   : > { %vm2952_vm8 = vcmp.ge.f32.partialorder %v12230_v22, 0.0  ;;  %v3208_v25 = vmul.f32 0.01, %v12230_v22  ;;  %12488 = vmatmul.mubr.msk.bf16.gmra.mxu1 %vm1449_vm0, %v3690_v21  ;;  %v3461_v32 = vsel %vm2949_vm9, %v2082_v20, %v3205_v24  ;;  %v13609_v24 = vld [vmem:[%s13942_s23 + $0x2a8] sm:$0xff]  }
 0x14a   : > { %v2085_v28 = vpop.f32.mrf.mxu0 }
 0x14b   : > { %vm2950_vm11 = vcmp.ge.f32.partialorder %v2085_v28, 0.0  ;;  %v3206_v29 = vmul.f32 0.01, %v2085_v28  ;;  %v3464_v30 = vsel %vm2952_vm8, %v12230_v22, %v3208_v25 }
 0x14c   : > { %v12233_v31 = vpop.f32.mrf.mxu0  ;;  %12328 = vmatmul.mubr.msk.bf16.gmra.mxu0 %vm1449_vm0, %v13600_v23  ;;  %v3692_v37 = vpack.c.bf16 %v3464_v30, %v3463_v34 }
 0x14d   : > { %v3462_v33 = vsel %vm2950_vm11, %v2085_v28, %v3206_v29  ;;  %12331 = vmatprep.mubr.msk.bf16.mxu0 %vm1449_vm0, %v13601_v26  ;;  %v3211_v43 = vmul.f32 0.01, %v12233_v31  ;;  %vm2955_vm14 = vcmp.ge.f32.partialorder %v12233_v31, 0.0 }
 0x14e   : > { %v3691_v35 = vpack.c.bf16 %v3462_v33, %v3461_v32  ;;  %v2098_v36 = vpop.f32.mrf.mxu0 }
 0x14f   : > { %v3209_v40 = vmul.f32 0.01, %v2098_v36  ;;  %vm2953_vm13 = vcmp.ge.f32.partialorder %v2098_v36, 0.0  ;;  %v3467_v50 = vsel %vm2955_vm14, %v12233_v31, %v3211_v43 }
 0x150   : > { %v12234_v38 = vpop.f32.mrf.mxu0  ;;  %12491 = vmatprep.mubr.msk.bf16.mxu1 %vm1449_vm0, %v3691_v35 }
 0x151   : > { %vm2956_vm12 = vcmp.ge.f32.partialorder %v12234_v38, 0.0  ;;  %v3212_v41 = vmul.f32 0.01, %v12234_v38  ;;  %12492 = vmatmul.mubr.msk.bf16.gmra.mxu1 %vm1449_vm0, %v3692_v37  ;;  %v3465_v48 = vsel %vm2953_vm13, %v2098_v36, %v3209_v40 }
 0x152   : > { %v2101_v44 = vpop.f32.mrf.mxu0 }
 0x153   : > { %vm2954_vm15 = vcmp.ge.f32.partialorder %v2101_v44, 0.0  ;;  %v3210_v45 = vmul.f32 0.01, %v2101_v44  ;;  %v3468_v46 = vsel %vm2956_vm12, %v12234_v38, %v3212_v41  ;;  %v13640_v38 = vld [vmem:[%s17270_s5 + $0x8] sm:$0xff]   ;;  %v13611_v41 = vld [vmem:[%s13942_s23 + $0x2b8] sm:$0xff]  }
 0x154   : > { %v12237_v47 = vpop.f32.mrf.mxu0  ;;  %12332 = vmatmul.mubr.msk.bf16.gmra.mxu0 %vm1449_vm0, %v13602_v39  ;;  %v3694_v53 = vpack.c.bf16 %v3468_v46, %v3467_v50  ;;  %13499 = vmatprep.subr.msk.bf16.mxu0 %vm1449_vm0, %v13640_v38 }
 0x155   : > { %v3466_v49 = vsel %vm2954_vm15, %v2101_v44, %v3210_v45  ;;  %12335 = vmatprep.mubr.msk.bf16.mxu0 %vm1449_vm0, %v13603_v42  ;;  %v3215_v59 = vmul.f32 0.01, %v12237_v47  ;;  %vm2959_vm3 = vcmp.ge.f32.partialorder %v12237_v47, 0.0  ;;  %v5629_v42 = vsel %vm1449_vm0, %v13640_v38, 0  ;;  %v13612_v45 = vld [vmem:[%s13942_s23 + $0x2c0] sm:$0xff]  }
 0x156   : > { %v3693_v51 = vpack.c.bf16 %v3466_v49, %v3465_v48  ;;  %v2114_v52 = vpop.f32.mrf.mxu0  ;;  %12700 = vmatpush3.bf16.xpose.msra.mxu0 %v5629_v42 }
 0x157   : > { %v3213_v56 = vmul.f32 0.01, %v2114_v52  ;;  %vm2957_vm2 = vcmp.ge.f32.partialorder %v2114_v52, 0.0  ;;  %v3471_v3 = vsel %vm2959_vm3, %v12237_v47, %v3215_v59 }
 0x158   : > { %v12238_v54 = vpop.f32.mrf.mxu0  ;;  %12495 = vmatprep.mubr.msk.bf16.mxu1 %vm1449_vm0, %v3693_v51 }
 0x159   : > { %vm2960_vm1 = vcmp.ge.f32.partialorder %v12238_v54, 0.0  ;;  %v3216_v57 = vmul.f32 0.01, %v12238_v54  ;;  %12496 = vmatmul.mubr.msk.bf16.gmra.mxu1 %vm1449_vm0, %v3694_v53  ;;  %v3469_v1 = vsel %vm2957_vm2, %v2114_v52, %v3213_v56 }
 0x15a   : > { %v2117_v61 = vpop.f32.mrf.mxu0 }
 0x15b   : > { %vm2958_vm4 = vcmp.ge.f32.partialorder %v2117_v61, 0.0  ;;  %v3214_v62 = vmul.f32 0.01, %v2117_v61  ;;  %v3472_v63 = vsel %vm2960_vm1, %v12238_v54, %v3216_v57 }
 0x15c   : > { %v12241_v0 = vpop.f32.mrf.mxu0  ;;  %12336 = vmatmul.mubr.msk.bf16.gmra.mxu0 %vm1449_vm0, %v13604_v55  ;;  %v3696_v6 = vpack.c.bf16 %v3472_v63, %v3471_v3 }
 0x15d   : > { %v3470_v2 = vsel %vm2958_vm4, %v2117_v61, %v3214_v62  ;;  %12339 = vmatprep.mubr.msk.bf16.mxu0 %vm1449_vm0, %v13605_v58  ;;  %v3219_v12 = vmul.f32 0.01, %v12241_v0  ;;  %vm2963_vm7 = vcmp.ge.f32.partialorder %v12241_v0, 0.0  ;;  %v13613_v58 = vld [vmem:[%s13942_s23 + $0x2c8] sm:$0xff]   ;;  %v13614_v62 = vld [vmem:[%s13942_s23 + $0x2d0] sm:$0xff]  }
 0x15e   : > { %v3695_v4 = vpack.c.bf16 %v3470_v2, %v3469_v1  ;;  %v2130_v5 = vpop.f32.mrf.mxu0 }
 0x15f   : > { %v3217_v9 = vmul.f32 0.01, %v2130_v5  ;;  %vm2961_vm6 = vcmp.ge.f32.partialorder %v2130_v5, 0.0  ;;  %v3475_v19 = vsel %vm2963_vm7, %v12241_v0, %v3219_v12 }
 0x160   : > { %v12242_v7 = vpop.f32.mrf.mxu0  ;;  %12499 = vmatprep.mubr.msk.bf16.mxu1 %vm1449_vm0, %v3695_v4 }
 0x161   : > { %vm2964_vm5 = vcmp.ge.f32.partialorder %v12242_v7, 0.0  ;;  %v3220_v10 = vmul.f32 0.01, %v12242_v7  ;;  %12500 = vmatmul.mubr.msk.bf16.gmra.mxu1 %vm1449_vm0, %v3696_v6  ;;  %v3473_v17 = vsel %vm2961_vm6, %v2130_v5, %v3217_v9 }
 0x162   : > { %v2133_v13 = vpop.f32.mrf.mxu0 }
 0x163   : > { %vm2962_vm8 = vcmp.ge.f32.partialorder %v2133_v13, 0.0  ;;  %v3218_v14 = vmul.f32 0.01, %v2133_v13  ;;  %v3476_v15 = vsel %vm2964_vm5, %v12242_v7, %v3220_v10 }
 0x164   : > { %v12245_v16 = vpop.f32.mrf.mxu0  ;;  %12340 = vmatmul.mubr.msk.bf16.gmra.mxu0 %vm1449_vm0, %v13606_v8  ;;  %v3698_v22 = vpack.c.bf16 %v3476_v15, %v3475_v19 }
 0x165   : > { %v3474_v18 = vsel %vm2962_vm8, %v2133_v13, %v3218_v14  ;;  %12343 = vmatprep.mubr.msk.bf16.mxu0 %vm1449_vm0, %v13608_v11  ;;  %v3223_v28 = vmul.f32 0.01, %v12245_v16  ;;  %vm2967_vm11 = vcmp.ge.f32.partialorder %v12245_v16, 0.0  ;;  %v13615_v11 = vld [vmem:[%s13942_s23 + $0x2d8] sm:$0xff]   ;;  %v13616_v14 = vld [vmem:[%s13942_s23 + $0x2e0] sm:$0xff]  }
 0x166   : > { %v3697_v20 = vpack.c.bf16 %v3474_v18, %v3473_v17  ;;  %v2146_v21 = vpop.f32.mrf.mxu0 }
 0x167   : > { %v3221_v25 = vmul.f32 0.01, %v2146_v21  ;;  %vm2965_vm10 = vcmp.ge.f32.partialorder %v2146_v21, 0.0  ;;  %v3479_v35 = vsel %vm2967_vm11, %v12245_v16, %v3223_v28 }
 0x168   : > { %v12246_v23 = vpop.f32.mrf.mxu0  ;;  %12503 = vmatprep.mubr.msk.bf16.mxu1 %vm1449_vm0, %v3697_v20 }
 0x169   : > { %vm2968_vm9 = vcmp.ge.f32.partialorder %v12246_v23, 0.0  ;;  %v3224_v26 = vmul.f32 0.01, %v12246_v23  ;;  %12504 = vmatmul.mubr.msk.bf16.gmra.mxu1 %vm1449_vm0, %v3698_v22  ;;  %v3477_v33 = vsel %vm2965_vm10, %v2146_v21, %v3221_v25 }
 0x16a   : > { %v2149_v29 = vpop.f32.mrf.mxu0 }
 0x16b   : > { %vm2966_vm12 = vcmp.ge.f32.partialorder %v2149_v29, 0.0  ;;  %v3222_v30 = vmul.f32 0.01, %v2149_v29  ;;  %v3480_v31 = vsel %vm2968_vm9, %v12246_v23, %v3224_v26 }
 0x16c   : > { %v12249_v32 = vpop.f32.mrf.mxu0  ;;  %12344 = vmatmul.mubr.msk.bf16.gmra.mxu0 %vm1449_vm0, %v13609_v24  ;;  %v3700_v39 = vpack.c.bf16 %v3480_v31, %v3479_v35 }
 0x16d   : > { %v3478_v34 = vsel %vm2966_vm12, %v2149_v29, %v3222_v30  ;;  %12347 = vmatprep.mubr.msk.bf16.mxu0 %vm1449_vm0, %v13610_v27  ;;  %v3227_v46 = vmul.f32 0.01, %v12249_v32  ;;  %vm2971_vm15 = vcmp.ge.f32.partialorder %v12249_v32, 0.0  ;;  %v13617_v27 = vld [vmem:[%s13942_s23 + $0x2e8] sm:$0xff]   ;;  %v13618_v30 = vld [vmem:[%s13942_s23 + $0x2f0] sm:$0xff]  }
 0x16e   : > { %v3699_v36 = vpack.c.bf16 %v3478_v34, %v3477_v33  ;;  %v2162_v37 = vpop.f32.mrf.mxu0 }
 0x16f   : > { %v3225_v43 = vmul.f32 0.01, %v2162_v37  ;;  %vm2969_vm14 = vcmp.ge.f32.partialorder %v2162_v37, 0.0  ;;  %v3483_v53 = vsel %vm2971_vm15, %v12249_v32, %v3227_v46 }
 0x170   : > { %v12250_v40 = vpop.f32.mrf.mxu0  ;;  %12507 = vmatprep.mubr.msk.bf16.mxu1 %vm1449_vm0, %v3699_v36 }
 0x171   : > { %vm2972_vm13 = vcmp.ge.f32.partialorder %v12250_v40, 0.0  ;;  %v3228_v44 = vmul.f32 0.01, %v12250_v40  ;;  %12508 = vmatmul.mubr.msk.bf16.gmra.mxu1 %vm1449_vm0, %v3700_v39  ;;  %v3481_v51 = vsel %vm2969_vm14, %v2162_v37, %v3225_v43  ;;  %v13619_v43 = vld [vmem:[%s13942_s23 + $0x2f8] sm:$0xff]  }
 0x172   : > { %v2165_v47 = vpop.f32.mrf.mxu0 }
 0x173   : > { %vm2970_vm1 = vcmp.ge.f32.partialorder %v2165_v47, 0.0  ;;  %v3226_v48 = vmul.f32 0.01, %v2165_v47  ;;  %v3484_v49 = vsel %vm2972_vm13, %v12250_v40, %v3228_v44  ;;  %v13620_v44 = vld [vmem:[%s13942_s23 + $0x300] sm:$0xff]  }
 0x174   : > { %v12253_v50 = vpop.f32.mrf.mxu0  ;;  %12348 = vmatmul.mubr.msk.bf16.gmra.mxu0 %vm1449_vm0, %v13611_v41  ;;  %v3702_v56 = vpack.c.bf16 %v3484_v49, %v3483_v53 }
 0x175   : > { %v3482_v52 = vsel %vm2970_vm1, %v2165_v47, %v3226_v48  ;;  %12351 = vmatprep.mubr.msk.bf16.mxu0 %vm1449_vm0, %v13612_v45  ;;  %v3231_v63 = vmul.f32 0.01, %v12253_v50  ;;  %vm2975_vm4 = vcmp.ge.f32.partialorder %v12253_v50, 0.0  ;;  %v13653_v47 = vld [vmem:[%s17270_s5] sm:$0xff]  }
 0x176   : > { %v3701_v54 = vpack.c.bf16 %v3482_v52, %v3481_v51  ;;  %v2178_v55 = vpop.f32.mrf.mxu0  ;;  %13500 = vmatprep.subr.msk.bf16.mxu0 %vm1449_vm0, %v13653_v47  ;;  %v5626_v51 = vsel %vm1449_vm0, %v13653_v47, 0 }
 0x177   : > { %v3229_v59 = vmul.f32 0.01, %v2178_v55  ;;  %vm2973_vm3 = vcmp.ge.f32.partialorder %v2178_v55, 0.0  ;;  %v3487_v6 = vsel %vm2975_vm4, %v12253_v50, %v3231_v63  ;;  %12702 = vmatpush3.bf16.xpose.msra.mxu0 %v5626_v51 }
 0x178   : > { %v12254_v57 = vpop.f32.mrf.mxu0  ;;  %12511 = vmatprep.mubr.msk.bf16.mxu1 %vm1449_vm0, %v3701_v54  ;;  %12719 = vmatprep.subr.bf16.mxu0 %v17280_v60 }
 0x179   : > { %vm2976_vm2 = vcmp.ge.f32.partialorder %v12254_v57, 0.0  ;;  %v3232_v61 = vmul.f32 0.01, %v12254_v57  ;;  %12512 = vmatmul.mubr.msk.bf16.gmra.mxu1 %vm1449_vm0, %v3702_v56  ;;  %v3485_v4 = vsel %vm2973_vm3, %v2178_v55, %v3229_v59 }
 0x17a   : > { %v2181_v0 = vpop.f32.mrf.mxu0 }
 0x17b   : > { %vm2974_vm5 = vcmp.ge.f32.partialorder %v2181_v0, 0.0  ;;  %v3230_v1 = vmul.f32 0.01, %v2181_v0  ;;  %v3488_v2 = vsel %vm2976_vm2, %v12254_v57, %v3232_v61 }
 0x17c   : > { %v12257_v3 = vpop.f32.mrf.mxu0  ;;  %12352 = vmatmul.mubr.msk.bf16.gmra.mxu0 %vm1449_vm0, %v13613_v58  ;;  %v3704_v9 = vpack.c.bf16 %v3488_v2, %v3487_v6 }
 0x17d   : > { %v3486_v5 = vsel %vm2974_vm5, %v2181_v0, %v3230_v1  ;;  %12355 = vmatprep.mubr.msk.bf16.mxu0 %vm1449_vm0, %v13614_v62  ;;  %v3235_v15 = vmul.f32 0.01, %v12257_v3  ;;  %vm2979_vm8 = vcmp.ge.f32.partialorder %v12257_v3, 0.0  ;;  %v13621_v62 = vld [vmem:[%s13942_s23 + $0x308] sm:$0xff]   ;;  %v13622_v1 = vld [vmem:[%s13942_s23 + $0x310] sm:$0xff]  }
 0x17e   : > { %v3703_v7 = vpack.c.bf16 %v3486_v5, %v3485_v4  ;;  %v2194_v8 = vpop.f32.mrf.mxu0 }
 0x17f   : > { %v3233_v12 = vmul.f32 0.01, %v2194_v8  ;;  %vm2977_vm7 = vcmp.ge.f32.partialorder %v2194_v8, 0.0  ;;  %v3491_v22 = vsel %vm2979_vm8, %v12257_v3, %v3235_v15 }
 0x180   : > { %v12258_v10 = vpop.f32.mrf.mxu0  ;;  %12515 = vmatprep.mubr.msk.bf16.mxu1 %vm1449_vm0, %v3703_v7 }
 0x181   : > { %vm2980_vm6 = vcmp.ge.f32.partialorder %v12258_v10, 0.0  ;;  %v3236_v13 = vmul.f32 0.01, %v12258_v10  ;;  %12516 = vmatmul.mubr.msk.bf16.gmra.mxu1 %vm1449_vm0, %v3704_v9  ;;  %v3489_v20 = vsel %vm2977_vm7, %v2194_v8, %v3233_v12 }
 0x182   : > { %v2197_v16 = vpop.f32.mrf.mxu0 }
 0x183   : > { %vm2978_vm9 = vcmp.ge.f32.partialorder %v2197_v16, 0.0  ;;  %v3234_v17 = vmul.f32 0.01, %v2197_v16  ;;  %v3492_v18 = vsel %vm2980_vm6, %v12258_v10, %v3236_v13 }
 0x184   : > { %v12261_v19 = vpop.f32.mrf.mxu0  ;;  %12356 = vmatmul.mubr.msk.bf16.gmra.mxu0 %vm1449_vm0, %v13615_v11  ;;  %v3706_v25 = vpack.c.bf16 %v3492_v18, %v3491_v22 }
 0x185   : > { %v3490_v21 = vsel %vm2978_vm9, %v2197_v16, %v3234_v17  ;;  %12359 = vmatprep.mubr.msk.bf16.mxu0 %vm1449_vm0, %v13616_v14  ;;  %v3239_v31 = vmul.f32 0.01, %v12261_v19  ;;  %vm2983_vm12 = vcmp.ge.f32.partialorder %v12261_v19, 0.0  ;;  %v13623_v14 = vld [vmem:[%s13942_s23 + $0x318] sm:$0xff]   ;;  %v13624_v17 = vld [vmem:[%s13942_s23 + $0x320] sm:$0xff]  }
 0x186   : > { %v3705_v23 = vpack.c.bf16 %v3490_v21, %v3489_v20  ;;  %v2210_v24 = vpop.f32.mrf.mxu0 }
 0x187   : > { %v3237_v28 = vmul.f32 0.01, %v2210_v24  ;;  %vm2981_vm11 = vcmp.ge.f32.partialorder %v2210_v24, 0.0  ;;  %v3495_v38 = vsel %vm2983_vm12, %v12261_v19, %v3239_v31 }
 0x188   : > { %v12262_v26 = vpop.f32.mrf.mxu0  ;;  %12519 = vmatprep.mubr.msk.bf16.mxu1 %vm1449_vm0, %v3705_v23 }
 0x189   : > { %vm2984_vm10 = vcmp.ge.f32.partialorder %v12262_v26, 0.0  ;;  %v3240_v29 = vmul.f32 0.01, %v12262_v26  ;;  %12520 = vmatmul.mubr.msk.bf16.gmra.mxu1 %vm1449_vm0, %v3706_v25  ;;  %v3493_v36 = vsel %vm2981_vm11, %v2210_v24, %v3237_v28 }
 0x18a   : > { %v2213_v32 = vpop.f32.mrf.mxu0 }
 0x18b   : > { %vm2982_vm13 = vcmp.ge.f32.partialorder %v2213_v32, 0.0  ;;  %v3238_v33 = vmul.f32 0.01, %v2213_v32  ;;  %v3496_v34 = vsel %vm2984_vm10, %v12262_v26, %v3240_v29 }
 0x18c   : > { %v12265_v35 = vpop.f32.mrf.mxu0  ;;  %12360 = vmatmul.mubr.msk.bf16.gmra.mxu0 %vm1449_vm0, %v13617_v27  ;;  %v3708_v41 = vpack.c.bf16 %v3496_v34, %v3495_v38  ;;  %v13626_v34 = vld [vmem:[%s13942_s23 + $0x330] sm:$0xff]  }
 0x18d   : > { %v3494_v37 = vsel %vm2982_vm13, %v2213_v32, %v3238_v33  ;;  %12363 = vmatprep.mubr.msk.bf16.mxu0 %vm1449_vm0, %v13618_v30  ;;  %v3243_v48 = vmul.f32 0.01, %v12265_v35  ;;  %vm2987_vm1 = vcmp.ge.f32.partialorder %v12265_v35, 0.0  ;;  %v13625_v30 = vld [vmem:[%s13942_s23 + $0x328] sm:$0xff]  }
 0x18e   : > { %v3707_v39 = vpack.c.bf16 %v3494_v37, %v3493_v36  ;;  %v2226_v40 = vpop.f32.mrf.mxu0 }
 0x18f   : > { %v3241_v45 = vmul.f32 0.01, %v2226_v40  ;;  %vm2985_vm15 = vcmp.ge.f32.partialorder %v2226_v40, 0.0  ;;  %v3499_v56 = vsel %vm2987_vm1, %v12265_v35, %v3243_v48 }
 0x190   : > { %v12266_v42 = vpop.f32.mrf.mxu0  ;;  %12523 = vmatprep.mubr.msk.bf16.mxu1 %vm1449_vm0, %v3707_v39 }
 0x191   : > { %vm2988_vm14 = vcmp.ge.f32.partialorder %v12266_v42, 0.0  ;;  %v3244_v46 = vmul.f32 0.01, %v12266_v42  ;;  %12524 = vmatmul.mubr.msk.bf16.gmra.mxu1 %vm1449_vm0, %v3708_v41  ;;  %v3497_v54 = vsel %vm2985_vm15, %v2226_v40, %v3241_v45 }
 0x192   : > { %v2229_v49 = vpop.f32.mrf.mxu0 }
 0x193   : > { %vm2986_vm2 = vcmp.ge.f32.partialorder %v2229_v49, 0.0  ;;  %v3242_v50 = vmul.f32 0.01, %v2229_v49  ;;  %v3500_v52 = vsel %vm2988_vm14, %v12266_v42, %v3244_v46 }
 0x194   : > { %v12269_v53 = vpop.f32.mrf.mxu0  ;;  %12364 = vmatmul.mubr.msk.bf16.gmra.mxu0 %vm1449_vm0, %v13619_v43  ;;  %v3710_v59 = vpack.c.bf16 %v3500_v52, %v3499_v56 }
 0x195   : > { %v3498_v55 = vsel %vm2986_vm2, %v2229_v49, %v3242_v50  ;;  %12367 = vmatprep.mubr.msk.bf16.mxu0 %vm1449_vm0, %v13620_v44  ;;  %v3247_v2 = vmul.f32 0.01, %v12269_v53  ;;  %vm2991_vm5 = vcmp.ge.f32.partialorder %v12269_v53, 0.0  ;;  %v13627_v50 = vld [vmem:[%s13942_s23 + $0x338] sm:$0xff]  }
 0x196   : > { %v3709_v57 = vpack.c.bf16 %v3498_v55, %v3497_v54  ;;  %v2242_v58 = vpop.f32.mrf.mxu0  ;;  %v13628_v54 = vld [vmem:[%s13942_s23 + $0x340] sm:$0xff]  }
 0x197   : > { %v3245_v63 = vmul.f32 0.01, %v2242_v58  ;;  %vm2989_vm4 = vcmp.ge.f32.partialorder %v2242_v58, 0.0  ;;  %v3503_v9 = vsel %vm2991_vm5, %v12269_v53, %v3247_v2 }
 0x198   : > { %v12270_v61 = vpop.f32.mrf.mxu0  ;;  %12527 = vmatprep.mubr.msk.bf16.mxu1 %vm1449_vm0, %v3709_v57  ;;  %v14264_v57 = vld [vmem:[%s17273_s8] ss:$0 sm:$0xff] }
 0x199   : > { %vm2992_vm3 = vcmp.ge.f32.partialorder %v12270_v61, 0.0  ;;  %v3248_v0 = vmul.f32 0.01, %v12270_v61  ;;  %12528 = vmatmul.mubr.msk.bf16.gmra.mxu1 %vm1449_vm0, %v3710_v59  ;;  %v3501_v7 = vsel %vm2989_vm4, %v2242_v58, %v3245_v63  ;;  %v14268_v63 = vld [vmem:[%s14259_s30] sm:$0x1]  ;;  %vm6334_vm4 = vcmask 523264  }
 0x19a   : > { %v2245_v3 = vpop.f32.mrf.mxu0 }
 0x19b   : > { %vm2990_vm6 = vcmp.ge.f32.partialorder %v2245_v3, 0.0  ;;  %v3246_v4 = vmul.f32 0.01, %v2245_v3  ;;  %v3504_v5 = vsel %vm2992_vm3, %v12270_v61, %v3248_v0  ;;  %v14271_v0 = vld [vmem:[%s14259_s30 + $0x1] sm:$0x1] }
 0x19c   : > { %v12273_v6 = vpop.f32.mrf.mxu0  ;;  %12368 = vmatmul.mubr.msk.bf16.gmra.mxu0 %vm1449_vm0, %v13621_v62  ;;  %v3712_v12 = vpack.c.bf16 %v3504_v5, %v3503_v9  ;;  %v14278_v5 = vld [vmem:[%s14259_s30 + $0x9] sm:$0x1] }
 0x19d   : > { %v3502_v8 = vsel %vm2990_vm6, %v2245_v3, %v3246_v4  ;;  %12371 = vmatprep.mubr.msk.bf16.mxu0 %vm1449_vm0, %v13622_v1  ;;  %v3251_v18 = vmul.f32 0.01, %v12273_v6  ;;  %vm2995_vm9 = vcmp.ge.f32.partialorder %v12273_v6, 0.0  ;;  %v14274_v1 = vld [vmem:[%s14259_s30 + $0x2] sm:$0x1] }
 0x19e   : > { %v3711_v10 = vpack.c.bf16 %v3502_v8, %v3501_v7  ;;  %v2258_v11 = vpop.f32.mrf.mxu0 }
 0x19f   : > { %v3249_v15 = vmul.f32 0.01, %v2258_v11  ;;  %vm2993_vm8 = vcmp.ge.f32.partialorder %v2258_v11, 0.0  ;;  %v3507_v25 = vsel %vm2995_vm9, %v12273_v6, %v3251_v18  ;;  %v14281_v6 = vld [vmem:[%s14259_s30 + $0xa] sm:$0x1]  ;;  %v5433_v18 = vpack.c.bf16 %v14271_v0, %v14271_v0 }
 0x1a0   : > { %v12274_v13 = vpop.f32.mrf.mxu0  ;;  %12531 = vmatprep.mubr.msk.bf16.mxu1 %vm1449_vm0, %v3711_v10 }
 0x1a1   : > { %vm2996_vm7 = vcmp.ge.f32.partialorder %v12274_v13, 0.0  ;;  %v3252_v16 = vmul.f32 0.01, %v12274_v13  ;;  %12532 = vmatmul.mubr.msk.bf16.gmra.mxu1 %vm1449_vm0, %v3712_v12  ;;  %v3505_v23 = vsel %vm2993_vm8, %v2258_v11, %v3249_v15  ;;  %v14287_v12 = vld [vmem:[%s14259_s30 + $0x3] sm:$0x1]  ;;  %v13629_v15 = vld [vmem:[%s13942_s23 + $0x348] sm:$0xff]  }
 0x1a2   : > { %v2261_v19 = vpop.f32.mrf.mxu0 }
 0x1a3   : > { %vm2994_vm10 = vcmp.ge.f32.partialorder %v2261_v19, 0.0  ;;  %v3250_v20 = vmul.f32 0.01, %v2261_v19  ;;  %v3508_v21 = vsel %vm2996_vm7, %v12274_v13, %v3252_v16  ;;  %v14291_v16 = vld [vmem:[%s14259_s30 + $0x4] sm:$0x1] }
 0x1a4   : > { %v12277_v22 = vpop.f32.mrf.mxu0  ;;  %12372 = vmatmul.mubr.msk.bf16.gmra.mxu0 %vm1449_vm0, %v13623_v14  ;;  %v3714_v28 = vpack.c.bf16 %v3508_v21, %v3507_v25  ;;  %v5441_v25 = vpack.c.bf16 %v14278_v5, %v14278_v5 }
 0x1a5   : > { %v3506_v24 = vsel %vm2994_vm10, %v2261_v19, %v3250_v20  ;;  %12375 = vmatprep.mubr.msk.bf16.mxu0 %vm1449_vm0, %v13624_v17  ;;  %v3255_v35 = vmul.f32 0.01, %v12277_v22  ;;  %vm2999_vm13 = vcmp.ge.f32.partialorder %v12277_v22, 0.0  ;;  %v5432_v17 = vpack.c.bf16 %v14268_v63, %v14268_v63 }
 0x1a6   : > { %v3713_v26 = vpack.c.bf16 %v3506_v24, %v3505_v23  ;;  %v2274_v27 = vpop.f32.mrf.mxu0  ;;  %v5434_v19 = vpack.c.bf16 %v14274_v1, %v14274_v1  ;;  %v14303_v23 = vld [vmem:[%s14259_s30 + $0x5] sm:$0x1]  ;;  %v14306_v24 = vld [vmem:[%s14259_s30 + $0x8] sm:$0x1] }
 0x1a7   : > { %v3253_v31 = vmul.f32 0.01, %v2274_v27  ;;  %vm2997_vm12 = vcmp.ge.f32.partialorder %v2274_v27, 0.0  ;;  %v3511_v44 = vsel %vm2999_vm13, %v12277_v22, %v3255_v35 }
 0x1a8   : > { %v12278_v29 = vpop.f32.mrf.mxu0  ;;  %12535 = vmatprep.mubr.msk.bf16.mxu1 %vm1449_vm0, %v3713_v26  ;;  %v5442_v26 = vpack.c.bf16 %v14281_v6, %v14281_v6  ;;  %v13635_v6 = vld [vmem:[%s13942_s23 + $0x378] sm:$0xff]  }
 0x1a9   : > { %vm3000_vm11 = vcmp.ge.f32.partialorder %v12278_v29, 0.0  ;;  %v3256_v32 = vmul.f32 0.01, %v12278_v29  ;;  %v14239_v33 = vpop.f32.mrf.mxu1  ;;  %12536 = vmatmul.mubr.msk.bf16.gmra.mxu1 %vm1449_vm0, %v3714_v28  ;;  %v3509_v41 = vsel %vm2997_vm12, %v2274_v27, %v3253_v31  ;;  %v5435_v31 = vpack.c.bf16 %v14287_v12, %v14287_v12 }
 0x1aa   : > { %v2277_v36 = vpop.f32.mrf.mxu0 }
 0x1ab   : > { %vm2998_vm14 = vcmp.ge.f32.partialorder %v2277_v36, 0.0  ;;  %v3254_v37 = vmul.f32 0.01, %v2277_v36  ;;  %v14243_v38 = vpop.f32.mrf.mxu1  ;;  %v3512_v39 = vsel %vm3000_vm11, %v12278_v29, %v3256_v32 }
 0x1ac   : > { %v12281_v40 = vpop.f32.mrf.mxu0  ;;  %12376 = vmatmul.mubr.msk.bf16.gmra.mxu0 %vm1449_vm0, %v13625_v30  ;;  %v3716_v47 = vpack.c.bf16 %v3512_v39, %v3511_v44  ;;  %v13630_v30 = vld [vmem:[%s13942_s23 + $0x350] sm:$0xff]   ;;  %v5436_v39 = vpack.c.bf16 %v14291_v16, %v14291_v16 }
 0x1ad   : > { %v3510_v42 = vsel %vm2998_vm14, %v2277_v36, %v3254_v37  ;;  %v14246_v43 = vpop.f32.mrf.mxu1  ;;  %12379 = vmatprep.mubr.msk.bf16.mxu0 %vm1449_vm0, %v13626_v34  ;;  %v3259_v55 = vmul.f32 0.01, %v12281_v40  ;;  %vm3003_vm2 = vcmp.ge.f32.partialorder %v12281_v40, 0.0 }
 0x1ae   : > { %v3715_v45 = vpack.c.bf16 %v3510_v42, %v3509_v41  ;;  %v2290_v46 = vpop.f32.mrf.mxu0 }
 0x1af   : > { %v14249_v48 = vpop.f32.mrf.mxu1  ;;  %v3257_v51 = vmul.f32 0.01, %v2290_v46  ;;  %vm3001_vm1 = vcmp.ge.f32.partialorder %v2290_v46, 0.0  ;;  %v3515_v7 = vsel %vm3003_vm2, %v12281_v40, %v3259_v55  ;;  %v5437_v40 = vpack.c.bf16 %v14303_v23, %v14303_v23 }
 0x1b0   : > { %v12282_v49 = vpop.f32.mrf.mxu0  ;;  %12539 = vmatprep.mubr.msk.bf16.mxu1 %vm1449_vm0, %v3715_v45  ;;  %v14330_v45 = vld [vmem:[%s14259_s30 + $0x6] sm:$0x1]  ;;  %v4253_v16 = vadd.f32 %v14264_v57, %v14249_v48  ;;  %v4250_v23 = vadd.f32 %v14264_v57, %v14243_v38 }
 0x1b1   : > { %vm3004_vm15 = vcmp.ge.f32.partialorder %v12282_v49, 0.0  ;;  %v3260_v52 = vmul.f32 0.01, %v12282_v49  ;;  %v12445_v53 = vpop.f32.mrf.mxu1  ;;  %12540 = vmatmul.mubr.msk.bf16.gmra.mxu1 %vm1449_vm0, %v3716_v47  ;;  %v3513_v2 = vsel %vm3001_vm1, %v2290_v46, %v3257_v51  ;;  %v14333_v46 = vld [vmem:[%s14259_s30 + $0xb] sm:$0x1]  ;;  %v5438_v0 = vpack.c.bf16 %v14330_v45, %v14330_v45 }
 0x1b2   : > { %v2293_v56 = vpop.f32.mrf.mxu0  ;;  %v4274_v8 = vadd.f32 %v12445_v53, %v14264_v57  ;;  %v14336_v47 = vld [vmem:[%s14259_s30 + $0xc] sm:$0x1]  ;;  %v14432_v12 = vunpack.c.l.b16 %v5437_v40  ;;  %v14466_v45 = vunpack.c.l.b16 %v5441_v25 }
 0x1b3   : > { %vm3002_vm3 = vcmp.ge.f32.partialorder %v2293_v56, 0.0  ;;  %v3258_v58 = vmul.f32 0.01, %v2293_v56  ;;  %v4265_v59 = vpop.f32.mrf.mxu1  ;;  %v3516_v61 = vsel %vm3004_vm15, %v12282_v49, %v3260_v52  ;;  %v5440_v49 = vpack.c.bf16 %v14306_v24, %v14306_v24 }
 0x1b4   : > { %v12285_v62 = vpop.f32.mrf.mxu0  ;;  %12380 = vmatmul.mubr.msk.bf16.gmra.mxu0 %vm1449_vm0, %v13627_v50  ;;  %v3718_v13 = vpack.c.bf16 %v3516_v61, %v3515_v7  ;;  %v4266_v41 = vadd.f32 %v14264_v57, %v4265_v59 }
 0x1b5   : > { %v3514_v3 = vsel %vm3002_vm3, %v2293_v56, %v3258_v58  ;;  %v12446_v4 = vpop.f32.mrf.mxu1  ;;  %12383 = vmatprep.mubr.msk.bf16.mxu0 %vm1449_vm0, %v13628_v54  ;;  %v3263_v20 = vmul.f32 0.01, %v12285_v62  ;;  %vm3007_vm6 = vcmp.ge.f32.partialorder %v12285_v62, 0.0  ;;  %v14344_v54 = vunpack.c.l.b16 %v5432_v17 }
 0x1b6   : > { %v3717_v9 = vpack.c.bf16 %v3514_v3, %v3513_v2  ;;  %v4277_v10 = vadd.f32 %v12446_v4, %v14264_v57  ;;  %v2306_v11 = vpop.f32.mrf.mxu0  ;;  %v5443_v2 = vpack.c.bf16 %v14333_v46, %v14333_v46  ;;  %v5444_v3 = vpack.c.bf16 %v14336_v47, %v14336_v47 }
 0x1b7   : > { %v4268_v14 = vpop.f32.mrf.mxu1  ;;  %v3261_v27 = vmul.f32 0.01, %v2306_v11  ;;  %vm3005_vm7 = vcmp.ge.f32.partialorder %v2306_v11, 0.0  ;;  %v3519_v50 = vsel %vm3007_vm6, %v12285_v62, %v3263_v20  ;;  %v14457_v38 = vunpack.c.l.b16 %v5440_v49 }
 0x1b8   : > { %v14299_v21 = vpack.c.bf16 %v4277_v10, %v4274_v8  ;;  %v12286_v22 = vpop.f32.mrf.mxu0  ;;  %12543 = vmatprep.mubr.msk.bf16.mxu1 %vm1449_vm0, %v3717_v9  ;;  %v4269_v32 = vadd.f32 %v14264_v57, %v4268_v14  ;;  %v13631_v9 = vld [vmem:[%s13942_s23 + $0x358] sm:$0xff]   ;;  %v14368_v14 = vunpack.c.l.b16 %v5433_v18  ;;  %v14479_v5 = vunpack.c.l.b16 %v5443_v2 }
 0x1b9   : > { %vm3008_vm5 = vcmp.ge.f32.partialorder %v12286_v22, 0.0  ;;  %v3264_v28 = vmul.f32 0.01, %v12286_v22  ;;  %12544 = vmatmul.mubr.msk.bf16.gmra.mxu1 %vm1449_vm0, %v3718_v13  ;;  %v12449_v29 = vpop.f32.mrf.mxu1  ;;  %v3517_v51 = vsel %vm3005_vm7, %v2306_v11, %v3261_v27  ;;  %v14363_v11 = vld [vmem:[%s14259_s30 + $0x7] sm:$0x1]  ;;  %v14484_v25 = vunpack.c.l.b16 %v5444_v3 }
 0x1ba   : > { %17394 = vst [vmem:[#allocation2_spill] sm:$0xff] %v14299_v21  ;;  %v2309_v34 = vpop.f32.mrf.mxu0  ;;  %v6348_v35 = vsel %vm6334_vm4, %v14299_v21, 0  ;;  %v14346_v55 = vpack.c.bf16 %v4269_v32, %v4266_v41  ;;  %v4290_v59 = vadd.f32 %v12449_v29, %v14264_v57  ;;  %v14366_v13 = vld [vmem:[%s14259_s30 + $0xd] sm:$0x1]  ;;  %v13632_v27 = vld [vmem:[%s13942_s23 + $0x360] sm:$0xff]   ;;  %v5534_v46 = vrot.slane %v14368_v14, 7 }
 0x1bb   : > { %vm3006_vm8 = vcmp.ge.f32.partialorder %v2309_v34, 0.0  ;;  %v3262_v36 = vmul.f32 0.01, %v2309_v34  ;;  %12708 = vmatpush3.bf16.xpose.msra.mxu1 %v6348_v35  ;;  %v4281_v37 = vpop.f32.mrf.mxu1  ;;  %v3520_v42 = vsel %vm3008_vm5, %v12286_v22, %v3264_v28  ;;  %v14380_v32 = vld [vmem:[%s14259_s30 + $0xe] sm:$0x1]  ;;  %vm5535_vm3 = vcmask 1041409  }
 0x1bc   : > { %v14325_v44 = vpop.f32.mrf.mxu0  ;;  %12384 = vmatmul.mubr.msk.bf16.gmra.mxu0 %vm1449_vm0, %v13629_v15  ;;  %12709 = vmatprep.subr.bf16.mxu1 %v17280_v60  ;;  %17395 = vst [vmem:[#allocation3_spill] sm:$0xff] %v14346_v55  ;;  %v3720_v62 = vpack.c.bf16 %v3520_v42, %v3519_v50  ;;  %v4282_v7 = vadd.f32 %v14264_v57, %v4281_v37  ;;  %v14389_v41 = vld [vmem:[%s14259_s30 + $0xf] sm:$0x1]  ;;  %v14398_v50 = vunpack.c.l.b16 %v5434_v19 }
 0x1bd   : > { %v3518_v52 = vsel %vm3006_vm8, %v2309_v34, %v3262_v36  ;;  %12387 = vmatprep.mubr.msk.bf16.mxu0 %vm1449_vm0, %v13630_v30  ;;  %v12450_v53 = vpop.f32.mrf.mxu1  ;;  %v4261_v15 = vadd.f32 %v14246_v43, %v14264_v57  ;;  %v3267_v28 = vmul.f32 0.01, %v14325_v44  ;;  %v6345_v30 = vsel %vm6334_vm4, %v14346_v55, 0 }
 0x1be   : > { %v3719_v56 = vpack.c.bf16 %v3518_v52, %v3517_v51  ;;  %v2322_v58 = vpop.f32.mrf.mxu0  ;;  %v4293_v61 = vadd.f32 %v12450_v53, %v14264_v57  ;;  %v4258_v43 = vadd.f32 %v14239_v33, %v14264_v57  ;;  %vm3011_vm11 = vcmp.ge.f32.partialorder %v14325_v44, 0.0 }
 0x1bf   : > { %v4284_v63 = vpop.f32.mrf.mxu1  ;;  %v3265_v17 = vmul.f32 0.01, %v2322_v58  ;;  %vm3009_vm10 = vcmp.ge.f32.partialorder %v2322_v58, 0.0  ;;  %v5439_v42 = vpack.c.bf16 %v14363_v11, %v14363_v11  ;;  %v5445_v33 = vpack.c.bf16 %v14366_v13, %v14366_v13 }
 0x1c0   : > { %v12290_v4 = vpop.f32.mrf.mxu0  ;;  %12547 = vmatprep.mubr.msk.bf16.mxu1 %vm1449_vm0, %v3719_v56  ;;  %v14358_v8 = vpack.c.bf16 %v4293_v61, %v4290_v59  ;;  %v4285_v10 = vadd.f32 %v14264_v57, %v4284_v63  ;;  %v14400_v51 = vpack.c.bf16 %v4261_v15, %v4258_v43  ;;  %v5446_v59 = vpack.c.bf16 %v14380_v32, %v14380_v32 }
 0x1c1   : > { %vm3012_vm9 = vcmp.ge.f32.partialorder %v12290_v4, 0.0  ;;  %v3268_v20 = vmul.f32 0.01, %v12290_v4  ;;  %12548 = vmatmul.mubr.msk.bf16.gmra.mxu1 %vm1449_vm0, %v3720_v62  ;;  %v12453_v22 = vpop.f32.mrf.mxu1  ;;  %v3521_v52 = vsel %vm3009_vm10, %v2322_v58, %v3265_v17  ;;  %v3523_v61 = vsel %vm3011_vm11, %v14325_v44, %v3267_v28  ;;  %v13633_v17 = vld [vmem:[%s13942_s23 + $0x368] sm:$0xff]  }
 0x1c2   : > { %17396 = vst [vmem:[#allocation4_spill] sm:$0xff] %v14358_v8  ;;  %v2325_v29 = vpop.f32.mrf.mxu0  ;;  %v14377_v18 = vpack.c.bf16 %v4285_v10, %v4282_v7  ;;  %17398 = vst [vmem:[#allocation6_spill] sm:$0xff] %v14400_v51  ;;  %v4306_v19 = vadd.f32 %v12453_v22, %v14264_v57  ;;  %v5447_v7 = vpack.c.bf16 %v14389_v41, %v14389_v41  ;;  %v14421_v44 = vunpack.c.l.b16 %v5436_v39 }
 0x1c3   : > { %vm3010_vm12 = vcmp.ge.f32.partialorder %v2325_v29, 0.0  ;;  %v3266_v34 = vmul.f32 0.01, %v2325_v29  ;;  %12710 = vmatpush3.bf16.xpose.msra.mxu1 %v6345_v30  ;;  %v4297_v35 = vpop.f32.mrf.mxu1  ;;  %v3524_v36 = vsel %vm3012_vm9, %v12290_v4, %v3268_v20  ;;  %v6342_v30 = vsel %vm6334_vm4, %v14400_v51, 0 }
 0x1c4   : > { %17397 = vst [vmem:[#allocation5_spill] sm:$0xff] %v14377_v18  ;;  %v12293_v37 = vpop.f32.mrf.mxu0  ;;  %12388 = vmatmul.mubr.msk.bf16.gmra.mxu0 %vm1449_vm0, %v13631_v9  ;;  %12711 = vmatprep.subr.bf16.mxu1 %v17280_v60  ;;  %v3722_v4 = vpack.c.bf16 %v3524_v36, %v3523_v61  ;;  %v14416_v9 = vunpack.c.l.b16 %v5435_v31  ;;  %v4298_v11 = vadd.f32 %v14264_v57, %v4297_v35  ;;  %v14450_v36 = vunpack.c.l.b16 %v5438_v0 }
 0x1c5   : > { %v3522_v53 = vsel %vm3010_vm12, %v2325_v29, %v3266_v34  ;;  %12391 = vmatprep.mubr.msk.bf16.mxu0 %vm1449_vm0, %v13632_v27  ;;  %v12454_v56 = vpop.f32.mrf.mxu1  ;;  %v13634_v27 = vld [vmem:[%s13942_s23 + $0x370] sm:$0xff]   ;;  %v3271_v28 = vmul.f32 0.01, %v12293_v37  ;;  %vm3015_vm15 = vcmp.ge.f32.partialorder %v12293_v37, 0.0  ;;  %vm5538_vm8 = vcmask 1042434  }
 0x1c6   : > { %v3721_v62 = vpack.c.bf16 %v3522_v53, %v3521_v52  ;;  %v2338_v1 = vpop.f32.mrf.mxu0  ;;  %v4309_v63 = vadd.f32 %v12454_v56, %v14264_v57  ;;  %v14452_v52 = vunpack.c.l.b16 %v5439_v42  ;;  %v14459_v53 = vpack.c.bf16 %v4253_v16, %v4250_v23 }
 0x1c7   : > { %v4300_v58 = vpop.f32.mrf.mxu1  ;;  %v3269_v31 = vmul.f32 0.01, %v2338_v1  ;;  %vm3013_vm14 = vcmp.ge.f32.partialorder %v2338_v1, 0.0  ;;  %v3527_v0 = vsel %vm3015_vm15, %v12293_v37, %v3271_v28  ;;  %v5555_v13 = vrot.slane %v14466_v45, 7  ;;  %v13637_v45 = vld [vmem:[%s13942_s23 + $0x388] sm:$0xff]  }
 0x1c8   : > { %v12294_v10 = vpop.f32.mrf.mxu0  ;;  %12551 = vmatprep.mubr.msk.bf16.mxu1 %vm1449_vm0, %v3721_v62  ;;  %v14425_v15 = vpack.c.bf16 %v4309_v63, %v4306_v19  ;;  %v4301_v20 = vadd.f32 %v14264_v57, %v4300_v58  ;;  %17401 = vst [vmem:[#allocation9_spill] sm:$0xff] %v14459_v53  ;;  %v6339_v16 = vsel %vm6334_vm4, %v14459_v53, 0  ;;  %v5540_v32 = vrot.slane %v14416_v9, 5  ;;  %v13638_v9 = vld [vmem:[%s13942_s23 + $0x390] sm:$0xff]  }
 0x1c9   : > { %vm3016_vm13 = vcmp.ge.f32.partialorder %v12294_v10, 0.0  ;;  %v3272_v39 = vmul.f32 0.01, %v12294_v10  ;;  %12552 = vmatmul.mubr.msk.bf16.gmra.mxu1 %vm1449_vm0, %v3722_v4  ;;  %v12457_v22 = vpop.f32.mrf.mxu1  ;;  %v3525_v56 = vsel %vm3013_vm14, %v2338_v1, %v3269_v31  ;;  %v14474_v4 = vunpack.c.l.b16 %v5442_v26 }
 0x1ca   : > { %17399 = vst [vmem:[#allocation7_spill] sm:$0xff] %v14425_v15  ;;  %v2341_v29 = vpop.f32.mrf.mxu0  ;;  %v14440_v43 = vpack.c.bf16 %v4301_v20, %v4298_v11  ;;  %v4322_v42 = vadd.f32 %v12457_v22, %v14264_v57  ;;  %v13636_v11 = vld [vmem:[%s13942_s23 + $0x380] sm:$0xff]   ;;  %v5537_v22 = vrot.slane %v14398_v50, 6  ;;  %vm5541_vm9 = vcmask 1043459  }
 0x1cb   : > { %vm3014_vm1 = vcmp.ge.f32.partialorder %v2341_v29, 0.0  ;;  %v3270_v48 = vmul.f32 0.01, %v2341_v29  ;;  %12712 = vmatpush3.bf16.xpose.msra.mxu1 %v6342_v30  ;;  %v4313_v40 = vpop.f32.mrf.mxu1  ;;  %v3528_v34 = vsel %vm3016_vm13, %v12294_v10, %v3272_v39  ;;  %v5536_v30 = vsel %vm5535_vm3, %v5534_v46, %v14344_v54 }
 0x1cc   : > { %17400 = vst [vmem:[#allocation8_spill] sm:$0xff] %v14440_v43  ;;  %v12297_v35 = vpop.f32.mrf.mxu0  ;;  %12392 = vmatmul.mubr.msk.bf16.gmra.mxu0 %vm1449_vm0, %v13633_v17  ;;  %12713 = vmatprep.subr.bf16.mxu1 %v17280_v60  ;;  %v3724_v1 = vpack.c.bf16 %v3528_v34, %v3527_v0  ;;  %v4314_v58 = vadd.f32 %v14264_v57, %v4313_v40  ;;  %v14515_v40 = vunpack.c.l.b16 %v5446_v59  ;;  %v14539_v46 = vunpack.c.l.b16 %v5447_v7 }
 0x1cd   : > { %v3526_v61 = vsel %vm3014_vm1, %v2341_v29, %v3270_v48  ;;  %12395 = vmatprep.mubr.msk.bf16.mxu0 %vm1449_vm0, %v13634_v27  ;;  %v12458_v62 = vpop.f32.mrf.mxu1  ;;  %v3275_v3 = vmul.f32 0.01, %v12297_v35  ;;  %vm3019_vm6 = vcmp.ge.f32.partialorder %v12297_v35, 0.0  ;;  %v14505_v29 = vunpack.c.l.b16 %v5445_v33 }
 0x1ce   : > { %v3723_v24 = vpack.c.bf16 %v3526_v61, %v3525_v56  ;;  %v2354_v49 = vpop.f32.mrf.mxu0  ;;  %v4325_v19 = vadd.f32 %v12458_v62, %v14264_v57  ;;  %vm5544_vm14 = vcmask 1044484   ;;  %vm5547_vm15 = vcmask 1045509  }
 0x1cf   : > { %v4316_v63 = vpop.f32.mrf.mxu1  ;;  %v3273_v2 = vmul.f32 0.01, %v2354_v49  ;;  %vm3017_vm5 = vcmp.ge.f32.partialorder %v2354_v49, 0.0  ;;  %v3531_v33 = vsel %vm3019_vm6, %v12297_v35, %v3275_v3 }
 0x1d0   : > { %v12298_v37 = vpop.f32.mrf.mxu0  ;;  %12555 = vmatprep.mubr.msk.bf16.mxu1 %vm1449_vm0, %v3723_v24  ;;  %v14488_v10 = vpack.c.bf16 %v4325_v19, %v4322_v42  ;;  %v4317_v26 = vadd.f32 %v14264_v57, %v4316_v63  ;;  %v5539_v24 = vsel %vm5538_vm8, %v5537_v22, %v5536_v30  ;;  %v5557_v19 = vrot.slane %v14474_v4, 6 }
 0x1d1   : > { %vm3020_vm2 = vcmp.ge.f32.partialorder %v12298_v37, 0.0  ;;  %v3276_v17 = vmul.f32 0.01, %v12298_v37  ;;  %12556 = vmatmul.mubr.msk.bf16.gmra.mxu1 %vm1449_vm0, %v3724_v1  ;;  %v12461_v47 = vpop.f32.mrf.mxu1  ;;  %v3529_v23 = vsel %vm3017_vm5, %v2354_v49, %v3273_v2 }
 0x1d2   : > { %17402 = vst [vmem:[#allocation10_spill] sm:$0xff] %v14488_v10  ;;  %v2357_v20 = vpop.f32.mrf.mxu0  ;;  %v14497_v31 = vpack.c.bf16 %v4317_v26, %v4314_v58  ;;  %v4338_v56 = vadd.f32 %v12461_v47, %v14264_v57  ;;  %v5556_v58 = vsel %vm5535_vm3, %v5555_v13, %v14457_v38  ;;  %v5542_v38 = vsel %vm5541_vm9, %v5540_v32, %v5539_v24 }
 0x1d3   : > { %vm3018_vm7 = vcmp.ge.f32.partialorder %v2357_v20, 0.0  ;;  %v3274_v39 = vmul.f32 0.01, %v2357_v20  ;;  %12714 = vmatpush3.bf16.xpose.msra.mxu1 %v6339_v16  ;;  %v4329_v14 = vpop.f32.mrf.mxu1  ;;  %v3532_v27 = vsel %vm3020_vm2, %v12298_v37, %v3276_v17  ;;  %v5559_v17 = vrot.slane %v14479_v5, 5 }
 0x1d4   : > { %17403 = vst [vmem:[#allocation11_spill] sm:$0xff] %v14497_v31  ;;  %v12301_v28 = vpop.f32.mrf.mxu0  ;;  %12396 = vmatmul.mubr.msk.bf16.gmra.mxu0 %vm1449_vm0, %v13635_v6  ;;  %12731 = vmatprep.subr.bf16.mxu1 %v17280_v60  ;;  %v3726_v62 = vpack.c.bf16 %v3532_v27, %v3531_v33  ;;  %v4330_v49 = vadd.f32 %v14264_v57, %v4329_v14  ;;  %v5561_v5 = vrot.slane %v14484_v25, 4  ;;  %v5563_v24 = vrot.slane %v14505_v29, 3 }
 0x1d5   : > { %v3530_v48 = vsel %vm3018_vm7, %v2357_v20, %v3274_v39  ;;  %12399 = vmatprep.mubr.msk.bf16.mxu0 %vm1449_vm0, %v13636_v11  ;;  %v12462_v50 = vpop.f32.mrf.mxu1  ;;  %v3279_v6 = vmul.f32 0.01, %v12301_v28  ;;  %vm3023_vm12 = vcmp.ge.f32.partialorder %v12301_v28, 0.0  ;;  %v5543_v20 = vrot.slane %v14421_v44, 4 }
 0x1d6   : > { %v3725_v54 = vpack.c.bf16 %v3530_v48, %v3529_v23  ;;  %v2370_v34 = vpop.f32.mrf.mxu0  ;;  %v4341_v61 = vadd.f32 %v12462_v50, %v14264_v57  ;;  %v5558_v16 = vsel %vm5538_vm8, %v5557_v19, %v5556_v58  ;;  %v5546_v50 = vrot.slane %v14432_v12, 3 }
 0x1d7   : > { %v4332_v0 = vpop.f32.mrf.mxu1  ;;  %v3277_v1 = vmul.f32 0.01, %v2370_v34  ;;  %vm3021_vm11 = vcmp.ge.f32.partialorder %v2370_v34, 0.0  ;;  %v3535_v14 = vsel %vm3023_vm12, %v12301_v28, %v3279_v6  ;;  %v5560_v13 = vsel %vm5541_vm9, %v5559_v17, %v5558_v16  ;;  %v13639_v28 = vld [vmem:[%s13942_s23 + $0x398] sm:$0xff]  }
 0x1d8   : > { %v12302_v59 = vpop.f32.mrf.mxu0  ;;  %12559 = vmatprep.mubr.msk.bf16.mxu1 %vm1449_vm0, %v3725_v54  ;;  %v14525_v35 = vpack.c.bf16 %v4341_v61, %v4338_v56  ;;  %v4333_v42 = vadd.f32 %v14264_v57, %v4332_v0  ;;  %v13641_v56 = vld [vmem:[%s13942_s23 + $0x3a0] sm:$0xff]   ;;  %v5545_v61 = vsel %vm5544_vm14, %v5543_v20, %v5542_v38  ;;  %vm5550_vm7 = vcmask 1046534  }
 0x1d9   : > { %vm3024_vm10 = vcmp.ge.f32.partialorder %v12302_v59, 0.0  ;;  %v3280_v63 = vmul.f32 0.01, %v12302_v59  ;;  %12560 = vmatmul.mubr.msk.bf16.gmra.mxu1 %vm1449_vm0, %v3726_v62  ;;  %v12465_v37 = vpop.f32.mrf.mxu1  ;;  %v3533_v41 = vsel %vm3021_vm11, %v2370_v34, %v3277_v1  ;;  %v5549_v1 = vrot.slane %v14450_v36, 2 }
 0x1da   : > { %17404 = vst [vmem:[#allocation12_spill] sm:$0xff] %v14525_v35  ;;  %v2373_v26 = vpop.f32.mrf.mxu0  ;;  %v14534_v11 = vpack.c.bf16 %v4333_v42, %v4330_v49  ;;  %v4354_v30 = vadd.f32 %v12465_v37, %v14264_v57  ;;  %v5548_v29 = vsel %vm5547_vm15, %v5546_v50, %v5545_v61  ;;  %v5565_v36 = vrot.slane %v14515_v40, 2  ;;  %v14584_v40 = vld [vmem:[%s14259_s30 + $0x11] sm:$0x1] }
 0x1db   : > { %vm3022_vm13 = vcmp.ge.f32.partialorder %v2373_v26, 0.0  ;;  %v3278_v4 = vmul.f32 0.01, %v2373_v26  ;;  %v4345_v2 = vpop.f32.mrf.mxu1  ;;  %v3536_v47 = vsel %vm3024_vm10, %v12302_v59, %v3280_v63  ;;  %vm5553_vm10 = vcmask 1047559  }
 0x1dc   : > { %17405 = vst [vmem:[#allocation13_spill] sm:$0xff] %v14534_v11  ;;  %v12305_v3 = vpop.f32.mrf.mxu0  ;;  %12400 = vmatmul.mubr.msk.bf16.gmra.mxu0 %vm1449_vm0, %v13637_v45  ;;  %v3728_v23 = vpack.c.bf16 %v3536_v47, %v3535_v14  ;;  %v4346_v54 = vadd.f32 %v14264_v57, %v4345_v2  ;;  %v5562_v45 = vsel %vm5544_vm14, %v5561_v5, %v5560_v13  ;;  %v13642_v14 = vld [vmem:[%s13942_s23 + $0x3a8] sm:$0xff]   ;;  %v13643_v13 = vld [vmem:[%s13942_s23 + $0x3b0] sm:$0xff]  }
 0x1dd   : > { %v3534_v7 = vsel %vm3022_vm13, %v2373_v26, %v3278_v4  ;;  %12403 = vmatprep.mubr.msk.bf16.mxu0 %vm1449_vm0, %v13638_v9  ;;  %v12466_v39 = vpop.f32.mrf.mxu1  ;;  %v3283_v32 = vmul.f32 0.01, %v12305_v3  ;;  %vm3027_vm5 = vcmp.ge.f32.partialorder %v12305_v3, 0.0  ;;  %v5552_v9 = vrot.slane %v14452_v52, 1 }
 0x1de   : > { %v3727_v22 = vpack.c.bf16 %v3534_v7, %v3533_v41  ;;  %v2386_v27 = vpop.f32.mrf.mxu0  ;;  %v4357_v44 = vadd.f32 %v12466_v39, %v14264_v57  ;;  %v5564_v4 = vsel %vm5547_vm15, %v5563_v24, %v5562_v45  ;;  %v5551_v41 = vsel %vm5550_vm7, %v5549_v1, %v5548_v29  ;;  %v14581_v7 = vld [vmem:[%s14259_s30 + $0x10] sm:$0x1]  ;;  %v14625_v45 = vld [vmem:[%s14259_s30 + $0x16] sm:$0x1] }
 0x1df   : > { %v4348_v48 = vpop.f32.mrf.mxu1  ;;  %v3281_v62 = vmul.f32 0.01, %v2386_v27  ;;  %vm3025_vm2 = vcmp.ge.f32.partialorder %v2386_v27, 0.0  ;;  %v3539_v2 = vsel %vm3027_vm5, %v12305_v3, %v3283_v32 }
 0x1e0   : > { %v12306_v33 = vpop.f32.mrf.mxu0  ;;  %12563 = vmatprep.mubr.msk.bf16.mxu1 %vm1449_vm0, %v3727_v22  ;;  %v14556_v25 = vpack.c.bf16 %v4357_v44, %v4354_v30  ;;  %v4349_v34 = vadd.f32 %v14264_v57, %v4348_v48  ;;  %v14594_v30 = vld [vmem:[%s14259_s30 + $0x12] sm:$0x1]  ;;  %v14597_v44 = vld [vmem:[%s14259_s30 + $0x13] sm:$0x1] }
 0x1e1   : > { %vm3028_vm1 = vcmp.ge.f32.partialorder %v12306_v33, 0.0  ;;  %v3284_v0 = vmul.f32 0.01, %v12306_v33  ;;  %12564 = vmatmul.mubr.msk.bf16.gmra.mxu1 %vm1449_vm0, %v3728_v23  ;;  %v12469_v12 = vpop.f32.mrf.mxu1  ;;  %v3537_v58 = vsel %vm3025_vm2, %v2386_v27, %v3281_v62  ;;  %v5567_v27 = vrot.slane %v14539_v46, 1 }
 0x1e2   : > { %17406 = vst [vmem:[#allocation14_spill] sm:$0xff] %v14556_v25  ;;  %v2389_v59 = vpop.f32.mrf.mxu0  ;;  %v14564_v49 = vpack.c.bf16 %v4349_v34, %v4346_v54  ;;  %v4370_v38 = vadd.f32 %v12469_v12, %v14264_v57  ;;  %v14606_v34 = vsel %vm5553_vm10, %v5552_v9, %v5551_v41  ;;  %v5450_v1 = vpack.c.bf16 %v14594_v30, %v14594_v30  ;;  %v14653_v41 = vld [vmem:[%s14259_s30 + $0x1a] sm:$0x1] }
 0x1e3   : > { %vm3026_vm6 = vcmp.ge.f32.partialorder %v2389_v59, 0.0  ;;  %v3282_v42 = vmul.f32 0.01, %v2389_v59  ;;  %v4361_v19 = vpop.f32.mrf.mxu1  ;;  %v3540_v63 = vsel %vm3028_vm1, %v12306_v33, %v3284_v0  ;;  %v5566_v33 = vsel %vm5550_vm7, %v5565_v36, %v5564_v4 }
 0x1e4   : > { %17407 = vst [vmem:[#allocation15_spill] sm:$0xff] %v14564_v49  ;;  %v14568_v37 = vpop.f32.mrf.mxu0  ;;  %12404 = vmatmul.mubr.msk.bf16.gmra.mxu0 %vm1449_vm0, %v13639_v28  ;;  %v3730_v20 = vpack.c.bf16 %v3540_v63, %v3539_v2  ;;  %v4362_v3 = vadd.f32 %v14264_v57, %v4361_v19  ;;  %v5448_v0 = vpack.c.bf16 %v14581_v7, %v14581_v7 }
 0x1e5   : > { %v3538_v6 = vsel %vm3026_vm6, %v2389_v59, %v3282_v42  ;;  %12407 = vmatprep.mubr.msk.bf16.mxu0 %vm1449_vm0, %v13641_v56  ;;  %v12470_v26 = vpop.f32.mrf.mxu1  ;;  %v3287_v54 = vmul.f32 0.01, %v14568_v37  ;;  %v14609_v56 = vld [vmem:[%s14259_s30 + $0x14] sm:$0x1]  ;;  %vm3031_vm13 = vcmp.ge.f32.partialorder %v14568_v37, 0.0  ;;  %v14619_v32 = vsel %vm5553_vm10, %v5567_v27, %v5566_v33 }
 0x1e6   : > { %v3729_v17 = vpack.c.bf16 %v3538_v6, %v3537_v58  ;;  %v2402_v47 = vpop.f32.mrf.mxu0  ;;  %v4373_v52 = vadd.f32 %v12470_v26, %v14264_v57  ;;  %v14622_v59 = vld [vmem:[%s14259_s30 + $0x15] sm:$0x1]  ;;  %v14628_v42 = vld [vmem:[%s14259_s30 + $0x17] sm:$0x1]  ;;  %v5449_v19 = vpack.c.bf16 %v14584_v40, %v14584_v40  ;;  %v14637_v58 = vld [vmem:[%s14259_s30 + $0x18] sm:$0x1]  ;;  %v5451_v6 = vpack.c.bf16 %v14597_v44, %v14597_v44 }
 0x1e7   : > { %v4364_v16 = vpop.f32.mrf.mxu1  ;;  %v3285_v23 = vmul.f32 0.01, %v2402_v47  ;;  %vm3029_vm12 = vcmp.ge.f32.partialorder %v2402_v47, 0.0  ;;  %v5452_v26 = vpack.c.bf16 %v14609_v56, %v14609_v56  ;;  %v3543_v4 = vsel %vm3031_vm13, %v14568_v37, %v3287_v54  ;;  %v14676_v33 = vld [vmem:[%s14259_s30 + $0x1e] sm:$0x1]  ;;  %v13646_v40 = vld [vmem:[%s13942_s23 + $0x3c8] sm:$0xff]  }
 0x1e8   : > { %v12310_v39 = vpop.f32.mrf.mxu0  ;;  %12567 = vmatprep.mubr.msk.bf16.mxu1 %vm1449_vm0, %v3729_v17  ;;  %v14588_v5 = vpack.c.bf16 %v4373_v52, %v4370_v38  ;;  %v4365_v22 = vadd.f32 %v14264_v57, %v4364_v16  ;;  %v14649_v38 = vld [vmem:[%s14259_s30 + $0x19] sm:$0x1]  ;;  %v5453_v37 = vpack.c.bf16 %v14622_v59, %v14622_v59  ;;  %v5519_v7 = vunpack.c.l.b16 %v5449_v19 }
 0x1e9   : > { %vm3032_vm11 = vcmp.ge.f32.partialorder %v12310_v39, 0.0  ;;  %v3288_v48 = vmul.f32 0.01, %v12310_v39  ;;  %12568 = vmatmul.mubr.msk.bf16.gmra.mxu1 %vm1449_vm0, %v3730_v20  ;;  %v12473_v50 = vpop.f32.mrf.mxu1  ;;  %v3541_v63 = vsel %vm3029_vm12, %v2402_v47, %v3285_v23  ;;  %v13644_v20 = vld [vmem:[%s13942_s23 + $0x3b8] sm:$0xff]   ;;  %v14739_v30 = vunpack.c.l.b16 %v5452_v26 }
 0x1ea   : > { %17408 = vst [vmem:[#allocation16_spill] sm:$0xff] %v14588_v5  ;;  %v2405_v46 = vpop.f32.mrf.mxu0  ;;  %v14603_v28 = vpack.c.bf16 %v4365_v22, %v4362_v3  ;;  %v4386_v17 = vadd.f32 %v12473_v50, %v14264_v57  ;;  %v5454_v3 = vpack.c.bf16 %v14625_v45, %v14625_v45  ;;  %v14670_v50 = vld [vmem:[%s14259_s30 + $0x1c] sm:$0x1] }
 0x1eb   : > { %vm3030_vm1 = vcmp.ge.f32.partialorder %v2405_v46, 0.0  ;;  %v3286_v61 = vmul.f32 0.01, %v2405_v46  ;;  %v4377_v62 = vpop.f32.mrf.mxu1  ;;  %v3544_v12 = vsel %vm3032_vm11, %v12310_v39, %v3288_v48  ;;  %v14656_v39 = vld [vmem:[%s14259_s30 + $0x1b] sm:$0x1] }
 0x1ec   : > { %17409 = vst [vmem:[#allocation17_spill] sm:$0xff] %v14603_v28  ;;  %v14615_v24 = vpop.f32.mrf.mxu0  ;;  %12408 = vmatmul.mubr.msk.bf16.gmra.mxu0 %vm1449_vm0, %v13642_v14  ;;  %v3732_v52 = vpack.c.bf16 %v3544_v12, %v3543_v4  ;;  %v4378_v27 = vadd.f32 %v14264_v57, %v4377_v62  ;;  %v13645_v12 = vld [vmem:[%s13942_s23 + $0x3c0] sm:$0xff]  }
 0x1ed   : > { %v3542_v29 = vsel %vm3030_vm1, %v2405_v46, %v3286_v61  ;;  %12411 = vmatprep.mubr.msk.bf16.mxu0 %vm1449_vm0, %v13643_v13  ;;  %v12474_v9 = vpop.f32.mrf.mxu1  ;;  %v14673_v13 = vld [vmem:[%s14259_s30 + $0x1d] sm:$0x1]  ;;  %vm3035_vm6 = vcmp.ge.f32.partialorder %v14615_v24, 0.0 }
 0x1ee   : > { %v3731_v36 = vpack.c.bf16 %v3542_v29, %v3541_v63  ;;  %v2418_v2 = vpop.f32.mrf.mxu0  ;;  %v4389_v47 = vadd.f32 %v12474_v9, %v14264_v57  ;;  %v5457_v63 = vpack.c.bf16 %v14649_v38, %v14649_v38  ;;  %v3291_v29 = vmul.f32 0.01, %v14615_v24 }
 0x1ef   : > { %v4380_v16 = vpop.f32.mrf.mxu1  ;;  %v3289_v46 = vmul.f32 0.01, %v2418_v2  ;;  %vm3033_vm5 = vcmp.ge.f32.partialorder %v2418_v2, 0.0 }
 0x1f0   : > { %v12314_v22 = vpop.f32.mrf.mxu0  ;;  %12571 = vmatprep.mubr.msk.bf16.mxu1 %vm1449_vm0, %v3731_v36  ;;  %v14666_v23 = vpack.c.bf16 %v4389_v47, %v4386_v17  ;;  %v4381_v48 = vadd.f32 %v14264_v57, %v4380_v16  ;;  %v14688_v36 = vld [vmem:[%s14259_s30 + $0x1f] sm:$0x1]  ;;  %v5458_v17 = vpack.c.bf16 %v14653_v41, %v14653_v41 }
 0x1f1   : > { %vm3036_vm2 = vcmp.ge.f32.partialorder %v12314_v22, 0.0  ;;  %v3292_v61 = vmul.f32 0.01, %v12314_v22  ;;  %12572 = vmatmul.mubr.msk.bf16.gmra.mxu1 %vm1449_vm0, %v3732_v52  ;;  %v12477_v62 = vpop.f32.mrf.mxu1  ;;  %v3545_v54 = vsel %vm3033_vm5, %v2418_v2, %v3289_v46 }
 0x1f2   : > { %17410 = vst [vmem:[#allocation18_spill] sm:$0xff] %v14666_v23  ;;  %v2421_v9 = vpop.f32.mrf.mxu0  ;;  %v14685_v4 = vpack.c.bf16 %v4381_v48, %v4378_v27  ;;  %v5460_v27 = vpack.c.bf16 %v14670_v50, %v14670_v50  ;;  %v5461_v48 = vpack.c.bf16 %v14673_v13, %v14673_v13  ;;  %v3547_v50 = vsel %vm3035_vm6, %v14615_v24, %v3291_v29  ;;  %v13647_v29 = vld [vmem:[%s13942_s23 + $0x3d0] sm:$0xff]  }
 0x1f3   : > { %vm3034_vm11 = vcmp.ge.f32.partialorder %v2421_v9, 0.0  ;;  %v3290_v47 = vmul.f32 0.01, %v2421_v9  ;;  %v4393_v52 = vpop.f32.mrf.mxu1  ;;  %v3548_v38 = vsel %vm3036_vm2, %v12314_v22, %v3292_v61  ;;  %v4402_v2 = vadd.f32 %v12477_v62, %v14264_v57 }
 0x1f4   : > { %17411 = vst [vmem:[#allocation19_spill] sm:$0xff] %v14685_v4  ;;  %v12317_v60 = vpop.f32.mrf.mxu0  ;;  %12412 = vmatmul.mubr.msk.bf16.gmra.mxu0 %vm1449_vm0, %v13644_v20  ;;  %v14710_v20 = vunpack.c.l.b16 %v5448_v0  ;;  %v14723_v0 = vunpack.c.l.b16 %v5450_v1  ;;  %v14728_v24 = vunpack.c.l.b16 %v5451_v6 }
 0x1f5   : > { %v3546_v14 = vsel %vm3034_vm11, %v2421_v9, %v3290_v47  ;;  %12415 = vmatprep.mubr.msk.bf16.mxu0 %vm1449_vm0, %v13645_v12  ;;  %v12478_v16 = vpop.f32.mrf.mxu1  ;;  %v3734_v12 = vpack.c.bf16 %v3548_v38, %v3547_v50  ;;  %v5527_v47 = vunpack.c.l.b16 %v5457_v63  ;;  %v14748_v50 = vunpack.c.l.b16 %v5453_v37 }
 0x1f6   : > { %v3733_v61 = vpack.c.bf16 %v3546_v14, %v3545_v54  ;;  %v2434_v41 = vpop.f32.mrf.mxu0  ;;  %v4405_v46 = vadd.f32 %v12478_v16, %v14264_v57  ;;  %v4394_v54 = vadd.f32 %v14264_v57, %v4393_v52  ;;  %v3295_v52 = vmul.f32 0.01, %v12317_v60 }
 0x1f7   : > { %v4396_v9 = vpop.f32.mrf.mxu1  ;;  %v3293_v1 = vmul.f32 0.01, %v2434_v41  ;;  %vm3037_vm13 = vcmp.ge.f32.partialorder %v2434_v41, 0.0  ;;  %vm3039_vm1 = vcmp.ge.f32.partialorder %v12317_v60, 0.0  ;;  %v17415_v37 = vpack.c.bf16 %v14637_v58, %v14637_v58 }
 0x1f8   : > { %v12318_v14 = vpop.f32.mrf.mxu0  ;;  %12575 = vmatprep.mubr.msk.bf16.mxu1 %vm1449_vm0, %v3733_v61  ;;  %v14732_v62 = vpack.c.bf16 %v4405_v46, %v4402_v2  ;;  %v4397_v19 = vadd.f32 %v14264_v57, %v4396_v9  ;;  %v14753_v61 = vunpack.c.l.b16 %v5454_v3  ;;  %v17414_v46 = vpack.c.bf16 %v14628_v42, %v14628_v42 }
 0x1f9   : > { %vm3040_vm12 = vcmp.ge.f32.partialorder %v12318_v14, 0.0  ;;  %v3296_v44 = vmul.f32 0.01, %v12318_v14  ;;  %12576 = vmatmul.mubr.msk.bf16.gmra.mxu1 %vm1449_vm0, %v3734_v12  ;;  %v12481_v6 = vpop.f32.mrf.mxu1  ;;  %v5526_v12 = vunpack.c.l.b16 %v17415_v37  ;;  %v5569_v9 = vrot.slane %v5519_v7, 7 }
 0x1fa   : > { %17412 = vst [vmem:[#allocation20_spill] sm:$0xff] %v14732_v62  ;;  %v2437_v16 = vpop.f32.mrf.mxu0  ;;  %v14743_v38 = vpack.c.bf16 %v4397_v19, %v4394_v54  ;;  %v14760_v59 = vunpack.c.l.b16 %v17414_v46  ;;  %v3549_v54 = vsel %vm3037_vm13, %v2434_v41, %v3293_v1  ;;  %v5528_v3 = vunpack.c.l.b16 %v5458_v17 }
 0x1fb   : > { %vm3038_vm2 = vcmp.ge.f32.partialorder %v2437_v16, 0.0  ;;  %v3294_v56 = vmul.f32 0.01, %v2437_v16  ;;  %v4409_v26 = vpop.f32.mrf.mxu1  ;;  %v3552_v63 = vsel %vm3040_vm12, %v12318_v14, %v3296_v44  ;;  %v5583_v14 = vrot.slane %v5527_v47, 7 }
 0x1fc   : > { %17413 = vst [vmem:[#allocation21_spill] sm:$0xff] %v14743_v38  ;;  %v12321_v2 = vpop.f32.mrf.mxu0  ;;  %12416 = vmatmul.mubr.msk.bf16.gmra.mxu0 %vm1449_vm0, %v13646_v40  ;;  %v3551_v40 = vsel %vm3039_vm1, %v12317_v60, %v3295_v52  ;;  %v4418_v46 = vadd.f32 %v12481_v6, %v14264_v57  ;;  %v17416_v41 = vpack.c.bf16 %v14656_v39, %v14656_v39  ;;  %v14774_v1 = vunpack.c.l.b16 %v5460_v27  ;;  %v13648_v6 = vld [vmem:[%s13942_s23 + $0x3d8] sm:$0xff]  }
 0x1fd   : > { %v3550_v19 = vsel %vm3038_vm2, %v2437_v16, %v3294_v56  ;;  %12419 = vmatprep.mubr.msk.bf16.mxu0 %vm1449_vm0, %v13647_v29  ;;  %v12482_v45 = vpop.f32.mrf.mxu1  ;;  %v3736_v58 = vpack.c.bf16 %v3552_v63, %v3551_v40  ;;  %v5571_v17 = vrot.slane %v14723_v0, 6  ;;  %v4410_v60 = vadd.f32 %v14264_v57, %v4409_v26  ;;  %v13649_v16 = vld [vmem:[%s13942_s23 + $0x3e0] sm:$0xff]  }
 0x1fe   : > { %v3735_v44 = vpack.c.bf16 %v3550_v19, %v3549_v54  ;;  %v2450_v42 = vpop.f32.mrf.mxu0  ;;  %v4421_v22 = vadd.f32 %v12482_v45, %v14264_v57  ;;  %v14772_v7 = vunpack.c.l.b16 %v17416_v41  ;;  %v5570_v39 = vsel %vm5535_vm3, %v5569_v9, %v14710_v20 }
 0x1ff   : > { %v4412_v37 = vpop.f32.mrf.mxu1  ;;  %v3297_v56 = vmul.f32 0.01, %v2450_v42  ;;  %v5585_v63 = vrot.slane %v5528_v3, 6  ;;  %v3299_v54 = vmul.f32 0.01, %v12321_v2  ;;  %vm3041_vm6 = vcmp.ge.f32.partialorder %v2450_v42, 0.0 }
 0x200   : > { %v12322_v29 = vpop.f32.mrf.mxu0  ;;  %12579 = vmatprep.mubr.msk.bf16.mxu1 %vm1449_vm0, %v3735_v44  ;;  %v14779_v47 = vpack.c.bf16 %v4421_v22, %v4418_v46  ;;  %v4413_v52 = vadd.f32 %v14264_v57, %v4412_v37  ;;  %v5584_v22 = vsel %vm5535_vm3, %v5583_v14, %v5526_v12  ;;  %vm3043_vm11 = vcmp.ge.f32.partialorder %v12321_v2, 0.0 }
 0x201   : > { %vm3044_vm5 = vcmp.ge.f32.partialorder %v12322_v29, 0.0  ;;  %v3300_v27 = vmul.f32 0.01, %v12322_v29  ;;  %12580 = vmatmul.mubr.msk.bf16.gmra.mxu1 %vm1449_vm0, %v3736_v58  ;;  %v12485_v0 = vpop.f32.mrf.mxu1  ;;  %v5573_v20 = vrot.slane %v14728_v24, 5  ;;  %v14795_v3 = vunpack.c.l.b16 %v5461_v48  ;;  %v14806_v48 = vld [vmem:[%s17273_s8] ss:$0 sm:$0xff] }
 0x202   : > { %17417 = vst [vmem:[#allocation22_spill] sm:$0xff] %v14779_v47  ;;  %v2453_v26 = vpop.f32.mrf.mxu0  ;;  %v14787_v19 = vpack.c.bf16 %v4413_v52, %v4410_v60  ;;  %v5572_v44 = vsel %vm5538_vm8, %v5571_v17, %v5570_v39  ;;  %v5575_v46 = vrot.slane %v14739_v30, 4  ;;  %v3553_v12 = vsel %vm3041_vm6, %v2450_v42, %v3297_v56 }
 0x203   : > { %vm3042_vm12 = vcmp.ge.f32.partialorder %v2453_v26, 0.0  ;;  %v3298_v57 = vmul.f32 0.01, %v2453_v26  ;;  %v4425_v45 = vpop.f32.mrf.mxu1  ;;  %v3556_v9 = vsel %vm3044_vm5, %v12322_v29, %v3300_v27  ;;  %v5586_v24 = vsel %vm5538_vm8, %v5585_v63, %v5584_v22  ;;  %v13650_v27 = vld [vmem:[%s13942_s23 + $0x3e8] sm:$0xff]   ;;  %v13651_v22 = vld [vmem:[%s13942_s23 + $0x3f0] sm:$0xff]  }
 0x204   : > { %17418 = vst [vmem:[#allocation23_spill] sm:$0xff] %v14787_v19  ;;  %v12325_v40 = vpop.f32.mrf.mxu0  ;;  %12420 = vmatmul.mubr.msk.bf16.gmra.mxu0 %vm1449_vm0, %v13648_v6  ;;  %v5587_v37 = vrot.slane %v14772_v7, 5  ;;  %v3555_v41 = vsel %vm3043_vm11, %v12321_v2, %v3299_v54  ;;  %v4434_v30 = vadd.f32 %v14806_v48, %v12485_v0  ;;  %v17419_v6 = vpack.c.bf16 %v14676_v33, %v14676_v33 }
 0x205   : > { %v3554_v14 = vsel %vm3042_vm12, %v2453_v26, %v3298_v57  ;;  %12423 = vmatprep.mubr.msk.bf16.mxu0 %vm1449_vm0, %v13649_v16  ;;  %v12486_v58 = vpop.f32.mrf.mxu1  ;;  %v3738_v17 = vpack.c.bf16 %v3556_v9, %v3555_v41  ;;  %v5574_v2 = vsel %vm5541_vm9, %v5573_v20, %v5572_v44  ;;  %v5577_v52 = vrot.slane %v14748_v50, 3 }
 0x206   : > { %v3737_v29 = vpack.c.bf16 %v3554_v14, %v3553_v12  ;;  %v2466_v13 = vpop.f32.mrf.mxu0  ;;  %v4437_v42 = vadd.f32 %v14806_v48, %v12486_v58  ;;  %v14813_v7 = vunpack.c.l.b16 %v17419_v6  ;;  %v4426_v39 = vadd.f32 %v14806_v48, %v4425_v45 }
 0x207   : > { %v4428_v60 = vpop.f32.mrf.mxu1  ;;  %v5589_v63 = vrot.slane %v14774_v1, 4  ;;  %v3301_v33 = vmul.f32 0.01, %v2466_v13  ;;  %v5588_v50 = vsel %vm5541_vm9, %v5587_v37, %v5586_v24  ;;  %v3303_v57 = vmul.f32 0.01, %v12325_v40 }
 0x208   : > { %v12326_v16 = vpop.f32.mrf.mxu0  ;;  %12583 = vmatprep.mubr.msk.bf16.mxu1 %vm1449_vm0, %v3737_v29  ;;  %v14819_v56 = vpack.c.bf16 %v4437_v42, %v4434_v30  ;;  %v4429_v0 = vadd.f32 %v14806_v48, %v4428_v60  ;;  %vm3045_vm1 = vcmp.ge.f32.partialorder %v2466_v13, 0.0  ;;  %v5576_v9 = vsel %vm5544_vm14, %v5575_v46, %v5574_v2 }
 0x209   : > { %vm3048_vm13 = vcmp.ge.f32.partialorder %v12326_v16, 0.0  ;;  %v3304_v54 = vmul.f32 0.01, %v12326_v16  ;;  %12584 = vmatmul.mubr.msk.bf16.gmra.mxu1 %vm1449_vm0, %v3738_v17  ;;  %v12489_v26 = vpop.f32.mrf.mxu1  ;;  %vm3047_vm2 = vcmp.ge.f32.partialorder %v12325_v40, 0.0  ;;  %v5591_v12 = vrot.slane %v14795_v3, 3 }
 0x20a   : > { %17420 = vst [vmem:[#allocation24_spill] sm:$0xff] %v14819_v56  ;;  %v2469_v45 = vpop.f32.mrf.mxu0  ;;  %v14827_v20 = vpack.c.bf16 %v4429_v0, %v4426_v39  ;;  %v17422_v24 = vpack.c.bf16 %v14688_v36, %v14688_v36  ;;  %v5579_v41 = vrot.slane %v14753_v61, 2  ;;  %v5590_v29 = vsel %vm5544_vm14, %v5589_v63, %v5588_v50  ;;  %v13652_v63 = vld [vmem:[%s13942_s23 + $0x3f8] sm:$0xff]  }
 0x20b   : > { %vm3046_vm5 = vcmp.ge.f32.partialorder %v2469_v45, 0.0  ;;  %v3302_v44 = vmul.f32 0.01, %v2469_v45  ;;  %v4441_v1 = vpop.f32.mrf.mxu1  ;;  %v3560_v14 = vsel %vm3048_vm13, %v12326_v16, %v3304_v54  ;;  %v3557_v46 = vsel %vm3045_vm1, %v2466_v13, %v3301_v33 }
 0x20c   : > { %17421 = vst [vmem:[#allocation25_spill] sm:$0xff] %v14827_v20  ;;  %v12329_v58 = vpop.f32.mrf.mxu0  ;;  %12424 = vmatmul.mubr.msk.bf16.gmra.mxu0 %vm1449_vm0, %v13650_v27  ;;  %v5533_v37 = vunpack.c.l.b16 %v17422_v24  ;;  %v5578_v3 = vsel %vm5547_vm15, %v5577_v52, %v5576_v9  ;;  %v5593_v17 = vrot.slane %v14813_v7, 2  ;;  %v3559_v60 = vsel %vm3047_vm2, %v12325_v40, %v3303_v57 }
 0x20d   : > { %v3558_v30 = vsel %vm3046_vm5, %v2469_v45, %v3302_v44  ;;  %12427 = vmatprep.mubr.msk.bf16.mxu0 %vm1449_vm0, %v13651_v22  ;;  %v12490_v42 = vpop.f32.mrf.mxu1  ;;  %v4450_v36 = vadd.f32 %v14806_v48, %v12489_v26  ;;  %v3740_v16 = vpack.c.bf16 %v3560_v14, %v3559_v60  ;;  %v5597_v13 = vpack.c.b16 %v14619_v32, %v14606_v34 }
 0x20e   : > { %v3739_v6 = vpack.c.bf16 %v3558_v30, %v3557_v46  ;;  %v2482_v2 = vpop.f32.mrf.mxu0  ;;  %v4453_v61 = vadd.f32 %v14806_v48, %v12490_v42  ;;  %v5581_v27 = vrot.slane %v14760_v59, 1  ;;  %v5592_v52 = vsel %vm5547_vm15, %v5591_v12, %v5590_v29 }
 0x20f   : > { %v4444_v39 = vpop.f32.mrf.mxu1  ;;  %v4442_v7 = vadd.f32 %v14806_v48, %v4441_v1  ;;  %v5580_v54 = vsel %vm5550_vm7, %v5579_v41, %v5578_v3  ;;  %v3305_v26 = vmul.f32 0.01, %v2482_v2  ;;  %v5595_v32 = vrot.slane %v5533_v37, 1 }
 0x210   : > { %v12330_v0 = vpop.f32.mrf.mxu0  ;;  %12587 = vmatprep.mubr.msk.bf16.mxu1 %vm1449_vm0, %v3739_v6  ;;  %v14850_v40 = vpack.c.bf16 %v4453_v61, %v4450_v36  ;;  %v4445_v33 = vadd.f32 %v14806_v48, %v4444_v39  ;;  %v3307_v59 = vmul.f32 0.01, %v12329_v58  ;;  %vm3049_vm11 = vcmp.ge.f32.partialorder %v2482_v2, 0.0 }
 0x211   : > { %vm3052_vm6 = vcmp.ge.f32.partialorder %v12330_v0, 0.0  ;;  %v3308_v22 = vmul.f32 0.01, %v12330_v0  ;;  %12588 = vmatmul.mubr.msk.bf16.gmra.mxu1 %vm1449_vm0, %v3740_v16  ;;  %v12493_v34 = vpop.f32.mrf.mxu1  ;;  %v5594_v45 = vsel %vm5550_vm7, %v5593_v17, %v5592_v52  ;;  %vm3051_vm12 = vcmp.ge.f32.partialorder %v12329_v58, 0.0 }
 0x212   : > { %17423 = vst [vmem:[#allocation26_spill] sm:$0xff] %v14850_v40  ;;  %v2485_v50 = vpop.f32.mrf.mxu0  ;;  %v14856_v57 = vpack.c.bf16 %v4445_v33, %v4442_v7  ;;  %v3561_v14 = vsel %vm3049_vm11, %v2482_v2, %v3305_v26  ;;  %v5582_v37 = vsel %vm5553_vm10, %v5581_v27, %v5580_v54  ;;  %v5596_v29 = vsel %vm5553_vm10, %v5595_v32, %v5594_v45 }
 0x213   : > { %vm3050_vm13 = vcmp.ge.f32.partialorder %v2485_v50, 0.0  ;;  %v3306_v9 = vmul.f32 0.01, %v2485_v50  ;;  %v4457_v44 = vpop.f32.mrf.mxu1  ;;  %v3564_v1 = vsel %vm3052_vm6, %v12330_v0, %v3308_v22  ;;  %v3563_v46 = vsel %vm3051_vm12, %v12329_v58, %v3307_v59 }
 0x214   : > { %17424 = vst [vmem:[#allocation27_spill] sm:$0xff] %v14856_v57  ;;  %v12333_v12 = vpop.f32.mrf.mxu0  ;;  %12428 = vmatmul.mubr.msk.bf16.gmra.mxu0 %vm1449_vm0, %v13652_v63  ;;  %v4466_v3 = vadd.f32 %v14806_v48, %v12493_v34  ;;  %v3742_v60 = vpack.c.bf16 %v3564_v1, %v3563_v46  ;;  %v4458_v2 = vadd.f32 %v14806_v48, %v4457_v44  ;;  %v6403_v22 = vsel %vm6334_vm4, %v14425_v15, 0 }
 0x215   : > { %v3562_v24 = vsel %vm3050_vm13, %v2485_v50, %v3306_v9  ;;  %v12494_v41 = vpop.f32.mrf.mxu1  ;;  %12703 = vmatprep.mubr.msk.bf16.mxu0 %vm1449_vm0, %v5597_v13  ;;  %v5598_v16 = vpack.c.b16 %v5596_v29, %v5582_v37  ;;  %v3311_v52 = vmul.f32 0.01, %v12333_v12  ;;  %vm3055_vm5 = vcmp.ge.f32.partialorder %v12333_v12, 0.0 }
 0x216   : > { %v3741_v30 = vpack.c.bf16 %v3562_v24, %v3561_v14  ;;  %v2498_v42 = vpop.f32.mrf.mxu0  ;;  %v4469_v17 = vadd.f32 %v14806_v48, %v12494_v41  ;;  %v17427_v14 = vmov 0.0  }
 0x217   : > { %v4460_v6 = vpop.f32.mrf.mxu1  ;;  %v3309_v13 = vmul.f32 0.01, %v2498_v42  ;;  %vm3053_vm2 = vcmp.ge.f32.partialorder %v2498_v42, 0.0  ;;  %v3567_v50 = vsel %vm3055_vm5, %v12333_v12, %v3311_v52 }
 0x218   : > { %v12334_v36 = vpop.f32.mrf.mxu0  ;;  %12591 = vmatprep.mubr.msk.bf16.mxu1 %vm1449_vm0, %v3741_v30  ;;  %v14867_v61 = vpack.c.bf16 %v4469_v17, %v4466_v3  ;;  %v4461_v39 = vadd.f32 %v14806_v48, %v4460_v6 }
 0x219   : > { %vm3056_vm1 = vcmp.ge.f32.partialorder %v12334_v36, 0.0  ;;  %v3312_v58 = vmul.f32 0.01, %v12334_v36  ;;  %12592 = vmatmul.mubr.msk.bf16.gmra.mxu1 %vm1449_vm0, %v3742_v60  ;;  %v12497_v27 = vpop.f32.mrf.mxu1  ;;  %v3565_v34 = vsel %vm3053_vm2, %v2498_v42, %v3309_v13  ;;  %v6400_v13 = vsel %vm6334_vm4, %v14440_v43, 0 }
 0x21a   : > { %17425 = vst [vmem:[#allocation28_spill] sm:$0xff] %v14867_v61  ;;  %v2501_v0 = vpop.f32.mrf.mxu0  ;;  %v14871_v7 = vpack.c.bf16 %v4461_v39, %v4458_v2  ;;  %v4482_v44 = vadd.f32 %v14806_v48, %v12497_v27 }
 0x21b   : > { %vm3054_vm6 = vcmp.ge.f32.partialorder %v2501_v0, 0.0  ;;  %v3310_v63 = vmul.f32 0.01, %v2501_v0  ;;  %v4473_v33 = vpop.f32.mrf.mxu1  ;;  %v3568_v54 = vsel %vm3056_vm1, %v12334_v36, %v3312_v58 }
 0x21c   : > { %17426 = vst [vmem:[#allocation29_spill] sm:$0xff] %v14871_v7  ;;  %v12337_v26 = vpop.f32.mrf.mxu0  ;;  %12704 = vmatmul.mubr.msk.bf16.vlgmr.msra.gmra.mxu0 %vm1449_vm0, %v5598_v16  ;;  %v3744_v24 = vpack.c.bf16 %v3568_v54, %v3567_v50  ;;  %v4474_v29 = vadd.f32 %v14806_v48, %v4473_v33 }
 0x21d   : > { %v3566_v32 = vsel %vm3054_vm6, %v2501_v0, %v3310_v63  ;;  %v12498_v59 = vpop.f32.mrf.mxu1  ;;  %12720 = vmatpush3.bf16.xpose.msra.mxu0 %v6403_v22  ;;  %v3315_v17 = vmul.f32 0.01, %v12337_v26  ;;  %vm3059_vm13 = vcmp.ge.f32.partialorder %v12337_v26, 0.0 }
 0x21e   : > { %v3743_v45 = vpack.c.bf16 %v3566_v32, %v3565_v34  ;;  %v2514_v9 = vpop.f32.mrf.mxu0  ;;  %v4485_v1 = vadd.f32 %v14806_v48, %v12498_v59  ;;  %12721 = vmatprep.subr.bf16.mxu0 %v17427_v14 }
 0x21f   : > { %v4476_v41 = vpop.f32.mrf.mxu1  ;;  %v3313_v12 = vmul.f32 0.01, %v2514_v9  ;;  %vm3057_vm12 = vcmp.ge.f32.partialorder %v2514_v9, 0.0  ;;  %v3571_v0 = vsel %vm3059_vm13, %v12337_v26, %v3315_v17 }
 0x220   : > { %v12338_v37 = vpop.f32.mrf.mxu0  ;;  %12595 = vmatprep.mubr.msk.bf16.mxu1 %vm1449_vm0, %v3743_v45  ;;  %v14881_v46 = vpack.c.bf16 %v4485_v1, %v4482_v44  ;;  %v4477_v30 = vadd.f32 %v14806_v48, %v4476_v41 }
 0x221   : > { %vm3060_vm11 = vcmp.ge.f32.partialorder %v12338_v37, 0.0  ;;  %v3316_v42 = vmul.f32 0.01, %v12338_v37  ;;  %12596 = vmatmul.mubr.msk.bf16.gmra.mxu1 %vm1449_vm0, %v3744_v24  ;;  %v12501_v3 = vpop.f32.mrf.mxu1  ;;  %v3569_v58 = vsel %vm3057_vm12, %v2514_v9, %v3313_v12 }
 0x222   : > { %17428 = vst [vmem:[#allocation30_spill] sm:$0xff] %v14881_v46  ;;  %v2517_v60 = vpop.f32.mrf.mxu0  ;;  %v14885_v6 = vpack.c.bf16 %v4477_v30, %v4474_v29  ;;  %v4498_v54 = vadd.f32 %v14806_v48, %v12501_v3  ;;  %v6397_v3 = vsel %vm6334_vm4, %v14358_v8, 0 }
 0x223   : > { %vm3058_vm1 = vcmp.ge.f32.partialorder %v2517_v60, 0.0  ;;  %v3314_v36 = vmul.f32 0.01, %v2517_v60  ;;  %v4489_v2 = vpop.f32.mrf.mxu1  ;;  %v3572_v16 = vsel %vm3060_vm11, %v12338_v37, %v3316_v42 }
 0x224   : > { %17429 = vst [vmem:[#allocation31_spill] sm:$0xff] %v14885_v6  ;;  %v12341_v39 = vpop.f32.mrf.mxu0  ;;  %v3746_v34 = vpack.c.bf16 %v3572_v16, %v3571_v0  ;;  %v4490_v50 = vadd.f32 %v14806_v48, %v4489_v2 }
 0x225   : > { %v3570_v27 = vsel %vm3058_vm1, %v2517_v60, %v3314_v36  ;;  %v12502_v52 = vpop.f32.mrf.mxu1  ;;  %12722 = vmatpush3.bf16.xpose.msra.mxu0 %v6400_v13  ;;  %v3319_v24 = vmul.f32 0.01, %v12341_v39  ;;  %vm3063_vm6 = vcmp.ge.f32.partialorder %v12341_v39, 0.0 }
 0x226   : > { %v3745_v63 = vpack.c.bf16 %v3570_v27, %v3569_v58  ;;  %v2530_v33 = vpop.f32.mrf.mxu0  ;;  %v4501_v22 = vadd.f32 %v14806_v48, %v12502_v52  ;;  %12723 = vmatprep.subr.bf16.mxu0 %v17427_v14 }
 0x227   : > { %v4492_v32 = vpop.f32.mrf.mxu1  ;;  %v3317_v26 = vmul.f32 0.01, %v2530_v33  ;;  %vm3061_vm5 = vcmp.ge.f32.partialorder %v2530_v33, 0.0  ;;  %v3575_v2 = vsel %vm3063_vm6, %v12341_v39, %v3319_v24 }
 0x228   : > { %v12342_v59 = vpop.f32.mrf.mxu0  ;;  %12599 = vmatprep.mubr.msk.bf16.mxu1 %vm1449_vm0, %v3745_v63  ;;  %v14894_v45 = vpack.c.bf16 %v4501_v22, %v4498_v54  ;;  %v4493_v9 = vadd.f32 %v14806_v48, %v4492_v32 }
 0x229   : > { %vm3064_vm2 = vcmp.ge.f32.partialorder %v12342_v59, 0.0  ;;  %v3320_v44 = vmul.f32 0.01, %v12342_v59  ;;  %12600 = vmatmul.mubr.msk.bf16.gmra.mxu1 %vm1449_vm0, %v3746_v34  ;;  %v12505_v1 = vpop.f32.mrf.mxu1  ;;  %v3573_v17 = vsel %vm3061_vm5, %v2530_v33, %v3317_v26 }
 0x22a   : > { %17430 = vst [vmem:[#allocation32_spill] sm:$0xff] %v14894_v45  ;;  %v2533_v41 = vpop.f32.mrf.mxu0  ;;  %v14898_v37 = vpack.c.bf16 %v4493_v9, %v4490_v50  ;;  %v4514_v58 = vadd.f32 %v14806_v48, %v12505_v1 }
 0x22b   : > { %vm3062_vm11 = vcmp.ge.f32.partialorder %v2533_v41, 0.0  ;;  %v3318_v29 = vmul.f32 0.01, %v2533_v41  ;;  %v4505_v30 = vpop.f32.mrf.mxu1  ;;  %v3576_v12 = vsel %vm3064_vm2, %v12342_v59, %v3320_v44 }
 0x22c   : > { %17431 = vst [vmem:[#allocation33_spill] sm:$0xff] %v14898_v37  ;;  %v12345_v42 = vpop.f32.mrf.mxu0  ;;  %v3748_v52 = vpack.c.bf16 %v3576_v12, %v3575_v2  ;;  %v4506_v54 = vadd.f32 %v14806_v48, %v4505_v30 }
 0x22d   : > { %v3574_v60 = vsel %vm3062_vm11, %v2533_v41, %v3318_v29  ;;  %v12506_v36 = vpop.f32.mrf.mxu1  ;;  %12724 = vmatpush3.bf16.xpose.msra.mxu0 %v6397_v3  ;;  %v3323_v59 = vmul.f32 0.01, %v12345_v42  ;;  %vm3067_vm1 = vcmp.ge.f32.partialorder %v12345_v42, 0.0  ;;  %v6394_v41 = vsel %vm6334_vm4, %v14377_v18, 0 }
 0x22e   : > { %v3747_v16 = vpack.c.bf16 %v3574_v60, %v3573_v17  ;;  %v2546_v13 = vpop.f32.mrf.mxu0  ;;  %v4517_v27 = vadd.f32 %v14806_v48, %v12506_v36  ;;  %12725 = vmatprep.subr.bf16.mxu0 %v17427_v14 }
 0x22f   : > { %v4508_v0 = vpop.f32.mrf.mxu1  ;;  %v3321_v39 = vmul.f32 0.01, %v2546_v13  ;;  %vm3065_vm13 = vcmp.ge.f32.partialorder %v2546_v13, 0.0  ;;  %v3579_v3 = vsel %vm3067_vm1, %v12345_v42, %v3323_v59 }
 0x230   : > { %v12346_v63 = vpop.f32.mrf.mxu0  ;;  %12603 = vmatprep.mubr.msk.bf16.mxu1 %vm1449_vm0, %v3747_v16  ;;  %v14907_v33 = vpack.c.bf16 %v4517_v27, %v4514_v58  ;;  %v4509_v22 = vadd.f32 %v14806_v48, %v4508_v0 }
 0x231   : > { %vm3068_vm12 = vcmp.ge.f32.partialorder %v12346_v63, 0.0  ;;  %v3324_v34 = vmul.f32 0.01, %v12346_v63  ;;  %12604 = vmatmul.mubr.msk.bf16.gmra.mxu1 %vm1449_vm0, %v3748_v52  ;;  %v12509_v32 = vpop.f32.mrf.mxu1  ;;  %v3577_v29 = vsel %vm3065_vm13, %v2546_v13, %v3321_v39 }
 0x232   : > { %17432 = vst [vmem:[#allocation34_spill] sm:$0xff] %v14907_v33  ;;  %v2549_v50 = vpop.f32.mrf.mxu0  ;;  %v14911_v9 = vpack.c.bf16 %v4509_v22, %v4506_v54  ;;  %v4530_v36 = vadd.f32 %v14806_v48, %v12509_v32 }
 0x233   : > { %vm3066_vm2 = vcmp.ge.f32.partialorder %v2549_v50, 0.0  ;;  %v3322_v26 = vmul.f32 0.01, %v2549_v50  ;;  %v4521_v44 = vpop.f32.mrf.mxu1  ;;  %v3580_v1 = vsel %vm3068_vm12, %v12346_v63, %v3324_v34 }
 0x234   : > { %17433 = vst [vmem:[#allocation35_spill] sm:$0xff] %v14911_v9  ;;  %v12349_v24 = vpop.f32.mrf.mxu0  ;;  %v3750_v16 = vpack.c.bf16 %v3580_v1, %v3579_v3  ;;  %v4522_v52 = vadd.f32 %v14806_v48, %v4521_v44 }
 0x235   : > { %v3578_v30 = vsel %vm3066_vm2, %v2549_v50, %v3322_v26  ;;  %v12510_v12 = vpop.f32.mrf.mxu1  ;;  %12726 = vmatpush3.bf16.xpose.msra.mxu0 %v6394_v41  ;;  %v3327_v22 = vmul.f32 0.01, %v12349_v24  ;;  %vm3071_vm11 = vcmp.ge.f32.partialorder %v12349_v24, 0.0 }
 0x236   : > { %v3749_v17 = vpack.c.bf16 %v3578_v30, %v3577_v29  ;;  %v2562_v60 = vpop.f32.mrf.mxu0  ;;  %v4533_v2 = vadd.f32 %v14806_v48, %v12510_v12  ;;  %12743 = vmatprep.subr.bf16.mxu0 %v17427_v14 }
 0x237   : > { %v4524_v58 = vpop.f32.mrf.mxu1  ;;  %v3325_v42 = vmul.f32 0.01, %v2562_v60  ;;  %vm3069_vm6 = vcmp.ge.f32.partialorder %v2562_v60, 0.0  ;;  %v3583_v29 = vsel %vm3071_vm11, %v12349_v24, %v3327_v22 }
 0x238   : > { %v12350_v27 = vpop.f32.mrf.mxu0  ;;  %12607 = vmatprep.mubr.msk.bf16.mxu1 %vm1449_vm0, %v3749_v17  ;;  %v14920_v13 = vpack.c.bf16 %v4533_v2, %v4530_v36  ;;  %v4525_v0 = vadd.f32 %v14806_v48, %v4524_v58 }
 0x239   : > { %vm3072_vm5 = vcmp.ge.f32.partialorder %v12350_v27, 0.0  ;;  %v3328_v63 = vmul.f32 0.01, %v12350_v27  ;;  %12608 = vmatmul.mubr.msk.bf16.gmra.mxu1 %vm1449_vm0, %v3750_v16  ;;  %v12513_v54 = vpop.f32.mrf.mxu1  ;;  %v3581_v44 = vsel %vm3069_vm6, %v2562_v60, %v3325_v42 }
 0x23a   : > { %17434 = vst [vmem:[#allocation36_spill] sm:$0xff] %v14920_v13  ;;  %v2565_v39 = vpop.f32.mrf.mxu0  ;;  %v14924_v34 = vpack.c.bf16 %v4525_v0, %v4522_v52  ;;  %v4546_v3 = vadd.f32 %v14806_v48, %v12513_v54 }
 0x23b   : > { %vm3070_vm12 = vcmp.ge.f32.partialorder %v2565_v39, 0.0  ;;  %v3326_v32 = vmul.f32 0.01, %v2565_v39  ;;  %v4537_v59 = vpop.f32.mrf.mxu1  ;;  %v3584_v50 = vsel %vm3072_vm5, %v12350_v27, %v3328_v63 }
 0x23c   : > { %17435 = vst [vmem:[#allocation37_spill] sm:$0xff] %v14924_v34  ;;  %v12353_v26 = vpop.f32.mrf.mxu0  ;;  %v3752_v36 = vpack.c.bf16 %v3584_v50, %v3583_v29  ;;  %v4538_v58 = vadd.f32 %v14806_v48, %v4537_v59 }
 0x23d   : > { %v3582_v1 = vsel %vm3070_vm12, %v2565_v39, %v3326_v32  ;;  %v12514_v41 = vpop.f32.mrf.mxu1  ;;  %v3331_v42 = vmul.f32 0.01, %v12353_v26  ;;  %vm3075_vm2 = vcmp.ge.f32.partialorder %v12353_v26, 0.0 }
 0x23e   : > { %v3751_v30 = vpack.c.bf16 %v3582_v1, %v3581_v44  ;;  %v2578_v12 = vpop.f32.mrf.mxu0  ;;  %v4549_v17 = vadd.f32 %v14806_v48, %v12514_v41 }
 0x23f   : > { %v4540_v2 = vpop.f32.mrf.mxu1  ;;  %v3329_v27 = vmul.f32 0.01, %v2578_v12  ;;  %vm3073_vm1 = vcmp.ge.f32.partialorder %v2578_v12, 0.0  ;;  %v3587_v41 = vsel %vm3075_vm2, %v12353_v26, %v3331_v42 }
 0x240   : > { %v12354_v16 = vpop.f32.mrf.mxu0  ;;  %12611 = vmatprep.mubr.msk.bf16.mxu1 %vm1449_vm0, %v3751_v30  ;;  %v14930_v52 = vpack.c.bf16 %v4549_v17, %v4546_v3  ;;  %v4541_v60 = vadd.f32 %v14806_v48, %v4540_v2 }
 0x241   : > { %vm3076_vm13 = vcmp.ge.f32.partialorder %v12354_v16, 0.0  ;;  %v3332_v24 = vmul.f32 0.01, %v12354_v16  ;;  %12612 = vmatmul.mubr.msk.bf16.gmra.mxu1 %vm1449_vm0, %v3752_v36  ;;  %v12517_v0 = vpop.f32.mrf.mxu1  ;;  %v3585_v50 = vsel %vm3073_vm1, %v2578_v12, %v3329_v27 }
 0x242   : > { %17436 = vst [vmem:[#allocation38_spill] sm:$0xff] %v14930_v52  ;;  %v2581_v63 = vpop.f32.mrf.mxu0  ;;  %v14934_v54 = vpack.c.bf16 %v4541_v60, %v4538_v58  ;;  %v4562_v3 = vadd.f32 %v14806_v48, %v12517_v0 }
 0x243   : > { %vm3074_vm5 = vcmp.ge.f32.partialorder %v2581_v63, 0.0  ;;  %v3330_v22 = vmul.f32 0.01, %v2581_v63  ;;  %v4553_v39 = vpop.f32.mrf.mxu1  ;;  %v3588_v32 = vsel %vm3076_vm13, %v12354_v16, %v3332_v24 }
 0x244   : > { %17437 = vst [vmem:[#allocation39_spill] sm:$0xff] %v14934_v54  ;;  %v12357_v59 = vpop.f32.mrf.mxu0  ;;  %v3754_v36 = vpack.c.bf16 %v3588_v32, %v3587_v41  ;;  %v4554_v60 = vadd.f32 %v14806_v48, %v4553_v39 }
 0x245   : > { %v3586_v44 = vsel %vm3074_vm5, %v2581_v63, %v3330_v22  ;;  %v12518_v1 = vpop.f32.mrf.mxu1  ;;  %v3335_v24 = vmul.f32 0.01, %v12357_v59  ;;  %vm3079_vm12 = vcmp.ge.f32.partialorder %v12357_v59, 0.0 }
 0x246   : > { %v3753_v29 = vpack.c.bf16 %v3586_v44, %v3585_v50  ;;  %v2594_v30 = vpop.f32.mrf.mxu0  ;;  %v4565_v17 = vadd.f32 %v14806_v48, %v12518_v1 }
 0x247   : > { %v4556_v2 = vpop.f32.mrf.mxu1  ;;  %v3333_v16 = vmul.f32 0.01, %v2594_v30  ;;  %vm3077_vm11 = vcmp.ge.f32.partialorder %v2594_v30, 0.0  ;;  %v3591_v41 = vsel %vm3079_vm12, %v12357_v59, %v3335_v24 }
 0x248   : > { %v12358_v58 = vpop.f32.mrf.mxu0  ;;  %12615 = vmatprep.mubr.msk.bf16.mxu1 %vm1449_vm0, %v3753_v29  ;;  %v14940_v18 = vpack.c.bf16 %v4565_v17, %v4562_v3  ;;  %v4557_v12 = vadd.f32 %v14806_v48, %v4556_v2 }
 0x249   : > { %vm3080_vm6 = vcmp.ge.f32.partialorder %v12358_v58, 0.0  ;;  %v3336_v26 = vmul.f32 0.01, %v12358_v58  ;;  %12616 = vmatmul.mubr.msk.bf16.gmra.mxu1 %vm1449_vm0, %v3754_v36  ;;  %v12521_v27 = vpop.f32.mrf.mxu1  ;;  %v3589_v50 = vsel %vm3077_vm11, %v2594_v30, %v3333_v16 }
 0x24a   : > { %17438 = vst [vmem:[#allocation40_spill] sm:$0xff] %v14940_v18  ;;  %v2597_v0 = vpop.f32.mrf.mxu0  ;;  %v14944_v42 = vpack.c.bf16 %v4557_v12, %v4554_v60  ;;  %v4578_v17 = vadd.f32 %v14806_v48, %v12521_v27 }
 0x24b   : > { %vm3078_vm13 = vcmp.ge.f32.partialorder %v2597_v0, 0.0  ;;  %v3334_v63 = vmul.f32 0.01, %v2597_v0  ;;  %v4569_v22 = vpop.f32.mrf.mxu1  ;;  %v3592_v39 = vsel %vm3080_vm6, %v12358_v58, %v3336_v26 }
 0x24c   : > { %17439 = vst [vmem:[#allocation41_spill] sm:$0xff] %v14944_v42  ;;  %v12361_v32 = vpop.f32.mrf.mxu0  ;;  %v3756_v2 = vpack.c.bf16 %v3592_v39, %v3591_v41  ;;  %v4570_v12 = vadd.f32 %v14806_v48, %v4569_v22 }
 0x24d   : > { %v3590_v44 = vsel %vm3078_vm13, %v2597_v0, %v3334_v63  ;;  %v12522_v1 = vpop.f32.mrf.mxu1  ;;  %v3339_v26 = vmul.f32 0.01, %v12361_v32  ;;  %vm3083_vm5 = vcmp.ge.f32.partialorder %v12361_v32, 0.0 }
 0x24e   : > { %v3755_v29 = vpack.c.bf16 %v3590_v44, %v3589_v50  ;;  %v2610_v3 = vpop.f32.mrf.mxu0  ;;  %v4581_v36 = vadd.f32 %v14806_v48, %v12522_v1 }
 0x24f   : > { %v4572_v53 = vpop.f32.mrf.mxu1  ;;  %v3337_v58 = vmul.f32 0.01, %v2610_v3  ;;  %vm3081_vm2 = vcmp.ge.f32.partialorder %v2610_v3, 0.0  ;;  %v3595_v1 = vsel %vm3083_vm5, %v12361_v32, %v3339_v26 }
 0x250   : > { %v12362_v60 = vpop.f32.mrf.mxu0  ;;  %12619 = vmatprep.mubr.msk.bf16.mxu1 %vm1449_vm0, %v3755_v29  ;;  %v14950_v8 = vpack.c.bf16 %v4581_v36, %v4578_v17  ;;  %v4573_v30 = vadd.f32 %v14806_v48, %v4572_v53 }
 0x251   : > { %vm3084_vm1 = vcmp.ge.f32.partialorder %v12362_v60, 0.0  ;;  %v3340_v59 = vmul.f32 0.01, %v12362_v60  ;;  %12620 = vmatmul.mubr.msk.bf16.gmra.mxu1 %vm1449_vm0, %v3756_v2  ;;  %v12525_v16 = vpop.f32.mrf.mxu1  ;;  %v3593_v50 = vsel %vm3081_vm2, %v2610_v3, %v3337_v58 }
 0x252   : > { %17440 = vst [vmem:[#allocation42_spill] sm:$0xff] %v14950_v8  ;;  %v2613_v27 = vpop.f32.mrf.mxu0  ;;  %v14954_v24 = vpack.c.bf16 %v4573_v30, %v4570_v12  ;;  %v4594_v17 = vadd.f32 %v14806_v48, %v12525_v16 }
 0x253   : > { %vm3082_vm6 = vcmp.ge.f32.partialorder %v2613_v27, 0.0  ;;  %v3338_v0 = vmul.f32 0.01, %v2613_v27  ;;  %v4585_v63 = vpop.f32.mrf.mxu1  ;;  %v3596_v22 = vsel %vm3084_vm1, %v12362_v60, %v3340_v59 }
 0x254   : > { %17441 = vst [vmem:[#allocation43_spill] sm:$0xff] %v14954_v24  ;;  %v12365_v39 = vpop.f32.mrf.mxu0  ;;  %v3758_v2 = vpack.c.bf16 %v3596_v22, %v3595_v1  ;;  %v4586_v30 = vadd.f32 %v14806_v48, %v4585_v63 }
 0x255   : > { %v3594_v44 = vsel %vm3082_vm6, %v2613_v27, %v3338_v0  ;;  %v12526_v53 = vpop.f32.mrf.mxu1  ;;  %v3343_v59 = vmul.f32 0.01, %v12365_v39  ;;  %vm3087_vm13 = vcmp.ge.f32.partialorder %v12365_v39, 0.0 }
 0x256   : > { %v3757_v41 = vpack.c.bf16 %v3594_v44, %v3593_v50  ;;  %v2626_v29 = vpop.f32.mrf.mxu0  ;;  %v4597_v36 = vadd.f32 %v14806_v48, %v12526_v53 }
 0x257   : > { %v4588_v51 = vpop.f32.mrf.mxu1  ;;  %v3341_v60 = vmul.f32 0.01, %v2626_v29  ;;  %vm3085_vm12 = vcmp.ge.f32.partialorder %v2626_v29, 0.0  ;;  %v3599_v53 = vsel %vm3087_vm13, %v12365_v39, %v3343_v59 }
 0x258   : > { %v12366_v12 = vpop.f32.mrf.mxu0  ;;  %12623 = vmatprep.mubr.msk.bf16.mxu1 %vm1449_vm0, %v3757_v41  ;;  %v14960_v43 = vpack.c.bf16 %v4597_v36, %v4594_v17  ;;  %v4589_v3 = vadd.f32 %v14806_v48, %v4588_v51 }
 0x259   : > { %vm3088_vm11 = vcmp.ge.f32.partialorder %v12366_v12, 0.0  ;;  %v3344_v32 = vmul.f32 0.01, %v12366_v12  ;;  %12624 = vmatmul.mubr.msk.bf16.gmra.mxu1 %vm1449_vm0, %v3758_v2  ;;  %v12529_v58 = vpop.f32.mrf.mxu1  ;;  %v3597_v50 = vsel %vm3085_vm12, %v2626_v29, %v3341_v60 }
 0x25a   : > { %17442 = vst [vmem:[#allocation44_spill] sm:$0xff] %v14960_v43  ;;  %v2629_v16 = vpop.f32.mrf.mxu0  ;;  %v14964_v26 = vpack.c.bf16 %v4589_v3, %v4586_v30  ;;  %v4610_v17 = vadd.f32 %v14806_v48, %v12529_v58 }
 0x25b   : > { %vm3086_vm1 = vcmp.ge.f32.partialorder %v2629_v16, 0.0  ;;  %v3342_v27 = vmul.f32 0.01, %v2629_v16  ;;  %v4601_v0 = vpop.f32.mrf.mxu1  ;;  %v3600_v63 = vsel %vm3088_vm11, %v12366_v12, %v3344_v32 }
 0x25c   : > { %17443 = vst [vmem:[#allocation45_spill] sm:$0xff] %v14964_v26  ;;  %v12369_v22 = vpop.f32.mrf.mxu0  ;;  %v3760_v2 = vpack.c.bf16 %v3600_v63, %v3599_v53  ;;  %v4602_v3 = vadd.f32 %v14806_v48, %v4601_v0 }
 0x25d   : > { %v3598_v44 = vsel %vm3086_vm1, %v2629_v16, %v3342_v27  ;;  %v12530_v51 = vpop.f32.mrf.mxu1  ;;  %v3347_v32 = vmul.f32 0.01, %v12369_v22  ;;  %vm3091_vm6 = vcmp.ge.f32.partialorder %v12369_v22, 0.0 }
 0x25e   : > { %v3759_v1 = vpack.c.bf16 %v3598_v44, %v3597_v50  ;;  %v2642_v41 = vpop.f32.mrf.mxu0  ;;  %v4613_v36 = vadd.f32 %v14806_v48, %v12530_v51 }
 0x25f   : > { %v4604_v55 = vpop.f32.mrf.mxu1  ;;  %v3345_v12 = vmul.f32 0.01, %v2642_v41  ;;  %vm3089_vm5 = vcmp.ge.f32.partialorder %v2642_v41, 0.0  ;;  %v3603_v51 = vsel %vm3091_vm6, %v12369_v22, %v3347_v32 }
 0x260   : > { %v12370_v30 = vpop.f32.mrf.mxu0  ;;  %12627 = vmatprep.mubr.msk.bf16.mxu1 %vm1449_vm0, %v3759_v1  ;;  %v14970_v15 = vpack.c.bf16 %v4613_v36, %v4610_v17  ;;  %v4605_v29 = vadd.f32 %v14806_v48, %v4604_v55 }
 0x261   : > { %vm3092_vm2 = vcmp.ge.f32.partialorder %v12370_v30, 0.0  ;;  %v3348_v39 = vmul.f32 0.01, %v12370_v30  ;;  %12628 = vmatmul.mubr.msk.bf16.gmra.mxu1 %vm1449_vm0, %v3760_v2  ;;  %v12533_v60 = vpop.f32.mrf.mxu1  ;;  %v3601_v50 = vsel %vm3089_vm5, %v2642_v41, %v3345_v12 }
 0x262   : > { %17444 = vst [vmem:[#allocation46_spill] sm:$0xff] %v14970_v15  ;;  %v2645_v58 = vpop.f32.mrf.mxu0  ;;  %v14974_v59 = vpack.c.bf16 %v4605_v29, %v4602_v3  ;;  %v4626_v17 = vadd.f32 %v14806_v48, %v12533_v60 }
 0x263   : > { %vm3090_vm11 = vcmp.ge.f32.partialorder %v2645_v58, 0.0  ;;  %v3346_v16 = vmul.f32 0.01, %v2645_v58  ;;  %v4617_v27 = vpop.f32.mrf.mxu1  ;;  %v3604_v0 = vsel %vm3092_vm2, %v12370_v30, %v3348_v39 }
 0x264   : > { %17445 = vst [vmem:[#allocation47_spill] sm:$0xff] %v14974_v59  ;;  %v12373_v63 = vpop.f32.mrf.mxu0  ;;  %v3762_v2 = vpack.c.bf16 %v3604_v0, %v3603_v51  ;;  %v4618_v29 = vadd.f32 %v14806_v48, %v4617_v27 }
 0x265   : > { %v3602_v44 = vsel %vm3090_vm11, %v2645_v58, %v3346_v16  ;;  %v12534_v55 = vpop.f32.mrf.mxu1  ;;  %v3351_v39 = vmul.f32 0.01, %v12373_v63  ;;  %vm3095_vm1 = vcmp.ge.f32.partialorder %v12373_v63, 0.0 }
 0x266   : > { %v3761_v53 = vpack.c.bf16 %v3602_v44, %v3601_v50  ;;  %v2658_v1 = vpop.f32.mrf.mxu0  ;;  %v4629_v36 = vadd.f32 %v14806_v48, %v12534_v55 }
 0x267   : > { %v4620_v21 = vpop.f32.mrf.mxu1  ;;  %v3349_v30 = vmul.f32 0.01, %v2658_v1  ;;  %vm3093_vm13 = vcmp.ge.f32.partialorder %v2658_v1, 0.0  ;;  %v3607_v55 = vsel %vm3095_vm1, %v12373_v63, %v3351_v39 }
 0x268   : > { %v12374_v3 = vpop.f32.mrf.mxu0  ;;  %12631 = vmatprep.mubr.msk.bf16.mxu1 %vm1449_vm0, %v3761_v53  ;;  %v14980_v59 = vpack.c.bf16 %v4629_v36, %v4626_v17  ;;  %v4621_v41 = vadd.f32 %v14806_v48, %v4620_v21 }
 0x269   : > { %vm3096_vm12 = vcmp.ge.f32.partialorder %v12374_v3, 0.0  ;;  %v3352_v22 = vmul.f32 0.01, %v12374_v3  ;;  %12632 = vmatmul.mubr.msk.bf16.gmra.mxu1 %vm1449_vm0, %v3762_v2  ;;  %v12537_v12 = vpop.f32.mrf.mxu1  ;;  %v3605_v50 = vsel %vm3093_vm13, %v2658_v1, %v3349_v30  ;;  %vm13842_vm13 = vmmov 0  }
 0x26a   : > { %17446 = vst [vmem:[#allocation48_spill] sm:$0xff] %v14980_v59  ;;  %v2661_v60 = vpop.f32.mrf.mxu0  ;;  %v14984_v32 = vpack.c.bf16 %v4621_v41, %v4618_v29  ;;  %v4642_v17 = vadd.f32 %v14806_v48, %v12537_v12  ;;  %12727 = vmatprep.mubr.msk.bf16.mxu0 %vm13842_vm13, %v17427_v14 }
 0x26b   : > { %vm3094_vm2 = vcmp.ge.f32.partialorder %v2661_v60, 0.0  ;;  %v3350_v58 = vmul.f32 0.01, %v2661_v60  ;;  %v4633_v16 = vpop.f32.mrf.mxu1  ;;  %v3608_v27 = vsel %vm3096_vm12, %v12374_v3, %v3352_v22 }
 0x26c   : > { %17447 = vst [vmem:[#allocation49_spill] sm:$0xff] %v14984_v32  ;;  %v12377_v0 = vpop.f32.mrf.mxu0  ;;  %v3764_v2 = vpack.c.bf16 %v3608_v27, %v3607_v55  ;;  %v4634_v41 = vadd.f32 %v14806_v48, %v4633_v16 }
 0x26d   : > { %v3606_v44 = vsel %vm3094_vm2, %v2661_v60, %v3350_v58  ;;  %v12538_v21 = vpop.f32.mrf.mxu1  ;;  %v3355_v22 = vmul.f32 0.01, %v12377_v0  ;;  %vm3099_vm11 = vcmp.ge.f32.partialorder %v12377_v0, 0.0 }
 0x26e   : > { %v3763_v51 = vpack.c.bf16 %v3606_v44, %v3605_v50  ;;  %v2674_v53 = vpop.f32.mrf.mxu0  ;;  %v4645_v36 = vadd.f32 %v14806_v48, %v12538_v21 }
 0x26f   : > { %v4636_v24 = vpop.f32.mrf.mxu1  ;;  %v3353_v3 = vmul.f32 0.01, %v2674_v53  ;;  %vm3097_vm6 = vcmp.ge.f32.partialorder %v2674_v53, 0.0  ;;  %v3611_v21 = vsel %vm3099_vm11, %v12377_v0, %v3355_v22 }
 0x270   : > { %v12378_v29 = vpop.f32.mrf.mxu0  ;;  %12635 = vmatprep.mubr.msk.bf16.mxu1 %vm1449_vm0, %v3763_v51  ;;  %v14990_v15 = vpack.c.bf16 %v4645_v36, %v4642_v17  ;;  %v4637_v1 = vadd.f32 %v14806_v48, %v4636_v24 }
 0x271   : > { %vm3100_vm5 = vcmp.ge.f32.partialorder %v12378_v29, 0.0  ;;  %v3356_v63 = vmul.f32 0.01, %v12378_v29  ;;  %12636 = vmatmul.mubr.msk.bf16.gmra.mxu1 %vm1449_vm0, %v3764_v2  ;;  %v12541_v30 = vpop.f32.mrf.mxu1  ;;  %v3609_v50 = vsel %vm3097_vm6, %v2674_v53, %v3353_v3 }
 0x272   : > { %17448 = vst [vmem:[#allocation50_spill] sm:$0xff] %v14990_v15  ;;  %v2677_v12 = vpop.f32.mrf.mxu0  ;;  %v14994_v39 = vpack.c.bf16 %v4637_v1, %v4634_v41  ;;  %v4658_v17 = vadd.f32 %v14806_v48, %v12541_v30 }
 0x273   : > { %vm3098_vm12 = vcmp.ge.f32.partialorder %v2677_v12, 0.0  ;;  %v3354_v60 = vmul.f32 0.01, %v2677_v12  ;;  %v4649_v58 = vpop.f32.mrf.mxu1  ;;  %v3612_v16 = vsel %vm3100_vm5, %v12378_v29, %v3356_v63 }
 0x274   : > { %17449 = vst [vmem:[#allocation51_spill] sm:$0xff] %v14994_v39  ;;  %v12381_v27 = vpop.f32.mrf.mxu0  ;;  %v3766_v2 = vpack.c.bf16 %v3612_v16, %v3611_v21  ;;  %v4650_v29 = vadd.f32 %v14806_v48, %v4649_v58 }
 0x275   : > { %v3610_v44 = vsel %vm3098_vm12, %v2677_v12, %v3354_v60  ;;  %v12542_v24 = vpop.f32.mrf.mxu1  ;;  %v3359_v30 = vmul.f32 0.01, %v12381_v27  ;;  %vm3103_vm5 = vcmp.ge.f32.partialorder %v12381_v27, 0.0 }
 0x276   : > { %v3765_v55 = vpack.c.bf16 %v3610_v44, %v3609_v50  ;;  %v2690_v51 = vpop.f32.mrf.mxu0  ;;  %v4661_v36 = vadd.f32 %v14806_v48, %v12542_v24 }
 0x277   : > { %v4652_v41 = vpop.f32.mrf.mxu1  ;;  %v3357_v63 = vmul.f32 0.01, %v2690_v51  ;;  %vm3101_vm2 = vcmp.ge.f32.partialorder %v2690_v51, 0.0 }
 0x278   : > { %v12382_v1 = vpop.f32.mrf.mxu0  ;;  %12639 = vmatprep.mubr.msk.bf16.mxu1 %vm1449_vm0, %v3765_v55  ;;  %v15002_v53 = vpack.c.bf16 %v4661_v36, %v4658_v17  ;;  %v4653_v3 = vadd.f32 %v14806_v48, %v4652_v41  ;;  %v3615_v17 = vsel %vm3103_vm5, %v12381_v27, %v3359_v30 }
 0x279   : > { %vm3104_vm1 = vcmp.ge.f32.partialorder %v12382_v1, 0.0  ;;  %v3360_v0 = vmul.f32 0.01, %v12382_v1  ;;  %12640 = vmatmul.mubr.msk.bf16.gmra.mxu1 %vm1449_vm0, %v3766_v2  ;;  %v12545_v22 = vpop.f32.mrf.mxu1  ;;  %v3613_v24 = vsel %vm3101_vm2, %v2690_v51, %v3357_v63 }
 0x27a   : > { %17450 = vst [vmem:[#allocation52_spill] sm:$0xff] %v15002_v53  ;;  %v2693_v12 = vpop.f32.mrf.mxu0  ;;  %v15006_v60 = vpack.c.bf16 %v4653_v3, %v4650_v29  ;;  %v4674_v2 = vadd.f32 %v14806_v48, %v12545_v22 }
 0x27b   : > { %vm3102_vm6 = vcmp.ge.f32.partialorder %v2693_v12, 0.0  ;;  %v3358_v58 = vmul.f32 0.01, %v2693_v12  ;;  %v4665_v16 = vpop.f32.mrf.mxu1  ;;  %v3616_v50 = vsel %vm3104_vm1, %v12382_v1, %v3360_v0 }
 0x27c   : > { %17451 = vst [vmem:[#allocation53_spill] sm:$0xff] %v15006_v60  ;;  %v12385_v44 = vpop.f32.mrf.mxu0  ;;  %v3768_v15 = vpack.c.bf16 %v3616_v50, %v3615_v17  ;;  %v4666_v3 = vadd.f32 %v14806_v48, %v4665_v16 }
 0x27d   : > { %v3614_v21 = vsel %vm3102_vm6, %v2693_v12, %v3358_v58  ;;  %v12546_v55 = vpop.f32.mrf.mxu1  ;;  %v3363_v0 = vmul.f32 0.01, %v12385_v44  ;;  %vm3107_vm1 = vcmp.ge.f32.partialorder %v12385_v44, 0.0 }
 0x27e   : > { %v3767_v36 = vpack.c.bf16 %v3614_v21, %v3613_v24  ;;  %v2706_v41 = vpop.f32.mrf.mxu0  ;;  %v4677_v39 = vadd.f32 %v14806_v48, %v12546_v55 }
 0x27f   : > { %v4668_v53 = vpop.f32.mrf.mxu1  ;;  %v3361_v1 = vmul.f32 0.01, %v2706_v41  ;;  %vm3105_vm12 = vcmp.ge.f32.partialorder %v2706_v41, 0.0 }
 0x280   : > { %v12386_v29 = vpop.f32.mrf.mxu0  ;;  %12643 = vmatprep.mubr.msk.bf16.mxu1 %vm1449_vm0, %v3767_v36  ;;  %v15012_v60 = vpack.c.bf16 %v4677_v39, %v4674_v2  ;;  %v4669_v51 = vadd.f32 %v14806_v48, %v4668_v53  ;;  %v3619_v53 = vsel %vm3107_vm1, %v12385_v44, %v3363_v0 }
 0x281   : > { %vm3108_vm11 = vcmp.ge.f32.partialorder %v12386_v29, 0.0  ;;  %v3364_v27 = vmul.f32 0.01, %v12386_v29  ;;  %12644 = vmatmul.mubr.msk.bf16.gmra.mxu1 %vm1449_vm0, %v3768_v15  ;;  %v12549_v63 = vpop.f32.mrf.mxu1  ;;  %v3617_v50 = vsel %vm3105_vm12, %v2706_v41, %v3361_v1  ;;  %v15021_v15 = vld [vmem:[%s17273_s8] ss:$0 sm:$0xff] }
 0x282   : > { %17452 = vst [vmem:[#allocation54_spill] sm:$0xff] %v15012_v60  ;;  %v2709_v22 = vpop.f32.mrf.mxu0  ;;  %v15016_v30 = vpack.c.bf16 %v4669_v51, %v4666_v3  ;;  %v4690_v17 = vadd.f32 %v15021_v15, %v12549_v63 }
 0x283   : > { %vm3106_vm2 = vcmp.ge.f32.partialorder %v2709_v22, 0.0  ;;  %v3362_v12 = vmul.f32 0.01, %v2709_v22  ;;  %v4681_v58 = vpop.f32.mrf.mxu1  ;;  %v3620_v16 = vsel %vm3108_vm11, %v12386_v29, %v3364_v27 }
 0x284   : > { %17453 = vst [vmem:[#allocation55_spill] sm:$0xff] %v15016_v30  ;;  %v12389_v39 = vpop.f32.mrf.mxu0  ;;  %v3770_v2 = vpack.c.bf16 %v3620_v16, %v3619_v53  ;;  %v4682_v29 = vadd.f32 %v15021_v15, %v4681_v58 }
 0x285   : > { %v3618_v24 = vsel %vm3106_vm2, %v2709_v22, %v3362_v12  ;;  %v12550_v48 = vpop.f32.mrf.mxu1  ;;  %v3367_v63 = vmul.f32 0.01, %v12389_v39  ;;  %vm3111_vm11 = vcmp.ge.f32.partialorder %v12389_v39, 0.0 }
 0x286   : > { %v3769_v21 = vpack.c.bf16 %v3618_v24, %v3617_v50  ;;  %v2722_v55 = vpop.f32.mrf.mxu0  ;;  %v4693_v36 = vadd.f32 %v15021_v15, %v12550_v48 }
 0x287   : > { %v4684_v3 = vpop.f32.mrf.mxu1  ;;  %v3365_v1 = vmul.f32 0.01, %v2722_v55  ;;  %vm3109_vm6 = vcmp.ge.f32.partialorder %v2722_v55, 0.0 }
 0x288   : > { %v12390_v51 = vpop.f32.mrf.mxu0  ;;  %12647 = vmatprep.mubr.msk.bf16.mxu1 %vm1449_vm0, %v3769_v21  ;;  %v15027_v41 = vpack.c.bf16 %v4693_v36, %v4690_v17  ;;  %v4685_v44 = vadd.f32 %v15021_v15, %v4684_v3  ;;  %v3623_v17 = vsel %vm3111_vm11, %v12389_v39, %v3367_v63 }
 0x289   : > { %vm3112_vm5 = vcmp.ge.f32.partialorder %v12390_v51, 0.0  ;;  %v3368_v27 = vmul.f32 0.01, %v12390_v51  ;;  %12648 = vmatmul.mubr.msk.bf16.gmra.mxu1 %vm1449_vm0, %v3770_v2  ;;  %v12553_v0 = vpop.f32.mrf.mxu1  ;;  %v3621_v48 = vsel %vm3109_vm6, %v2722_v55, %v3365_v1 }
 0x28a   : > { %17454 = vst [vmem:[#allocation56_spill] sm:$0xff] %v15027_v41  ;;  %v2725_v22 = vpop.f32.mrf.mxu0  ;;  %v15031_v12 = vpack.c.bf16 %v4685_v44, %v4682_v29  ;;  %v4706_v2 = vadd.f32 %v15021_v15, %v12553_v0 }
 0x28b   : > { %vm3110_vm12 = vcmp.ge.f32.partialorder %v2725_v22, 0.0  ;;  %v3366_v58 = vmul.f32 0.01, %v2725_v22  ;;  %v4697_v16 = vpop.f32.mrf.mxu1  ;;  %v3624_v50 = vsel %vm3112_vm5, %v12390_v51, %v3368_v27 }
 0x28c   : > { %17455 = vst [vmem:[#allocation57_spill] sm:$0xff] %v15031_v12  ;;  %v12393_v24 = vpop.f32.mrf.mxu0  ;;  %v3772_v60 = vpack.c.bf16 %v3624_v50, %v3623_v17  ;;  %v4698_v44 = vadd.f32 %v15021_v15, %v4697_v16 }
 0x28d   : > { %v3622_v53 = vsel %vm3110_vm12, %v2725_v22, %v3366_v58  ;;  %v12554_v21 = vpop.f32.mrf.mxu1  ;;  %v3371_v27 = vmul.f32 0.01, %v12393_v24  ;;  %vm3115_vm5 = vcmp.ge.f32.partialorder %v12393_v24, 0.0 }
 0x28e   : > { %v3771_v36 = vpack.c.bf16 %v3622_v53, %v3621_v48  ;;  %v2738_v3 = vpop.f32.mrf.mxu0  ;;  %v4709_v30 = vadd.f32 %v15021_v15, %v12554_v21 }
 0x28f   : > { %v4700_v41 = vpop.f32.mrf.mxu1  ;;  %v3369_v51 = vmul.f32 0.01, %v2738_v3  ;;  %vm3113_vm2 = vcmp.ge.f32.partialorder %v2738_v3, 0.0  ;;  %v3627_v53 = vsel %vm3115_vm5, %v12393_v24, %v3371_v27 }
 0x290   : > { %v12394_v29 = vpop.f32.mrf.mxu0  ;;  %12651 = vmatprep.mubr.msk.bf16.mxu1 %vm1449_vm0, %v3771_v36  ;;  %v15037_v12 = vpack.c.bf16 %v4709_v30, %v4706_v2  ;;  %v4701_v55 = vadd.f32 %v15021_v15, %v4700_v41 }
 0x291   : > { %vm3116_vm1 = vcmp.ge.f32.partialorder %v12394_v29, 0.0  ;;  %v3372_v39 = vmul.f32 0.01, %v12394_v29  ;;  %12652 = vmatmul.mubr.msk.bf16.gmra.mxu1 %vm1449_vm0, %v3772_v60  ;;  %v12557_v1 = vpop.f32.mrf.mxu1  ;;  %v3625_v50 = vsel %vm3113_vm2, %v2738_v3, %v3369_v51 }
 0x292   : > { %17456 = vst [vmem:[#allocation58_spill] sm:$0xff] %v15037_v12  ;;  %v2741_v0 = vpop.f32.mrf.mxu0  ;;  %v15041_v63 = vpack.c.bf16 %v4701_v55, %v4698_v44  ;;  %v4722_v60 = vadd.f32 %v15021_v15, %v12557_v1 }
 0x293   : > { %vm3114_vm6 = vcmp.ge.f32.partialorder %v2741_v0, 0.0  ;;  %v3370_v22 = vmul.f32 0.01, %v2741_v0  ;;  %v4713_v58 = vpop.f32.mrf.mxu1  ;;  %v3628_v16 = vsel %vm3116_vm1, %v12394_v29, %v3372_v39 }
 0x294   : > { %17457 = vst [vmem:[#allocation59_spill] sm:$0xff] %v15041_v63  ;;  %v12397_v30 = vpop.f32.mrf.mxu0  ;;  %v3774_v2 = vpack.c.bf16 %v3628_v16, %v3627_v53  ;;  %v4714_v55 = vadd.f32 %v15021_v15, %v4713_v58 }
 0x295   : > { %v3626_v48 = vsel %vm3114_vm6, %v2741_v0, %v3370_v22  ;;  %v12558_v41 = vpop.f32.mrf.mxu1  ;;  %v3375_v39 = vmul.f32 0.01, %v12397_v30  ;;  %vm3119_vm1 = vcmp.ge.f32.partialorder %v12397_v30, 0.0 }
 0x296   : > { %v3773_v21 = vpack.c.bf16 %v3626_v48, %v3625_v50  ;;  %v2754_v17 = vpop.f32.mrf.mxu0  ;;  %v4725_v36 = vadd.f32 %v15021_v15, %v12558_v41 }
 0x297   : > { %v4716_v12 = vpop.f32.mrf.mxu1  ;;  %v3373_v29 = vmul.f32 0.01, %v2754_v17  ;;  %vm3117_vm12 = vcmp.ge.f32.partialorder %v2754_v17, 0.0  ;;  %v3631_v41 = vsel %vm3119_vm1, %v12397_v30, %v3375_v39 }
 0x298   : > { %v12398_v44 = vpop.f32.mrf.mxu0  ;;  %12655 = vmatprep.mubr.msk.bf16.mxu1 %vm1449_vm0, %v3773_v21  ;;  %v15047_v63 = vpack.c.bf16 %v4725_v36, %v4722_v60  ;;  %v4717_v3 = vadd.f32 %v15021_v15, %v4716_v12 }
 0x299   : > { %vm3120_vm11 = vcmp.ge.f32.partialorder %v12398_v44, 0.0  ;;  %v3376_v24 = vmul.f32 0.01, %v12398_v44  ;;  %12656 = vmatmul.mubr.msk.bf16.gmra.mxu1 %vm1449_vm0, %v3774_v2  ;;  %v12561_v51 = vpop.f32.mrf.mxu1  ;;  %v3629_v50 = vsel %vm3117_vm12, %v2754_v17, %v3373_v29 }
 0x29a   : > { %17458 = vst [vmem:[#allocation60_spill] sm:$0xff] %v15047_v63  ;;  %v2757_v1 = vpop.f32.mrf.mxu0  ;;  %v15051_v27 = vpack.c.bf16 %v4717_v3, %v4714_v55  ;;  %v4738_v60 = vadd.f32 %v15021_v15, %v12561_v51 }
 0x29b   : > { %vm3118_vm2 = vcmp.ge.f32.partialorder %v2757_v1, 0.0  ;;  %v3374_v0 = vmul.f32 0.01, %v2757_v1  ;;  %v4729_v22 = vpop.f32.mrf.mxu1  ;;  %v3632_v58 = vsel %vm3120_vm11, %v12398_v44, %v3376_v24 }
 0x29c   : > { %17459 = vst [vmem:[#allocation61_spill] sm:$0xff] %v15051_v27  ;;  %v12401_v16 = vpop.f32.mrf.mxu0  ;;  %v3776_v2 = vpack.c.bf16 %v3632_v58, %v3631_v41  ;;  %v4730_v3 = vadd.f32 %v15021_v15, %v4729_v22 }
 0x29d   : > { %v3630_v48 = vsel %vm3118_vm2, %v2757_v1, %v3374_v0  ;;  %v12562_v12 = vpop.f32.mrf.mxu1  ;;  %v3379_v24 = vmul.f32 0.01, %v12401_v16  ;;  %vm3123_vm11 = vcmp.ge.f32.partialorder %v12401_v16, 0.0 }
 0x29e   : > { %v3775_v53 = vpack.c.bf16 %v3630_v48, %v3629_v50  ;;  %v2770_v21 = vpop.f32.mrf.mxu0  ;;  %v4741_v36 = vadd.f32 %v15021_v15, %v12562_v12 }
 0x29f   : > { %v4732_v63 = vpop.f32.mrf.mxu1  ;;  %v3377_v44 = vmul.f32 0.01, %v2770_v21  ;;  %vm3121_vm6 = vcmp.ge.f32.partialorder %v2770_v21, 0.0  ;;  %v3635_v12 = vsel %vm3123_vm11, %v12401_v16, %v3379_v24 }
 0x2a0   : > { %v12402_v55 = vpop.f32.mrf.mxu0  ;;  %12659 = vmatprep.mubr.msk.bf16.mxu1 %vm1449_vm0, %v3775_v53  ;;  %v15057_v27 = vpack.c.bf16 %v4741_v36, %v4738_v60  ;;  %v4733_v17 = vadd.f32 %v15021_v15, %v4732_v63 }
 0x2a1   : > { %vm3124_vm5 = vcmp.ge.f32.partialorder %v12402_v55, 0.0  ;;  %v3380_v30 = vmul.f32 0.01, %v12402_v55  ;;  %12660 = vmatmul.mubr.msk.bf16.gmra.mxu1 %vm1449_vm0, %v3776_v2  ;;  %v12565_v29 = vpop.f32.mrf.mxu1  ;;  %v3633_v50 = vsel %vm3121_vm6, %v2770_v21, %v3377_v44 }
 0x2a2   : > { %17460 = vst [vmem:[#allocation62_spill] sm:$0xff] %v15057_v27  ;;  %v2773_v51 = vpop.f32.mrf.mxu0  ;;  %v15061_v39 = vpack.c.bf16 %v4733_v17, %v4730_v3  ;;  %v4754_v60 = vadd.f32 %v15021_v15, %v12565_v29 }
 0x2a3   : > { %vm3122_vm12 = vcmp.ge.f32.partialorder %v2773_v51, 0.0  ;;  %v3378_v1 = vmul.f32 0.01, %v2773_v51  ;;  %v4745_v0 = vpop.f32.mrf.mxu1  ;;  %v3636_v22 = vsel %vm3124_vm5, %v12402_v55, %v3380_v30 }
 0x2a4   : > { %17461 = vst [vmem:[#allocation63_spill] sm:$0xff] %v15061_v39  ;;  %v12405_v58 = vpop.f32.mrf.mxu0  ;;  %v3778_v2 = vpack.c.bf16 %v3636_v22, %v3635_v12  ;;  %v4746_v17 = vadd.f32 %v15021_v15, %v4745_v0 }
 0x2a5   : > { %v3634_v48 = vsel %vm3122_vm12, %v2773_v51, %v3378_v1  ;;  %v12566_v63 = vpop.f32.mrf.mxu1  ;;  %v3383_v30 = vmul.f32 0.01, %v12405_v58  ;;  %vm3127_vm5 = vcmp.ge.f32.partialorder %v12405_v58, 0.0 }
 0x2a6   : > { %v3777_v41 = vpack.c.bf16 %v3634_v48, %v3633_v50  ;;  %v2786_v53 = vpop.f32.mrf.mxu0  ;;  %v4757_v36 = vadd.f32 %v15021_v15, %v12566_v63 }
 0x2a7   : > { %v4748_v27 = vpop.f32.mrf.mxu1  ;;  %v3381_v55 = vmul.f32 0.01, %v2786_v53  ;;  %vm3125_vm2 = vcmp.ge.f32.partialorder %v2786_v53, 0.0  ;;  %v3639_v63 = vsel %vm3127_vm5, %v12405_v58, %v3383_v30 }
 0x2a8   : > { %v12406_v3 = vpop.f32.mrf.mxu0  ;;  %12663 = vmatprep.mubr.msk.bf16.mxu1 %vm1449_vm0, %v3777_v41  ;;  %v15067_v39 = vpack.c.bf16 %v4757_v36, %v4754_v60  ;;  %v4749_v21 = vadd.f32 %v15021_v15, %v4748_v27 }
 0x2a9   : > { %vm3128_vm1 = vcmp.ge.f32.partialorder %v12406_v3, 0.0  ;;  %v3384_v16 = vmul.f32 0.01, %v12406_v3  ;;  %12664 = vmatmul.mubr.msk.bf16.gmra.mxu1 %vm1449_vm0, %v3778_v2  ;;  %v12569_v44 = vpop.f32.mrf.mxu1  ;;  %v3637_v50 = vsel %vm3125_vm2, %v2786_v53, %v3381_v55 }
 0x2aa   : > { %17462 = vst [vmem:[#allocation64_spill] sm:$0xff] %v15067_v39  ;;  %v2789_v29 = vpop.f32.mrf.mxu0  ;;  %v15071_v24 = vpack.c.bf16 %v4749_v21, %v4746_v17  ;;  %v4770_v60 = vadd.f32 %v15021_v15, %v12569_v44 }
 0x2ab   : > { %vm3126_vm6 = vcmp.ge.f32.partialorder %v2789_v29, 0.0  ;;  %v3382_v51 = vmul.f32 0.01, %v2789_v29  ;;  %v4761_v1 = vpop.f32.mrf.mxu1  ;;  %v3640_v0 = vsel %vm3128_vm1, %v12406_v3, %v3384_v16 }
 0x2ac   : > { %17463 = vst [vmem:[#allocation65_spill] sm:$0xff] %v15071_v24  ;;  %v12409_v22 = vpop.f32.mrf.mxu0  ;;  %v3780_v2 = vpack.c.bf16 %v3640_v0, %v3639_v63  ;;  %v4762_v21 = vadd.f32 %v15021_v15, %v4761_v1 }
 0x2ad   : > { %v3638_v48 = vsel %vm3126_vm6, %v2789_v29, %v3382_v51  ;;  %v12570_v27 = vpop.f32.mrf.mxu1  ;;  %v3387_v16 = vmul.f32 0.01, %v12409_v22  ;;  %vm3131_vm1 = vcmp.ge.f32.partialorder %v12409_v22, 0.0 }
 0x2ae   : > { %v3779_v12 = vpack.c.bf16 %v3638_v48, %v3637_v50  ;;  %v2802_v41 = vpop.f32.mrf.mxu0  ;;  %v4773_v36 = vadd.f32 %v15021_v15, %v12570_v27 }
 0x2af   : > { %v4764_v39 = vpop.f32.mrf.mxu1  ;;  %v3385_v3 = vmul.f32 0.01, %v2802_v41  ;;  %vm3129_vm12 = vcmp.ge.f32.partialorder %v2802_v41, 0.0  ;;  %v3643_v27 = vsel %vm3131_vm1, %v12409_v22, %v3387_v16 }
 0x2b0   : > { %v12410_v17 = vpop.f32.mrf.mxu0  ;;  %12667 = vmatprep.mubr.msk.bf16.mxu1 %vm1449_vm0, %v3779_v12  ;;  %v15077_v24 = vpack.c.bf16 %v4773_v36, %v4770_v60  ;;  %v4765_v53 = vadd.f32 %v15021_v15, %v4764_v39 }
 0x2b1   : > { %vm3132_vm11 = vcmp.ge.f32.partialorder %v12410_v17, 0.0  ;;  %v3388_v58 = vmul.f32 0.01, %v12410_v17  ;;  %12668 = vmatmul.mubr.msk.bf16.gmra.mxu1 %vm1449_vm0, %v3780_v2  ;;  %v12573_v55 = vpop.f32.mrf.mxu1  ;;  %v3641_v50 = vsel %vm3129_vm12, %v2802_v41, %v3385_v3 }
 0x2b2   : > { %17464 = vst [vmem:[#allocation66_spill] sm:$0xff] %v15077_v24  ;;  %v2805_v44 = vpop.f32.mrf.mxu0  ;;  %v15081_v30 = vpack.c.bf16 %v4765_v53, %v4762_v21  ;;  %v4786_v60 = vadd.f32 %v15021_v15, %v12573_v55 }
 0x2b3   : > { %vm3130_vm2 = vcmp.ge.f32.partialorder %v2805_v44, 0.0  ;;  %v3386_v29 = vmul.f32 0.01, %v2805_v44  ;;  %v4777_v51 = vpop.f32.mrf.mxu1  ;;  %v3644_v1 = vsel %vm3132_vm11, %v12410_v17, %v3388_v58 }
 0x2b4   : > { %17465 = vst [vmem:[#allocation67_spill] sm:$0xff] %v15081_v30  ;;  %v12413_v0 = vpop.f32.mrf.mxu0  ;;  %v3782_v2 = vpack.c.bf16 %v3644_v1, %v3643_v27  ;;  %v4778_v53 = vadd.f32 %v15021_v15, %v4777_v51 }
 0x2b5   : > { %v3642_v48 = vsel %vm3130_vm2, %v2805_v44, %v3386_v29  ;;  %v12574_v39 = vpop.f32.mrf.mxu1  ;;  %v3391_v58 = vmul.f32 0.01, %v12413_v0  ;;  %vm3135_vm11 = vcmp.ge.f32.partialorder %v12413_v0, 0.0 }
 0x2b6   : > { %v3781_v63 = vpack.c.bf16 %v3642_v48, %v3641_v50  ;;  %v2818_v12 = vpop.f32.mrf.mxu0  ;;  %v4789_v36 = vadd.f32 %v15021_v15, %v12574_v39 }
 0x2b7   : > { %v4780_v24 = vpop.f32.mrf.mxu1  ;;  %v3389_v17 = vmul.f32 0.01, %v2818_v12  ;;  %vm3133_vm6 = vcmp.ge.f32.partialorder %v2818_v12, 0.0  ;;  %v3647_v39 = vsel %vm3135_vm11, %v12413_v0, %v3391_v58 }
 0x2b8   : > { %v12414_v21 = vpop.f32.mrf.mxu0  ;;  %12671 = vmatprep.mubr.msk.bf16.mxu1 %vm1449_vm0, %v3781_v63  ;;  %v15087_v30 = vpack.c.bf16 %v4789_v36, %v4786_v60  ;;  %v4781_v41 = vadd.f32 %v15021_v15, %v4780_v24 }
 0x2b9   : > { %vm3136_vm5 = vcmp.ge.f32.partialorder %v12414_v21, 0.0  ;;  %v3392_v22 = vmul.f32 0.01, %v12414_v21  ;;  %12672 = vmatmul.mubr.msk.bf16.gmra.mxu1 %vm1449_vm0, %v3782_v2  ;;  %v12577_v3 = vpop.f32.mrf.mxu1  ;;  %v3645_v50 = vsel %vm3133_vm6, %v2818_v12, %v3389_v17 }
 0x2ba   : > { %17466 = vst [vmem:[#allocation68_spill] sm:$0xff] %v15087_v30  ;;  %v2821_v55 = vpop.f32.mrf.mxu0  ;;  %v15091_v16 = vpack.c.bf16 %v4781_v41, %v4778_v53  ;;  %v4802_v60 = vadd.f32 %v15021_v15, %v12577_v3 }
 0x2bb   : > { %vm3134_vm12 = vcmp.ge.f32.partialorder %v2821_v55, 0.0  ;;  %v3390_v44 = vmul.f32 0.01, %v2821_v55  ;;  %v4793_v29 = vpop.f32.mrf.mxu1  ;;  %v3648_v51 = vsel %vm3136_vm5, %v12414_v21, %v3392_v22 }
 0x2bc   : > { %17467 = vst [vmem:[#allocation69_spill] sm:$0xff] %v15091_v16  ;;  %v12417_v1 = vpop.f32.mrf.mxu0  ;;  %v3784_v2 = vpack.c.bf16 %v3648_v51, %v3647_v39  ;;  %v4794_v41 = vadd.f32 %v15021_v15, %v4793_v29 }
 0x2bd   : > { %v3646_v48 = vsel %vm3134_vm12, %v2821_v55, %v3390_v44  ;;  %v12578_v24 = vpop.f32.mrf.mxu1  ;;  %v3395_v22 = vmul.f32 0.01, %v12417_v1  ;;  %vm3139_vm5 = vcmp.ge.f32.partialorder %v12417_v1, 0.0 }
 0x2be   : > { %v3783_v27 = vpack.c.bf16 %v3646_v48, %v3645_v50  ;;  %v2834_v63 = vpop.f32.mrf.mxu0  ;;  %v4805_v36 = vadd.f32 %v15021_v15, %v12578_v24 }
 0x2bf   : > { %v4796_v30 = vpop.f32.mrf.mxu1  ;;  %v3393_v21 = vmul.f32 0.01, %v2834_v63  ;;  %vm3137_vm2 = vcmp.ge.f32.partialorder %v2834_v63, 0.0  ;;  %v3651_v24 = vsel %vm3139_vm5, %v12417_v1, %v3395_v22 }
 0x2c0   : > { %v12418_v53 = vpop.f32.mrf.mxu0  ;;  %12675 = vmatprep.mubr.msk.bf16.mxu1 %vm1449_vm0, %v3783_v27  ;;  %v15097_v16 = vpack.c.bf16 %v4805_v36, %v4802_v60  ;;  %v4797_v12 = vadd.f32 %v15021_v15, %v4796_v30 }
 0x2c1   : > { %vm3140_vm1 = vcmp.ge.f32.partialorder %v12418_v53, 0.0  ;;  %v3396_v0 = vmul.f32 0.01, %v12418_v53  ;;  %12676 = vmatmul.mubr.msk.bf16.gmra.mxu1 %vm1449_vm0, %v3784_v2  ;;  %v12581_v17 = vpop.f32.mrf.mxu1  ;;  %v3649_v50 = vsel %vm3137_vm2, %v2834_v63, %v3393_v21 }
 0x2c2   : > { %17468 = vst [vmem:[#allocation70_spill] sm:$0xff] %v15097_v16  ;;  %v2837_v3 = vpop.f32.mrf.mxu0  ;;  %v15101_v58 = vpack.c.bf16 %v4797_v12, %v4794_v41  ;;  %v4818_v60 = vadd.f32 %v15021_v15, %v12581_v17 }
 0x2c3   : > { %vm3138_vm6 = vcmp.ge.f32.partialorder %v2837_v3, 0.0  ;;  %v3394_v55 = vmul.f32 0.01, %v2837_v3  ;;  %v4809_v44 = vpop.f32.mrf.mxu1  ;;  %v3652_v29 = vsel %vm3140_vm1, %v12418_v53, %v3396_v0 }
 0x2c4   : > { %17469 = vst [vmem:[#allocation71_spill] sm:$0xff] %v15101_v58  ;;  %v12421_v51 = vpop.f32.mrf.mxu0  ;;  %v3786_v2 = vpack.c.bf16 %v3652_v29, %v3651_v24  ;;  %v4810_v12 = vadd.f32 %v15021_v15, %v4809_v44 }
 0x2c5   : > { %v3650_v48 = vsel %vm3138_vm6, %v2837_v3, %v3394_v55  ;;  %v12582_v30 = vpop.f32.mrf.mxu1  ;;  %v3399_v0 = vmul.f32 0.01, %v12421_v51  ;;  %vm3143_vm1 = vcmp.ge.f32.partialorder %v12421_v51, 0.0 }
 0x2c6   : > { %v3785_v39 = vpack.c.bf16 %v3650_v48, %v3649_v50  ;;  %v2850_v27 = vpop.f32.mrf.mxu0  ;;  %v4821_v36 = vadd.f32 %v15021_v15, %v12582_v30 }
 0x2c7   : > { %v4812_v16 = vpop.f32.mrf.mxu1  ;;  %v3397_v53 = vmul.f32 0.01, %v2850_v27  ;;  %vm3141_vm12 = vcmp.ge.f32.partialorder %v2850_v27, 0.0  ;;  %v3655_v30 = vsel %vm3143_vm1, %v12421_v51, %v3399_v0 }
 0x2c8   : > { %v12422_v41 = vpop.f32.mrf.mxu0  ;;  %12679 = vmatprep.mubr.msk.bf16.mxu1 %vm1449_vm0, %v3785_v39  ;;  %v15107_v58 = vpack.c.bf16 %v4821_v36, %v4818_v60  ;;  %v4813_v63 = vadd.f32 %v15021_v15, %v4812_v16 }
 0x2c9   : > { %vm3144_vm11 = vcmp.ge.f32.partialorder %v12422_v41, 0.0  ;;  %v3400_v1 = vmul.f32 0.01, %v12422_v41  ;;  %12680 = vmatmul.mubr.msk.bf16.gmra.mxu1 %vm1449_vm0, %v3786_v2  ;;  %v12585_v21 = vpop.f32.mrf.mxu1  ;;  %v3653_v50 = vsel %vm3141_vm12, %v2850_v27, %v3397_v53 }
 0x2ca   : > { %17470 = vst [vmem:[#allocation72_spill] sm:$0xff] %v15107_v58  ;;  %v2853_v17 = vpop.f32.mrf.mxu0  ;;  %v15111_v22 = vpack.c.bf16 %v4813_v63, %v4810_v12  ;;  %v4834_v60 = vadd.f32 %v15021_v15, %v12585_v21 }
 0x2cb   : > { %vm3142_vm2 = vcmp.ge.f32.partialorder %v2853_v17, 0.0  ;;  %v3398_v3 = vmul.f32 0.01, %v2853_v17  ;;  %v4825_v55 = vpop.f32.mrf.mxu1  ;;  %v3656_v44 = vsel %vm3144_vm11, %v12422_v41, %v3400_v1 }
 0x2cc   : > { %17471 = vst [vmem:[#allocation73_spill] sm:$0xff] %v15111_v22  ;;  %v12425_v29 = vpop.f32.mrf.mxu0  ;;  %v3788_v2 = vpack.c.bf16 %v3656_v44, %v3655_v30  ;;  %v4826_v63 = vadd.f32 %v15021_v15, %v4825_v55  ;;  %v13843_v44 = vmov 1966171168  }
 0x2cd   : > { %v3654_v48 = vsel %vm3142_vm2, %v2853_v17, %v3398_v3  ;;  %v12586_v16 = vpop.f32.mrf.mxu1  ;;  %v3403_v1 = vmul.f32 0.01, %v12425_v29  ;;  %v5694_v17 = vlaneseq  ;;  %vm3147_vm11 = vcmp.ge.f32.partialorder %v12425_v29, 0.0 }
 0x2ce   : > { %v3787_v24 = vpack.c.bf16 %v3654_v48, %v3653_v50  ;;  %v2866_v39 = vpop.f32.mrf.mxu0  ;;  %v4837_v36 = vadd.f32 %v15021_v15, %v12586_v16  ;;  %v5692_v50 = vunpack.c.l.s4 %v13843_v44 }
 0x2cf   : > { %v4828_v58 = vpop.f32.mrf.mxu1  ;;  %v3401_v41 = vmul.f32 0.01, %v2866_v39  ;;  %vm3145_vm6 = vcmp.ge.f32.partialorder %v2866_v39, 0.0  ;;  %v5695_v8 = vshrl.u32 %v5694_v17, 7 }
 0x2d0   : > { %v12426_v12 = vpop.f32.mrf.mxu0  ;;  %12683 = vmatprep.mubr.msk.bf16.mxu1 %vm1449_vm0, %v3787_v24  ;;  %v15117_v22 = vpack.c.bf16 %v4837_v36, %v4834_v60  ;;  %v4829_v27 = vadd.f32 %v15021_v15, %v4828_v58  ;;  %v3659_v60 = vsel %vm3147_vm11, %v12425_v29, %v3403_v1  ;;  %vm8095_vm11 = vcmask 519168  }
 0x2d1   : > { %vm3148_vm5 = vcmp.ge.f32.partialorder %v12426_v12, 0.0  ;;  %v3404_v51 = vmul.f32 0.01, %v12426_v12  ;;  %12684 = vmatmul.mubr.msk.bf16.gmra.mxu1 %vm1449_vm0, %v3788_v2  ;;  %v12589_v53 = vpop.f32.mrf.mxu1  ;;  %v3657_v16 = vsel %vm3145_vm6, %v2866_v39, %v3401_v41 }
 0x2d2   : > { %17472 = vst [vmem:[#allocation74_spill] sm:$0xff] %v15117_v22  ;;  %v2869_v21 = vpop.f32.mrf.mxu0  ;;  %v15121_v0 = vpack.c.bf16 %v4829_v27, %v4826_v63  ;;  %v4850_v22 = vadd.f32 %v15021_v15, %v12589_v53 }
 0x2d3   : > { %vm3146_vm12 = vcmp.ge.f32.partialorder %v2869_v21, 0.0  ;;  %v3402_v3 = vmul.f32 0.01, %v2869_v21  ;;  %v4841_v55 = vpop.f32.mrf.mxu1  ;;  %v3660_v48 = vsel %vm3148_vm5, %v12426_v12, %v3404_v51 }
 0x2d4   : > { %17473 = vst [vmem:[#allocation75_spill] sm:$0xff] %v15121_v0  ;;  %v12429_v58 = vpop.f32.mrf.mxu0  ;;  %v3790_v27 = vpack.c.bf16 %v3660_v48, %v3659_v60  ;;  %v5693_v0 = vunpack.c.0.s8 %v5692_v50  ;;  %v4842_v59 = vadd.f32 %v15021_v15, %v4841_v55 }
 0x2d5   : > { %v3658_v30 = vsel %vm3146_vm12, %v2869_v21, %v3402_v3  ;;  %v12590_v24 = vpop.f32.mrf.mxu1  ;;  %v3407_v53 = vmul.f32 0.01, %v12429_v58  ;;  %v15134_v21 = vld [vmem:[%s17271_s6] ss:$0 sm:$0xff]  ;;  %vm3151_vm5 = vcmp.ge.f32.partialorder %v12429_v58, 0.0 }
 0x2d6   : > { %v3789_v36 = vpack.c.bf16 %v3658_v30, %v3657_v16  ;;  %v2882_v2 = vpop.f32.mrf.mxu0  ;;  %v4853_v63 = vadd.f32 %v15021_v15, %v12590_v24 }
 0x2d7   : > { %v4844_v32 = vpop.f32.mrf.mxu1  ;;  %v3405_v29 = vmul.f32 0.01, %v2882_v2  ;;  %vm3149_vm2 = vcmp.ge.f32.partialorder %v2882_v2, 0.0  ;;  %v3663_v24 = vsel %vm3151_vm5, %v12429_v58, %v3407_v53 }
 0x2d8   : > { %v12430_v26 = vpop.f32.mrf.mxu0  ;;  %12687 = vmatprep.mubr.msk.bf16.mxu1 %vm1449_vm0, %v3789_v36  ;;  %v15127_v12 = vpack.c.bf16 %v4853_v63, %v4850_v22  ;;  %v4845_v39 = vadd.f32 %v15021_v15, %v4844_v32  ;;  %v15138_v32 = vsub.s32 %v5693_v0, %v5695_v8 }
 0x2d9   : > { %vm3152_vm1 = vcmp.ge.f32.partialorder %v12430_v26, 0.0  ;;  %v3408_v41 = vmul.f32 0.01, %v12430_v26  ;;  %12688 = vmatmul.mubr.msk.bf16.gmra.mxu1 %vm1449_vm0, %v3790_v27  ;;  %v12593_v51 = vpop.f32.mrf.mxu1  ;;  %v3661_v50 = vsel %vm3149_vm2, %v2882_v2, %v3405_v29 }
 0x2da   : > { %17474 = vst [vmem:[#allocation76_spill] sm:$0xff] %v15127_v12  ;;  %v2885_v1 = vpop.f32.mrf.mxu0  ;;  %v15136_v17 = vpack.c.bf16 %v4845_v39, %v4842_v59  ;;  %17476 = vst [vmem:[#allocation78_spill] sm:$0xff] %v15138_v32  ;;  %v4866_v59 = vadd.f32 %v15021_v15, %v12593_v51 }
 0x2db   : > { %vm3150_vm6 = vcmp.ge.f32.partialorder %v2885_v1, 0.0  ;;  %v3406_v22 = vmul.f32 0.01, %v2885_v1  ;;  %v15140_v3 = vpop.f32.mrf.mxu1  ;;  %v3664_v55 = vsel %vm3152_vm1, %v12430_v26, %v3408_v41  ;;  %v15148_v26 = vsub.s32 0, %v5695_v8 }
 0x2dc   : > { %17475 = vst [vmem:[#allocation77_spill] sm:$0xff] %v15136_v17  ;;  %17477 = vst [vmem:[#allocation79_spill] sm:$0xff] %v15140_v3  ;;  %v12705_v44 = vpop.f32.mrf.mxu0  ;;  %v3792_v27 = vpack.c.bf16 %v3664_v55, %v3663_v24 }
 0x2dd   : > { %v3662_v48 = vsel %vm3150_vm6, %v2885_v1, %v3406_v22  ;;  %v5680_v16 = vadd.f32 %v12705_v44, %v15134_v21  ;;  %v12594_v30 = vpop.f32.mrf.mxu1 }
 0x2de   : > { %v3791_v60 = vpack.c.bf16 %v3662_v48, %v3661_v50  ;;  %v5671_v36 = vpop.f32.mrf.mxu0  ;;  %v4869_v63 = vadd.f32 %v15021_v15, %v12594_v30 }
 0x2df   : > { %v5788_v39 = vcombine.high %v5680_v16, %v5680_v16  ;;  %v5795_v0 = vrot.slane %v5680_v16, %v15138_v32  ;;  %v15146_v17 = vpop.f32.mrf.mxu1  ;;  %v15151_v2 = vadd.f32 %v15134_v21, %v5671_v36 }
 0x2e0   : > { %17478 = vst [vmem:[#allocation80_spill] sm:$0xff] %v15146_v17  ;;  %12691 = vmatprep.mubr.msk.bf16.mxu1 %vm1449_vm0, %v3791_v60  ;;  %v15154_v58 = vpack.c.bf16 %v4869_v63, %v4866_v59  ;;  %v12706_v29 = vpop.f32.mrf.mxu0 }
 0x2e1   : > { %v5802_v41 = vrot.slane %v5788_v39, %v15138_v32  ;;  %v5803_v51 = vcombine.high %v5795_v0, %v5795_v0  ;;  %v15158_v53 = vrot.slane %v5795_v0, %v15138_v32  ;;  %12692 = vmatmul.mubr.msk.bf16.gmra.mxu1 %vm1449_vm0, %v3792_v27  ;;  %v12597_v1 = vpop.f32.mrf.mxu1  ;;  %v15164_v8 = vadd.f32 %v12706_v29, %v15134_v21 }
 0x2e2   : > { %17479 = vst [vmem:[#allocation81_spill] sm:$0xff] %v15154_v58  ;;  %12715 = vmatprep.mubr.msk.bf16.mxu1 %vm13842_vm13, %v17427_v14  ;;  %v5697_v30 = vrot.slane %v15151_v2, %v15138_v32  ;;  %v6458_v58 = vsel %vm6334_vm4, %v14525_v35, 0 }
 0x2e3   : > { %v5804_v22 = vcombine.high %v5802_v41, %v5802_v41  ;;  %v15167_v55 = vrot.slane %v5802_v41, %v15138_v32  ;;  %v15170_v44 = vrot.slane %v5803_v51, %v15138_v32  ;;  %v5833_v50 = vcombine.high %v15158_v53, %v15158_v53  ;;  %v15174_v48 = vpop.f32.mrf.mxu1 }
 0x2e4   : > { %v5705_v59 = vcombine.high %v5697_v30, %v5697_v30  ;;  %v15210_v39 = vrot.slane %v5697_v30, %v15138_v32 }
 0x2e5   : > { %17480 = vst [vmem:[#allocation82_spill] sm:$0xff] %v15167_v55  ;;  %v15181_v24 = vrot.slane %v5804_v22, %v15138_v32  ;;  %v5834_v60 = vcombine.high %v15167_v55, %v15167_v55  ;;  %v5835_v36 = vcombine.high %v15170_v44, %v15170_v44  ;;  %v12598_v63 = vpop.f32.mrf.mxu1  ;;  %v15190_v27 = vrot.slane %v5833_v50, %v15148_v26 }
 0x2e6   : > { %v5889_v41 = vrot.slane %v15210_v39, %v15148_v26  ;;  %v4885_v3 = vadd.f32 %v15021_v15, %v12598_v63 }
 0x2e7   : > { %17481 = vst [vmem:[#allocation83_spill] sm:$0xff] %v15181_v24  ;;  %17482 = vst [vmem:[#allocation84_spill] sm:$0xff] %v15190_v27  ;;  %v5836_v0 = vcombine.high %v15181_v24, %v15181_v24  ;;  %v15197_v29 = vrot.slane %v5835_v36, %v15148_v26  ;;  %v15202_v51 = vrot.slane %v5834_v60, %v15148_v26  ;;  %v15204_v22 = vpop.f32.mrf.mxu1 }
 0x2e8   : > { %v15215_v36 = vrot.slane %v5705_v59, %v15138_v32  ;;  %v4882_v27 = vadd.f32 %v15021_v15, %v12597_v1 }
 0x2e9   : > { %17483 = vst [vmem:[#allocation85_spill] sm:$0xff] %v15197_v29  ;;  %17484 = vst [vmem:[#allocation86_spill] sm:$0xff] %v15202_v51  ;;  %v15207_v50 = vrot.slane %v5836_v0, %v15148_v26  ;;  %v12601_v16 = vpop.f32.mrf.mxu1  ;;  %v15222_v51 = vld [vmem:[%s17268_s3] sm:$0xf] }
 0x2ea   : > { %v5893_v0 = vrot.slane %v15215_v36, %v15148_v26  ;;  %v6046_v30 = vmul.f32 %v5889_v41, %v15222_v51  ;;  %v6513_v41 = vsel %vm6334_vm4, %v14588_v5, 0  ;;  %v4898_v63 = vadd.f32 %v15021_v15, %v12601_v16 }
 0x2eb   : > { %17485 = vst [vmem:[#allocation87_spill] sm:$0xff] %v15207_v50  ;;  %v15212_v55 = vpop.f32.mrf.mxu1  ;;  %v5844_v16 = vrot.slane %v15164_v8, %v15138_v32 }
 0x2ec   : > { %17486 = vst [vmem:[#allocation88_spill] sm:$0xff] %v15212_v55  ;;  %v6047_v24 = vmul.f32 %v5893_v0, %v15222_v51  ;;  %v6078_v59 = vpack.c.bf16 %v6046_v30, %v6046_v30  ;;  %v15240_v0 = vpack.c.bf16 %v4885_v3, %v4882_v27  ;;  %v5837_v3 = vcombine.high %v15164_v8, %v15164_v8 }
 0x2ed   : > { %v12602_v60 = vpop.f32.mrf.mxu1  ;;  %v5852_v5 = vcombine.high %v5844_v16, %v5844_v16  ;;  %v15265_v35 = vrot.slane %v5844_v16, %v15138_v32 }
 0x2ee   : > { %v6079_v29 = vpack.c.bf16 %v6047_v24, %v6047_v24  ;;  %12716 = vmatmul.mubr.msk.bf16.vlgmr.msra.gmra.mxu1 %vm6334_vm4, %v6078_v59  ;;  %17489 = vst [vmem:[#allocation91_spill] sm:$0xff] %v15240_v0  ;;  %v5674_v24 = vpop.f32.mrf.mxu0  ;;  %v4901_v30 = vadd.f32 %v15021_v15, %v12602_v60 }
 0x2ef   : > { %v15227_v50 = vpop.f32.mrf.mxu1  ;;  %12732 = vmatpush3.bf16.xpose.msra.mxu1 %v6458_v58  ;;  %12739 = vmatprep.mubr.msk.bf16.mxu1 %vm13842_vm13, %v17427_v14  ;;  %17491 = vst [vmem:[#allocation93_spill] sm:$0xff] %v15265_v35 }
 0x2f0   : > { %17487 = vst [vmem:[#allocation89_spill] sm:$0xff] %v15227_v50  ;;  %12728 = vmatmul.mubr.msk.bf16.vlgmr.msra.gmra.mxu0 %vm6334_vm4, %v6079_v29  ;;  %12733 = vmatprep.subr.bf16.mxu1 %v17427_v14  ;;  %v15258_v27 = vpack.c.bf16 %v4901_v30, %v4898_v63  ;;  %v6455_v50 = vsel %vm6334_vm4, %v14534_v11, 0  ;;  %v5882_v30 = vcombine.high %v15265_v35, %v15265_v35 }
 0x2f1   : > { %v12605_v55 = vpop.f32.mrf.mxu1  ;;  %12744 = vmatpush3.bf16.xpose.msra.mxu0 %v6513_v41  ;;  %12751 = vmatprep.mubr.msk.bf16.mxu0 %vm13842_vm13, %v17427_v14 }
 0x2f2   : > { %12745 = vmatprep.subr.bf16.mxu0 %v17427_v14  ;;  %v4914_v58 = vadd.f32 %v15021_v15, %v12605_v55  ;;  %17490 = vst [vmem:[#allocation92_spill] sm:$0xff] %v15258_v27  ;;  %v5675_v55 = vadd.f32 %v15134_v21, %v5674_v24  ;;  %v15277_v24 = vrot.slane %v5852_v5, %v15138_v32 }
 0x2f3   : > { %v15235_v17 = vpop.f32.mrf.mxu1 }
 0x2f4   : > { %17488 = vst [vmem:[#allocation90_spill] sm:$0xff] %v15235_v17  ;;  %v6510_v17 = vsel %vm6334_vm4, %v14603_v28, 0  ;;  %17494 = vst [vmem:[#allocation96_spill] sm:$0xff] %v15277_v24  ;;  %v5746_v16 = vrot.slane %v5675_v55, %v15138_v32 }
 0x2f5   : > { %v12606_v1 = vpop.f32.mrf.mxu1 }
 0x2f6   : > { %v4917_v29 = vadd.f32 %v15021_v15, %v12606_v1  ;;  %v5851_v1 = vrot.slane %v5837_v3, %v15138_v32  ;;  %v5739_v3 = vcombine.high %v5675_v55, %v5675_v55 }
 0x2f7   : > { %v15248_v59 = vpop.f32.mrf.mxu1  ;;  %12734 = vmatpush3.bf16.xpose.msra.mxu1 %v6455_v50  ;;  %v5884_v50 = vcombine.high %v15277_v24, %v15277_v24  ;;  %v6452_v24 = vsel %vm6334_vm4, %v14488_v10, 0 }
 0x2f8   : > { %v15261_v60 = vpack.c.bf16 %v4917_v29, %v4914_v58  ;;  %v5853_v63 = vcombine.high %v5851_v1, %v5851_v1  ;;  %v15274_v21 = vrot.slane %v5851_v1, %v15138_v32  ;;  %12735 = vmatprep.subr.bf16.mxu1 %v17427_v14 }
 0x2f9   : > { %v12609_v41 = vpop.f32.mrf.mxu1  ;;  %12746 = vmatpush3.bf16.xpose.msra.mxu0 %v6510_v17  ;;  %v15298_v17 = vrot.slane %v5882_v30, %v15148_v26  ;;  %v15307_v35 = vrot.slane %v5884_v50, %v15148_v26 }
 0x2fa   : > { %17493 = vst [vmem:[#allocation95_spill] sm:$0xff] %v15274_v21  ;;  %v4930_v58 = vadd.f32 %v15021_v15, %v12609_v41  ;;  %v15287_v28 = vrot.slane %v5853_v63, %v15138_v32  ;;  %v5883_v5 = vcombine.high %v15274_v21, %v15274_v21  ;;  %12747 = vmatprep.subr.bf16.mxu0 %v17427_v14 }
 0x2fb   : > { %v15271_v8 = vpop.f32.mrf.mxu1  ;;  %17496 = vst [vmem:[#allocation98_spill] sm:$0xff] %v15298_v17  ;;  %17498 = vst [vmem:[#allocation100_spill] sm:$0xff] %v15307_v35  ;;  %v5753_v63 = vrot.slane %v5739_v3, %v15138_v32  ;;  %v5754_v21 = vcombine.high %v5746_v16, %v5746_v16 }
 0x2fc   : > { %17492 = vst [vmem:[#allocation94_spill] sm:$0xff] %v15271_v8  ;;  %17495 = vst [vmem:[#allocation97_spill] sm:$0xff] %v15287_v28  ;;  %v5885_v11 = vcombine.high %v15287_v28, %v15287_v28  ;;  %v15312_v8 = vrot.slane %v5883_v5, %v15148_v26  ;;  %v5737_v5 = vcombine.high %v15215_v36, %v15215_v36 }
 0x2fd   : > { %v12610_v1 = vpop.f32.mrf.mxu1 }
 0x2fe   : > { %v4933_v41 = vadd.f32 %v15021_v15, %v12610_v1  ;;  %17499 = vst [vmem:[#allocation101_spill] sm:$0xff] %v15312_v8  ;;  %v15317_v17 = vrot.slane %v5885_v11, %v15148_v26  ;;  %v5735_v1 = vcombine.high %v15210_v39, %v15210_v39  ;;  %v15335_v39 = vrot.slane %v5746_v16, %v15138_v32 }
 0x2ff   : > { %v15302_v29 = vpop.f32.mrf.mxu1  ;;  %12736 = vmatpush3.bf16.xpose.msra.mxu1 %v6452_v24  ;;  %v15338_v24 = vrot.slane %v5753_v63, %v15138_v32 }
 0x300   : > { %17497 = vst [vmem:[#allocation99_spill] sm:$0xff] %v15302_v29  ;;  %v15314_v55 = vpack.c.bf16 %v4933_v41, %v4930_v58  ;;  %17501 = vst [vmem:[#allocation103_spill] sm:$0xff] %v15317_v17  ;;  %v6507_v58 = vsel %vm6334_vm4, %v14556_v25, 0  ;;  %12737 = vmatprep.subr.bf16.mxu1 %v17427_v14  ;;  %v5755_v41 = vcombine.high %v5753_v63, %v5753_v63 }
 0x301   : > { %v12613_v30 = vpop.f32.mrf.mxu1  ;;  %12748 = vmatpush3.bf16.xpose.msra.mxu0 %v6507_v58  ;;  %v15341_v25 = vrot.slane %v5754_v21, %v15138_v32  ;;  %v5785_v16 = vcombine.high %v15338_v24, %v15338_v24 }
 0x302   : > { %17500 = vst [vmem:[#allocation102_spill] sm:$0xff] %v15314_v55  ;;  %v4946_v11 = vadd.f32 %v15021_v15, %v12613_v30  ;;  %12749 = vmatprep.subr.bf16.mxu0 %v17427_v14  ;;  %v15346_v58 = vrot.slane %v5755_v41, %v15138_v32  ;;  %v5897_v30 = vrot.slane %v5735_v1, %v15148_v26 }
 0x303   : > { %v15322_v50 = vpop.f32.mrf.mxu1  ;;  %v5786_v21 = vcombine.high %v15341_v25, %v15341_v25  ;;  %v5901_v1 = vrot.slane %v5737_v5, %v15148_v26 }
 0x304   : > { %v5787_v8 = vcombine.high %v15346_v58, %v15346_v58  ;;  %v6048_v35 = vmul.f32 %v5897_v30, %v15222_v51  ;;  %v6568_v30 = vsel %vm6334_vm4, %v14732_v62, 0 }
 0x305   : > { %v12614_v3 = vpop.f32.mrf.mxu1  ;;  %v15374_v29 = vrot.slane %v5786_v21, %v15148_v26 }
 0x306   : > { %v4949_v10 = vadd.f32 %v15021_v15, %v12614_v3  ;;  %v5784_v3 = vcombine.high %v15335_v39, %v15335_v39  ;;  %v15382_v5 = vrot.slane %v5787_v8, %v15148_v26 }
 0x307   : > { %v15343_v36 = vpop.f32.mrf.mxu1 }
 0x308   : > { %v15349_v17 = vpack.c.bf16 %v4949_v10, %v4946_v11  ;;  %v6449_v11 = vsel %vm6334_vm4, %v14497_v31, 0  ;;  %v15367_v28 = vrot.slane %v5784_v3, %v15148_v26  ;;  %v15379_v10 = vrot.slane %v5785_v16, %v15148_v26 }
 0x309   : > { %v12617_v63 = vpop.f32.mrf.mxu1  ;;  %12738 = vmatpush3.bf16.xpose.msra.mxu1 %v6449_v11  ;;  %v6504_v3 = vsel %vm6334_vm4, %v14564_v49, 0  ;;  %v6049_v31 = vmul.f32 %v5901_v1, %v15222_v51 }
 0x30a   : > { %12750 = vmatpush3.bf16.xpose.msra.mxu0 %v6504_v3  ;;  %12755 = vmatprep.subr.bf16.mxu1 %v17427_v14  ;;  %v4962_v16 = vadd.f32 %v15021_v15, %v12617_v63 }
 0x30b   : > { %v15371_v55 = vpop.f32.mrf.mxu1  ;;  %12767 = vmatprep.subr.bf16.mxu0 %v17427_v14  ;;  %v6081_v27 = vpack.c.bf16 %v6049_v31, %v6049_v31  ;;  %v15409_v31 = vld [vmem:[%s17273_s8] ss:$0 sm:$0xff] }
 0x30c   : > { %17502 = vst [vmem:[#allocation104_spill] sm:$0xff] %v15371_v55  ;;  %v6080_v55 = vpack.c.bf16 %v6048_v35, %v6048_v35 }
 0x30d   : > { %v12618_v21 = vpop.f32.mrf.mxu1 }
 0x30e   : > { %v4965_v41 = vadd.f32 %v15021_v15, %v12618_v21  ;;  %v6623_v15 = vsel %vm6334_vm4, %v14819_v56, 0  ;;  %v5690_v21 = vcombine.high %v15151_v2, %v15151_v2 }
 0x30f   : > { %v15392_v8 = vpop.f32.mrf.mxu1 }
 0x310   : > { %v15394_v11 = vpack.c.bf16 %v4965_v41, %v4962_v16  ;;  %12740 = vmatmul.mubr.msk.bf16.vlgmr.msra.gmra.mxu1 %vm6334_vm4, %v6080_v55  ;;  %v6565_v16 = vsel %vm6334_vm4, %v14743_v38, 0 }
 0x311   : > { %v12621_v49 = vpop.f32.mrf.mxu1  ;;  %12756 = vmatpush3.bf16.xpose.msra.mxu1 %v6568_v30  ;;  %12752 = vmatmul.mubr.msk.bf16.vlgmr.msra.gmra.mxu0 %vm6334_vm4, %v6081_v27  ;;  %v6620_v30 = vsel %vm6334_vm4, %v14827_v20, 0 }
 0x312   : > { %12768 = vmatpush3.bf16.xpose.msra.mxu0 %v6623_v15  ;;  %12757 = vmatprep.subr.bf16.mxu1 %v17427_v14  ;;  %v4978_v35 = vadd.f32 %v15409_v31, %v12621_v49 }
 0x313   : > { %v15399_v3 = vpop.f32.mrf.mxu1  ;;  %12769 = vmatprep.subr.bf16.mxu0 %v17427_v14  ;;  %12763 = vmatprep.mubr.msk.bf16.mxu1 %vm13842_vm13, %v17427_v14 }
 0x314   : > { %12775 = vmatprep.mubr.msk.bf16.mxu0 %vm13842_vm13, %v17427_v14 }
 0x315   : > { %v12622_v63 = vpop.f32.mrf.mxu1 }
 0x316   : > { %v4981_v55 = vadd.f32 %v15409_v31, %v12622_v63  ;;  %v5704_v63 = vrot.slane %v5690_v21, %v15138_v32  ;;  %v6617_v21 = vsel %vm6334_vm4, %v14779_v47, 0 }
 0x317   : > { %v15415_v27 = vpop.f32.mrf.mxu1 }
 0x318   : > { %v15419_v41 = vpack.c.bf16 %v4981_v55, %v4978_v35  ;;  %v5706_v56 = vcombine.high %v5704_v63, %v5704_v63  ;;  %v15445_v62 = vrot.slane %v5704_v63, %v15138_v32 }
 0x319   : > { %v12625_v1 = vpop.f32.mrf.mxu1  ;;  %12758 = vmatpush3.bf16.xpose.msra.mxu1 %v6565_v16 }
 0x31a   : > { %12770 = vmatpush3.bf16.xpose.msra.mxu0 %v6620_v30  ;;  %12759 = vmatprep.subr.bf16.mxu1 %v17427_v14  ;;  %v4994_v35 = vadd.f32 %v15409_v31, %v12625_v1  ;;  %v6562_v30 = vsel %vm6334_vm4, %v14666_v23, 0  ;;  %v5905_v63 = vrot.slane %v15445_v62, %v15148_v26 }
 0x31b   : > { %v15425_v49 = vpop.f32.mrf.mxu1  ;;  %12771 = vmatprep.subr.bf16.mxu0 %v17427_v14 }
 0x31c   : > { %17503 = vst [vmem:[#allocation105_spill] sm:$0xff] %v15425_v49 }
 0x31d   : > { %v12626_v15 = vpop.f32.mrf.mxu1 }
 0x31e   : > { %v4997_v2 = vadd.f32 %v15409_v31, %v12626_v15  ;;  %v15449_v15 = vrot.slane %v5706_v56, %v15138_v32  ;;  %v6559_v56 = vsel %vm6334_vm4, %v14685_v4, 0 }
 0x31f   : > { %v15434_v55 = vpop.f32.mrf.mxu1 }
 0x320   : > { %17504 = vst [vmem:[#allocation106_spill] sm:$0xff] %v15434_v55  ;;  %v15436_v38 = vpack.c.bf16 %v4997_v2, %v4994_v35  ;;  %v5909_v47 = vrot.slane %v15449_v15, %v15148_v26 }
 0x321   : > { %v12629_v16 = vpop.f32.mrf.mxu1  ;;  %12760 = vmatpush3.bf16.xpose.msra.mxu1 %v6562_v30 }
 0x322   : > { %17505 = vst [vmem:[#allocation107_spill] sm:$0xff] %v15436_v38  ;;  %12772 = vmatpush3.bf16.xpose.msra.mxu0 %v6617_v21  ;;  %12761 = vmatprep.subr.bf16.mxu1 %v17427_v14  ;;  %v5010_v35 = vadd.f32 %v15409_v31, %v12629_v16  ;;  %v6614_v16 = vsel %vm6334_vm4, %v14787_v19, 0 }
 0x323   : > { %v15440_v20 = vpop.f32.mrf.mxu1  ;;  %12773 = vmatprep.subr.bf16.mxu0 %v17427_v14 }
 0x325   : > { %v12630_v1 = vpop.f32.mrf.mxu1 }
 0x326   : > { %v5013_v2 = vadd.f32 %v15409_v31, %v12630_v1  ;;  %v6050_v1 = vmul.f32 %v5905_v63, %v15222_v51  ;;  %v6678_v63 = vsel %vm6334_vm4, %v14867_v61, 0  ;;  %v6669_v61 = vsel %vm6334_vm4, %v14856_v57, 0 }
 0x327   : > { %v15454_v30 = vpop.f32.mrf.mxu1 }
 0x328   : > { %v15456_v23 = vpack.c.bf16 %v5013_v2, %v5010_v35  ;;  %v6051_v2 = vmul.f32 %v5909_v47, %v15222_v51  ;;  %v6733_v47 = vsel %vm6334_vm4, %v14894_v45, 0 }
 0x329   : > { %v12633_v21 = vpop.f32.mrf.mxu1  ;;  %12762 = vmatpush3.bf16.xpose.msra.mxu1 %v6559_v56 }
 0x32a   : > { %12774 = vmatpush3.bf16.xpose.msra.mxu0 %v6614_v16  ;;  %12779 = vmatprep.subr.bf16.mxu1 %v17427_v14  ;;  %v5026_v49 = vadd.f32 %v15409_v31, %v12633_v21  ;;  %v6083_v55 = vpack.c.bf16 %v6051_v2, %v6051_v2 }
 0x32b   : > { %v15464_v32 = vpop.f32.mrf.mxu1  ;;  %12791 = vmatprep.subr.bf16.mxu0 %v17427_v14 }
 0x32c   : > { %17506 = vst [vmem:[#allocation108_spill] sm:$0xff] %v15464_v32  ;;  %v6082_v32 = vpack.c.bf16 %v6050_v1, %v6050_v1 }
 0x32d   : > { %v12634_v35 = vpop.f32.mrf.mxu1 }
 0x32e   : > { %v5029_v4 = vadd.f32 %v15409_v31, %v12634_v35  ;;  %v6675_v35 = vsel %vm6334_vm4, %v14871_v7, 0 }
 0x32f   : > { %v15474_v38 = vpop.f32.mrf.mxu1 }
 0x330   : > { %v15476_v56 = vpack.c.bf16 %v5029_v4, %v5026_v49  ;;  %12764 = vmatmul.mubr.msk.bf16.vlgmr.msra.gmra.mxu1 %vm6334_vm4, %v6082_v32 }
 0x331   : > { %v12637_v19 = vpop.f32.mrf.mxu1  ;;  %12780 = vmatpush3.bf16.xpose.msra.mxu1 %v6678_v63  ;;  %12776 = vmatmul.mubr.msk.bf16.vlgmr.msra.gmra.mxu0 %vm6334_vm4, %v6083_v55 }
 0x332   : > { %12792 = vmatpush3.bf16.xpose.msra.mxu0 %v6733_v47  ;;  %12781 = vmatprep.subr.bf16.mxu1 %v17427_v14  ;;  %v5042_v49 = vadd.f32 %v15409_v31, %v12637_v19  ;;  %v6730_v19 = vsel %vm6334_vm4, %v14898_v37, 0  ;;  %v5736_v37 = vcombine.high %v15445_v62, %v15445_v62 }
 0x333   : > { %v15481_v16 = vpop.f32.mrf.mxu1  ;;  %12793 = vmatprep.subr.bf16.mxu0 %v17427_v14  ;;  %12787 = vmatprep.mubr.msk.bf16.mxu1 %vm13842_vm13, %v17427_v14 }
 0x334   : > { %12799 = vmatprep.mubr.msk.bf16.mxu0 %vm13842_vm13, %v17427_v14 }
 0x335   : > { %v12638_v4 = vpop.f32.mrf.mxu1 }
 0x336   : > { %v5045_v32 = vadd.f32 %v15409_v31, %v12638_v4 }
 0x337   : > { %v15492_v21 = vpop.f32.mrf.mxu1 }
 0x338   : > { %v15496_v55 = vpack.c.bf16 %v5045_v32, %v5042_v49 }
 0x339   : > { %v12641_v1 = vpop.f32.mrf.mxu1  ;;  %12782 = vmatpush3.bf16.xpose.msra.mxu1 %v6675_v35  ;;  %v6672_v35 = vsel %vm6334_vm4, %v14850_v40, 0 }
 0x33a   : > { %12794 = vmatpush3.bf16.xpose.msra.mxu0 %v6730_v19  ;;  %12783 = vmatprep.subr.bf16.mxu1 %v17427_v14  ;;  %v5058_v47 = vadd.f32 %v15409_v31, %v12641_v1  ;;  %v6727_v19 = vsel %vm6334_vm4, %v14881_v46, 0  ;;  %v5913_v46 = vrot.slane %v5736_v37, %v15148_v26 }
 0x33b   : > { %v15500_v2 = vpop.f32.mrf.mxu1  ;;  %12795 = vmatprep.subr.bf16.mxu0 %v17427_v14 }
 0x33c   : > { %17507 = vst [vmem:[#allocation109_spill] sm:$0xff] %v15500_v2 }
 0x33d   : > { %v12642_v63 = vpop.f32.mrf.mxu1 }
 0x33e   : > { %v5061_v4 = vadd.f32 %v15409_v31, %v12642_v63  ;;  %v5738_v63 = vcombine.high %v15449_v15, %v15449_v15  ;;  %v6052_v15 = vmul.f32 %v5913_v46, %v15222_v51  ;;  %v6788_v46 = vsel %vm6334_vm4, %v14920_v13, 0 }
 0x33f   : > { %v15508_v49 = vpop.f32.mrf.mxu1 }
 0x340   : > { %v15510_v32 = vpack.c.bf16 %v5061_v4, %v5058_v47  ;;  %v6084_v57 = vpack.c.bf16 %v6052_v15, %v6052_v15 }
 0x341   : > { %v12645_v7 = vpop.f32.mrf.mxu1  ;;  %12784 = vmatpush3.bf16.xpose.msra.mxu1 %v6672_v35 }
 0x342   : > { %12796 = vmatpush3.bf16.xpose.msra.mxu0 %v6727_v19  ;;  %12785 = vmatprep.subr.bf16.mxu1 %v17427_v14  ;;  %v5074_v47 = vadd.f32 %v15409_v31, %v12645_v7  ;;  %v5917_v19 = vrot.slane %v5738_v63, %v15148_v26  ;;  %v6724_v7 = vsel %vm6334_vm4, %v14885_v6, 0 }
 0x343   : > { %v15514_v45 = vpop.f32.mrf.mxu1  ;;  %12797 = vmatprep.subr.bf16.mxu0 %v17427_v14 }
 0x344   : > { %v6053_v37 = vmul.f32 %v5917_v19, %v15222_v51 }
 0x345   : > { %v12646_v1 = vpop.f32.mrf.mxu1 }
 0x346   : > { %v5077_v4 = vadd.f32 %v15409_v31, %v12646_v1 }
 0x347   : > { %v15526_v35 = vpop.f32.mrf.mxu1 }
 0x348   : > { %v15528_v40 = vpack.c.bf16 %v5077_v4, %v5074_v47 }
 0x349   : > { %v12649_v62 = vpop.f32.mrf.mxu1  ;;  %12786 = vmatpush3.bf16.xpose.msra.mxu1 %v6669_v61 }
 0x34a   : > { %12798 = vmatpush3.bf16.xpose.msra.mxu0 %v6724_v7  ;;  %12803 = vmatprep.subr.bf16.mxu1 %v17427_v14  ;;  %v5090_v63 = vadd.f32 %v15409_v31, %v12649_v62  ;;  %v6843_v62 = vsel %vm6334_vm4, %v14940_v18, 0 }
 0x34b   : > { %v15534_v2 = vpop.f32.mrf.mxu1  ;;  %12815 = vmatprep.subr.bf16.mxu0 %v17427_v14 }
 0x34c   : > { %17508 = vst [vmem:[#allocation110_spill] sm:$0xff] %v15534_v2  ;;  %v6085_v2 = vpack.c.bf16 %v6053_v37, %v6053_v37 }
 0x34d   : > { %v12650_v1 = vpop.f32.mrf.mxu1 }
 0x34e   : > { %v5093_v47 = vadd.f32 %v15409_v31, %v12650_v1 }
 0x34f   : > { %v15544_v4 = vpop.f32.mrf.mxu1 }
 0x350   : > { %v15546_v61 = vpack.c.bf16 %v5093_v47, %v5090_v63  ;;  %12788 = vmatmul.mubr.msk.bf16.vlgmr.msra.gmra.mxu1 %vm6334_vm4, %v6084_v57  ;;  %v6785_v63 = vsel %vm6334_vm4, %v14924_v34, 0 }
 0x351   : > { %v12653_v6 = vpop.f32.mrf.mxu1  ;;  %12804 = vmatpush3.bf16.xpose.msra.mxu1 %v6788_v46  ;;  %12800 = vmatmul.mubr.msk.bf16.vlgmr.msra.gmra.mxu0 %vm6334_vm4, %v6085_v2 }
 0x352   : > { %12816 = vmatpush3.bf16.xpose.msra.mxu0 %v6843_v62  ;;  %12805 = vmatprep.subr.bf16.mxu1 %v17427_v14  ;;  %v5106_v15 = vadd.f32 %v15409_v31, %v12653_v6  ;;  %v6840_v6 = vsel %vm6334_vm4, %v14944_v42, 0 }
 0x353   : > { %v15551_v7 = vpop.f32.mrf.mxu1  ;;  %12817 = vmatprep.subr.bf16.mxu0 %v17427_v14  ;;  %12811 = vmatprep.mubr.msk.bf16.mxu1 %vm13842_vm13, %v17427_v14 }
 0x354   : > { %12823 = vmatprep.mubr.msk.bf16.mxu0 %vm13842_vm13, %v17427_v14 }
 0x355   : > { %v12654_v19 = vpop.f32.mrf.mxu1 }
 0x356   : > { %v5109_v57 = vadd.f32 %v15409_v31, %v12654_v19 }
 0x357   : > { %v15562_v1 = vpop.f32.mrf.mxu1 }
 0x358   : > { %v15566_v2 = vpack.c.bf16 %v5109_v57, %v5106_v15 }
 0x359   : > { %v12657_v37 = vpop.f32.mrf.mxu1  ;;  %12806 = vmatpush3.bf16.xpose.msra.mxu1 %v6785_v63  ;;  %v6782_v63 = vsel %vm6334_vm4, %v14907_v33, 0 }
 0x35a   : > { %12818 = vmatpush3.bf16.xpose.msra.mxu0 %v6840_v6  ;;  %12807 = vmatprep.subr.bf16.mxu1 %v17427_v14  ;;  %v5122_v62 = vadd.f32 %v15409_v31, %v12657_v37  ;;  %v6837_v6 = vsel %vm6334_vm4, %v14930_v52, 0 }
 0x35b   : > { %v15570_v47 = vpop.f32.mrf.mxu1  ;;  %12819 = vmatprep.subr.bf16.mxu0 %v17427_v14 }
 0x35c   : > { %17509 = vst [vmem:[#allocation111_spill] sm:$0xff] %v15570_v47  ;;  %v6898_v47 = vsel %vm6334_vm4, %v14960_v43, 0 }
 0x35d   : > { %v12658_v46 = vpop.f32.mrf.mxu1 }
 0x35e   : > { %v5125_v19 = vadd.f32 %v15409_v31, %v12658_v46 }
 0x35f   : > { %v15578_v15 = vpop.f32.mrf.mxu1 }
 0x360   : > { %v15580_v57 = vpack.c.bf16 %v5125_v19, %v5122_v62 }
 0x361   : > { %v12661_v34 = vpop.f32.mrf.mxu1  ;;  %12808 = vmatpush3.bf16.xpose.msra.mxu1 %v6782_v63  ;;  %v6779_v63 = vsel %vm6334_vm4, %v14911_v9, 0 }
 0x362   : > { %17510 = vst [vmem:[#allocation112_spill] sm:$0xff] %v15580_v57  ;;  %12820 = vmatpush3.bf16.xpose.msra.mxu0 %v6837_v6  ;;  %12809 = vmatprep.subr.bf16.mxu1 %v17427_v14  ;;  %v5138_v46 = vadd.f32 %v15409_v31, %v12661_v34  ;;  %v6834_v6 = vsel %vm6334_vm4, %v14934_v54, 0  ;;  %v17512_v34 = vrot.slane %v15335_v39, %v15148_v26 }
 0x363   : > { %v15584_v18 = vpop.f32.mrf.mxu1  ;;  %12821 = vmatprep.subr.bf16.mxu0 %v17427_v14 }
 0x364   : > { %v6054_v52 = vmul.f32 %v17512_v34, %v15222_v51 }
 0x365   : > { %v12662_v37 = vpop.f32.mrf.mxu1 }
 0x366   : > { %v5141_v62 = vadd.f32 %v15409_v31, %v12662_v37  ;;  %v6086_v39 = vpack.c.bf16 %v6054_v52, %v6054_v52 }
 0x367   : > { %v15592_v19 = vpop.f32.mrf.mxu1 }
 0x368   : > { %v15594_v42 = vpack.c.bf16 %v5141_v62, %v5138_v46  ;;  %v17513_v46 = vrot.slane %v15341_v25, %v15148_v26 }
 0x369   : > { %v12665_v33 = vpop.f32.mrf.mxu1  ;;  %12810 = vmatpush3.bf16.xpose.msra.mxu1 %v6779_v63 }
 0x36a   : > { %12822 = vmatpush3.bf16.xpose.msra.mxu0 %v6834_v6  ;;  %12827 = vmatprep.subr.bf16.mxu1 %v17427_v14  ;;  %v6055_v62 = vmul.f32 %v17513_v46, %v15222_v51  ;;  %v5154_v63 = vadd.f32 %v15409_v31, %v12665_v33  ;;  %v17517_v33 = vld [vmem:[#allocation48_spill] sm:$0xff] }
 0x36b   : > { %v15598_v13 = vpop.f32.mrf.mxu1  ;;  %12839 = vmatprep.subr.bf16.mxu0 %v17427_v14 }
 0x36c   : > { %17511 = vst [vmem:[#allocation113_spill] sm:$0xff] %v15598_v13  ;;  %v6087_v34 = vpack.c.bf16 %v6055_v62, %v6055_v62 }
 0x36d   : > { %v12666_v37 = vpop.f32.mrf.mxu1 }
 0x36e   : > { %v5157_v54 = vadd.f32 %v15409_v31, %v12666_v37  ;;  %v6953_v37 = vsel %vm6334_vm4, %v17517_v33, 0 }
 0x36f   : > { %v15614_v9 = vpop.f32.mrf.mxu1 }
 0x370   : > { %17514 = vst [vmem:[#allocation114_spill] sm:$0xff] %v15614_v9  ;;  %v15616_v13 = vpack.c.bf16 %v5157_v54, %v5154_v63  ;;  %12812 = vmatmul.mubr.msk.bf16.vlgmr.msra.gmra.mxu1 %vm6334_vm4, %v6086_v39  ;;  %v17519_v39 = vld [vmem:[#allocation45_spill] sm:$0xff] }
 0x371   : > { %v12669_v6 = vpop.f32.mrf.mxu1  ;;  %12828 = vmatpush3.bf16.xpose.msra.mxu1 %v6898_v47  ;;  %12824 = vmatmul.mubr.msk.bf16.vlgmr.msra.gmra.mxu0 %vm6334_vm4, %v6087_v34  ;;  %v6895_v34 = vsel %vm6334_vm4, %v17519_v39, 0 }
 0x372   : > { %17515 = vst [vmem:[#allocation115_spill] sm:$0xff] %v15616_v13  ;;  %12840 = vmatpush3.bf16.xpose.msra.mxu0 %v6953_v37  ;;  %12829 = vmatprep.subr.bf16.mxu1 %v17427_v14  ;;  %v5170_v52 = vadd.f32 %v15409_v31, %v12669_v6  ;;  %v17521_v6 = vld [vmem:[#allocation49_spill] sm:$0xff] }
 0x373   : > { %v15621_v25 = vpop.f32.mrf.mxu1  ;;  %12841 = vmatprep.subr.bf16.mxu0 %v17427_v14  ;;  %12835 = vmatprep.mubr.msk.bf16.mxu1 %vm13842_vm13, %v17427_v14 }
 0x374   : > { %17516 = vst [vmem:[#allocation116_spill] sm:$0xff] %v15621_v25  ;;  %12847 = vmatprep.mubr.msk.bf16.mxu0 %vm13842_vm13, %v17427_v14  ;;  %v6056_v25 = vmul.f32 %v15367_v28, %v15222_v51 }
 0x375   : > { %v12670_v54 = vpop.f32.mrf.mxu1 }
 0x376   : > { %v5173_v46 = vadd.f32 %v15409_v31, %v12670_v54  ;;  %v6950_v54 = vsel %vm6334_vm4, %v17521_v6, 0 }
 0x377   : > { %v15632_v62 = vpop.f32.mrf.mxu1 }
 0x378   : > { %v15636_v47 = vpack.c.bf16 %v5173_v46, %v5170_v52 }
 0x379   : > { %v12673_v63 = vpop.f32.mrf.mxu1  ;;  %12830 = vmatpush3.bf16.xpose.msra.mxu1 %v6895_v34 }
 0x37a   : > { %17518 = vst [vmem:[#allocation117_spill] sm:$0xff] %v15636_v47  ;;  %12842 = vmatpush3.bf16.xpose.msra.mxu0 %v6950_v54  ;;  %12831 = vmatprep.subr.bf16.mxu1 %v17427_v14  ;;  %v5186_v43 = vadd.f32 %v15409_v31, %v12673_v63  ;;  %v17526_v54 = vld [vmem:[#allocation46_spill] sm:$0xff] }
 0x37b   : > { %v15640_v37 = vpop.f32.mrf.mxu1  ;;  %12843 = vmatprep.subr.bf16.mxu0 %v17427_v14  ;;  %v6947_v6 = vsel %vm6334_vm4, %v17526_v54, 0 }
 0x37c   : > { %17520 = vst [vmem:[#allocation118_spill] sm:$0xff] %v15640_v37  ;;  %v17524_v37 = vld [vmem:[#allocation42_spill] sm:$0xff] }
 0x37d   : > { %v12674_v33 = vpop.f32.mrf.mxu1  ;;  %v6892_v34 = vsel %vm6334_vm4, %v17524_v37, 0 }
 0x37e   : > { %v5189_v52 = vadd.f32 %v15409_v31, %v12674_v33 }
 0x37f   : > { %v15648_v46 = vpop.f32.mrf.mxu1 }
 0x380   : > { %17522 = vst [vmem:[#allocation119_spill] sm:$0xff] %v15648_v46  ;;  %v15650_v13 = vpack.c.bf16 %v5189_v52, %v5186_v43  ;;  %v17529_v46 = vld [vmem:[#allocation43_spill] sm:$0xff] }
 0x381   : > { %v12677_v39 = vpop.f32.mrf.mxu1  ;;  %12832 = vmatpush3.bf16.xpose.msra.mxu1 %v6892_v34  ;;  %v6889_v34 = vsel %vm6334_vm4, %v17529_v46, 0 }
 0x382   : > { %17523 = vst [vmem:[#allocation120_spill] sm:$0xff] %v15650_v13  ;;  %12844 = vmatpush3.bf16.xpose.msra.mxu0 %v6947_v6  ;;  %12833 = vmatprep.subr.bf16.mxu1 %v17427_v14  ;;  %v5202_v33 = vadd.f32 %v15409_v31, %v12677_v39  ;;  %v17531_v6 = vld [vmem:[#allocation47_spill] sm:$0xff] }
 0x383   : > { %v15654_v9 = vpop.f32.mrf.mxu1  ;;  %12845 = vmatprep.subr.bf16.mxu0 %v17427_v14  ;;  %v6944_v54 = vsel %vm6334_vm4, %v17531_v6, 0  ;;  %v6088_v6 = vpack.c.bf16 %v6056_v25, %v6056_v25 }
 0x384   : > { %17525 = vst [vmem:[#allocation121_spill] sm:$0xff] %v15654_v9 }
 0x385   : > { %v12678_v63 = vpop.f32.mrf.mxu1 }
 0x386   : > { %v5205_v43 = vadd.f32 %v15409_v31, %v12678_v63  ;;  %v6057_v63 = vmul.f32 %v15374_v29, %v15222_v51  ;;  %v17536_v29 = vld [vmem:[#allocation56_spill] sm:$0xff] }
 0x387   : > { %v15662_v52 = vpop.f32.mrf.mxu1 }
 0x388   : > { %17527 = vst [vmem:[#allocation122_spill] sm:$0xff] %v15662_v52  ;;  %v15664_v13 = vpack.c.bf16 %v5205_v43, %v5202_v33  ;;  %v6089_v28 = vpack.c.bf16 %v6057_v63, %v6057_v63 }
 0x389   : > { %v12681_v37 = vpop.f32.mrf.mxu1  ;;  %12834 = vmatpush3.bf16.xpose.msra.mxu1 %v6889_v34 }
 0x38a   : > { %17528 = vst [vmem:[#allocation123_spill] sm:$0xff] %v15664_v13  ;;  %12846 = vmatpush3.bf16.xpose.msra.mxu0 %v6944_v54  ;;  %12851 = vmatprep.subr.bf16.mxu1 %v17427_v14  ;;  %v5218_v33 = vadd.f32 %v15409_v31, %v12681_v37  ;;  %v17534_v54 = vld [vmem:[#allocation52_spill] sm:$0xff]  ;;  %v7063_v37 = vsel %vm6334_vm4, %v17536_v29, 0 }
 0x38b   : > { %v15668_v9 = vpop.f32.mrf.mxu1  ;;  %12863 = vmatprep.subr.bf16.mxu0 %v17427_v14  ;;  %v7008_v13 = vsel %vm6334_vm4, %v17534_v54, 0 }
 0x38c   : > { %17530 = vst [vmem:[#allocation124_spill] sm:$0xff] %v15668_v9 }
 0x38d   : > { %v12682_v39 = vpop.f32.mrf.mxu1 }
 0x38e   : > { %v5221_v43 = vadd.f32 %v15409_v31, %v12682_v39 }
 0x38f   : > { %v15680_v34 = vpop.f32.mrf.mxu1 }
 0x390   : > { %17532 = vst [vmem:[#allocation125_spill] sm:$0xff] %v15680_v34  ;;  %v15682_v46 = vpack.c.bf16 %v5221_v43, %v5218_v33  ;;  %12836 = vmatmul.mubr.msk.bf16.vlgmr.msra.gmra.mxu1 %vm6334_vm4, %v6088_v6  ;;  %v17538_v43 = vld [vmem:[#allocation53_spill] sm:$0xff] }
 0x391   : > { %v12685_v9 = vpop.f32.mrf.mxu1  ;;  %12852 = vmatpush3.bf16.xpose.msra.mxu1 %v7008_v13  ;;  %12848 = vmatmul.mubr.msk.bf16.vlgmr.msra.gmra.mxu0 %vm6334_vm4, %v6089_v28  ;;  %v7005_v28 = vsel %vm6334_vm4, %v17538_v43, 0 }
 0x392   : > { %17533 = vst [vmem:[#allocation126_spill] sm:$0xff] %v15682_v46  ;;  %12864 = vmatpush3.bf16.xpose.msra.mxu0 %v7063_v37  ;;  %12853 = vmatprep.subr.bf16.mxu1 %v17427_v14  ;;  %v5234_v25 = vadd.f32 %v15409_v31, %v12685_v9  ;;  %v17540_v9 = vld [vmem:[#allocation57_spill] sm:$0xff] }
 0x393   : > { %v15687_v52 = vpop.f32.mrf.mxu1  ;;  %12865 = vmatprep.subr.bf16.mxu0 %v17427_v14  ;;  %12859 = vmatprep.mubr.msk.bf16.mxu1 %vm13842_vm13, %v17427_v14 }
 0x394   : > { %17535 = vst [vmem:[#allocation127_spill] sm:$0xff] %v15687_v52  ;;  %12871 = vmatprep.mubr.msk.bf16.mxu0 %vm13842_vm13, %v17427_v14 }
 0x395   : > { %v12686_v39 = vpop.f32.mrf.mxu1 }
 0x396   : > { %v5237_v6 = vadd.f32 %v15409_v31, %v12686_v39  ;;  %v7060_v39 = vsel %vm6334_vm4, %v17540_v9, 0 }
 0x397   : > { %v15698_v63 = vpop.f32.mrf.mxu1 }
 0x398   : > { %v15702_v13 = vpack.c.bf16 %v5237_v6, %v5234_v25 }
 0x399   : > { %v12689_v33 = vpop.f32.mrf.mxu1  ;;  %12854 = vmatpush3.bf16.xpose.msra.mxu1 %v7005_v28 }
 0x39a   : > { %17537 = vst [vmem:[#allocation128_spill] sm:$0xff] %v15702_v13  ;;  %12866 = vmatpush3.bf16.xpose.msra.mxu0 %v7060_v39  ;;  %12855 = vmatprep.subr.bf16.mxu1 %v17427_v14  ;;  %v5250_v54 = vadd.f32 %v15409_v31, %v12689_v33  ;;  %v17545_v39 = vld [vmem:[#allocation54_spill] sm:$0xff] }
 0x39b   : > { %v15706_v37 = vpop.f32.mrf.mxu1  ;;  %12867 = vmatprep.subr.bf16.mxu0 %v17427_v14  ;;  %v7057_v9 = vsel %vm6334_vm4, %v17545_v39, 0 }
 0x39c   : > { %17539 = vst [vmem:[#allocation129_spill] sm:$0xff] %v15706_v37  ;;  %v17543_v37 = vld [vmem:[#allocation50_spill] sm:$0xff] }
 0x39d   : > { %v12690_v29 = vpop.f32.mrf.mxu1  ;;  %v7002_v28 = vsel %vm6334_vm4, %v17543_v37, 0  ;;  %v17547_v37 = vld [vmem:[#allocation51_spill] sm:$0xff] }
 0x39e   : > { %v5253_v25 = vadd.f32 %v15409_v31, %v12690_v29 }
 0x39f   : > { %v15714_v6 = vpop.f32.mrf.mxu1 }
 0x3a0   : > { %17541 = vst [vmem:[#allocation130_spill] sm:$0xff] %v15714_v6  ;;  %v15716_v46 = vpack.c.bf16 %v5253_v25, %v5250_v54 }
 0x3a1   : > { %v12693_v43 = vpop.f32.mrf.mxu1  ;;  %12856 = vmatpush3.bf16.xpose.msra.mxu1 %v7002_v28  ;;  %v17548_v28 = vld [vmem:[#allocation55_spill] sm:$0xff] }
 0x3a2   : > { %17542 = vst [vmem:[#allocation131_spill] sm:$0xff] %v15716_v46  ;;  %12868 = vmatpush3.bf16.xpose.msra.mxu0 %v7057_v9  ;;  %12857 = vmatprep.subr.bf16.mxu1 %v17427_v14  ;;  %v5266_v54 = vadd.f32 %v15409_v31, %v12693_v43  ;;  %v6999_v46 = vsel %vm6334_vm4, %v17547_v37, 0  ;;  %v7054_v39 = vsel %vm6334_vm4, %v17548_v28, 0  ;;  %v17549_v9 = vrot.slane %v15338_v24, %v15148_v26  ;;  %v17552_v28 = vld [vmem:[#allocation64_spill] sm:$0xff] }
 0x3a3   : > { %v15720_v34 = vpop.f32.mrf.mxu1  ;;  %12869 = vmatprep.subr.bf16.mxu0 %v17427_v14  ;;  %v17550_v43 = vrot.slane %v15346_v58, %v15148_v26  ;;  %v7173_v37 = vsel %vm6334_vm4, %v17552_v28, 0  ;;  %v17554_v28 = vld [vmem:[#allocation65_spill] sm:$0xff] }
 0x3a4   : > { %17544 = vst [vmem:[#allocation132_spill] sm:$0xff] %v15720_v34  ;;  %v6058_v6 = vmul.f32 %v17549_v9, %v15222_v51  ;;  %v7170_v52 = vsel %vm6334_vm4, %v17554_v28, 0  ;;  %v11468_v28 = vld [vmem:[%s15748_s16 + $0x3] ss:$0 sm:$0xff] }
 0x3a5   : > { %v12694_v33 = vpop.f32.mrf.mxu1 }
 0x3a6   : > { %v5269_v29 = vadd.f32 %v15409_v31, %v12694_v33  ;;  %v6059_v33 = vmul.f32 %v17550_v43, %v15222_v51  ;;  %v11466_v43 = vld [vmem:[%s15748_s16 + $0x1] ss:$0 sm:$0xff] }
 0x3a7   : > { %v15750_v24 = vpop.f32.mrf.mxu1 }
 0x3a8   : > { %v15728_v25 = vpack.c.bf16 %v5269_v29, %v5266_v54  ;;  %v6091_v54 = vpack.c.bf16 %v6059_v33, %v6059_v33  ;;  %v17551_v29 = vld [vmem:[#allocation60_spill] sm:$0xff] }
 0x3a9   : > { %12858 = vmatpush3.bf16.xpose.msra.mxu1 %v6999_v46  ;;  %v6090_v46 = vpack.c.bf16 %v6058_v6, %v6058_v6  ;;  %v7118_v58 = vsel %vm6334_vm4, %v17551_v29, 0 }
 0x3aa   : > { %17546 = vst [vmem:[#allocation133_spill] sm:$0xff] %v15728_v25  ;;  %12870 = vmatpush3.bf16.xpose.msra.mxu0 %v7054_v39  ;;  %12875 = vmatprep.subr.bf16.mxu1 %v17427_v14  ;;  %v11465_v39 = vld [vmem:[%s15748_s16] ss:$0 sm:$0xff] }
 0x3ab   : > { %12887 = vmatprep.subr.bf16.mxu0 %v17427_v14 }
 0x3ae   : > { %v6384_v9 = vpop.f32.mrf.mxu1 }
 0x3af   : > { %v15760_v34 = vadd.f32 %v11465_v39, %v6384_v9 }
 0x3b0   : > { %12860 = vmatmul.mubr.msk.bf16.vlgmr.msra.gmra.mxu1 %vm6334_vm4, %v6090_v46  ;;  %v6439_v6 = vpop.f32.mrf.mxu0  ;;  %v12717_v33 = vpop.f32.mrf.mxu1 }
 0x3b1   : > { %12876 = vmatpush3.bf16.xpose.msra.mxu1 %v7118_v58  ;;  %12872 = vmatmul.mubr.msk.bf16.vlgmr.msra.gmra.mxu0 %vm6334_vm4, %v6091_v54  ;;  %v15763_v46 = vadd.f32 %v11466_v43, %v6439_v6  ;;  %v8096_v29 = vsel %vm8095_vm11, %v15760_v34, -inf  ;;  %v17553_v6 = vld [vmem:[#allocation61_spill] sm:$0xff] }
 0x3b2   : > { %12888 = vmatpush3.bf16.xpose.msra.mxu0 %v7173_v37  ;;  %12877 = vmatprep.subr.bf16.mxu1 %v17427_v14  ;;  %v12729_v54 = vpop.f32.mrf.mxu0  ;;  %v6387_v58 = vpop.f32.mrf.mxu1  ;;  %v7115_v33 = vsel %vm6334_vm4, %v17553_v6, 0 }
 0x3b3   : > { %12889 = vmatprep.subr.bf16.mxu0 %v17427_v14  ;;  %12883 = vmatprep.mubr.msk.bf16.mxu1 %vm13842_vm13, %v17427_v14  ;;  %v8099_v9 = vsel %vm8095_vm11, %v15763_v46, -inf  ;;  %v17556_v58 = vld [vmem:[#allocation62_spill] sm:$0xff] }
 0x3b4   : > { %8097 = vmax.xlane.f32.xlu0 %v8096_v29  ;;  %12895 = vmatprep.mubr.msk.bf16.mxu0 %vm13842_vm13, %v17427_v14  ;;  %v6442_v37 = vpop.f32.mrf.mxu0  ;;  %v12718_v39 = vpop.f32.mrf.mxu1  ;;  %v17555_v29 = vld [vmem:[#allocation58_spill] sm:$0xff] }
 0x3b5   : > { %v7112_v54 = vsel %vm6334_vm4, %v17555_v29, 0  ;;  %v7167_v37 = vsel %vm6334_vm4, %v17556_v58, 0  ;;  %v17557_v39 = vld [vmem:[#allocation59_spill] sm:$0xff]  ;;  %v11467_v58 = vld [vmem:[%s15748_s16 + $0x2] ss:$0 sm:$0xff] }
 0x3b6   : > { %v12730_v43 = vpop.f32.mrf.mxu0 }
 0x3b8   : > { %8100 = vmax.xlane.f32.xlu0 %v8099_v9  ;;  %v17558_v9 = vld [vmem:[#allocation63_spill] sm:$0xff] }
 0x3b9   : > { %12878 = vmatpush3.bf16.xpose.msra.mxu1 %v7115_v33  ;;  %v7164_v43 = vsel %vm6334_vm4, %v17558_v9, 0  ;;  %v6060_v33 = vmul.f32 %v15379_v10, %v15222_v51  ;;  %v17560_v10 = vld [vmem:[#allocation72_spill] sm:$0xff] }
 0x3ba   : > { %12890 = vmatpush3.bf16.xpose.msra.mxu0 %v7170_v52  ;;  %12879 = vmatprep.subr.bf16.mxu1 %v17427_v14  ;;  %v7109_v52 = vsel %vm6334_vm4, %v17557_v39, 0 }
 0x3bb   : > { %12891 = vmatprep.subr.bf16.mxu0 %v17427_v14 }
 0x3c1   : > { %12880 = vmatpush3.bf16.xpose.msra.mxu1 %v7112_v54  ;;  %v6061_v54 = vmul.f32 %v15382_v5, %v15222_v51 }
 0x3c2   : > { %12892 = vmatpush3.bf16.xpose.msra.mxu0 %v7167_v37  ;;  %12881 = vmatprep.subr.bf16.mxu1 %v17427_v14  ;;  %v6092_v37 = vpack.c.bf16 %v6060_v33, %v6060_v33 }
 0x3c3   : > { %12893 = vmatprep.subr.bf16.mxu0 %v17427_v14  ;;  %v6093_v29 = vpack.c.bf16 %v6061_v54, %v6061_v54 }
 0x3c9   : > { %12882 = vmatpush3.bf16.xpose.msra.mxu1 %v7109_v52  ;;  %v17559_v52 = vld [vmem:[#allocation68_spill] sm:$0xff] }
 0x3ca   : > { %12894 = vmatpush3.bf16.xpose.msra.mxu0 %v7164_v43  ;;  %12899 = vmatprep.subr.bf16.mxu1 %v17427_v14  ;;  %v7228_v39 = vsel %vm6334_vm4, %v17559_v52, 0  ;;  %v7283_v43 = vsel %vm6334_vm4, %v17560_v10, 0 }
 0x3cb   : > { %12911 = vmatprep.subr.bf16.mxu0 %v17427_v14 }
 0x3d0   : > { %12884 = vmatmul.mubr.msk.bf16.vlgmr.msra.gmra.mxu1 %vm6334_vm4, %v6092_v37  ;;  %v6494_v9 = vpop.f32.mrf.mxu1 }
 0x3d1   : > { %12900 = vmatpush3.bf16.xpose.msra.mxu1 %v7228_v39  ;;  %12896 = vmatmul.mubr.msk.bf16.vlgmr.msra.gmra.mxu0 %vm6334_vm4, %v6093_v29  ;;  %v15804_v6 = vadd.f32 %v11467_v58, %v6494_v9  ;;  %v6549_v51 = vpop.f32.mrf.mxu0 }
 0x3d2   : > { %12912 = vmatpush3.bf16.xpose.msra.mxu0 %v7283_v43  ;;  %12901 = vmatprep.subr.bf16.mxu1 %v17427_v14  ;;  %v12741_v5 = vpop.f32.mrf.mxu1  ;;  %v15807_v33 = vadd.f32 %v11468_v28, %v6549_v51  ;;  %v17561_v43 = vld [vmem:[#allocation69_spill] sm:$0xff] }
 0x3d3   : > { %v8102_v54 = vsel %vm8095_vm11, %v15804_v6, -inf  ;;  %12913 = vmatprep.subr.bf16.mxu0 %v17427_v14  ;;  %12907 = vmatprep.mubr.msk.bf16.mxu1 %vm13842_vm13, %v17427_v14  ;;  %v12753_v29 = vpop.f32.mrf.mxu0  ;;  %v7225_v51 = vsel %vm6334_vm4, %v17561_v43, 0  ;;  %v17562_v5 = vld [vmem:[#allocation73_spill] sm:$0xff] }
 0x3d4   : > { %8103 = vmax.xlane.f32.xlu1 %v8102_v54  ;;  %v6497_v39 = vpop.f32.mrf.mxu1  ;;  %12919 = vmatprep.mubr.msk.bf16.mxu0 %vm13842_vm13, %v17427_v14  ;;  %v8105_v28 = vsel %vm8095_vm11, %v15807_v33, -inf  ;;  %v7280_v10 = vsel %vm6334_vm4, %v17562_v5, 0  ;;  %v17563_v54 = vld [vmem:[#allocation66_spill] sm:$0xff] }
 0x3d5   : > { %v6552_v58 = vpop.f32.mrf.mxu0  ;;  %v7222_v29 = vsel %vm6334_vm4, %v17563_v54, 0  ;;  %v17564_v39 = vld [vmem:[#allocation70_spill] sm:$0xff] }
 0x3d6   : > { %v12742_v9 = vpop.f32.mrf.mxu1  ;;  %v7277_v58 = vsel %vm6334_vm4, %v17564_v39, 0  ;;  %v11469_v39 = vld [vmem:[%s15748_s16 + $0x4] ss:$0 sm:$0xff]  ;;  %v11470_v5 = vld [vmem:[%s15748_s16 + $0x5] ss:$0 sm:$0xff] }
 0x3d7   : > { %v12754_v37 = vpop.f32.mrf.mxu0  ;;  %v17565_v9 = vld [vmem:[#allocation67_spill] sm:$0xff] }
 0x3d8   : > { %8106 = vmax.xlane.f32.xlu1 %v8105_v28  ;;  %v17566_v28 = vld [vmem:[#allocation71_spill] sm:$0xff] }
 0x3d9   : > { %12902 = vmatpush3.bf16.xpose.msra.mxu1 %v7225_v51  ;;  %v7274_v37 = vsel %vm6334_vm4, %v17566_v28, 0  ;;  %v15837_v51 = vld [vmem:[%s17268_s3] sm:$0xf] }
 0x3da   : > { %12914 = vmatpush3.bf16.xpose.msra.mxu0 %v7280_v10  ;;  %12903 = vmatprep.subr.bf16.mxu1 %v17427_v14  ;;  %v7219_v10 = vsel %vm6334_vm4, %v17565_v9, 0  ;;  %v17568_v9 = vrot.slane %v15170_v44, %v15148_v26  ;;  %v7393_v44 = vsel %vm6334_vm4, %v15240_v0, 0 }
 0x3db   : > { %12915 = vmatprep.subr.bf16.mxu0 %v17427_v14 }
 0x3e1   : > { %12904 = vmatpush3.bf16.xpose.msra.mxu1 %v7222_v29  ;;  %v17567_v29 = vrot.slane %v15158_v53, %v15148_v26  ;;  %v7338_v53 = vsel %vm6334_vm4, %v15127_v12, 0  ;;  %v4874_v12 = vadd.f32 %v15409_v31, %v15174_v48 }
 0x3e2   : > { %12916 = vmatpush3.bf16.xpose.msra.mxu0 %v7277_v58  ;;  %12905 = vmatprep.subr.bf16.mxu1 %v17427_v14 }
 0x3e3   : > { %12917 = vmatprep.subr.bf16.mxu0 %v17427_v14  ;;  %v6062_v58 = vmul.f32 %v15837_v51, %v17567_v29 }
 0x3e5   : > { %v6094_v28 = vpack.c.bf16 %v6062_v58, %v6062_v58 }
 0x3e9   : > { %12906 = vmatpush3.bf16.xpose.msra.mxu1 %v7219_v10  ;;  %v6063_v10 = vmul.f32 %v15837_v51, %v17568_v9 }
 0x3ea   : > { %12918 = vmatpush3.bf16.xpose.msra.mxu0 %v7274_v37  ;;  %12923 = vmatprep.subr.bf16.mxu1 %v17427_v14  ;;  %v4877_v37 = vadd.f32 %v15409_v31, %v15204_v22 }
 0x3eb   : > { %12935 = vmatprep.subr.bf16.mxu0 %v17427_v14  ;;  %v6095_v54 = vpack.c.bf16 %v6063_v10, %v6063_v10 }
 0x3f0   : > { %12908 = vmatmul.mubr.msk.bf16.vlgmr.msra.gmra.mxu1 %vm6334_vm4, %v6094_v28  ;;  %v6604_v29 = vpop.f32.mrf.mxu1 }
 0x3f1   : > { %12924 = vmatpush3.bf16.xpose.msra.mxu1 %v7338_v53  ;;  %12920 = vmatmul.mubr.msk.bf16.vlgmr.msra.gmra.mxu0 %vm6334_vm4, %v6095_v54  ;;  %v15859_v9 = vadd.f32 %v11469_v39, %v6604_v29  ;;  %v6659_v58 = vpop.f32.mrf.mxu0  ;;  %v15875_v53 = vpack.c.bf16 %v4877_v37, %v4874_v12  ;;  %v17572_v37 = vld [vmem:[#allocation80_spill] sm:$0xff] }
 0x3f2   : > { %12936 = vmatpush3.bf16.xpose.msra.mxu0 %v7393_v44  ;;  %v15861_v10 = vadd.f32 %v11470_v5, %v6659_v58  ;;  %12925 = vmatprep.subr.bf16.mxu1 %v17427_v14  ;;  %v12765_v28 = vpop.f32.mrf.mxu1  ;;  %v17570_v58 = vld [vmem:[#allocation77_spill] sm:$0xff] }
 0x3f3   : > { %v8108_v22 = vsel %vm8095_vm11, %v15859_v9, -inf  ;;  %12937 = vmatprep.subr.bf16.mxu0 %v17427_v14  ;;  %v12777_v54 = vpop.f32.mrf.mxu0  ;;  %12931 = vmatprep.mubr.msk.bf16.mxu1 %vm13842_vm13, %v17427_v14  ;;  %17569 = vst [vmem:[#allocation68_spill] sm:$0xff] %v15875_v53  ;;  %v7335_v28 = vsel %vm6334_vm4, %v17570_v58, 0  ;;  %v11472_v58 = vld [vmem:[%s15748_s16 + $0x7] ss:$0 sm:$0xff] }
 0x3f4   : > { %8109 = vmax.xlane.f32.xlu0 %v8108_v22  ;;  %v8111_v5 = vsel %vm8095_vm11, %v15861_v10, -inf  ;;  %v6607_v39 = vpop.f32.mrf.mxu1  ;;  %12943 = vmatprep.mubr.msk.bf16.mxu0 %vm13842_vm13, %v17427_v14  ;;  %v7390_v22 = vsel %vm6334_vm4, %v15875_v53, 0  ;;  %v17571_v54 = vld [vmem:[#allocation74_spill] sm:$0xff] }
 0x3f5   : > { %8112 = vmax.xlane.f32.xlu1 %v8111_v5  ;;  %v6662_v48 = vpop.f32.mrf.mxu0  ;;  %v7332_v12 = vsel %vm6334_vm4, %v17571_v54, 0  ;;  %v4861_v5 = vadd.f32 %v15409_v31, %v17572_v37  ;;  %v17573_v39 = vld [vmem:[#allocation81_spill] sm:$0xff]  ;;  %v17577_v37 = vld [vmem:[#allocation84_spill] sm:$0xff] }
 0x3f6   : > { %v12766_v29 = vpop.f32.mrf.mxu1  ;;  %v7387_v48 = vsel %vm6334_vm4, %v17573_v39, 0  ;;  %v17578_v39 = vld [vmem:[#allocation85_spill] sm:$0xff] }
 0x3f7   : > { %v12778_v44 = vpop.f32.mrf.mxu0  ;;  %v17574_v29 = vld [vmem:[#allocation79_spill] sm:$0xff] }
 0x3f8   : > { %v4858_v44 = vadd.f32 %v15409_v31, %v17574_v29  ;;  %v6065_v29 = vmul.f32 %v15837_v51, %v17578_v39 }
 0x3f9   : > { %12926 = vmatpush3.bf16.xpose.msra.mxu1 %v7335_v28 }
 0x3fa   : > { %12938 = vmatpush3.bf16.xpose.msra.mxu0 %v7390_v22  ;;  %12927 = vmatprep.subr.bf16.mxu1 %v17427_v14  ;;  %v15893_v28 = vpack.c.bf16 %v4861_v5, %v4858_v44  ;;  %v17576_v22 = vld [vmem:[#allocation75_spill] sm:$0xff]  ;;  %v11471_v44 = vld [vmem:[%s15748_s16 + $0x6] ss:$0 sm:$0xff]  ;;  %v6097_v53 = vpack.c.bf16 %v6065_v29, %v6065_v29 }
 0x3fb   : > { %12939 = vmatprep.subr.bf16.mxu0 %v17427_v14  ;;  %v7329_v54 = vsel %vm6334_vm4, %v17576_v22, 0  ;;  %v17579_v29 = vld [vmem:[#allocation90_spill] sm:$0xff] }
 0x3fc   : > { %17575 = vst [vmem:[#allocation69_spill] sm:$0xff] %v15893_v28 }
 0x401   : > { %12928 = vmatpush3.bf16.xpose.msra.mxu1 %v7332_v12  ;;  %v7384_v12 = vsel %vm6334_vm4, %v15893_v28, 0 }
 0x402   : > { %12940 = vmatpush3.bf16.xpose.msra.mxu0 %v7387_v48  ;;  %12929 = vmatprep.subr.bf16.mxu1 %v17427_v14  ;;  %v6064_v48 = vmul.f32 %v15837_v51, %v17577_v37  ;;  %v4941_v37 = vadd.f32 %v15409_v31, %v15343_v36  ;;  %v4938_v36 = vadd.f32 %v15409_v31, %v15322_v50 }
 0x403   : > { %12941 = vmatprep.subr.bf16.mxu0 %v17427_v14 }
 0x404   : > { %v6096_v5 = vpack.c.bf16 %v6064_v48, %v6064_v48  ;;  %v7503_v48 = vsel %vm6334_vm4, %v15349_v17, 0  ;;  %v15937_v50 = vpack.c.bf16 %v4941_v37, %v4938_v36  ;;  %v17581_v36 = vld [vmem:[#allocation92_spill] sm:$0xff] }
 0x409   : > { %12930 = vmatpush3.bf16.xpose.msra.mxu1 %v7329_v54  ;;  %v4909_v54 = vadd.f32 %v15409_v31, %v15248_v59  ;;  %v4906_v59 = vadd.f32 %v15409_v31, %v17579_v29 }
 0x40a   : > { %12942 = vmatpush3.bf16.xpose.msra.mxu0 %v7384_v12  ;;  %12947 = vmatprep.subr.bf16.mxu1 %v17427_v14  ;;  %v7448_v12 = vsel %vm6334_vm4, %v15261_v60, 0 }
 0x40b   : > { %12959 = vmatprep.subr.bf16.mxu0 %v17427_v14 }
 0x410   : > { %v6714_v22 = vpop.f32.mrf.mxu1  ;;  %12932 = vmatmul.mubr.msk.bf16.vlgmr.msra.gmra.mxu1 %vm6334_vm4, %v6096_v5 }
 0x411   : > { %v15914_v28 = vadd.f32 %v11471_v44, %v6714_v22  ;;  %12948 = vmatpush3.bf16.xpose.msra.mxu1 %v7448_v12  ;;  %v6769_v39 = vpop.f32.mrf.mxu0  ;;  %12944 = vmatmul.mubr.msk.bf16.vlgmr.msra.gmra.mxu0 %vm6334_vm4, %v6097_v53  ;;  %v15931_v44 = vpack.c.bf16 %v4909_v54, %v4906_v59  ;;  %v7500_v54 = vsel %vm6334_vm4, %v15937_v50, 0  ;;  %v17580_v59 = vld [vmem:[#allocation89_spill] sm:$0xff] }
 0x412   : > { %v15921_v0 = vadd.f32 %v11472_v58, %v6769_v39  ;;  %12960 = vmatpush3.bf16.xpose.msra.mxu0 %v7503_v48  ;;  %12949 = vmatprep.subr.bf16.mxu1 %v17427_v14  ;;  %v12789_v5 = vpop.f32.mrf.mxu1  ;;  %v4893_v37 = vadd.f32 %v15409_v31, %v17580_v59 }
 0x413   : > { %v8114_v22 = vsel %vm8095_vm11, %v15914_v28, -inf  ;;  %12961 = vmatprep.subr.bf16.mxu0 %v17427_v14  ;;  %v12801_v53 = vpop.f32.mrf.mxu0  ;;  %12955 = vmatprep.mubr.msk.bf16.mxu1 %vm13842_vm13, %v17427_v14  ;;  %v7445_v5 = vsel %vm6334_vm4, %v15931_v44, 0 }
 0x414   : > { %8115 = vmax.xlane.f32.xlu0 %v8114_v22  ;;  %v8117_v58 = vsel %vm8095_vm11, %v15921_v0, -inf  ;;  %v6717_v12 = vpop.f32.mrf.mxu1  ;;  %12967 = vmatprep.mubr.msk.bf16.mxu0 %vm13842_vm13, %v17427_v14  ;;  %v7442_v22 = vsel %vm6334_vm4, %v17581_v36, 0  ;;  %v17582_v53 = vld [vmem:[#allocation99_spill] sm:$0xff] }
 0x415   : > { %8118 = vmax.xlane.f32.xlu1 %v8117_v58  ;;  %v6772_v39 = vpop.f32.mrf.mxu0  ;;  %v4925_v58 = vadd.f32 %v15409_v31, %v17582_v53  ;;  %v17583_v12 = vld [vmem:[#allocation102_spill] sm:$0xff] }
 0x416   : > { %v12790_v48 = vpop.f32.mrf.mxu1  ;;  %v7497_v39 = vsel %vm6334_vm4, %v17583_v12, 0 }
 0x417   : > { %v12802_v29 = vpop.f32.mrf.mxu0  ;;  %v17584_v48 = vld [vmem:[#allocation88_spill] sm:$0xff] }
 0x418   : > { %v4890_v29 = vadd.f32 %v15409_v31, %v17584_v48 }
 0x419   : > { %12950 = vmatpush3.bf16.xpose.msra.mxu1 %v7445_v5  ;;  %v17585_v5 = vld [vmem:[#allocation94_spill] sm:$0xff] }
 0x41a   : > { %12962 = vmatpush3.bf16.xpose.msra.mxu0 %v7500_v54  ;;  %12951 = vmatprep.subr.bf16.mxu1 %v17427_v14  ;;  %v4922_v54 = vadd.f32 %v15409_v31, %v17585_v5  ;;  %v15959_v59 = vpack.c.bf16 %v4893_v37, %v4890_v29  ;;  %v17590_v5 = vld [vmem:[#allocation83_spill] sm:$0xff] }
 0x41b   : > { %12963 = vmatprep.subr.bf16.mxu0 %v17427_v14  ;;  %v17591_v37 = vrot.slane %v17590_v5, %v15148_v26 }
 0x41c   : > { %17586 = vst [vmem:[#allocation80_spill] sm:$0xff] %v15959_v59  ;;  %v15961_v53 = vpack.c.bf16 %v4925_v58, %v4922_v54  ;;  %v11473_v54 = vld [vmem:[%s15748_s16 + $0x8] ss:$0 sm:$0xff] }
 0x41d   : > { %v6067_v58 = vmul.f32 %v15837_v51, %v17591_v37 }
 0x41e   : > { %17587 = vst [vmem:[#allocation79_spill] sm:$0xff] %v15961_v53  ;;  %v7494_v48 = vsel %vm6334_vm4, %v15961_v53, 0  ;;  %v4973_v53 = vadd.f32 %v15409_v31, %v15415_v27  ;;  %v15994_v27 = vld [vmem:[%s17273_s8] ss:$0 sm:$0xff] }
 0x421   : > { %12952 = vmatpush3.bf16.xpose.msra.mxu1 %v7442_v22  ;;  %v7439_v22 = vsel %vm6334_vm4, %v15959_v59, 0  ;;  %v11474_v59 = vld [vmem:[%s15748_s16 + $0x9] ss:$0 sm:$0xff] }
 0x422   : > { %12964 = vmatpush3.bf16.xpose.msra.mxu0 %v7497_v39  ;;  %12953 = vmatprep.subr.bf16.mxu1 %v17427_v14  ;;  %v17588_v39 = vld [vmem:[#allocation82_spill] sm:$0xff] }
 0x423   : > { %12965 = vmatprep.subr.bf16.mxu0 %v17427_v14  ;;  %v17589_v12 = vrot.slane %v17588_v39, %v15148_v26 }
 0x425   : > { %v6066_v36 = vmul.f32 %v15837_v51, %v17589_v12  ;;  %v7558_v12 = vsel %vm6334_vm4, %v15419_v41, 0 }
 0x427   : > { %v6098_v29 = vpack.c.bf16 %v6066_v36, %v6066_v36  ;;  %v7613_v36 = vsel %vm6334_vm4, %v15456_v23, 0 }
 0x429   : > { %12954 = vmatpush3.bf16.xpose.msra.mxu1 %v7439_v22  ;;  %v6099_v22 = vpack.c.bf16 %v6067_v58, %v6067_v58  ;;  %v4970_v58 = vadd.f32 %v15994_v27, %v15399_v3 }
 0x42a   : > { %12966 = vmatpush3.bf16.xpose.msra.mxu0 %v7494_v48  ;;  %12971 = vmatprep.subr.bf16.mxu1 %v17427_v14  ;;  %v5005_v48 = vadd.f32 %v15409_v31, %v15454_v30  ;;  %v5002_v30 = vadd.f32 %v15994_v27, %v15440_v20 }
 0x42b   : > { %12983 = vmatprep.subr.bf16.mxu0 %v17427_v14 }
 0x42c   : > { %v16014_v20 = vpack.c.bf16 %v5005_v48, %v5002_v30  ;;  %v4957_v30 = vadd.f32 %v15994_v27, %v15392_v8  ;;  %v17595_v8 = vld [vmem:[#allocation105_spill] sm:$0xff] }
 0x430   : > { %v6824_v39 = vpop.f32.mrf.mxu1  ;;  %12956 = vmatmul.mubr.msk.bf16.vlgmr.msra.gmra.mxu1 %vm6334_vm4, %v6098_v29 }
 0x431   : > { %v15986_v5 = vadd.f32 %v11473_v54, %v6824_v39  ;;  %12972 = vmatpush3.bf16.xpose.msra.mxu1 %v7558_v12  ;;  %v6879_v37 = vpop.f32.mrf.mxu0  ;;  %12968 = vmatmul.mubr.msk.bf16.vlgmr.msra.gmra.mxu0 %vm6334_vm4, %v6099_v22  ;;  %v16008_v39 = vpack.c.bf16 %v4973_v53, %v4970_v58  ;;  %v7610_v53 = vsel %vm6334_vm4, %v16014_v20, 0 }
 0x432   : > { %v15998_v29 = vadd.f32 %v11474_v59, %v6879_v37  ;;  %12984 = vmatpush3.bf16.xpose.msra.mxu0 %v7613_v36  ;;  %12973 = vmatprep.subr.bf16.mxu1 %v17427_v14  ;;  %v12813_v31 = vpop.f32.mrf.mxu1 }
 0x433   : > { %v8120_v54 = vsel %vm8095_vm11, %v15986_v5, -inf  ;;  %12985 = vmatprep.subr.bf16.mxu0 %v17427_v14  ;;  %v12825_v22 = vpop.f32.mrf.mxu0  ;;  %12979 = vmatprep.mubr.msk.bf16.mxu1 %vm13842_vm13, %v17427_v14  ;;  %v7555_v31 = vsel %vm6334_vm4, %v16008_v39, 0 }
 0x434   : > { %8121 = vmax.xlane.f32.xlu0 %v8120_v54  ;;  %v8123_v3 = vsel %vm8095_vm11, %v15998_v29, -inf  ;;  %v6827_v59 = vpop.f32.mrf.mxu1  ;;  %12991 = vmatprep.mubr.msk.bf16.mxu0 %vm13842_vm13, %v17427_v14  ;;  %v7552_v54 = vsel %vm6334_vm4, %v15394_v11, 0  ;;  %v17592_v22 = vld [vmem:[#allocation106_spill] sm:$0xff] }
 0x435   : > { %8124 = vmax.xlane.f32.xlu1 %v8123_v3  ;;  %v6882_v12 = vpop.f32.mrf.mxu0  ;;  %v4989_v3 = vadd.f32 %v15994_v27, %v17592_v22  ;;  %v17593_v59 = vld [vmem:[#allocation107_spill] sm:$0xff] }
 0x436   : > { %v12814_v37 = vpop.f32.mrf.mxu1  ;;  %v7607_v12 = vsel %vm6334_vm4, %v17593_v59, 0 }
 0x437   : > { %v12826_v36 = vpop.f32.mrf.mxu0 }
 0x438   : > { %v17594_v36 = vld [vmem:[#allocation104_spill] sm:$0xff] }
 0x439   : > { %12974 = vmatpush3.bf16.xpose.msra.mxu1 %v7555_v31  ;;  %v4954_v31 = vadd.f32 %v15994_v27, %v17594_v36 }
 0x43a   : > { %12986 = vmatpush3.bf16.xpose.msra.mxu0 %v7610_v53  ;;  %12975 = vmatprep.subr.bf16.mxu1 %v17427_v14  ;;  %v4986_v53 = vadd.f32 %v15994_v27, %v17595_v8  ;;  %v11476_v8 = vld [vmem:[%s15748_s16 + $0xb] ss:$0 sm:$0xff] }
 0x43b   : > { %12987 = vmatprep.subr.bf16.mxu0 %v17427_v14 }
 0x43c   : > { %v16040_v59 = vpack.c.bf16 %v4989_v3, %v4986_v53  ;;  %v5037_v53 = vadd.f32 %v15994_v27, %v15492_v21  ;;  %v5034_v21 = vadd.f32 %v15994_v27, %v15481_v16 }
 0x43d   : > { %v8098_v58 = vpop.xlane.xlu0 %8097 }
 0x43e   : > { %v8192_v48 = vsub.f32 %v15760_v34, %v8098_v58  ;;  %v16080_v16 = vpack.c.bf16 %v5037_v53, %v5034_v21 }
 0x440   : > { %v8224_v58 = vmul.f32 1.442695, %v8192_v48  ;;  %v7665_v21 = vsel %vm6334_vm4, %v16080_v16, 0 }
 0x441   : > { %12976 = vmatpush3.bf16.xpose.msra.mxu1 %v7552_v54  ;;  %v8101_v37 = vpop.xlane.xlu0 %8100  ;;  %v16038_v54 = vpack.c.bf16 %v4957_v30, %v4954_v31  ;;  %v17597_v30 = vld [vmem:[#allocation87_spill] sm:$0xff] }
 0x442   : > { %12988 = vmatpush3.bf16.xpose.msra.mxu0 %v7607_v12  ;;  %v8193_v34 = vsub.f32 %v15763_v46, %v8101_v37  ;;  %12977 = vmatprep.subr.bf16.mxu1 %v17427_v14  ;;  %13658 = vpow2.f32 %v8224_v58  ;;  %v7604_v12 = vsel %vm6334_vm4, %v16040_v59, 0  ;;  %v17596_v37 = vld [vmem:[#allocation86_spill] sm:$0xff]  ;;  %v6069_v36 = vmul.f32 %v15837_v51, %v17597_v30  ;;  %v11475_v31 = vld [vmem:[%s15748_s16 + $0xa] ss:$0 sm:$0xff] }
 0x443   : > { %12989 = vmatprep.subr.bf16.mxu0 %v17427_v14  ;;  %v7549_v46 = vsel %vm6334_vm4, %v16038_v54, 0  ;;  %v6068_v48 = vmul.f32 %v15837_v51, %v17596_v37 }
 0x444   : > { %v8226_v22 = vmul.f32 1.442695, %v8193_v34  ;;  %v6101_v34 = vpack.c.bf16 %v6069_v36, %v6069_v36 }
 0x445   : > { %v6100_v3 = vpack.c.bf16 %v6068_v48, %v6068_v48  ;;  %v7723_v48 = vsel %vm6334_vm4, %v15528_v40, 0 }
 0x446   : > { %13660 = vpow2.f32 %v8226_v22  ;;  %v7668_v22 = vsel %vm6334_vm4, %v15496_v55, 0 }
 0x449   : > { %12978 = vmatpush3.bf16.xpose.msra.mxu1 %v7549_v46  ;;  %v5069_v46 = vadd.f32 %v15994_v27, %v15526_v35  ;;  %v5066_v35 = vadd.f32 %v15994_v27, %v15514_v45 }
 0x44a   : > { %12990 = vmatpush3.bf16.xpose.msra.mxu0 %v7604_v12  ;;  %12995 = vmatprep.subr.bf16.mxu1 %v17427_v14 }
 0x44b   : > { %13007 = vmatprep.subr.bf16.mxu0 %v17427_v14 }
 0x450   : > { %v6934_v58 = vpop.f32.mrf.mxu1  ;;  %12980 = vmatmul.mubr.msk.bf16.vlgmr.msra.gmra.mxu1 %vm6334_vm4, %v6100_v3 }
 0x451   : > { %v16061_v12 = vadd.f32 %v11475_v31, %v6934_v58  ;;  %12996 = vmatpush3.bf16.xpose.msra.mxu1 %v7668_v22  ;;  %v6989_v37 = vpop.f32.mrf.mxu0  ;;  %12992 = vmatmul.mubr.msk.bf16.vlgmr.msra.gmra.mxu0 %vm6334_vm4, %v6101_v34  ;;  %v16078_v34 = vpop.eup %13658  ;;  %v16088_v22 = vpack.c.bf16 %v5069_v46, %v5066_v35 }
 0x452   : > { %v16068_v30 = vadd.f32 %v11476_v8, %v6989_v37  ;;  %13008 = vmatpush3.bf16.xpose.msra.mxu0 %v7723_v48  ;;  %12997 = vmatprep.subr.bf16.mxu1 %v17427_v14  ;;  %v12837_v36 = vpop.f32.mrf.mxu1 }
 0x453   : > { %v8126_v3 = vsel %vm8095_vm11, %v16061_v12, -inf  ;;  %13009 = vmatprep.subr.bf16.mxu0 %v17427_v14  ;;  %v12849_v31 = vpop.f32.mrf.mxu0  ;;  %13003 = vmatprep.mubr.msk.bf16.mxu1 %vm13842_vm13, %v17427_v14  ;;  %v16086_v45 = vpop.eup %13660  ;;  %v8288_v36 = vsel %vm8095_vm11, %v16078_v34, 0.0  ;;  %v7720_v46 = vsel %vm6334_vm4, %v16088_v22, 0 }
 0x454   : > { %8127 = vmax.xlane.f32.xlu0 %v8126_v3  ;;  %v8129_v8 = vsel %vm8095_vm11, %v16068_v30, -inf  ;;  %v6937_v58 = vpop.f32.mrf.mxu1  ;;  %13015 = vmatprep.mubr.msk.bf16.mxu0 %vm13842_vm13, %v17427_v14  ;;  %v8291_v3 = vsel %vm8095_vm11, %v16086_v45, 0.0 }
 0x455   : > { %8130 = vmax.xlane.f32.xlu1 %v8129_v8  ;;  %v6992_v37 = vpop.f32.mrf.mxu0  ;;  %v5021_v8 = vadd.f32 %v15994_v27, %v15474_v38  ;;  %v7662_v58 = vsel %vm6334_vm4, %v15476_v56, 0  ;;  %v17599_v38 = vld [vmem:[#allocation109_spill] sm:$0xff] }
 0x456   : > { %v12838_v48 = vpop.f32.mrf.mxu1  ;;  %v5053_v37 = vadd.f32 %v15994_v27, %v15508_v49 }
 0x457   : > { %v12850_v53 = vpop.f32.mrf.mxu0  ;;  %v7717_v48 = vsel %vm6334_vm4, %v15510_v32, 0 }
 0x458   : > { %8289 = vadd.xlane.f32.xlu0 %v8288_v36  ;;  %v17598_v53 = vld [vmem:[#allocation108_spill] sm:$0xff] }
 0x459   : > { %12998 = vmatpush3.bf16.xpose.msra.mxu1 %v7665_v21  ;;  %8292 = vadd.xlane.f32.xlu1 %v8291_v3  ;;  %v5018_v21 = vadd.f32 %v15994_v27, %v17598_v53  ;;  %v5050_v3 = vadd.f32 %v15994_v27, %v17599_v38  ;;  %v11477_v38 = vld [vmem:[%s15748_s16 + $0xc] ss:$0 sm:$0xff] }
 0x45a   : > { %13010 = vmatpush3.bf16.xpose.msra.mxu0 %v7720_v46  ;;  %12999 = vmatprep.subr.bf16.mxu1 %v17427_v14 }
 0x45b   : > { %13011 = vmatprep.subr.bf16.mxu0 %v17427_v14  ;;  %v16116_v49 = vpack.c.bf16 %v5021_v8, %v5018_v21  ;;  %v17602_v8 = vld [vmem:[#allocation96_spill] sm:$0xff] }
 0x45d   : > { %v8104_v35 = vpop.xlane.xlu1 %8103 }
 0x45e   : > { %v8194_v31 = vsub.f32 %v15804_v6, %v8104_v35 }
 0x460   : > { %v8228_v46 = vmul.f32 1.442695, %v8194_v31 }
 0x461   : > { %13000 = vmatpush3.bf16.xpose.msra.mxu1 %v7662_v58  ;;  %v8107_v36 = vpop.xlane.xlu1 %8106  ;;  %v16118_v58 = vpack.c.bf16 %v5053_v37, %v5050_v3  ;;  %v17603_v37 = vrot.slane %v17602_v8, %v15148_v26 }
 0x462   : > { %13012 = vmatpush3.bf16.xpose.msra.mxu0 %v7717_v48  ;;  %v8195_v6 = vsub.f32 %v15807_v33, %v8107_v36  ;;  %13001 = vmatprep.subr.bf16.mxu1 %v17427_v14  ;;  %13662 = vpow2.f32 %v8228_v46  ;;  %v7659_v33 = vsel %vm6334_vm4, %v16116_v49, 0  ;;  %v17600_v36 = vld [vmem:[#allocation93_spill] sm:$0xff]  ;;  %v11478_v46 = vld [vmem:[%s15748_s16 + $0xd] ss:$0 sm:$0xff] }
 0x463   : > { %13013 = vmatprep.subr.bf16.mxu0 %v17427_v14  ;;  %v7714_v48 = vsel %vm6334_vm4, %v16118_v58, 0  ;;  %v17601_v31 = vrot.slane %v17600_v36, %v15148_v26  ;;  %v6071_v21 = vmul.f32 %v15837_v51, %v17603_v37  ;;  %v5133_v36 = vadd.f32 %v15994_v27, %v15592_v19 }
 0x464   : > { %v8230_v35 = vmul.f32 1.442695, %v8195_v6  ;;  %v5130_v19 = vadd.f32 %v15994_v27, %v15584_v18 }
 0x465   : > { %v6070_v53 = vmul.f32 %v15837_v51, %v17601_v31  ;;  %v6103_v3 = vpack.c.bf16 %v6071_v21, %v6071_v21 }
 0x466   : > { %13664 = vpow2.f32 %v8230_v35  ;;  %v5101_v35 = vadd.f32 %v15994_v27, %v15562_v1  ;;  %v5098_v1 = vadd.f32 %v15994_v27, %v15551_v7 }
 0x467   : > { %v6102_v6 = vpack.c.bf16 %v6070_v53, %v6070_v53  ;;  %v7833_v53 = vsel %vm6334_vm4, %v15594_v42, 0 }
 0x468   : > { %v16162_v7 = vpack.c.bf16 %v5101_v35, %v5098_v1 }
 0x469   : > { %13002 = vmatpush3.bf16.xpose.msra.mxu1 %v7659_v33 }
 0x46a   : > { %13014 = vmatpush3.bf16.xpose.msra.mxu0 %v7714_v48  ;;  %13019 = vmatprep.subr.bf16.mxu1 %v17427_v14  ;;  %v7778_v48 = vsel %vm6334_vm4, %v15566_v2, 0  ;;  %v7775_v1 = vsel %vm6334_vm4, %v16162_v7, 0 }
 0x46b   : > { %13031 = vmatprep.subr.bf16.mxu0 %v17427_v14 }
 0x470   : > { %v7044_v33 = vpop.f32.mrf.mxu1  ;;  %13004 = vmatmul.mubr.msk.bf16.vlgmr.msra.gmra.mxu1 %vm6334_vm4, %v6102_v6 }
 0x471   : > { %v16143_v31 = vadd.f32 %v11477_v38, %v7044_v33  ;;  %13020 = vmatpush3.bf16.xpose.msra.mxu1 %v7778_v48  ;;  %v7099_v8 = vpop.f32.mrf.mxu0  ;;  %13016 = vmatmul.mubr.msk.bf16.vlgmr.msra.gmra.mxu0 %vm6334_vm4, %v6103_v3  ;;  %v16160_v3 = vpop.eup %13662  ;;  %v16170_v48 = vpack.c.bf16 %v5133_v36, %v5130_v19 }
 0x472   : > { %v16150_v37 = vadd.f32 %v11478_v46, %v7099_v8  ;;  %13032 = vmatpush3.bf16.xpose.msra.mxu0 %v7833_v53  ;;  %13021 = vmatprep.subr.bf16.mxu1 %v17427_v14  ;;  %v12861_v21 = vpop.f32.mrf.mxu1 }
 0x473   : > { %v8132_v6 = vsel %vm8095_vm11, %v16143_v31, -inf  ;;  %13033 = vmatprep.subr.bf16.mxu0 %v17427_v14  ;;  %v12873_v38 = vpop.f32.mrf.mxu0  ;;  %13027 = vmatprep.mubr.msk.bf16.mxu1 %vm13842_vm13, %v17427_v14  ;;  %v16168_v18 = vpop.eup %13664  ;;  %v8294_v21 = vsel %vm8095_vm11, %v16160_v3, 0.0  ;;  %v7830_v36 = vsel %vm6334_vm4, %v16170_v48, 0 }
 0x474   : > { %8133 = vmax.xlane.f32.xlu0 %v8132_v6  ;;  %v8135_v46 = vsel %vm8095_vm11, %v16150_v37, -inf  ;;  %v7047_v33 = vpop.f32.mrf.mxu1  ;;  %13039 = vmatprep.mubr.msk.bf16.mxu0 %vm13842_vm13, %v17427_v14  ;;  %v8297_v6 = vsel %vm8095_vm11, %v16168_v18, 0.0 }
 0x475   : > { %8136 = vmax.xlane.f32.xlu1 %v8135_v46  ;;  %v7102_v8 = vpop.f32.mrf.mxu0  ;;  %v5085_v33 = vadd.f32 %v15994_v27, %v15544_v4 }
 0x476   : > { %v12862_v53 = vpop.f32.mrf.mxu1  ;;  %v7772_v8 = vsel %vm6334_vm4, %v15546_v61, 0 }
 0x477   : > { %v12874_v35 = vpop.f32.mrf.mxu0 }
 0x478   : > { %8295 = vadd.xlane.f32.xlu0 %v8294_v21  ;;  %v5117_v21 = vadd.f32 %v15994_v27, %v15578_v15  ;;  %v7827_v35 = vsel %vm6334_vm4, %v15580_v57, 0 }
 0x479   : > { %13022 = vmatpush3.bf16.xpose.msra.mxu1 %v7775_v1  ;;  %8298 = vadd.xlane.f32.xlu1 %v8297_v6  ;;  %v17604_v1 = vld [vmem:[#allocation110_spill] sm:$0xff] }
 0x47a   : > { %13034 = vmatpush3.bf16.xpose.msra.mxu0 %v7830_v36  ;;  %13023 = vmatprep.subr.bf16.mxu1 %v17427_v14  ;;  %v5082_v6 = vadd.f32 %v15994_v27, %v17604_v1  ;;  %v11479_v1 = vld [vmem:[%s15748_s16 + $0xe] ss:$0 sm:$0xff] }
 0x47b   : > { %13035 = vmatprep.subr.bf16.mxu0 %v17427_v14 }
 0x47d   : > { %v8110_v19 = vpop.xlane.xlu0 %8109 }
 0x47e   : > { %v8113_v38 = vpop.xlane.xlu1 %8112  ;;  %v8196_v46 = vsub.f32 %v15859_v9, %v8110_v19  ;;  %v17605_v9 = vld [vmem:[#allocation111_spill] sm:$0xff] }
 0x47f   : > { %v8197_v53 = vsub.f32 %v15861_v10, %v8113_v38  ;;  %v5114_v4 = vadd.f32 %v15994_v27, %v17605_v9  ;;  %v16198_v10 = vpack.c.bf16 %v5085_v33, %v5082_v6  ;;  %v17609_v33 = vld [vmem:[#allocation100_spill] sm:$0xff]  ;;  %v11480_v9 = vld [vmem:[%s15748_s16 + $0xf] ss:$0 sm:$0xff] }
 0x480   : > { %v8232_v36 = vmul.f32 1.442695, %v8196_v46 }
 0x481   : > { %13024 = vmatpush3.bf16.xpose.msra.mxu1 %v7772_v8  ;;  %17606 = vst [vmem:[#allocation84_spill] sm:$0xff] %v16198_v10  ;;  %v8234_v15 = vmul.f32 1.442695, %v8197_v53  ;;  %v16200_v19 = vpack.c.bf16 %v5117_v21, %v5114_v4  ;;  %v7769_v38 = vsel %vm6334_vm4, %v16198_v10, 0  ;;  %v6073_v53 = vmul.f32 %v15837_v51, %v17609_v33 }
 0x482   : > { %13036 = vmatpush3.bf16.xpose.msra.mxu0 %v7827_v35  ;;  %13025 = vmatprep.subr.bf16.mxu1 %v17427_v14  ;;  %13666 = vpow2.f32 %v8232_v36  ;;  %v17608_v35 = vld [vmem:[#allocation98_spill] sm:$0xff]  ;;  %v5165_v4 = vadd.f32 %v15994_v27, %v15632_v62 }
 0x483   : > { %13037 = vmatprep.subr.bf16.mxu0 %v17427_v14  ;;  %17607 = vst [vmem:[#allocation85_spill] sm:$0xff] %v16200_v19  ;;  %13668 = vpow2.f32 %v8234_v15  ;;  %v7824_v8 = vsel %vm6334_vm4, %v16200_v19, 0  ;;  %v6072_v46 = vmul.f32 %v15837_v51, %v17608_v35  ;;  %v6105_v6 = vpack.c.bf16 %v6073_v53, %v6073_v53  ;;  %v17612_v19 = vld [vmem:[#allocation116_spill] sm:$0xff] }
 0x484   : > { %v7888_v15 = vsel %vm6334_vm4, %v15636_v47, 0  ;;  %v5162_v62 = vadd.f32 %v15994_v27, %v17612_v19  ;;  %v17613_v47 = vld [vmem:[#allocation121_spill] sm:$0xff] }
 0x485   : > { %v6104_v21 = vpack.c.bf16 %v6072_v46, %v6072_v46  ;;  %v17611_v46 = vld [vmem:[#allocation123_spill] sm:$0xff] }
 0x486   : > { %v7943_v53 = vsel %vm6334_vm4, %v17611_v46, 0  ;;  %v17620_v46 = vld [vmem:[#allocation113_spill] sm:$0xff] }
 0x487   : > { %v5146_v57 = vadd.f32 %v15994_v27, %v17620_v46 }
 0x489   : > { %13026 = vmatpush3.bf16.xpose.msra.mxu1 %v7769_v38  ;;  %v17610_v38 = vld [vmem:[#allocation122_spill] sm:$0xff] }
 0x48a   : > { %13038 = vmatpush3.bf16.xpose.msra.mxu0 %v7824_v8  ;;  %13043 = vmatprep.subr.bf16.mxu1 %v17427_v14  ;;  %v5197_v8 = vadd.f32 %v15994_v27, %v17610_v38 }
 0x48b   : > { %13055 = vmatprep.subr.bf16.mxu0 %v17427_v14 }
 0x490   : > { %v7154_v36 = vpop.f32.mrf.mxu1  ;;  %13028 = vmatmul.mubr.msk.bf16.vlgmr.msra.gmra.mxu1 %vm6334_vm4, %v6104_v21 }
 0x491   : > { %v16221_v35 = vadd.f32 %v11479_v1, %v7154_v36  ;;  %13044 = vmatpush3.bf16.xpose.msra.mxu1 %v7888_v15  ;;  %v7209_v33 = vpop.f32.mrf.mxu0  ;;  %13040 = vmatmul.mubr.msk.bf16.vlgmr.msra.gmra.mxu0 %vm6334_vm4, %v6105_v6  ;;  %v5194_v1 = vadd.f32 %v15994_v27, %v17613_v47  ;;  %v16238_v6 = vpop.eup %13666 }
 0x492   : > { %v12885_v10 = vpop.f32.mrf.mxu1  ;;  %v16228_v21 = vadd.f32 %v11480_v9, %v7209_v33  ;;  %13056 = vmatpush3.bf16.xpose.msra.mxu0 %v7943_v53  ;;  %13045 = vmatprep.subr.bf16.mxu1 %v17427_v14  ;;  %v16246_v47 = vpop.eup %13668 }
 0x493   : > { %v12897_v36 = vpop.f32.mrf.mxu0  ;;  %v8138_v15 = vsel %vm8095_vm11, %v16221_v35, -inf  ;;  %13057 = vmatprep.subr.bf16.mxu0 %v17427_v14  ;;  %13051 = vmatprep.mubr.msk.bf16.mxu1 %vm13842_vm13, %v17427_v14  ;;  %v16240_v10 = vpack.c.bf16 %v5165_v4, %v5162_v62  ;;  %v16248_v38 = vpack.c.bf16 %v5197_v8, %v5194_v1  ;;  %v8300_v4 = vsel %vm8095_vm11, %v16238_v6, 0.0 }
 0x494   : > { %8139 = vmax.xlane.f32.xlu0 %v8138_v15  ;;  %v7157_v19 = vpop.f32.mrf.mxu1  ;;  %v8141_v9 = vsel %vm8095_vm11, %v16228_v21, -inf  ;;  %13063 = vmatprep.mubr.msk.bf16.mxu0 %vm13842_vm13, %v17427_v14  ;;  %v8303_v15 = vsel %vm8095_vm11, %v16246_v47, 0.0 }
 0x495   : > { %17614 = vst [vmem:[#allocation90_spill] sm:$0xff] %v16240_v10  ;;  %17615 = vst [vmem:[#allocation89_spill] sm:$0xff] %v16248_v38  ;;  %v7212_v33 = vpop.f32.mrf.mxu0  ;;  %8142 = vmax.xlane.f32.xlu1 %v8141_v9  ;;  %v7885_v62 = vsel %vm6334_vm4, %v16240_v10, 0  ;;  %v7940_v8 = vsel %vm6334_vm4, %v16248_v38, 0 }
 0x496   : > { %v12886_v53 = vpop.f32.mrf.mxu1  ;;  %v17616_v33 = vld [vmem:[#allocation114_spill] sm:$0xff] }
 0x497   : > { %v12898_v36 = vpop.f32.mrf.mxu0  ;;  %v5149_v53 = vadd.f32 %v15994_v27, %v17616_v33 }
 0x498   : > { %8301 = vadd.xlane.f32.xlu0 %v8300_v4  ;;  %v17617_v4 = vld [vmem:[#allocation115_spill] sm:$0xff] }
 0x499   : > { %13046 = vmatpush3.bf16.xpose.msra.mxu1 %v7885_v62  ;;  %8304 = vadd.xlane.f32.xlu1 %v8303_v15  ;;  %v7882_v62 = vsel %vm6334_vm4, %v17617_v4, 0  ;;  %v17618_v15 = vld [vmem:[#allocation119_spill] sm:$0xff] }
 0x49a   : > { %13058 = vmatpush3.bf16.xpose.msra.mxu0 %v7940_v8  ;;  %13047 = vmatprep.subr.bf16.mxu1 %v17427_v14  ;;  %v5181_v38 = vadd.f32 %v15994_v27, %v17618_v15  ;;  %v17619_v8 = vld [vmem:[#allocation120_spill] sm:$0xff]  ;;  %v17624_v15 = vld [vmem:[#allocation95_spill] sm:$0xff] }
 0x49b   : > { %13059 = vmatprep.subr.bf16.mxu0 %v17427_v14  ;;  %v7937_v10 = vsel %vm6334_vm4, %v17619_v8, 0  ;;  %v17702_v8 = vld [vmem:[#allocation58_spill] sm:$0xff] }
 0x49d   : > { %v8116_v1 = vpop.xlane.xlu0 %8115 }
 0x49e   : > { %v8119_v19 = vpop.xlane.xlu1 %8118  ;;  %v8198_v9 = vsub.f32 %v15914_v28, %v8116_v1  ;;  %v17621_v28 = vld [vmem:[#allocation118_spill] sm:$0xff] }
 0x49f   : > { %v8199_v36 = vsub.f32 %v15921_v0, %v8119_v19  ;;  %v5178_v1 = vadd.f32 %v15994_v27, %v17621_v28  ;;  %v16276_v19 = vpack.c.bf16 %v5149_v53, %v5146_v57  ;;  %v17626_v57 = vld [vmem:[#allocation97_spill] sm:$0xff] }
 0x4a0   : > { %v8236_v0 = vmul.f32 1.442695, %v8198_v9  ;;  %v17625_v9 = vrot.slane %v17624_v15, %v15148_v26 }
 0x4a1   : > { %13048 = vmatpush3.bf16.xpose.msra.mxu1 %v7882_v62  ;;  %17622 = vst [vmem:[#allocation99_spill] sm:$0xff] %v16276_v19  ;;  %v8238_v33 = vmul.f32 1.442695, %v8199_v36  ;;  %v16278_v62 = vpack.c.bf16 %v5181_v38, %v5178_v1  ;;  %v7879_v46 = vsel %vm6334_vm4, %v16276_v19, 0  ;;  %v17627_v38 = vrot.slane %v17626_v57, %v15148_v26  ;;  %v11481_v1 = vld [vmem:[%s15748_s16 + $0x10] ss:$0 sm:$0xff] }
 0x4a2   : > { %13060 = vmatpush3.bf16.xpose.msra.mxu0 %v7937_v10  ;;  %13049 = vmatprep.subr.bf16.mxu1 %v17427_v14  ;;  %13670 = vpow2.f32 %v8236_v0  ;;  %v6074_v28 = vmul.f32 %v15837_v51, %v17625_v9  ;;  %v5261_v26 = vadd.f32 %v15994_v27, %v15750_v24 }
 0x4a3   : > { %13061 = vmatprep.subr.bf16.mxu0 %v17427_v14  ;;  %17623 = vst [vmem:[#allocation88_spill] sm:$0xff] %v16278_v62  ;;  %13672 = vpow2.f32 %v8238_v33  ;;  %v7934_v10 = vsel %vm6334_vm4, %v16278_v62, 0  ;;  %v6075_v53 = vmul.f32 %v15837_v51, %v17627_v38  ;;  %v11482_v33 = vld [vmem:[%s15748_s16 + $0x11] ss:$0 sm:$0xff]  ;;  %v17628_v38 = vld [vmem:[#allocation127_spill] sm:$0xff] }
 0x4a4   : > { %v6106_v36 = vpack.c.bf16 %v6074_v28, %v6074_v28  ;;  %v8053_v28 = vsel %vm6334_vm4, %v15728_v25, 0  ;;  %v17636_v25 = vld [vmem:[#allocation124_spill] sm:$0xff] }
 0x4a5   : > { %v6107_v0 = vpack.c.bf16 %v6075_v53, %v6075_v53  ;;  %v5210_v62 = vadd.f32 %v15994_v27, %v17636_v25 }
 0x4a9   : > { %13050 = vmatpush3.bf16.xpose.msra.mxu1 %v7879_v46  ;;  %v5229_v46 = vadd.f32 %v15994_v27, %v15698_v63  ;;  %v5226_v63 = vadd.f32 %v15994_v27, %v17628_v38 }
 0x4aa   : > { %13062 = vmatpush3.bf16.xpose.msra.mxu0 %v7934_v10  ;;  %13067 = vmatprep.subr.bf16.mxu1 %v17427_v14  ;;  %v7998_v10 = vsel %vm6334_vm4, %v15702_v13, 0  ;;  %v17629_v13 = vld [vmem:[#allocation132_spill] sm:$0xff] }
 0x4ab   : > { %13079 = vmatprep.subr.bf16.mxu0 %v17427_v14  ;;  %v5258_v24 = vadd.f32 %v15994_v27, %v17629_v13 }
 0x4b0   : > { %v7264_v15 = vpop.f32.mrf.mxu1  ;;  %13052 = vmatmul.mubr.msk.bf16.vlgmr.msra.gmra.mxu1 %vm6334_vm4, %v6106_v36 }
 0x4b1   : > { %v16303_v9 = vadd.f32 %v11481_v1, %v7264_v15  ;;  %13068 = vmatpush3.bf16.xpose.msra.mxu1 %v7998_v10  ;;  %v7319_v57 = vpop.f32.mrf.mxu0  ;;  %13064 = vmatmul.mubr.msk.bf16.vlgmr.msra.gmra.mxu0 %vm6334_vm4, %v6107_v0  ;;  %v16320_v0 = vpop.eup %13670  ;;  %v16322_v10 = vpack.c.bf16 %v5229_v46, %v5226_v63 }
 0x4b2   : > { %v12909_v53 = vpop.f32.mrf.mxu1  ;;  %v16310_v36 = vadd.f32 %v11482_v33, %v7319_v57  ;;  %13080 = vmatpush3.bf16.xpose.msra.mxu0 %v8053_v28  ;;  %13069 = vmatprep.subr.bf16.mxu1 %v17427_v14  ;;  %v16328_v13 = vpop.eup %13672  ;;  %v16330_v28 = vpack.c.bf16 %v5261_v26, %v5258_v24  ;;  %v8306_v46 = vsel %vm8095_vm11, %v16320_v0, 0.0 }
 0x4b3   : > { %v12921_v1 = vpop.f32.mrf.mxu0  ;;  %v8144_v15 = vsel %vm8095_vm11, %v16303_v9, -inf  ;;  %13081 = vmatprep.subr.bf16.mxu0 %v17427_v14  ;;  %13075 = vmatprep.mubr.msk.bf16.mxu1 %vm13842_vm13, %v17427_v14  ;;  %17630 = vst [vmem:[#allocation94_spill] sm:$0xff] %v16322_v10  ;;  %v7995_v63 = vsel %vm6334_vm4, %v16322_v10, 0 }
 0x4b4   : > { %8145 = vmax.xlane.f32.xlu0 %v8144_v15  ;;  %v7267_v33 = vpop.f32.mrf.mxu1  ;;  %v8147_v57 = vsel %vm8095_vm11, %v16310_v36, -inf  ;;  %13087 = vmatprep.mubr.msk.bf16.mxu0 %vm13842_vm13, %v17427_v14  ;;  %17631 = vst [vmem:[#allocation82_spill] sm:$0xff] %v16330_v28  ;;  %v8309_v15 = vsel %vm8095_vm11, %v16328_v13, 0.0  ;;  %v8050_v26 = vsel %vm6334_vm4, %v16330_v28, 0 }
 0x4b5   : > { %v7322_v38 = vpop.f32.mrf.mxu0  ;;  %8148 = vmax.xlane.f32.xlu1 %v8147_v57 }
 0x4b6   : > { %v12910_v53 = vpop.f32.mrf.mxu1  ;;  %v17632_v38 = vld [vmem:[#allocation125_spill] sm:$0xff] }
 0x4b7   : > { %v12922_v1 = vpop.f32.mrf.mxu0  ;;  %v5213_v53 = vadd.f32 %v15994_v27, %v17632_v38 }
 0x4b8   : > { %8307 = vadd.xlane.f32.xlu0 %v8306_v46  ;;  %v17633_v46 = vld [vmem:[#allocation126_spill] sm:$0xff] }
 0x4b9   : > { %13070 = vmatpush3.bf16.xpose.msra.mxu1 %v7995_v63  ;;  %8310 = vadd.xlane.f32.xlu1 %v8309_v15  ;;  %v7992_v63 = vsel %vm6334_vm4, %v17633_v46, 0  ;;  %v17634_v15 = vld [vmem:[#allocation130_spill] sm:$0xff] }
 0x4ba   : > { %13082 = vmatpush3.bf16.xpose.msra.mxu0 %v8050_v26  ;;  %13071 = vmatprep.subr.bf16.mxu1 %v17427_v14  ;;  %v5245_v28 = vadd.f32 %v15994_v27, %v17634_v15  ;;  %v17635_v26 = vld [vmem:[#allocation131_spill] sm:$0xff] }
 0x4bb   : > { %13083 = vmatprep.subr.bf16.mxu0 %v17427_v14  ;;  %v8047_v10 = vsel %vm6334_vm4, %v17635_v26, 0 }
 0x4bd   : > { %v8122_v24 = vpop.xlane.xlu0 %8121 }
 0x4be   : > { %v8125_v33 = vpop.xlane.xlu1 %8124  ;;  %v8200_v57 = vsub.f32 %v15986_v5, %v8122_v24  ;;  %v17637_v5 = vld [vmem:[#allocation129_spill] sm:$0xff] }
 0x4bf   : > { %v8201_v1 = vsub.f32 %v15998_v29, %v8125_v33  ;;  %v5242_v24 = vadd.f32 %v15994_v27, %v17637_v5  ;;  %v16358_v33 = vpack.c.bf16 %v5213_v53, %v5210_v62  ;;  %v17640_v27 = vld [vmem:[#allocation101_spill] sm:$0xff]  ;;  %v17641_v62 = vld [vmem:[#allocation103_spill] sm:$0xff]  ;;  %v11484_v5 = vld [vmem:[%s15748_s16 + $0x13] ss:$0 sm:$0xff] }
 0x4c0   : > { %v8240_v29 = vmul.f32 1.442695, %v8200_v57  ;;  %v6076_v57 = vmul.f32 %v15837_v51, %v17640_v27  ;;  %v6077_v53 = vmul.f32 %v15837_v51, %v17641_v62  ;;  %v17643_v51 = vld [vmem:[#allocation7_spill] sm:$0xff] }
 0x4c1   : > { %13072 = vmatpush3.bf16.xpose.msra.mxu1 %v7992_v63  ;;  %17638 = vst [vmem:[#allocation83_spill] sm:$0xff] %v16358_v33  ;;  %v8242_v38 = vmul.f32 1.442695, %v8201_v1  ;;  %v16360_v63 = vpack.c.bf16 %v5245_v28, %v5242_v24  ;;  %v7989_v25 = vsel %vm6334_vm4, %v16358_v33, 0  ;;  %v11483_v1 = vld [vmem:[%s15748_s16 + $0x12] ss:$0 sm:$0xff] }
 0x4c2   : > { %13084 = vmatpush3.bf16.xpose.msra.mxu0 %v8047_v10  ;;  %13073 = vmatprep.subr.bf16.mxu1 %v17427_v14  ;;  %13674 = vpow2.f32 %v8240_v29  ;;  %v6108_v28 = vpack.c.bf16 %v6076_v57, %v6076_v57  ;;  %v6109_v15 = vpack.c.bf16 %v6077_v53, %v6077_v53 }
 0x4c3   : > { %13085 = vmatprep.subr.bf16.mxu0 %v17427_v14  ;;  %17639 = vst [vmem:[#allocation106_spill] sm:$0xff] %v16360_v63  ;;  %13676 = vpow2.f32 %v8242_v38  ;;  %v8044_v10 = vsel %vm6334_vm4, %v16360_v63, 0  ;;  %v17642_v38 = vld [vmem:[#allocation2_spill] sm:$0xff]  ;;  %v11486_v63 = vld [vmem:[%s15748_s16 + $0x15] ss:$0 sm:$0xff] }
 0x4c9   : > { %13074 = vmatpush3.bf16.xpose.msra.mxu1 %v7989_v25 }
 0x4ca   : > { %13086 = vmatpush3.bf16.xpose.msra.mxu0 %v8044_v10  ;;  %13091 = vmatprep.subr.bf16.mxu1 %v17427_v14 }
 0x4cb   : > { %13103 = vmatprep.subr.bf16.mxu0 %v17427_v14 }
 0x4cf   : > { %v16388_v53 = vpop.eup %13674 }
 0x4d0   : > { %v7374_v24 = vpop.f32.mrf.mxu1  ;;  %13076 = vmatmul.mubr.msk.bf16.vlgmr.msra.gmra.mxu1 %vm6334_vm4, %v6108_v28 }
 0x4d1   : > { %v16375_v29 = vadd.f32 %v11483_v1, %v7374_v24  ;;  %13092 = vmatpush3.bf16.msra.mxu1 %v17642_v38  ;;  %v7429_v25 = vpop.f32.mrf.mxu0  ;;  %13088 = vmatmul.mubr.msk.bf16.vlgmr.msra.gmra.mxu0 %vm6334_vm4, %v6109_v15  ;;  %v16394_v15 = vpop.eup %13676 }
 0x4d2   : > { %v12933_v10 = vpop.f32.mrf.mxu1  ;;  %v16379_v27 = vadd.f32 %v11484_v5, %v7429_v25  ;;  %13104 = vmatpush3.bf16.msra.mxu0 %v17643_v51  ;;  %13093 = vmatprep.subr.bf16.mxu1 %v17427_v14  ;;  %v17644_v5 = vld [vmem:[#allocation3_spill] sm:$0xff]  ;;  %v17645_v25 = vld [vmem:[#allocation8_spill] sm:$0xff]  ;;  %v8312_v51 = vsel %vm8095_vm11, %v16388_v53, 0.0 }
 0x4d3   : > { %v12945_v57 = vpop.f32.mrf.mxu0  ;;  %v8150_v62 = vsel %vm8095_vm11, %v16375_v29, -inf  ;;  %13105 = vmatprep.subr.bf16.mxu0 %v17427_v14  ;;  %13099 = vmatprep.mubr.msk.bf16.mxu1 %vm13842_vm13, %v17427_v14 }
 0x4d4   : > { %8151 = vmax.xlane.f32.xlu0 %v8150_v62  ;;  %v7377_v28 = vpop.f32.mrf.mxu1  ;;  %v8153_v1 = vsel %vm8095_vm11, %v16379_v27, -inf  ;;  %13111 = vmatprep.mubr.msk.bf16.mxu0 %vm13842_vm13, %v17427_v14  ;;  %v8315_v57 = vsel %vm8095_vm11, %v16394_v15, 0.0  ;;  %v17646_v62 = vld [vmem:[#allocation6_spill] sm:$0xff] }
 0x4d5   : > { %13094 = vmatpush3.bf16.msra.mxu1 %v17644_v5  ;;  %v7432_v24 = vpop.f32.mrf.mxu0  ;;  %8154 = vmax.xlane.f32.xlu1 %v8153_v1  ;;  %v17647_v28 = vld [vmem:[#allocation4_spill] sm:$0xff]  ;;  %v17648_v1 = vld [vmem:[#allocation9_spill] sm:$0xff] }
 0x4d6   : > { %v12934_v38 = vpop.f32.mrf.mxu1  ;;  %13106 = vmatpush3.bf16.msra.mxu0 %v17645_v25  ;;  %13095 = vmatprep.subr.bf16.mxu1 %v17427_v14 }
 0x4d7   : > { %v12946_v10 = vpop.f32.mrf.mxu0  ;;  %13107 = vmatprep.subr.bf16.mxu0 %v17427_v14  ;;  %v17649_v38 = vld [vmem:[#allocation5_spill] sm:$0xff] }
 0x4d8   : > { %8313 = vadd.xlane.f32.xlu0 %v8312_v51 }
 0x4d9   : > { %13096 = vmatpush3.bf16.msra.mxu1 %v17646_v62  ;;  %8316 = vadd.xlane.f32.xlu1 %v8315_v57 }
 0x4da   : > { %13108 = vmatpush3.bf16.msra.mxu0 %v17647_v28  ;;  %13097 = vmatprep.subr.bf16.mxu1 %v17427_v14 }
 0x4db   : > { %13109 = vmatprep.subr.bf16.mxu0 %v17427_v14 }
 0x4dd   : > { %13098 = vmatpush3.bf16.msra.mxu1 %v17648_v1  ;;  %v8128_v5 = vpop.xlane.xlu0 %8127  ;;  %v11485_v1 = vld [vmem:[%s15748_s16 + $0x14] ss:$0 sm:$0xff] }
 0x4de   : > { %v8131_v24 = vpop.xlane.xlu1 %8130  ;;  %13110 = vmatpush3.bf16.msra.mxu0 %v17649_v38  ;;  %13115 = vmatprep.subr.bf16.mxu1 %v17427_v14  ;;  %v8202_v25 = vsub.f32 %v16061_v12, %v8128_v5 }
 0x4df   : > { %13127 = vmatprep.subr.bf16.mxu0 %v17427_v14  ;;  %v8203_v10 = vsub.f32 %v16068_v30, %v8131_v24 }
 0x4e0   : > { %v8244_v62 = vmul.f32 1.442695, %v8202_v25 }
 0x4e1   : > { %v8290_v51 = vpop.xlane.xlu0 %8289  ;;  %v8246_v28 = vmul.f32 1.442695, %v8203_v10 }
 0x4e2   : > { %v8293_v57 = vpop.xlane.xlu1 %8292  ;;  %13678 = vrcp.f32 %v8290_v51 }
 0x4e3   : > { %13680 = vrcp.f32 %v8293_v57 }
 0x4e4   : > { %13682 = vpow2.f32 %v8244_v62 }
 0x4e5   : > { %13684 = vpow2.f32 %v8246_v28 }
 0x4ef   : > { %v13679_v38 = vpop.eup %13678 }
 0x4f0   : > { %v7484_v33 = vpop.f32.mrf.mxu1  ;;  %v13681_v19 = vpop.eup %13680  ;;  %v8416_v12 = vmul.f32 %v13679_v38, %v16078_v34 }
 0x4f1   : > { %v16416_v26 = vadd.f32 %v11485_v1, %v7484_v33  ;;  %v7539_v46 = vpop.f32.mrf.mxu0  ;;  %v8417_v24 = vmul.f32 %v13681_v19, %v16086_v45  ;;  %v16426_v62 = vpop.eup %13682  ;;  %v17650_v19 = vld [vmem:[#allocation12_spill] sm:$0xff] }
 0x4f2   : > { %v12957_v5 = vpop.f32.mrf.mxu1  ;;  %v16419_v30 = vadd.f32 %v11486_v63, %v7539_v46  ;;  %v8448_v51 = vpack.c.bf16 %v8416_v12, %v8416_v12  ;;  %v16428_v34 = vpop.eup %13684  ;;  %v17651_v63 = vld [vmem:[#allocation16_spill] sm:$0xff]  ;;  %v8318_v38 = vsel %vm8095_vm11, %v16426_v62, 0.0 }
 0x4f3   : > { %v12969_v25 = vpop.f32.mrf.mxu0  ;;  %v8156_v10 = vsel %vm8095_vm11, %v16416_v26, -inf  ;;  %v8449_v28 = vpack.c.bf16 %v8417_v24, %v8417_v24  ;;  %v8321_v12 = vsel %vm8095_vm11, %v16428_v34, 0.0  ;;  %v17652_v5 = vld [vmem:[#allocation13_spill] sm:$0xff] }
 0x4f4   : > { %8157 = vmax.xlane.f32.xlu0 %v8156_v10  ;;  %v7487_v57 = vpop.f32.mrf.mxu1  ;;  %v8159_v33 = vsel %vm8095_vm11, %v16419_v30, -inf  ;;  %13100 = vmatmul.mubr.msk.bf16.vlgmr.msra.gmra.mxu1 %vm6334_vm4, %v8448_v51  ;;  %v17653_v24 = vld [vmem:[#allocation17_spill] sm:$0xff]  ;;  %v17654_v51 = vld [vmem:[#allocation10_spill] sm:$0xff] }
 0x4f5   : > { %v7542_v1 = vpop.f32.mrf.mxu0  ;;  %8160 = vmax.xlane.f32.xlu1 %v8159_v33  ;;  %13116 = vmatpush3.bf16.msra.mxu1 %v17650_v19  ;;  %v17655_v33 = vld [vmem:[#allocation14_spill] sm:$0xff]  ;;  %v17656_v19 = vld [vmem:[#allocation11_spill] sm:$0xff] }
 0x4f6   : > { %v12958_v45 = vpop.f32.mrf.mxu1  ;;  %13112 = vmatmul.mubr.msk.bf16.vlgmr.msra.gmra.mxu0 %vm6334_vm4, %v8449_v28  ;;  %13117 = vmatprep.subr.bf16.mxu1 %v17427_v14 }
 0x4f7   : > { %v12970_v46 = vpop.f32.mrf.mxu0  ;;  %13128 = vmatpush3.bf16.msra.mxu0 %v17651_v63  ;;  %13123 = vmatprep.mubr.msk.bf16.mxu1 %vm13842_vm13, %v17427_v14  ;;  %v17657_v63 = vld [vmem:[#allocation15_spill] sm:$0xff] }
 0x4f8   : > { %8319 = vadd.xlane.f32.xlu0 %v8318_v38  ;;  %13129 = vmatprep.subr.bf16.mxu0 %v17427_v14  ;;  %v11487_v38 = vld [vmem:[%s15748_s16 + $0x16] ss:$0 sm:$0xff] }
 0x4f9   : > { %8322 = vadd.xlane.f32.xlu1 %v8321_v12  ;;  %13118 = vmatpush3.bf16.msra.mxu1 %v17652_v5 }
 0x4fa   : > { %13135 = vmatprep.mubr.msk.bf16.mxu0 %vm13842_vm13, %v17427_v14  ;;  %13119 = vmatprep.subr.bf16.mxu1 %v17427_v14 }
 0x4fb   : > { %13130 = vmatpush3.bf16.msra.mxu0 %v17653_v24 }
 0x4fc   : > { %13131 = vmatprep.subr.bf16.mxu0 %v17427_v14 }
 0x4fd   : > { %v8134_v25 = vpop.xlane.xlu0 %8133  ;;  %13120 = vmatpush3.bf16.msra.mxu1 %v17654_v51 }
 0x4fe   : > { %v8137_v10 = vpop.xlane.xlu1 %8136  ;;  %v8204_v57 = vsub.f32 %v16143_v31, %v8134_v25  ;;  %13121 = vmatprep.subr.bf16.mxu1 %v17427_v14 }
 0x4ff   : > { %13132 = vmatpush3.bf16.msra.mxu0 %v17655_v33  ;;  %v8205_v28 = vsub.f32 %v16150_v37, %v8137_v10  ;;  %v11488_v37 = vld [vmem:[%s15748_s16 + $0x17] ss:$0 sm:$0xff] }
 0x500   : > { %13133 = vmatprep.subr.bf16.mxu0 %v17427_v14  ;;  %v8248_v46 = vmul.f32 1.442695, %v8204_v57 }
 0x501   : > { %v8296_v1 = vpop.xlane.xlu0 %8295  ;;  %13122 = vmatpush3.bf16.msra.mxu1 %v17656_v19  ;;  %v8250_v31 = vmul.f32 1.442695, %v8205_v28 }
 0x502   : > { %v8299_v45 = vpop.xlane.xlu1 %8298  ;;  %13686 = vrcp.f32 %v8296_v1  ;;  %13139 = vmatprep.subr.bf16.mxu1 %v17427_v14 }
 0x503   : > { %13134 = vmatpush3.bf16.msra.mxu0 %v17657_v63  ;;  %13688 = vrcp.f32 %v8299_v45 }
 0x504   : > { %13151 = vmatprep.subr.bf16.mxu0 %v17427_v14  ;;  %13690 = vpow2.f32 %v8248_v46 }
 0x505   : > { %13692 = vpow2.f32 %v8250_v31 }
 0x50f   : > { %v13687_v5 = vpop.eup %13686 }
 0x510   : > { %v7594_v12 = vpop.f32.mrf.mxu1  ;;  %v13689_v10 = vpop.eup %13688  ;;  %v8418_v51 = vmul.f32 %v13687_v5, %v16160_v3 }
 0x511   : > { %v16460_v24 = vadd.f32 %v11487_v38, %v7594_v12  ;;  %v7649_v25 = vpop.f32.mrf.mxu0  ;;  %v8419_v28 = vmul.f32 %v13689_v10, %v16168_v18  ;;  %v16470_v31 = vpop.eup %13690 }
 0x512   : > { %v12981_v57 = vpop.f32.mrf.mxu1  ;;  %v16463_v33 = vadd.f32 %v11488_v37, %v7649_v25  ;;  %v8450_v19 = vpack.c.bf16 %v8418_v51, %v8418_v51  ;;  %v16472_v3 = vpop.eup %13692  ;;  %v17658_v37 = vld [vmem:[#allocation20_spill] sm:$0xff]  ;;  %v8324_v10 = vsel %vm8095_vm11, %v16470_v31, 0.0 }
 0x513   : > { %v12993_v1 = vpop.f32.mrf.mxu0  ;;  %v8162_v45 = vsel %vm8095_vm11, %v16460_v24, -inf  ;;  %v8451_v38 = vpack.c.bf16 %v8419_v28, %v8419_v28  ;;  %v17659_v25 = vld [vmem:[#allocation24_spill] sm:$0xff]  ;;  %v8327_v51 = vsel %vm8095_vm11, %v16472_v3, 0.0  ;;  %v17660_v57 = vld [vmem:[#allocation21_spill] sm:$0xff] }
 0x514   : > { %8163 = vmax.xlane.f32.xlu0 %v8162_v45  ;;  %v7597_v46 = vpop.f32.mrf.mxu1  ;;  %v8165_v63 = vsel %vm8095_vm11, %v16463_v33, -inf  ;;  %13124 = vmatmul.mubr.msk.bf16.vlgmr.msra.gmra.mxu1 %vm6334_vm4, %v8450_v19  ;;  %v17661_v28 = vld [vmem:[#allocation25_spill] sm:$0xff]  ;;  %v17662_v19 = vld [vmem:[#allocation18_spill] sm:$0xff] }
 0x515   : > { %v7652_v12 = vpop.f32.mrf.mxu0  ;;  %8166 = vmax.xlane.f32.xlu1 %v8165_v63  ;;  %13140 = vmatpush3.bf16.msra.mxu1 %v17658_v37  ;;  %v17663_v63 = vld [vmem:[#allocation22_spill] sm:$0xff]  ;;  %v17664_v37 = vld [vmem:[#allocation19_spill] sm:$0xff] }
 0x516   : > { %v12982_v18 = vpop.f32.mrf.mxu1  ;;  %13136 = vmatmul.mubr.msk.bf16.vlgmr.msra.gmra.mxu0 %vm6334_vm4, %v8451_v38  ;;  %13141 = vmatprep.subr.bf16.mxu1 %v17427_v14 }
 0x517   : > { %v12994_v5 = vpop.f32.mrf.mxu0  ;;  %13152 = vmatpush3.bf16.msra.mxu0 %v17659_v25  ;;  %13147 = vmatprep.mubr.msk.bf16.mxu1 %vm13842_vm13, %v17427_v14  ;;  %v17665_v25 = vld [vmem:[#allocation23_spill] sm:$0xff] }
 0x518   : > { %8325 = vadd.xlane.f32.xlu0 %v8324_v10  ;;  %13153 = vmatprep.subr.bf16.mxu0 %v17427_v14  ;;  %v11489_v10 = vld [vmem:[%s15748_s16 + $0x18] ss:$0 sm:$0xff] }
 0x519   : > { %8328 = vadd.xlane.f32.xlu1 %v8327_v51  ;;  %13142 = vmatpush3.bf16.msra.mxu1 %v17660_v57 }
 0x51a   : > { %13159 = vmatprep.mubr.msk.bf16.mxu0 %vm13842_vm13, %v17427_v14  ;;  %13143 = vmatprep.subr.bf16.mxu1 %v17427_v14 }
 0x51b   : > { %13154 = vmatpush3.bf16.msra.mxu0 %v17661_v28 }
 0x51c   : > { %13155 = vmatprep.subr.bf16.mxu0 %v17427_v14 }
 0x51d   : > { %v8140_v1 = vpop.xlane.xlu0 %8139  ;;  %13144 = vmatpush3.bf16.msra.mxu1 %v17662_v19 }
 0x51e   : > { %v8143_v45 = vpop.xlane.xlu1 %8142  ;;  %v8206_v46 = vsub.f32 %v16221_v35, %v8140_v1  ;;  %13145 = vmatprep.subr.bf16.mxu1 %v17427_v14 }
 0x51f   : > { %13156 = vmatpush3.bf16.msra.mxu0 %v17663_v63  ;;  %v8207_v38 = vsub.f32 %v16228_v21, %v8143_v45  ;;  %v11490_v21 = vld [vmem:[%s15748_s16 + $0x19] ss:$0 sm:$0xff] }
 0x520   : > { %13157 = vmatprep.subr.bf16.mxu0 %v17427_v14  ;;  %v8252_v5 = vmul.f32 1.442695, %v8206_v46 }
 0x521   : > { %v8302_v12 = vpop.xlane.xlu0 %8301  ;;  %13146 = vmatpush3.bf16.msra.mxu1 %v17664_v37  ;;  %v8254_v35 = vmul.f32 1.442695, %v8207_v38 }
 0x522   : > { %v8305_v18 = vpop.xlane.xlu1 %8304  ;;  %13694 = vrcp.f32 %v8302_v12  ;;  %13163 = vmatprep.subr.bf16.mxu1 %v17427_v14 }
 0x523   : > { %13158 = vmatpush3.bf16.msra.mxu0 %v17665_v25  ;;  %13696 = vrcp.f32 %v8305_v18 }
 0x524   : > { %13175 = vmatprep.subr.bf16.mxu0 %v17427_v14  ;;  %13698 = vpow2.f32 %v8252_v5 }
 0x525   : > { %13700 = vpow2.f32 %v8254_v35 }
 0x52f   : > { %v13695_v57 = vpop.eup %13694 }
 0x530   : > { %v7704_v51 = vpop.f32.mrf.mxu1  ;;  %v13697_v45 = vpop.eup %13696  ;;  %v8420_v19 = vmul.f32 %v13695_v57, %v16238_v6 }
 0x531   : > { %v16504_v28 = vadd.f32 %v11489_v10, %v7704_v51  ;;  %v7759_v1 = vpop.f32.mrf.mxu0  ;;  %v8421_v38 = vmul.f32 %v13697_v45, %v16246_v47  ;;  %v16514_v35 = vpop.eup %13698 }
 0x532   : > { %v13005_v46 = vpop.f32.mrf.mxu1  ;;  %v16507_v63 = vadd.f32 %v11490_v21, %v7759_v1  ;;  %v8452_v37 = vpack.c.bf16 %v8420_v19, %v8420_v19  ;;  %v16516_v6 = vpop.eup %13700  ;;  %v17666_v21 = vld [vmem:[#allocation28_spill] sm:$0xff]  ;;  %v8330_v45 = vsel %vm8095_vm11, %v16514_v35, 0.0 }
 0x533   : > { %v13017_v12 = vpop.f32.mrf.mxu0  ;;  %v8168_v18 = vsel %vm8095_vm11, %v16504_v28, -inf  ;;  %v8453_v10 = vpack.c.bf16 %v8421_v38, %v8421_v38  ;;  %v17667_v1 = vld [vmem:[#allocation32_spill] sm:$0xff]  ;;  %v8333_v19 = vsel %vm8095_vm11, %v16516_v6, 0.0  ;;  %v17668_v46 = vld [vmem:[#allocation29_spill] sm:$0xff] }
 0x534   : > { %8169 = vmax.xlane.f32.xlu0 %v8168_v18  ;;  %v7707_v5 = vpop.f32.mrf.mxu1  ;;  %v8171_v25 = vsel %vm8095_vm11, %v16507_v63, -inf  ;;  %13148 = vmatmul.mubr.msk.bf16.vlgmr.msra.gmra.mxu1 %vm6334_vm4, %v8452_v37  ;;  %v17669_v38 = vld [vmem:[#allocation33_spill] sm:$0xff]  ;;  %v17670_v37 = vld [vmem:[#allocation26_spill] sm:$0xff] }
 0x535   : > { %v7762_v51 = vpop.f32.mrf.mxu0  ;;  %8172 = vmax.xlane.f32.xlu1 %v8171_v25  ;;  %13164 = vmatpush3.bf16.msra.mxu1 %v17666_v21  ;;  %v17671_v25 = vld [vmem:[#allocation30_spill] sm:$0xff]  ;;  %v17672_v21 = vld [vmem:[#allocation27_spill] sm:$0xff] }
 0x536   : > { %v13006_v47 = vpop.f32.mrf.mxu1  ;;  %13160 = vmatmul.mubr.msk.bf16.vlgmr.msra.gmra.mxu0 %vm6334_vm4, %v8453_v10  ;;  %13165 = vmatprep.subr.bf16.mxu1 %v17427_v14 }
 0x537   : > { %v13018_v57 = vpop.f32.mrf.mxu0  ;;  %13176 = vmatpush3.bf16.msra.mxu0 %v17667_v1  ;;  %13171 = vmatprep.mubr.msk.bf16.mxu1 %vm13842_vm13, %v17427_v14  ;;  %v17673_v1 = vld [vmem:[#allocation31_spill] sm:$0xff] }
 0x538   : > { %8331 = vadd.xlane.f32.xlu0 %v8330_v45  ;;  %13177 = vmatprep.subr.bf16.mxu0 %v17427_v14  ;;  %v11491_v45 = vld [vmem:[%s15748_s16 + $0x1a] ss:$0 sm:$0xff] }
 0x539   : > { %8334 = vadd.xlane.f32.xlu1 %v8333_v19  ;;  %13166 = vmatpush3.bf16.msra.mxu1 %v17668_v46 }
 0x53a   : > { %13183 = vmatprep.mubr.msk.bf16.mxu0 %vm13842_vm13, %v17427_v14  ;;  %13167 = vmatprep.subr.bf16.mxu1 %v17427_v14 }
 0x53b   : > { %13178 = vmatpush3.bf16.msra.mxu0 %v17669_v38 }
 0x53c   : > { %13179 = vmatprep.subr.bf16.mxu0 %v17427_v14 }
 0x53d   : > { %v8146_v12 = vpop.xlane.xlu0 %8145  ;;  %13168 = vmatpush3.bf16.msra.mxu1 %v17670_v37 }
 0x53e   : > { %v8149_v18 = vpop.xlane.xlu1 %8148  ;;  %v8208_v5 = vsub.f32 %v16303_v9, %v8146_v12  ;;  %13169 = vmatprep.subr.bf16.mxu1 %v17427_v14 }
 0x53f   : > { %13180 = vmatpush3.bf16.msra.mxu0 %v17671_v25  ;;  %v8209_v10 = vsub.f32 %v16310_v36, %v8149_v18  ;;  %v11492_v36 = vld [vmem:[%s15748_s16 + $0x1b] ss:$0 sm:$0xff] }
 0x540   : > { %13181 = vmatprep.subr.bf16.mxu0 %v17427_v14  ;;  %v8256_v57 = vmul.f32 1.442695, %v8208_v5 }
 0x541   : > { %v8308_v51 = vpop.xlane.xlu0 %8307  ;;  %13170 = vmatpush3.bf16.msra.mxu1 %v17672_v21  ;;  %v8258_v9 = vmul.f32 1.442695, %v8209_v10 }
 0x542   : > { %v8311_v47 = vpop.xlane.xlu1 %8310  ;;  %13702 = vrcp.f32 %v8308_v51  ;;  %13187 = vmatprep.subr.bf16.mxu1 %v17427_v14 }
 0x543   : > { %13182 = vmatpush3.bf16.msra.mxu0 %v17673_v1  ;;  %13704 = vrcp.f32 %v8311_v47 }
 0x544   : > { %13199 = vmatprep.subr.bf16.mxu0 %v17427_v14  ;;  %13706 = vpow2.f32 %v8256_v57 }
 0x545   : > { %13708 = vpow2.f32 %v8258_v9 }
 0x54f   : > { %v13703_v46 = vpop.eup %13702 }
 0x550   : > { %v7814_v19 = vpop.f32.mrf.mxu1  ;;  %v13705_v18 = vpop.eup %13704  ;;  %v8422_v37 = vmul.f32 %v13703_v46, %v16320_v0 }
 0x551   : > { %v16548_v38 = vadd.f32 %v11491_v45, %v7814_v19  ;;  %v7869_v12 = vpop.f32.mrf.mxu0  ;;  %v8423_v10 = vmul.f32 %v13705_v18, %v16328_v13  ;;  %v16558_v9 = vpop.eup %13706 }
 0x552   : > { %v13029_v5 = vpop.f32.mrf.mxu1  ;;  %v16551_v25 = vadd.f32 %v11492_v36, %v7869_v12  ;;  %v8454_v21 = vpack.c.bf16 %v8422_v37, %v8422_v37  ;;  %v16560_v0 = vpop.eup %13708  ;;  %v17674_v36 = vld [vmem:[#allocation36_spill] sm:$0xff]  ;;  %v8336_v18 = vsel %vm8095_vm11, %v16558_v9, 0.0 }
 0x553   : > { %v13041_v51 = vpop.f32.mrf.mxu0  ;;  %v8174_v47 = vsel %vm8095_vm11, %v16548_v38, -inf  ;;  %v8455_v45 = vpack.c.bf16 %v8423_v10, %v8423_v10  ;;  %v17675_v12 = vld [vmem:[#allocation40_spill] sm:$0xff]  ;;  %v8339_v37 = vsel %vm8095_vm11, %v16560_v0, 0.0  ;;  %v17676_v5 = vld [vmem:[#allocation37_spill] sm:$0xff] }
 0x554   : > { %8175 = vmax.xlane.f32.xlu0 %v8174_v47  ;;  %v7817_v57 = vpop.f32.mrf.mxu1  ;;  %v8177_v1 = vsel %vm8095_vm11, %v16551_v25, -inf  ;;  %13172 = vmatmul.mubr.msk.bf16.vlgmr.msra.gmra.mxu1 %vm6334_vm4, %v8454_v21  ;;  %v17677_v10 = vld [vmem:[#allocation41_spill] sm:$0xff]  ;;  %v17678_v21 = vld [vmem:[#allocation34_spill] sm:$0xff] }
 0x555   : > { %v7872_v19 = vpop.f32.mrf.mxu0  ;;  %8178 = vmax.xlane.f32.xlu1 %v8177_v1  ;;  %13188 = vmatpush3.bf16.msra.mxu1 %v17674_v36  ;;  %v17679_v1 = vld [vmem:[#allocation38_spill] sm:$0xff]  ;;  %v17680_v36 = vld [vmem:[#allocation35_spill] sm:$0xff] }
 0x556   : > { %v13030_v13 = vpop.f32.mrf.mxu1  ;;  %13184 = vmatmul.mubr.msk.bf16.vlgmr.msra.gmra.mxu0 %vm6334_vm4, %v8455_v45  ;;  %13189 = vmatprep.subr.bf16.mxu1 %v17427_v14 }
 0x557   : > { %v13042_v46 = vpop.f32.mrf.mxu0  ;;  %13200 = vmatpush3.bf16.msra.mxu0 %v17675_v12  ;;  %13195 = vmatprep.mubr.msk.bf16.mxu1 %vm13842_vm13, %v17427_v14  ;;  %v17681_v12 = vld [vmem:[#allocation39_spill] sm:$0xff] }
 0x558   : > { %8337 = vadd.xlane.f32.xlu0 %v8336_v18  ;;  %13201 = vmatprep.subr.bf16.mxu0 %v17427_v14  ;;  %v11493_v18 = vld [vmem:[%s15748_s16 + $0x1c] ss:$0 sm:$0xff] }
 0x559   : > { %8340 = vadd.xlane.f32.xlu1 %v8339_v37  ;;  %13190 = vmatpush3.bf16.msra.mxu1 %v17676_v5 }
 0x55a   : > { %13207 = vmatprep.mubr.msk.bf16.mxu0 %vm13842_vm13, %v17427_v14  ;;  %13191 = vmatprep.subr.bf16.mxu1 %v17427_v14 }
 0x55b   : > { %13202 = vmatpush3.bf16.msra.mxu0 %v17677_v10 }
 0x55c   : > { %13203 = vmatprep.subr.bf16.mxu0 %v17427_v14 }
 0x55d   : > { %v8152_v51 = vpop.xlane.xlu0 %8151  ;;  %13192 = vmatpush3.bf16.msra.mxu1 %v17678_v21 }
 0x55e   : > { %v8155_v47 = vpop.xlane.xlu1 %8154  ;;  %v8210_v57 = vsub.f32 %v16375_v29, %v8152_v51  ;;  %13193 = vmatprep.subr.bf16.mxu1 %v17427_v14 }
 0x55f   : > { %13204 = vmatpush3.bf16.msra.mxu0 %v17679_v1  ;;  %v8211_v45 = vsub.f32 %v16379_v27, %v8155_v47  ;;  %v11494_v27 = vld [vmem:[%s15748_s16 + $0x1d] ss:$0 sm:$0xff] }
 0x560   : > { %13205 = vmatprep.subr.bf16.mxu0 %v17427_v14  ;;  %v8260_v46 = vmul.f32 1.442695, %v8210_v57 }
 0x561   : > { %v8314_v19 = vpop.xlane.xlu0 %8313  ;;  %13194 = vmatpush3.bf16.msra.mxu1 %v17680_v36  ;;  %v8262_v29 = vmul.f32 1.442695, %v8211_v45 }
 0x562   : > { %v8317_v13 = vpop.xlane.xlu1 %8316  ;;  %13710 = vrcp.f32 %v8314_v19  ;;  %13211 = vmatprep.subr.bf16.mxu1 %v17427_v14 }
 0x563   : > { %13206 = vmatpush3.bf16.msra.mxu0 %v17681_v12  ;;  %13712 = vrcp.f32 %v8317_v13 }
 0x564   : > { %13223 = vmatprep.subr.bf16.mxu0 %v17427_v14  ;;  %13714 = vpow2.f32 %v8260_v46 }
 0x565   : > { %13716 = vpow2.f32 %v8262_v29 }
 0x56f   : > { %v13711_v5 = vpop.eup %13710 }
 0x570   : > { %v7924_v37 = vpop.f32.mrf.mxu1  ;;  %v13713_v47 = vpop.eup %13712  ;;  %v8424_v21 = vmul.f32 %v13711_v5, %v16388_v53 }
 0x571   : > { %v16592_v10 = vadd.f32 %v11493_v18, %v7924_v37  ;;  %v7979_v51 = vpop.f32.mrf.mxu0  ;;  %v8425_v45 = vmul.f32 %v13713_v47, %v16394_v15  ;;  %v16602_v29 = vpop.eup %13714 }
 0x572   : > { %v13053_v57 = vpop.f32.mrf.mxu1  ;;  %v16595_v1 = vadd.f32 %v11494_v27, %v7979_v51  ;;  %v8456_v36 = vpack.c.bf16 %v8424_v21, %v8424_v21  ;;  %v16604_v53 = vpop.eup %13716  ;;  %v17682_v27 = vld [vmem:[#allocation44_spill] sm:$0xff]  ;;  %v8342_v47 = vsel %vm8095_vm11, %v16602_v29, 0.0 }
 0x573   : > { %v13065_v19 = vpop.f32.mrf.mxu0  ;;  %v8180_v13 = vsel %vm8095_vm11, %v16592_v10, -inf  ;;  %v8457_v18 = vpack.c.bf16 %v8425_v45, %v8425_v45  ;;  %v17683_v51 = vld [vmem:[#allocation48_spill] sm:$0xff]  ;;  %v8345_v21 = vsel %vm8095_vm11, %v16604_v53, 0.0  ;;  %v17684_v57 = vld [vmem:[#allocation45_spill] sm:$0xff] }
 0x574   : > { %8181 = vmax.xlane.f32.xlu0 %v8180_v13  ;;  %v7927_v46 = vpop.f32.mrf.mxu1  ;;  %v8183_v12 = vsel %vm8095_vm11, %v16595_v1, -inf  ;;  %13196 = vmatmul.mubr.msk.bf16.vlgmr.msra.gmra.mxu1 %vm6334_vm4, %v8456_v36  ;;  %v17685_v45 = vld [vmem:[#allocation49_spill] sm:$0xff]  ;;  %v17686_v36 = vld [vmem:[#allocation42_spill] sm:$0xff] }
 0x575   : > { %v7982_v37 = vpop.f32.mrf.mxu0  ;;  %8184 = vmax.xlane.f32.xlu1 %v8183_v12  ;;  %13212 = vmatpush3.bf16.msra.mxu1 %v17682_v27  ;;  %v17687_v12 = vld [vmem:[#allocation46_spill] sm:$0xff] }
 0x576   : > { %v13054_v15 = vpop.f32.mrf.mxu1  ;;  %13208 = vmatmul.mubr.msk.bf16.vlgmr.msra.gmra.mxu0 %vm6334_vm4, %v8457_v18  ;;  %13213 = vmatprep.subr.bf16.mxu1 %v17427_v14 }
 0x577   : > { %v13066_v5 = vpop.f32.mrf.mxu0  ;;  %13224 = vmatpush3.bf16.msra.mxu0 %v17683_v51  ;;  %13219 = vmatprep.mubr.msk.bf16.mxu1 %vm13842_vm13, %v17427_v14  ;;  %v17688_v15 = vld [vmem:[#allocation43_spill] sm:$0xff] }
 0x578   : > { %8343 = vadd.xlane.f32.xlu0 %v8342_v47  ;;  %13225 = vmatprep.subr.bf16.mxu0 %v17427_v14  ;;  %v17689_v51 = vld [vmem:[#allocation47_spill] sm:$0xff]  ;;  %v11495_v47 = vld [vmem:[%s15748_s16 + $0x1e] ss:$0 sm:$0xff] }
 0x579   : > { %8346 = vadd.xlane.f32.xlu1 %v8345_v21  ;;  %13214 = vmatpush3.bf16.msra.mxu1 %v17684_v57 }
 0x57a   : > { %13231 = vmatprep.mubr.msk.bf16.mxu0 %vm13842_vm13, %v17427_v14  ;;  %13215 = vmatprep.subr.bf16.mxu1 %v17427_v14 }
 0x57b   : > { %13226 = vmatpush3.bf16.msra.mxu0 %v17685_v45 }
 0x57c   : > { %13227 = vmatprep.subr.bf16.mxu0 %v17427_v14 }
 0x57d   : > { %v8158_v19 = vpop.xlane.xlu0 %8157  ;;  %13216 = vmatpush3.bf16.msra.mxu1 %v17686_v36 }
 0x57e   : > { %v8161_v13 = vpop.xlane.xlu1 %8160  ;;  %v8212_v46 = vsub.f32 %v16416_v26, %v8158_v19  ;;  %13217 = vmatprep.subr.bf16.mxu1 %v17427_v14 }
 0x57f   : > { %13228 = vmatpush3.bf16.msra.mxu0 %v17687_v12  ;;  %v8213_v18 = vsub.f32 %v16419_v30, %v8161_v13  ;;  %v11496_v30 = vld [vmem:[%s15748_s16 + $0x1f] ss:$0 sm:$0xff] }
 0x580   : > { %13229 = vmatprep.subr.bf16.mxu0 %v17427_v14  ;;  %v8264_v5 = vmul.f32 1.442695, %v8212_v46 }
 0x581   : > { %v8320_v37 = vpop.xlane.xlu0 %8319  ;;  %13218 = vmatpush3.bf16.msra.mxu1 %v17688_v15  ;;  %v8266_v26 = vmul.f32 1.442695, %v8213_v18 }
 0x582   : > { %v8323_v27 = vpop.xlane.xlu1 %8322  ;;  %13718 = vrcp.f32 %v8320_v37  ;;  %13235 = vmatprep.subr.bf16.mxu1 %v17427_v14 }
 0x583   : > { %13230 = vmatpush3.bf16.msra.mxu0 %v17689_v51  ;;  %13720 = vrcp.f32 %v8323_v27 }
 0x584   : > { %13247 = vmatprep.subr.bf16.mxu0 %v17427_v14  ;;  %13722 = vpow2.f32 %v8264_v5 }
 0x585   : > { %13724 = vpow2.f32 %v8266_v26 }
 0x58f   : > { %v13719_v57 = vpop.eup %13718 }
 0x590   : > { %v8034_v21 = vpop.f32.mrf.mxu1  ;;  %v13721_v13 = vpop.eup %13720  ;;  %v8426_v36 = vmul.f32 %v13719_v57, %v16426_v62 }
 0x591   : > { %v16636_v45 = vadd.f32 %v11495_v47, %v8034_v21  ;;  %v8089_v19 = vpop.f32.mrf.mxu0  ;;  %v8427_v18 = vmul.f32 %v13721_v13, %v16428_v34  ;;  %v16646_v26 = vpop.eup %13722 }
 0x592   : > { %v13077_v46 = vpop.f32.mrf.mxu1  ;;  %v16639_v12 = vadd.f32 %v11496_v30, %v8089_v19  ;;  %v8458_v27 = vpack.c.bf16 %v8426_v36, %v8426_v36  ;;  %v16648_v21 = vpop.eup %13724  ;;  %v17690_v30 = vld [vmem:[#allocation52_spill] sm:$0xff]  ;;  %v8348_v13 = vsel %vm8095_vm11, %v16646_v26, 0.0 }
 0x593   : > { %v8186_v37 = vsel %vm8095_vm11, %v16636_v45, -inf  ;;  %v13089_v15 = vpop.f32.mrf.mxu0  ;;  %v8459_v47 = vpack.c.bf16 %v8427_v18, %v8427_v18  ;;  %v17691_v19 = vld [vmem:[#allocation56_spill] sm:$0xff]  ;;  %v8351_v36 = vsel %vm8095_vm11, %v16648_v21, 0.0  ;;  %v17692_v46 = vld [vmem:[#allocation53_spill] sm:$0xff] }
 0x594   : > { %8187 = vmax.xlane.f32.xlu0 %v8186_v37  ;;  %v8037_v5 = vpop.f32.mrf.mxu1  ;;  %v8189_v51 = vsel %vm8095_vm11, %v16639_v12, -inf  ;;  %13220 = vmatmul.mubr.msk.bf16.vlgmr.msra.gmra.mxu1 %vm6334_vm4, %v8458_v27  ;;  %v17693_v18 = vld [vmem:[#allocation57_spill] sm:$0xff] }
 0x595   : > { %8190 = vmax.xlane.f32.xlu1 %v8189_v51  ;;  %v8092_v62 = vpop.f32.mrf.mxu0  ;;  %13236 = vmatpush3.bf16.msra.mxu1 %v17690_v30  ;;  %v17694_v5 = vld [vmem:[#allocation50_spill] sm:$0xff] }
 0x596   : > { %v13078_v34 = vpop.f32.mrf.mxu1  ;;  %13232 = vmatmul.mubr.msk.bf16.vlgmr.msra.gmra.mxu0 %vm6334_vm4, %v8459_v47  ;;  %13237 = vmatprep.subr.bf16.mxu1 %v17427_v14  ;;  %v17695_v62 = vld [vmem:[#allocation54_spill] sm:$0xff] }
 0x597   : > { %v13090_v57 = vpop.f32.mrf.mxu0  ;;  %13248 = vmatpush3.bf16.msra.mxu0 %v17691_v19  ;;  %13243 = vmatprep.mubr.msk.bf16.mxu1 %vm13842_vm13, %v17427_v14 }
 0x598   : > { %8349 = vadd.xlane.f32.xlu0 %v8348_v13  ;;  %13249 = vmatprep.subr.bf16.mxu0 %v17427_v14  ;;  %v17696_v57 = vld [vmem:[#allocation51_spill] sm:$0xff] }
 0x599   : > { %8352 = vadd.xlane.f32.xlu1 %v8351_v36  ;;  %13238 = vmatpush3.bf16.msra.mxu1 %v17692_v46 }
 0x59a   : > { %13255 = vmatprep.mubr.msk.bf16.mxu0 %vm13842_vm13, %v17427_v14  ;;  %13239 = vmatprep.subr.bf16.mxu1 %v17427_v14 }
 0x59b   : > { %13250 = vmatpush3.bf16.msra.mxu0 %v17693_v18 }
 0x59c   : > { %13251 = vmatprep.subr.bf16.mxu0 %v17427_v14 }
 0x59d   : > { %v8164_v37 = vpop.xlane.xlu0 %8163  ;;  %13240 = vmatpush3.bf16.msra.mxu1 %v17694_v5 }
 0x59e   : > { %v8214_v15 = vsub.f32 %v16460_v24, %v8164_v37  ;;  %v8167_v27 = vpop.xlane.xlu1 %8166  ;;  %13241 = vmatprep.subr.bf16.mxu1 %v17427_v14  ;;  %v17697_v24 = vld [vmem:[#allocation55_spill] sm:$0xff] }
 0x59f   : > { %v8215_v51 = vsub.f32 %v16463_v33, %v8167_v27  ;;  %13252 = vmatpush3.bf16.msra.mxu0 %v17695_v62  ;;  %v16692_v62 = vld [vmem:[%s17268_s3] sm:$0xf] }
 0x5a0   : > { %v8268_v47 = vmul.f32 1.442695, %v8214_v15  ;;  %13253 = vmatprep.subr.bf16.mxu0 %v17427_v14 }
 0x5a1   : > { %v8270_v34 = vmul.f32 1.442695, %v8215_v51  ;;  %v8326_v30 = vpop.xlane.xlu0 %8325  ;;  %13242 = vmatpush3.bf16.msra.mxu1 %v17696_v57 }
 0x5a2   : > { %13726 = vpow2.f32 %v8268_v47  ;;  %v8329_v19 = vpop.xlane.xlu1 %8328  ;;  %13259 = vmatprep.subr.bf16.mxu1 %v17427_v14 }
 0x5a3   : > { %13728 = vpow2.f32 %v8270_v34  ;;  %13254 = vmatpush3.bf16.msra.mxu0 %v17697_v24 }
 0x5a4   : > { %13730 = vrcp.f32 %v8326_v30  ;;  %13271 = vmatprep.subr.bf16.mxu0 %v17427_v14  ;;  %v17698_v30 = vld [vmem:[#allocation60_spill] sm:$0xff] }
 0x5a5   : > { %13732 = vrcp.f32 %v8329_v19  ;;  %v17699_v19 = vld [vmem:[#allocation64_spill] sm:$0xff] }
 0x5af   : > { %v16678_v33 = vpop.eup %13726 }
 0x5b0   : > { %v16680_v13 = vpop.eup %13728  ;;  %v8354_v36 = vsel %vm8095_vm11, %v16678_v33, 0.0 }
 0x5b1   : > { %v13731_v46 = vpop.eup %13730  ;;  %8355 = vadd.xlane.f32.xlu0 %v8354_v36  ;;  %v8357_v18 = vsel %vm8095_vm11, %v16680_v13, 0.0 }
 0x5b2   : > { %v13733_v37 = vpop.eup %13732  ;;  %v8428_v15 = vmul.f32 %v13731_v46, %v16470_v31  ;;  %8358 = vadd.xlane.f32.xlu1 %v8357_v18 }
 0x5b3   : > { %v8429_v27 = vmul.f32 %v13733_v37, %v16472_v3 }
 0x5b4   : > { %v8460_v5 = vpack.c.bf16 %v8428_v15, %v8428_v15  ;;  %v8517_v47 = vpop.f32.mrf.mxu1 }
 0x5b5   : > { %v8461_v51 = vpack.c.bf16 %v8429_v27, %v8429_v27  ;;  %v9856_v34 = vmul.f32 %v16692_v62, %v8517_v47  ;;  %v17700_v27 = vld [vmem:[#allocation61_spill] sm:$0xff] }
 0x5b6   : > { %13244 = vmatmul.mubr.msk.bf16.vlgmr.msra.gmra.mxu1 %vm6334_vm4, %v8460_v5  ;;  %v8560_v57 = vpop.f32.mrf.mxu0  ;;  %v13101_v31 = vpop.f32.mrf.mxu1 }
 0x5b7   : > { %13260 = vmatpush3.bf16.msra.mxu1 %v17698_v30  ;;  %13256 = vmatmul.mubr.msk.bf16.vlgmr.msra.gmra.mxu0 %vm6334_vm4, %v8461_v51  ;;  %v9857_v3 = vmul.f32 %v16692_v62, %v8560_v57  ;;  %v9888_v24 = vsel %vm8095_vm11, %v9856_v34, 0.0  ;;  %v17701_v34 = vld [vmem:[#allocation65_spill] sm:$0xff] }
 0x5b8   : > { %13272 = vmatpush3.bf16.msra.mxu0 %v17699_v19  ;;  %13261 = vmatprep.subr.bf16.mxu1 %v17427_v14  ;;  %v13113_v36 = vpop.f32.mrf.mxu0  ;;  %v9889_v46 = vrot.slane %v9888_v24, 4  ;;  %v8520_v37 = vpop.f32.mrf.mxu1 }
 0x5b9   : > { %13273 = vmatprep.subr.bf16.mxu0 %v17427_v14  ;;  %13267 = vmatprep.mubr.msk.bf16.mxu1 %vm13842_vm13, %v17427_v14  ;;  %v9895_v18 = vsel %vm8095_vm11, %v9857_v3, 0.0 }
 0x5ba   : > { %13279 = vmatprep.mubr.msk.bf16.mxu0 %vm13842_vm13, %v17427_v14  ;;  %v9896_v15 = vrot.slane %v9895_v18, 4  ;;  %v8563_v5 = vpop.f32.mrf.mxu0  ;;  %v9890_v51 = vadd.f32 %v9889_v46, %v9888_v24  ;;  %v13102_v47 = vpop.f32.mrf.mxu1 }
 0x5bb   : > { %13262 = vmatpush3.bf16.msra.mxu1 %v17700_v27  ;;  %v17703_v5 = vld [vmem:[#allocation62_spill] sm:$0xff] }
 0x5bc   : > { %13274 = vmatpush3.bf16.msra.mxu0 %v17701_v34  ;;  %13263 = vmatprep.subr.bf16.mxu1 %v17427_v14  ;;  %v9897_v30 = vadd.f32 %v9896_v15, %v9895_v18  ;;  %v13114_v57 = vpop.f32.mrf.mxu0  ;;  %v9891_v3 = vrot.slane %v9890_v51, 2 }
 0x5bd   : > { %v8170_v31 = vpop.xlane.xlu0 %8169  ;;  %13275 = vmatprep.subr.bf16.mxu0 %v17427_v14  ;;  %v17704_v57 = vld [vmem:[#allocation59_spill] sm:$0xff] }
 0x5be   : > { %v8216_v19 = vsub.f32 %v16504_v28, %v8170_v31  ;;  %v8173_v36 = vpop.xlane.xlu1 %8172  ;;  %v9898_v37 = vrot.slane %v9897_v30, 2  ;;  %v9892_v24 = vadd.f32 %v9891_v3, %v9890_v51 }
 0x5bf   : > { %13264 = vmatpush3.bf16.msra.mxu1 %v17702_v8  ;;  %v8217_v27 = vsub.f32 %v16507_v63, %v8173_v36  ;;  %v17705_v63 = vld [vmem:[#allocation63_spill] sm:$0xff] }
 0x5c0   : > { %v8272_v46 = vmul.f32 1.442695, %v8216_v19  ;;  %13276 = vmatpush3.bf16.msra.mxu0 %v17703_v5  ;;  %13265 = vmatprep.subr.bf16.mxu1 %v17427_v14  ;;  %v9899_v18 = vadd.f32 %v9898_v37, %v9897_v30  ;;  %v9893_v47 = vrot.slane %v9892_v24, 1 }
 0x5c1   : > { %v8274_v15 = vmul.f32 1.442695, %v8217_v27  ;;  %13277 = vmatprep.subr.bf16.mxu0 %v17427_v14  ;;  %v8332_v34 = vpop.xlane.xlu0 %8331 }
 0x5c2   : > { %13734 = vpow2.f32 %v8272_v46  ;;  %v9900_v28 = vrot.slane %v9899_v18, 1  ;;  %v8335_v8 = vpop.xlane.xlu1 %8334  ;;  %v9894_v31 = vadd.f32 %v9893_v47, %v9892_v24 }
 0x5c3   : > { %13736 = vpow2.f32 %v8274_v15  ;;  %13266 = vmatpush3.bf16.msra.mxu1 %v17704_v57 }
 0x5c4   : > { %13738 = vrcp.f32 %v8332_v34  ;;  %13278 = vmatpush3.bf16.msra.mxu0 %v17705_v63  ;;  %13283 = vmatprep.subr.bf16.mxu1 %v17427_v14  ;;  %v9901_v51 = vadd.f32 %v9900_v28, %v9899_v18  ;;  %v10112_v30 = vpack.c.bf16 %v9894_v31, %v9894_v31 }
 0x5c5   : > { %13740 = vrcp.f32 %v8335_v8  ;;  %13295 = vmatprep.subr.bf16.mxu0 %v17427_v14 }
 0x5c6   : > { %v10113_v3 = vpack.c.bf16 %v9901_v51, %v9901_v51  ;;  %v10182_v19 = vunpack.c.l.b16 %v10112_v30 }
 0x5c8   : > { %v10183_v36 = vunpack.c.l.b16 %v10113_v3  ;;  %v17706_v3 = vld [vmem:[#allocation72_spill] sm:$0xff] }
 0x5ca   : > { %v16722_v37 = vsel %vm5535_vm3, %v10183_v36, %v10182_v19 }
 0x5cf   : > { %v16724_v27 = vpop.eup %13734 }
 0x5d0   : > { %v16726_v46 = vpop.eup %13736  ;;  %v8360_v24 = vsel %vm8095_vm11, %v16724_v27, 0.0 }
 0x5d1   : > { %v13739_v5 = vpop.eup %13738  ;;  %8361 = vadd.xlane.f32.xlu0 %v8360_v24  ;;  %v8363_v18 = vsel %vm8095_vm11, %v16726_v46, 0.0 }
 0x5d2   : > { %v13741_v15 = vpop.eup %13740  ;;  %v8430_v47 = vmul.f32 %v13739_v5, %v16514_v35  ;;  %8364 = vadd.xlane.f32.xlu1 %v8363_v18 }
 0x5d3   : > { %v8431_v34 = vmul.f32 %v13741_v15, %v16516_v6 }
 0x5d4   : > { %v8462_v28 = vpack.c.bf16 %v8430_v47, %v8430_v47  ;;  %v8603_v8 = vpop.f32.mrf.mxu1  ;;  %v17707_v47 = vld [vmem:[#allocation73_spill] sm:$0xff] }
 0x5d5   : > { %v8463_v57 = vpack.c.bf16 %v8431_v34, %v8431_v34  ;;  %v9858_v31 = vmul.f32 %v16692_v62, %v8603_v8 }
 0x5d6   : > { %13268 = vmatmul.mubr.msk.bf16.vlgmr.msra.gmra.mxu1 %vm6334_vm4, %v8462_v28  ;;  %v8646_v63 = vpop.f32.mrf.mxu0  ;;  %v13125_v51 = vpop.f32.mrf.mxu1 }
 0x5d7   : > { %13284 = vmatpush3.bf16.msra.mxu1 %v17559_v52  ;;  %13280 = vmatmul.mubr.msk.bf16.vlgmr.msra.gmra.mxu0 %vm6334_vm4, %v8463_v57  ;;  %v9859_v30 = vmul.f32 %v16692_v62, %v8646_v63  ;;  %v9902_v35 = vsel %vm8095_vm11, %v9858_v31, 0.0 }
 0x5d8   : > { %13296 = vmatpush3.bf16.msra.mxu0 %v17706_v3  ;;  %13285 = vmatprep.subr.bf16.mxu1 %v17427_v14  ;;  %v13137_v6 = vpop.f32.mrf.mxu0  ;;  %v9903_v19 = vrot.slane %v9902_v35, 4  ;;  %v8606_v36 = vpop.f32.mrf.mxu1 }
 0x5d9   : > { %13297 = vmatprep.subr.bf16.mxu0 %v17427_v14  ;;  %13291 = vmatprep.mubr.msk.bf16.mxu1 %vm13842_vm13, %v17427_v14  ;;  %v9909_v52 = vsel %vm8095_vm11, %v9859_v30, 0.0  ;;  %v17708_v30 = vld [vmem:[#allocation66_spill] sm:$0xff] }
 0x5da   : > { %13303 = vmatprep.mubr.msk.bf16.mxu0 %vm13842_vm13, %v17427_v14  ;;  %v9910_v24 = vrot.slane %v9909_v52, 4  ;;  %v8649_v5 = vpop.f32.mrf.mxu0  ;;  %v9904_v18 = vadd.f32 %v9903_v19, %v9902_v35  ;;  %v13126_v15 = vpop.f32.mrf.mxu1  ;;  %v17709_v6 = vld [vmem:[#allocation70_spill] sm:$0xff] }
 0x5db   : > { %13286 = vmatpush3.bf16.msra.mxu1 %v17561_v43  ;;  %v17710_v5 = vld [vmem:[#allocation67_spill] sm:$0xff] }
 0x5dc   : > { %13298 = vmatpush3.bf16.msra.mxu0 %v17707_v47  ;;  %13287 = vmatprep.subr.bf16.mxu1 %v17427_v14  ;;  %v9911_v34 = vadd.f32 %v9910_v24, %v9909_v52  ;;  %v13138_v28 = vpop.f32.mrf.mxu0  ;;  %v9905_v8 = vrot.slane %v9904_v18, 2 }
 0x5dd   : > { %v8176_v57 = vpop.xlane.xlu0 %8175  ;;  %13299 = vmatprep.subr.bf16.mxu0 %v17427_v14 }
 0x5de   : > { %v8218_v31 = vsub.f32 %v16548_v38, %v8176_v57  ;;  %v8179_v63 = vpop.xlane.xlu1 %8178  ;;  %v9912_v51 = vrot.slane %v9911_v34, 2  ;;  %v9906_v3 = vadd.f32 %v9905_v8, %v9904_v18 }
 0x5df   : > { %13288 = vmatpush3.bf16.msra.mxu1 %v17708_v30  ;;  %v8219_v43 = vsub.f32 %v16551_v25, %v8179_v63  ;;  %v17711_v25 = vld [vmem:[#allocation71_spill] sm:$0xff] }
 0x5e0   : > { %v8276_v35 = vmul.f32 1.442695, %v8218_v31  ;;  %13300 = vmatpush3.bf16.msra.mxu0 %v17709_v6  ;;  %13289 = vmatprep.subr.bf16.mxu1 %v17427_v14  ;;  %v9913_v19 = vadd.f32 %v9912_v51, %v9911_v34  ;;  %v9907_v36 = vrot.slane %v9906_v3, 1 }
 0x5e1   : > { %v8278_v52 = vmul.f32 1.442695, %v8219_v43  ;;  %13301 = vmatprep.subr.bf16.mxu0 %v17427_v14  ;;  %v8338_v24 = vpop.xlane.xlu0 %8337 }
 0x5e2   : > { %13742 = vpow2.f32 %v8276_v35  ;;  %v9914_v38 = vrot.slane %v9913_v19, 1  ;;  %v8341_v15 = vpop.xlane.xlu1 %8340  ;;  %v9908_v47 = vadd.f32 %v9907_v36, %v9906_v3 }
 0x5e3   : > { %13744 = vpow2.f32 %v8278_v52  ;;  %13290 = vmatpush3.bf16.msra.mxu1 %v17710_v5  ;;  %v17712_v5 = vld [vmem:[#allocation76_spill] sm:$0xff] }
 0x5e4   : > { %13746 = vrcp.f32 %v8338_v24  ;;  %13302 = vmatpush3.bf16.msra.mxu0 %v17711_v25  ;;  %13307 = vmatprep.subr.bf16.mxu1 %v17427_v14  ;;  %v9915_v18 = vadd.f32 %v9914_v38, %v9913_v19  ;;  %v10114_v34 = vpack.c.bf16 %v9908_v47, %v9908_v47 }
 0x5e5   : > { %13748 = vrcp.f32 %v8341_v15  ;;  %13319 = vmatprep.subr.bf16.mxu0 %v17427_v14 }
 0x5e6   : > { %v10115_v28 = vpack.c.bf16 %v9915_v18, %v9915_v18  ;;  %v10184_v57 = vunpack.c.l.b16 %v10114_v34  ;;  %v17713_v18 = vld [vmem:[#allocation91_spill] sm:$0xff] }
 0x5e8   : > { %v10185_v8 = vunpack.c.l.b16 %v10115_v28  ;;  %v10215_v31 = vsel %vm5538_vm8, %v10184_v57, %v16722_v37 }
 0x5ea   : > { %v16765_v63 = vsel %vm5541_vm9, %v10185_v8, %v10215_v31  ;;  %v17714_v31 = vld [vmem:[#allocation77_spill] sm:$0xff] }
 0x5ef   : > { %v16767_v51 = vpop.eup %13742 }
 0x5f0   : > { %v16769_v30 = vpop.eup %13744  ;;  %v8366_v43 = vsel %vm8095_vm11, %v16767_v51, 0.0 }
 0x5f1   : > { %v13747_v3 = vpop.eup %13746  ;;  %8367 = vadd.xlane.f32.xlu0 %v8366_v43  ;;  %v8369_v35 = vsel %vm8095_vm11, %v16769_v30, 0.0 }
 0x5f2   : > { %v13749_v6 = vpop.eup %13748  ;;  %v8432_v19 = vmul.f32 %v13747_v3, %v16558_v9  ;;  %8370 = vadd.xlane.f32.xlu1 %v8369_v35 }
 0x5f3   : > { %v8433_v37 = vmul.f32 %v13749_v6, %v16560_v0  ;;  %v17715_v6 = vld [vmem:[#allocation68_spill] sm:$0xff] }
 0x5f4   : > { %v8464_v52 = vpack.c.bf16 %v8432_v19, %v8432_v19  ;;  %v8689_v24 = vpop.f32.mrf.mxu1 }
 0x5f5   : > { %v8465_v36 = vpack.c.bf16 %v8433_v37, %v8433_v37  ;;  %v9860_v38 = vmul.f32 %v16692_v62, %v8689_v24 }
 0x5f6   : > { %13292 = vmatmul.mubr.msk.bf16.vlgmr.msra.gmra.mxu1 %vm6334_vm4, %v8464_v52  ;;  %v8732_v15 = vpop.f32.mrf.mxu0  ;;  %v13149_v47 = vpop.f32.mrf.mxu1 }
 0x5f7   : > { %13308 = vmatpush3.bf16.msra.mxu1 %v17712_v5  ;;  %13304 = vmatmul.mubr.msk.bf16.vlgmr.msra.gmra.mxu0 %vm6334_vm4, %v8465_v36  ;;  %v9861_v25 = vmul.f32 %v16692_v62, %v8732_v15  ;;  %v9916_v9 = vsel %vm8095_vm11, %v9860_v38, 0.0  ;;  %v17716_v15 = vld [vmem:[#allocation74_spill] sm:$0xff] }
 0x5f8   : > { %13320 = vmatpush3.bf16.msra.mxu0 %v17713_v18  ;;  %13309 = vmatprep.subr.bf16.mxu1 %v17427_v14  ;;  %v13161_v0 = vpop.f32.mrf.mxu0  ;;  %v9917_v34 = vrot.slane %v9916_v9, 4  ;;  %v8692_v57 = vpop.f32.mrf.mxu1 }
 0x5f9   : > { %13321 = vmatprep.subr.bf16.mxu0 %v17427_v14  ;;  %13315 = vmatprep.mubr.msk.bf16.mxu1 %vm13842_vm13, %v17427_v14  ;;  %v9923_v28 = vsel %vm8095_vm11, %v9861_v25, 0.0 }
 0x5fa   : > { %13327 = vmatprep.mubr.msk.bf16.mxu0 %vm13842_vm13, %v17427_v14  ;;  %v9924_v8 = vrot.slane %v9923_v28, 4  ;;  %v8735_v43 = vpop.f32.mrf.mxu0  ;;  %v9918_v3 = vadd.f32 %v9917_v34, %v9916_v9  ;;  %v13150_v35 = vpop.f32.mrf.mxu1  ;;  %v17717_v9 = vld [vmem:[#allocation81_spill] sm:$0xff] }
 0x5fb   : > { %13310 = vmatpush3.bf16.msra.mxu1 %v17714_v31 }
 0x5fc   : > { %13322 = vmatpush3.bf16.msra.mxu0 %v17715_v6  ;;  %13311 = vmatprep.subr.bf16.mxu1 %v17427_v14  ;;  %v9925_v19 = vadd.f32 %v9924_v8, %v9923_v28  ;;  %v13162_v37 = vpop.f32.mrf.mxu0  ;;  %v9919_v36 = vrot.slane %v9918_v3, 2  ;;  %v17718_v8 = vld [vmem:[#allocation75_spill] sm:$0xff] }
 0x5fd   : > { %v8182_v52 = vpop.xlane.xlu0 %8181  ;;  %13323 = vmatprep.subr.bf16.mxu0 %v17427_v14 }
 0x5fe   : > { %v8220_v24 = vsub.f32 %v16592_v10, %v8182_v52  ;;  %v8185_v38 = vpop.xlane.xlu1 %8184  ;;  %v9926_v5 = vrot.slane %v9925_v19, 2  ;;  %v9920_v25 = vadd.f32 %v9919_v36, %v9918_v3 }
 0x5ff   : > { %13312 = vmatpush3.bf16.msra.mxu1 %v17716_v15  ;;  %v8221_v47 = vsub.f32 %v16595_v1, %v8185_v38  ;;  %v17719_v1 = vld [vmem:[#allocation69_spill] sm:$0xff] }
 0x600   : > { %v8280_v18 = vmul.f32 1.442695, %v8220_v24  ;;  %13324 = vmatpush3.bf16.msra.mxu0 %v17717_v9  ;;  %13313 = vmatprep.subr.bf16.mxu1 %v17427_v14  ;;  %v9927_v0 = vadd.f32 %v9926_v5, %v9925_v19  ;;  %v9921_v28 = vrot.slane %v9920_v25, 1 }
 0x601   : > { %v8282_v34 = vmul.f32 1.442695, %v8221_v47  ;;  %13325 = vmatprep.subr.bf16.mxu0 %v17427_v14  ;;  %v8344_v57 = vpop.xlane.xlu0 %8343 }
 0x602   : > { %13750 = vpow2.f32 %v8280_v18  ;;  %v9928_v10 = vrot.slane %v9927_v0, 1  ;;  %v8347_v31 = vpop.xlane.xlu1 %8346  ;;  %v9922_v43 = vadd.f32 %v9921_v28, %v9920_v25 }
 0x603   : > { %13752 = vpow2.f32 %v8282_v34  ;;  %13314 = vmatpush3.bf16.msra.mxu1 %v17718_v8 }
 0x604   : > { %13754 = vrcp.f32 %v8344_v57  ;;  %13326 = vmatpush3.bf16.msra.mxu0 %v17719_v1  ;;  %13331 = vmatprep.subr.bf16.mxu1 %v17427_v14  ;;  %v9929_v3 = vadd.f32 %v9928_v10, %v9927_v0  ;;  %v10116_v35 = vpack.c.bf16 %v9922_v43, %v9922_v43 }
 0x605   : > { %13756 = vrcp.f32 %v8347_v31  ;;  %13343 = vmatprep.subr.bf16.mxu0 %v17427_v14 }
 0x606   : > { %v10117_v6 = vpack.c.bf16 %v9929_v3, %v9929_v3  ;;  %v10186_v19 = vunpack.c.l.b16 %v10116_v35 }
 0x608   : > { %v10187_v37 = vunpack.c.l.b16 %v10117_v6  ;;  %v10217_v52 = vsel %vm5544_vm14, %v10186_v19, %v16765_v63 }
 0x60a   : > { %v16808_v36 = vsel %vm5547_vm15, %v10187_v37, %v10217_v52 }
 0x60f   : > { %v16810_v24 = vpop.eup %13750 }
 0x610   : > { %v16812_v38 = vpop.eup %13752  ;;  %v8372_v5 = vsel %vm8095_vm11, %v16810_v24, 0.0 }
 0x611   : > { %v13755_v15 = vpop.eup %13754  ;;  %8373 = vadd.xlane.f32.xlu0 %v8372_v5  ;;  %v8375_v47 = vsel %vm8095_vm11, %v16812_v38, 0.0 }
 0x612   : > { %v13757_v25 = vpop.eup %13756  ;;  %v8434_v18 = vmul.f32 %v13755_v15, %v16602_v29  ;;  %8376 = vadd.xlane.f32.xlu1 %v8375_v47 }
 0x613   : > { %v8435_v63 = vmul.f32 %v13757_v25, %v16604_v53  ;;  %v17720_v25 = vld [vmem:[#allocation92_spill] sm:$0xff] }
 0x614   : > { %v8466_v9 = vpack.c.bf16 %v8434_v18, %v8434_v18  ;;  %v8775_v34 = vpop.f32.mrf.mxu1 }
 0x615   : > { %v8467_v0 = vpack.c.bf16 %v8435_v63, %v8435_v63  ;;  %v9862_v28 = vmul.f32 %v16692_v62, %v8775_v34 }
 0x616   : > { %13316 = vmatmul.mubr.msk.bf16.vlgmr.msra.gmra.mxu1 %vm6334_vm4, %v8466_v9  ;;  %v8818_v57 = vpop.f32.mrf.mxu0  ;;  %v13173_v10 = vpop.f32.mrf.mxu1  ;;  %v17721_v9 = vld [vmem:[#allocation102_spill] sm:$0xff] }
 0x617   : > { %13332 = vmatpush3.bf16.msra.mxu1 %v15261_v60  ;;  %13328 = vmatmul.mubr.msk.bf16.vlgmr.msra.gmra.mxu0 %vm6334_vm4, %v8467_v0  ;;  %v9863_v8 = vmul.f32 %v16692_v62, %v8818_v57  ;;  %v9930_v29 = vsel %vm8095_vm11, %v9862_v28, 0.0  ;;  %v17722_v57 = vld [vmem:[#allocation80_spill] sm:$0xff] }
 0x618   : > { %13344 = vmatpush3.bf16.msra.mxu0 %v15349_v17  ;;  %13333 = vmatprep.subr.bf16.mxu1 %v17427_v14  ;;  %v13185_v53 = vpop.f32.mrf.mxu0  ;;  %v9931_v31 = vrot.slane %v9930_v29, 4  ;;  %v8778_v43 = vpop.f32.mrf.mxu1 }
 0x619   : > { %13345 = vmatprep.subr.bf16.mxu0 %v17427_v14  ;;  %13339 = vmatprep.mubr.msk.bf16.mxu1 %vm13842_vm13, %v17427_v14  ;;  %v9937_v60 = vsel %vm8095_vm11, %v9863_v8, 0.0 }
 0x61a   : > { %13351 = vmatprep.mubr.msk.bf16.mxu0 %vm13842_vm13, %v17427_v14  ;;  %v9938_v1 = vrot.slane %v9937_v60, 4  ;;  %v8821_v17 = vpop.f32.mrf.mxu0  ;;  %v9932_v3 = vadd.f32 %v9931_v31, %v9930_v29  ;;  %v13174_v35 = vpop.f32.mrf.mxu1 }
 0x61b   : > { %13334 = vmatpush3.bf16.msra.mxu1 %v15931_v44 }
 0x61c   : > { %13346 = vmatpush3.bf16.msra.mxu0 %v15937_v50  ;;  %13335 = vmatprep.subr.bf16.mxu1 %v17427_v14  ;;  %v9939_v6 = vadd.f32 %v9938_v1, %v9937_v60  ;;  %v13186_v19 = vpop.f32.mrf.mxu0  ;;  %v9933_v52 = vrot.slane %v9932_v3, 2 }
 0x61d   : > { %v8188_v37 = vpop.xlane.xlu0 %8187  ;;  %13347 = vmatprep.subr.bf16.mxu0 %v17427_v14 }
 0x61e   : > { %v8222_v5 = vsub.f32 %v16636_v45, %v8188_v37  ;;  %v8191_v15 = vpop.xlane.xlu1 %8190  ;;  %v9940_v47 = vrot.slane %v9939_v6, 2  ;;  %v9934_v18 = vadd.f32 %v9933_v52, %v9932_v3 }
 0x61f   : > { %13336 = vmatpush3.bf16.msra.mxu1 %v17720_v25  ;;  %v8223_v44 = vsub.f32 %v16639_v12, %v8191_v15  ;;  %v17723_v12 = vld [vmem:[#allocation79_spill] sm:$0xff] }
 0x620   : > { %v8284_v63 = vmul.f32 1.442695, %v8222_v5  ;;  %13348 = vmatpush3.bf16.msra.mxu0 %v17721_v9  ;;  %13337 = vmatprep.subr.bf16.mxu1 %v17427_v14  ;;  %v9941_v50 = vadd.f32 %v9940_v47, %v9939_v6  ;;  %v9935_v34 = vrot.slane %v9934_v18, 1 }
 0x621   : > { %v8286_v0 = vmul.f32 1.442695, %v8223_v44  ;;  %13349 = vmatprep.subr.bf16.mxu0 %v17427_v14  ;;  %v8350_v28 = vpop.xlane.xlu0 %8349 }
 0x622   : > { %13758 = vpow2.f32 %v8284_v63  ;;  %v9942_v45 = vrot.slane %v9941_v50, 1  ;;  %v8353_v10 = vpop.xlane.xlu1 %8352  ;;  %v9936_v8 = vadd.f32 %v9935_v34, %v9934_v18 }
 0x623   : > { %13760 = vpow2.f32 %v8286_v0  ;;  %13338 = vmatpush3.bf16.msra.mxu1 %v17722_v57 }
 0x624   : > { %13762 = vrcp.f32 %v8350_v28  ;;  %13350 = vmatpush3.bf16.msra.mxu0 %v17723_v12  ;;  %13355 = vmatprep.subr.bf16.mxu1 %v17427_v14  ;;  %v9943_v29 = vadd.f32 %v9942_v45, %v9941_v50  ;;  %v10118_v53 = vpack.c.bf16 %v9936_v8, %v9936_v8 }
 0x625   : > { %13764 = vrcp.f32 %v8353_v10  ;;  %13367 = vmatprep.subr.bf16.mxu0 %v17427_v14 }
 0x626   : > { %v10119_v31 = vpack.c.bf16 %v9943_v29, %v9943_v29  ;;  %v10188_v60 = vunpack.c.l.b16 %v10118_v53 }
 0x628   : > { %v10189_v43 = vunpack.c.l.b16 %v10119_v31  ;;  %v10219_v1 = vsel %vm5550_vm7, %v10188_v60, %v16808_v36 }
 0x62a   : > { %v16851_v17 = vsel %vm5553_vm10, %v10189_v43, %v10219_v1 }
 0x62f   : > { %v16853_v3 = vpop.eup %13758 }
 0x630   : > { %v16855_v35 = vpop.eup %13760  ;;  %v8378_v6 = vsel %vm8095_vm11, %v16853_v3, 0.0 }
 0x631   : > { %v13763_v19 = vpop.eup %13762  ;;  %8379 = vadd.xlane.f32.xlu0 %v8378_v6  ;;  %v8381_v37 = vsel %vm8095_vm11, %v16855_v35, 0.0 }
 0x632   : > { %v13765_v52 = vpop.eup %13764  ;;  %v8436_v5 = vmul.f32 %v13763_v19, %v16646_v26  ;;  %8382 = vadd.xlane.f32.xlu1 %v8381_v37 }
 0x633   : > { %v8437_v36 = vmul.f32 %v13765_v52, %v16648_v21 }
 0x634   : > { %v8468_v15 = vpack.c.bf16 %v8436_v5, %v8436_v5  ;;  %v8861_v25 = vpop.f32.mrf.mxu1 }
 0x635   : > { %v8469_v47 = vpack.c.bf16 %v8437_v36, %v8437_v36  ;;  %v9864_v44 = vmul.f32 %v16692_v62, %v8861_v25 }
 0x636   : > { %13340 = vmatmul.mubr.msk.bf16.vlgmr.msra.gmra.mxu1 %vm6334_vm4, %v8468_v15  ;;  %v8904_v18 = vpop.f32.mrf.mxu0  ;;  %v13197_v63 = vpop.f32.mrf.mxu1 }
 0x637   : > { %13356 = vmatpush3.bf16.msra.mxu1 %v15419_v41  ;;  %13352 = vmatmul.mubr.msk.bf16.vlgmr.msra.gmra.mxu0 %vm6334_vm4, %v8469_v47  ;;  %v9865_v9 = vmul.f32 %v16692_v62, %v8904_v18  ;;  %v9944_v26 = vsel %vm8095_vm11, %v9864_v44, 0.0 }
 0x638   : > { %13368 = vmatpush3.bf16.msra.mxu0 %v15456_v23  ;;  %13357 = vmatprep.subr.bf16.mxu1 %v17427_v14  ;;  %v13209_v21 = vpop.f32.mrf.mxu0  ;;  %v9945_v50 = vrot.slane %v9944_v26, 4  ;;  %v8864_v0 = vpop.f32.mrf.mxu1 }
 0x639   : > { %13369 = vmatprep.subr.bf16.mxu0 %v17427_v14  ;;  %13363 = vmatprep.mubr.msk.bf16.mxu1 %vm13842_vm13, %v17427_v14  ;;  %v9951_v41 = vsel %vm8095_vm11, %v9865_v9, 0.0 }
 0x63a   : > { %v8356_v34 = vpop.xlane.xlu0 %8355  ;;  %13375 = vmatprep.mubr.msk.bf16.mxu0 %vm13842_vm13, %v17427_v14  ;;  %v9952_v28 = vrot.slane %v9951_v41, 4  ;;  %v8907_v23 = vpop.f32.mrf.mxu0  ;;  %v9946_v57 = vadd.f32 %v9945_v50, %v9944_v26 }
 0x63b   : > { %13358 = vmatpush3.bf16.msra.mxu1 %v16008_v39  ;;  %13766 = vrcp.f32 %v8356_v34  ;;  %v8359_v45 = vpop.xlane.xlu1 %8358  ;;  %v13198_v10 = vpop.f32.mrf.mxu1  ;;  %v17724_v39 = vld [vmem:[#allocation107_spill] sm:$0xff] }
 0x63c   : > { %13370 = vmatpush3.bf16.msra.mxu0 %v16014_v20  ;;  %13359 = vmatprep.subr.bf16.mxu1 %v17427_v14  ;;  %13768 = vrcp.f32 %v8359_v45  ;;  %v9953_v8 = vadd.f32 %v9952_v28, %v9951_v41  ;;  %v13210_v12 = vpop.f32.mrf.mxu0  ;;  %v9947_v29 = vrot.slane %v9946_v57, 2 }
 0x63d   : > { %13371 = vmatprep.subr.bf16.mxu0 %v17427_v14 }
 0x63e   : > { %v9954_v53 = vrot.slane %v9953_v8, 2  ;;  %v9948_v31 = vadd.f32 %v9947_v29, %v9946_v57 }
 0x63f   : > { %13360 = vmatpush3.bf16.msra.mxu1 %v15394_v11 }
 0x640   : > { %13372 = vmatpush3.bf16.msra.mxu0 %v17724_v39  ;;  %13361 = vmatprep.subr.bf16.mxu1 %v17427_v14  ;;  %v9955_v60 = vadd.f32 %v9954_v53, %v9953_v8  ;;  %v9949_v20 = vrot.slane %v9948_v31, 1 }
 0x641   : > { %13373 = vmatprep.subr.bf16.mxu0 %v17427_v14 }
 0x642   : > { %v9956_v43 = vrot.slane %v9955_v60, 1  ;;  %v9950_v1 = vadd.f32 %v9949_v20, %v9948_v31 }
 0x643   : > { %13362 = vmatpush3.bf16.msra.mxu1 %v16038_v54 }
 0x644   : > { %13374 = vmatpush3.bf16.msra.mxu0 %v16040_v59  ;;  %13379 = vmatprep.subr.bf16.mxu1 %v17427_v14  ;;  %v9957_v6 = vadd.f32 %v9956_v43, %v9955_v60  ;;  %v10120_v11 = vpack.c.bf16 %v9950_v1, %v9950_v1 }
 0x645   : > { %13391 = vmatprep.subr.bf16.mxu0 %v17427_v14 }
 0x646   : > { %v10121_v19 = vpack.c.bf16 %v9957_v6, %v9957_v6  ;;  %v10190_v5 = vunpack.c.l.b16 %v10120_v11 }
 0x648   : > { %v13767_v37 = vpop.eup %13766  ;;  %v10191_v36 = vunpack.c.l.b16 %v10121_v19 }
 0x649   : > { %v13769_v52 = vpop.eup %13768  ;;  %v8438_v15 = vmul.f32 %v13767_v37, %v16678_v33 }
 0x64a   : > { %v8439_v47 = vmul.f32 %v13769_v52, %v16680_v13  ;;  %v10221_v54 = vsel %vm5535_vm3, %v10191_v36, %v10190_v5  ;;  %v17727_v36 = vld [vmem:[#allocation85_spill] sm:$0xff] }
 0x64b   : > { %v8470_v25 = vpack.c.bf16 %v8438_v15, %v8438_v15 }
 0x64c   : > { %v8471_v44 = vpack.c.bf16 %v8439_v47, %v8439_v47 }
 0x64d   : > { %13364 = vmatmul.mubr.msk.bf16.vlgmr.msra.gmra.mxu1 %vm6334_vm4, %v8470_v25 }
 0x64e   : > { %13380 = vmatpush3.bf16.msra.mxu1 %v15496_v55  ;;  %13376 = vmatmul.mubr.msk.bf16.vlgmr.msra.gmra.mxu0 %vm6334_vm4, %v8471_v44 }
 0x64f   : > { %13392 = vmatpush3.bf16.msra.mxu0 %v15528_v40  ;;  %13381 = vmatprep.subr.bf16.mxu1 %v17427_v14 }
 0x650   : > { %13393 = vmatprep.subr.bf16.mxu0 %v17427_v14  ;;  %13387 = vmatprep.mubr.msk.bf16.mxu1 %vm13842_vm13, %v17427_v14 }
 0x651   : > { %13399 = vmatprep.mubr.msk.bf16.mxu0 %vm13842_vm13, %v17427_v14 }
 0x652   : > { %13382 = vmatpush3.bf16.msra.mxu1 %v16080_v16 }
 0x653   : > { %13394 = vmatpush3.bf16.msra.mxu0 %v16088_v22  ;;  %13383 = vmatprep.subr.bf16.mxu1 %v17427_v14 }
 0x654   : > { %13395 = vmatprep.subr.bf16.mxu0 %v17427_v14  ;;  %v8947_v55 = vpop.f32.mrf.mxu1 }
 0x655   : > { %v9866_v40 = vmul.f32 %v16692_v62, %v8947_v55 }
 0x656   : > { %13384 = vmatpush3.bf16.msra.mxu1 %v15476_v56  ;;  %v8990_v59 = vpop.f32.mrf.mxu0  ;;  %v13221_v33 = vpop.f32.mrf.mxu1 }
 0x657   : > { %13396 = vmatpush3.bf16.msra.mxu0 %v15510_v32  ;;  %13385 = vmatprep.subr.bf16.mxu1 %v17427_v14  ;;  %v9867_v13 = vmul.f32 %v16692_v62, %v8990_v59  ;;  %v9958_v16 = vsel %vm8095_vm11, %v9866_v40, 0.0 }
 0x658   : > { %13397 = vmatprep.subr.bf16.mxu0 %v17427_v14  ;;  %v13233_v22 = vpop.f32.mrf.mxu0  ;;  %v9959_v18 = vrot.slane %v9958_v16, 4  ;;  %v8950_v9 = vpop.f32.mrf.mxu1 }
 0x659   : > { %v9965_v63 = vsel %vm8095_vm11, %v9867_v13, 0.0 }
 0x65a   : > { %13386 = vmatpush3.bf16.msra.mxu1 %v16116_v49  ;;  %v8362_v56 = vpop.xlane.xlu0 %8361  ;;  %v9966_v26 = vrot.slane %v9965_v63, 4  ;;  %v8993_v32 = vpop.f32.mrf.mxu0  ;;  %v9960_v50 = vadd.f32 %v9959_v18, %v9958_v16 }
 0x65b   : > { %13770 = vrcp.f32 %v8362_v56  ;;  %13398 = vmatpush3.bf16.msra.mxu0 %v16118_v58  ;;  %v8365_v21 = vpop.xlane.xlu1 %8364  ;;  %13403 = vmatprep.subr.bf16.mxu1 %v17427_v14  ;;  %v13222_v41 = vpop.f32.mrf.mxu1  ;;  %v17728_v32 = vld [vmem:[#allocation117_spill] sm:$0xff] }
 0x65c   : > { %13772 = vrcp.f32 %v8365_v21  ;;  %13415 = vmatprep.subr.bf16.mxu0 %v17427_v14  ;;  %v9967_v0 = vadd.f32 %v9966_v26, %v9965_v63  ;;  %v13234_v34 = vpop.f32.mrf.mxu0  ;;  %v9961_v28 = vrot.slane %v9960_v50, 2  ;;  %v17729_v21 = vld [vmem:[#allocation123_spill] sm:$0xff]  ;;  %v17731_v41 = vld [vmem:[#allocation89_spill] sm:$0xff] }
 0x65e   : > { %v9968_v23 = vrot.slane %v9967_v0, 2  ;;  %v9962_v45 = vadd.f32 %v9961_v28, %v9960_v50  ;;  %v17730_v50 = vld [vmem:[#allocation90_spill] sm:$0xff] }
 0x660   : > { %v9969_v49 = vadd.f32 %v9968_v23, %v9967_v0  ;;  %v9963_v57 = vrot.slane %v9962_v45, 1 }
 0x662   : > { %v9970_v10 = vrot.slane %v9969_v49, 1  ;;  %v9964_v8 = vadd.f32 %v9963_v57, %v9962_v45 }
 0x664   : > { %v9971_v12 = vadd.f32 %v9970_v10, %v9969_v49  ;;  %v10122_v29 = vpack.c.bf16 %v9964_v8, %v9964_v8  ;;  %v17732_v49 = vld [vmem:[#allocation120_spill] sm:$0xff] }
 0x666   : > { %v10123_v58 = vpack.c.bf16 %v9971_v12, %v9971_v12  ;;  %v10192_v31 = vunpack.c.l.b16 %v10122_v29 }
 0x668   : > { %v13771_v53 = vpop.eup %13770  ;;  %v10193_v60 = vunpack.c.l.b16 %v10123_v58  ;;  %v10222_v43 = vsel %vm5538_vm8, %v10192_v31, %v10221_v54 }
 0x669   : > { %v13773_v39 = vpop.eup %13772  ;;  %v8440_v20 = vmul.f32 %v13771_v53, %v16724_v27  ;;  %v17725_v27 = vld [vmem:[#allocation112_spill] sm:$0xff] }
 0x66a   : > { %v8441_v1 = vmul.f32 %v13773_v39, %v16726_v46  ;;  %v16922_v6 = vsel %vm5541_vm9, %v10193_v60, %v10222_v43  ;;  %v17733_v39 = vld [vmem:[#allocation99_spill] sm:$0xff] }
 0x66b   : > { %v8472_v11 = vpack.c.bf16 %v8440_v20, %v8440_v20 }
 0x66c   : > { %v8473_v19 = vpack.c.bf16 %v8441_v1, %v8441_v1  ;;  %v17734_v1 = vld [vmem:[#allocation88_spill] sm:$0xff] }
 0x66d   : > { %13388 = vmatmul.mubr.msk.bf16.vlgmr.msra.gmra.mxu1 %vm6334_vm4, %v8472_v11 }
 0x66e   : > { %13404 = vmatpush3.bf16.msra.mxu1 %v15566_v2  ;;  %13400 = vmatmul.mubr.msk.bf16.vlgmr.msra.gmra.mxu0 %vm6334_vm4, %v8473_v19 }
 0x66f   : > { %13416 = vmatpush3.bf16.msra.mxu0 %v15594_v42  ;;  %13405 = vmatprep.subr.bf16.mxu1 %v17427_v14 }
 0x670   : > { %13417 = vmatprep.subr.bf16.mxu0 %v17427_v14  ;;  %13411 = vmatprep.mubr.msk.bf16.mxu1 %vm13842_vm13, %v17427_v14 }
 0x671   : > { %13423 = vmatprep.mubr.msk.bf16.mxu0 %vm13842_vm13, %v17427_v14 }
 0x672   : > { %13406 = vmatpush3.bf16.msra.mxu1 %v16162_v7  ;;  %v17726_v7 = vld [vmem:[#allocation84_spill] sm:$0xff] }
 0x673   : > { %13418 = vmatpush3.bf16.msra.mxu0 %v16170_v48  ;;  %13407 = vmatprep.subr.bf16.mxu1 %v17427_v14 }
 0x674   : > { %13419 = vmatprep.subr.bf16.mxu0 %v17427_v14 }
 0x676   : > { %v9033_v2 = vpop.f32.mrf.mxu1  ;;  %13408 = vmatpush3.bf16.msra.mxu1 %v15546_v61 }
 0x677   : > { %v9076_v42 = vpop.f32.mrf.mxu0  ;;  %13420 = vmatpush3.bf16.msra.mxu0 %v17725_v27  ;;  %13409 = vmatprep.subr.bf16.mxu1 %v17427_v14  ;;  %v9868_v54 = vmul.f32 %v16692_v62, %v9033_v2 }
 0x678   : > { %v13245_v46 = vpop.f32.mrf.mxu1  ;;  %13421 = vmatprep.subr.bf16.mxu0 %v17427_v14  ;;  %v9869_v25 = vmul.f32 %v16692_v62, %v9076_v42 }
 0x679   : > { %v13257_v37 = vpop.f32.mrf.mxu0  ;;  %v9972_v44 = vsel %vm8095_vm11, %v9868_v54, 0.0 }
 0x67a   : > { %v9036_v52 = vpop.f32.mrf.mxu1  ;;  %13410 = vmatpush3.bf16.msra.mxu1 %v17726_v7  ;;  %v8368_v48 = vpop.xlane.xlu0 %8367  ;;  %v9973_v55 = vrot.slane %v9972_v44, 4  ;;  %v9979_v40 = vsel %vm8095_vm11, %v9869_v25, 0.0 }
 0x67b   : > { %13774 = vrcp.f32 %v8368_v48  ;;  %v9079_v5 = vpop.f32.mrf.mxu0  ;;  %13422 = vmatpush3.bf16.msra.mxu0 %v17727_v36  ;;  %v8371_v15 = vpop.xlane.xlu1 %8370  ;;  %13427 = vmatprep.subr.bf16.mxu1 %v17427_v14  ;;  %v9980_v13 = vrot.slane %v9979_v40, 4 }
 0x67c   : > { %v13246_v61 = vpop.f32.mrf.mxu1  ;;  %13776 = vrcp.f32 %v8371_v15  ;;  %13439 = vmatprep.subr.bf16.mxu0 %v17427_v14  ;;  %v9974_v22 = vadd.f32 %v9973_v55, %v9972_v44 }
 0x67d   : > { %v13258_v47 = vpop.f32.mrf.mxu0  ;;  %v9981_v56 = vadd.f32 %v9980_v13, %v9979_v40 }
 0x67e   : > { %v9975_v26 = vrot.slane %v9974_v22, 2 }
 0x688   : > { %v13775_v59 = vpop.eup %13774 }
 0x689   : > { %v13777_v33 = vpop.eup %13776  ;;  %v8442_v16 = vmul.f32 %v13775_v59, %v16767_v51  ;;  %v9982_v51 = vrot.slane %v9981_v56, 2 }
 0x68a   : > { %v8443_v18 = vmul.f32 %v13777_v33, %v16769_v30  ;;  %v9976_v30 = vadd.f32 %v9975_v26, %v9974_v22 }
 0x68b   : > { %v8474_v63 = vpack.c.bf16 %v8442_v16, %v8442_v16  ;;  %v9983_v0 = vadd.f32 %v9982_v51, %v9981_v56 }
 0x68c   : > { %v8475_v9 = vpack.c.bf16 %v8443_v18, %v8443_v18  ;;  %v9977_v34 = vrot.slane %v9976_v30, 1 }
 0x68d   : > { %13412 = vmatmul.mubr.msk.bf16.vlgmr.msra.gmra.mxu1 %vm6334_vm4, %v8474_v63  ;;  %v9984_v8 = vrot.slane %v9983_v0, 1 }
 0x68e   : > { %13428 = vmatpush3.bf16.msra.mxu1 %v17728_v32  ;;  %13424 = vmatmul.mubr.msk.bf16.vlgmr.msra.gmra.mxu0 %vm6334_vm4, %v8475_v9  ;;  %v9978_v58 = vadd.f32 %v9977_v34, %v9976_v30  ;;  %v17739_v30 = vld [vmem:[#allocation126_spill] sm:$0xff]  ;;  %v17740_v34 = vld [vmem:[#allocation131_spill] sm:$0xff] }
 0x68f   : > { %13440 = vmatpush3.bf16.msra.mxu0 %v17729_v21  ;;  %13429 = vmatprep.subr.bf16.mxu1 %v17427_v14  ;;  %v9985_v2 = vadd.f32 %v9984_v8, %v9983_v0  ;;  %v17735_v21 = vld [vmem:[#allocation128_spill] sm:$0xff] }
 0x690   : > { %13441 = vmatprep.subr.bf16.mxu0 %v17427_v14  ;;  %13435 = vmatprep.mubr.msk.bf16.mxu1 %vm13842_vm13, %v17427_v14  ;;  %v10124_v46 = vpack.c.bf16 %v9978_v58, %v9978_v58 }
 0x691   : > { %13447 = vmatprep.mubr.msk.bf16.mxu0 %vm13842_vm13, %v17427_v14  ;;  %v10125_v48 = vpack.c.bf16 %v9985_v2, %v9985_v2 }
 0x692   : > { %13430 = vmatpush3.bf16.msra.mxu1 %v17730_v50  ;;  %v10194_v36 = vunpack.c.l.b16 %v10124_v46  ;;  %v17007_v50 = vld [vmem:[%s17268_s3] sm:$0xf] }
 0x693   : > { %13442 = vmatpush3.bf16.msra.mxu0 %v17731_v41  ;;  %13431 = vmatprep.subr.bf16.mxu1 %v17427_v14  ;;  %v10195_v54 = vunpack.c.l.b16 %v10125_v48 }
 0x694   : > { %13443 = vmatprep.subr.bf16.mxu0 %v17427_v14  ;;  %v10224_v44 = vsel %vm5544_vm14, %v10194_v36, %v16922_v6 }
 0x695   : > { %v10225_v18 = vsel %vm5547_vm15, %v10195_v54, %v10224_v44 }
 0x696   : > { %v9119_v28 = vpop.f32.mrf.mxu1  ;;  %13432 = vmatpush3.bf16.msra.mxu1 %v17617_v4 }
 0x697   : > { %v9870_v23 = vmul.f32 %v16692_v62, %v9119_v28  ;;  %v9162_v45 = vpop.f32.mrf.mxu0  ;;  %13444 = vmatpush3.bf16.msra.mxu0 %v17732_v49  ;;  %13433 = vmatprep.subr.bf16.mxu1 %v17427_v14 }
 0x698   : > { %v13269_v57 = vpop.f32.mrf.mxu1  ;;  %v9871_v10 = vmul.f32 %v16692_v62, %v9162_v45  ;;  %13445 = vmatprep.subr.bf16.mxu0 %v17427_v14 }
 0x699   : > { %v9986_v12 = vsel %vm8095_vm11, %v9870_v23, 0.0  ;;  %v13281_v29 = vpop.f32.mrf.mxu0 }
 0x69a   : > { %v9987_v53 = vrot.slane %v9986_v12, 4  ;;  %v9993_v4 = vsel %vm8095_vm11, %v9871_v10, 0.0  ;;  %v9122_v31 = vpop.f32.mrf.mxu1  ;;  %13434 = vmatpush3.bf16.msra.mxu1 %v17733_v39  ;;  %v8374_v60 = vpop.xlane.xlu0 %8373 }
 0x69b   : > { %v9994_v20 = vrot.slane %v9993_v4, 4  ;;  %13778 = vrcp.f32 %v8374_v60  ;;  %v9165_v43 = vpop.f32.mrf.mxu0  ;;  %13446 = vmatpush3.bf16.msra.mxu0 %v17734_v1  ;;  %v8377_v62 = vpop.xlane.xlu1 %8376  ;;  %13451 = vmatprep.subr.bf16.mxu1 %v17427_v14 }
 0x69c   : > { %v9988_v11 = vadd.f32 %v9987_v53, %v9986_v12  ;;  %v13270_v19 = vpop.f32.mrf.mxu1  ;;  %13780 = vrcp.f32 %v8377_v62  ;;  %13463 = vmatprep.subr.bf16.mxu0 %v17427_v14  ;;  %v17741_v12 = vld [vmem:[#allocation83_spill] sm:$0xff] }
 0x69d   : > { %v9995_v42 = vadd.f32 %v9994_v20, %v9993_v4  ;;  %v13282_v27 = vpop.f32.mrf.mxu0  ;;  %v17742_v4 = vld [vmem:[#allocation106_spill] sm:$0xff] }
 0x69e   : > { %v9989_v37 = vrot.slane %v9988_v11, 2 }
 0x69f   : > { %v9996_v52 = vrot.slane %v9995_v42, 2 }
 0x6a0   : > { %v9990_v7 = vadd.f32 %v9989_v37, %v9988_v11 }
 0x6a1   : > { %v9997_v5 = vadd.f32 %v9996_v52, %v9995_v42 }
 0x6a2   : > { %v9991_v15 = vrot.slane %v9990_v7, 1 }
 0x6a3   : > { %v9998_v61 = vrot.slane %v9997_v5, 1 }
 0x6a4   : > { %v9992_v47 = vadd.f32 %v9991_v15, %v9990_v7 }
 0x6a5   : > { %v9999_v25 = vadd.f32 %v9998_v61, %v9997_v5 }
 0x6a6   : > { %v10126_v55 = vpack.c.bf16 %v9992_v47, %v9992_v47 }
 0x6a7   : > { %v10127_v40 = vpack.c.bf16 %v9999_v25, %v9999_v25 }
 0x6a8   : > { %v13779_v59 = vpop.eup %13778  ;;  %v10196_v33 = vunpack.c.l.b16 %v10126_v55 }
 0x6a9   : > { %v13781_v13 = vpop.eup %13780  ;;  %v10197_v16 = vunpack.c.l.b16 %v10127_v40  ;;  %v8444_v22 = vmul.f32 %v13779_v59, %v16810_v24  ;;  %v17736_v24 = vld [vmem:[#allocation133_spill] sm:$0xff] }
 0x6aa   : > { %v8445_v63 = vmul.f32 %v13781_v13, %v16812_v38  ;;  %v10226_v9 = vsel %vm5550_vm7, %v10196_v33, %v10225_v18  ;;  %v17737_v38 = vld [vmem:[#allocation94_spill] sm:$0xff] }
 0x6ab   : > { %v8476_v56 = vpack.c.bf16 %v8444_v22, %v8444_v22  ;;  %v16985_v26 = vsel %vm5553_vm10, %v10197_v16, %v10226_v9 }
 0x6ac   : > { %v8477_v32 = vpack.c.bf16 %v8445_v63, %v8445_v63  ;;  %v10242_v6 = vpack.c.b16 %v16985_v26, %v16851_v17  ;;  %v17738_v17 = vld [vmem:[#allocation82_spill] sm:$0xff] }
 0x6ad   : > { %13436 = vmatmul.mubr.msk.bf16.vlgmr.msra.gmra.mxu1 %vm6334_vm4, %v8476_v56 }
 0x6ae   : > { %13452 = vmatpush3.bf16.msra.mxu1 %v17735_v21  ;;  %13448 = vmatmul.mubr.msk.bf16.vlgmr.msra.gmra.mxu0 %vm6334_vm4, %v8477_v32 }
 0x6af   : > { %13464 = vmatpush3.bf16.msra.mxu0 %v17736_v24  ;;  %13453 = vmatprep.subr.bf16.mxu1 %v17427_v14 }
 0x6b0   : > { %13465 = vmatprep.subr.bf16.mxu0 %v17427_v14  ;;  %13459 = vmatprep.mubr.msk.bf16.mxu1 %vm13842_vm13, %v17427_v14 }
 0x6b1   : > { %13471 = vmatprep.mubr.msk.bf16.mxu0 %vm13842_vm13, %v17427_v14 }
 0x6b2   : > { %13454 = vmatpush3.bf16.msra.mxu1 %v17737_v38 }
 0x6b3   : > { %13466 = vmatpush3.bf16.msra.mxu0 %v17738_v17  ;;  %13455 = vmatprep.subr.bf16.mxu1 %v17427_v14 }
 0x6b4   : > { %13467 = vmatprep.subr.bf16.mxu0 %v17427_v14 }
 0x6b6   : > { %v9205_v51 = vpop.f32.mrf.mxu1  ;;  %13456 = vmatpush3.bf16.msra.mxu1 %v17739_v30 }
 0x6b7   : > { %v9872_v41 = vmul.f32 %v17007_v50, %v9205_v51  ;;  %v9248_v0 = vpop.f32.mrf.mxu0  ;;  %13468 = vmatpush3.bf16.msra.mxu0 %v17740_v34  ;;  %13457 = vmatprep.subr.bf16.mxu1 %v17427_v14 }
 0x6b8   : > { %v13293_v28 = vpop.f32.mrf.mxu1  ;;  %v9873_v23 = vmul.f32 %v17007_v50, %v9248_v0  ;;  %13469 = vmatprep.subr.bf16.mxu0 %v17427_v14 }
 0x6b9   : > { %v10000_v45 = vsel %vm8095_vm11, %v9872_v41, 0.0  ;;  %v13305_v49 = vpop.f32.mrf.mxu0 }
 0x6ba   : > { %v10001_v57 = vrot.slane %v10000_v45, 4  ;;  %v10007_v10 = vsel %vm8095_vm11, %v9873_v23, 0.0  ;;  %v9208_v8 = vpop.f32.mrf.mxu1  ;;  %13458 = vmatpush3.bf16.msra.mxu1 %v17741_v12  ;;  %v8380_v29 = vpop.xlane.xlu0 %8379 }
 0x6bb   : > { %v10008_v58 = vrot.slane %v10007_v10, 4  ;;  %13782 = vrcp.f32 %v8380_v29  ;;  %v9251_v53 = vpop.f32.mrf.mxu0  ;;  %13470 = vmatpush3.bf16.msra.mxu0 %v17742_v4  ;;  %v8383_v31 = vpop.xlane.xlu1 %8382 }
 0x6bc   : > { %v10002_v39 = vadd.f32 %v10001_v57, %v10000_v45  ;;  %v13294_v60 = vpop.f32.mrf.mxu1  ;;  %13784 = vrcp.f32 %v8383_v31 }
 0x6bd   : > { %v10009_v14 = vadd.f32 %v10008_v58, %v10007_v10  ;;  %v13306_v20 = vpop.f32.mrf.mxu0 }
 0x6be   : > { %v10003_v43 = vrot.slane %v10002_v39, 2 }
 0x6bf   : > { %v10010_v1 = vrot.slane %v10009_v14, 2 }
 0x6c0   : > { %v10004_v62 = vadd.f32 %v10003_v43, %v10002_v39 }
 0x6c1   : > { %v10011_v11 = vadd.f32 %v10010_v1, %v10009_v14 }
 0x6c2   : > { %v10005_v19 = vrot.slane %v10004_v62, 1 }
 0x6c3   : > { %v10012_v2 = vrot.slane %v10011_v11, 1 }
 0x6c4   : > { %v10006_v42 = vadd.f32 %v10005_v19, %v10004_v62 }
 0x6c5   : > { %v10013_v27 = vadd.f32 %v10012_v2, %v10011_v11 }
 0x6c6   : > { %v10128_v46 = vpack.c.bf16 %v10006_v42, %v10006_v42 }
 0x6c7   : > { %v10129_v37 = vpack.c.bf16 %v10013_v27, %v10013_v27 }
 0x6c8   : > { %v13783_v52 = vpop.eup %13782  ;;  %v10198_v48 = vunpack.c.l.b16 %v10128_v46 }
 0x6c9   : > { %v13785_v7 = vpop.eup %13784  ;;  %v10199_v5 = vunpack.c.l.b16 %v10129_v37  ;;  %v8446_v36 = vmul.f32 %v13783_v52, %v16853_v3 }
 0x6ca   : > { %v8447_v15 = vmul.f32 %v13785_v7, %v16855_v35 }
 0x6cb   : > { %v10228_v61 = vsel %vm5535_vm3, %v10199_v5, %v10198_v48  ;;  %v8478_v47 = vpack.c.bf16 %v8446_v36, %v8446_v36 }
 0x6cc   : > { %v8479_v54 = vpack.c.bf16 %v8447_v15, %v8447_v15 }
 0x6cd   : > { %13460 = vmatmul.mubr.msk.bf16.vlgmr.msra.gmra.mxu1 %vm6334_vm4, %v8478_v47 }
 0x6ce   : > { %13479 = vmatprep.mubr.msk.bf16.mxu1 %vm6334_vm4, %v10242_v6  ;;  %13472 = vmatmul.mubr.msk.bf16.vlgmr.msra.gmra.mxu0 %vm6334_vm4, %v8479_v54 }
 0x6d6   : > { %v9291_v25 = vpop.f32.mrf.mxu1 }
 0x6d7   : > { %v9874_v44 = vmul.f32 %v17007_v50, %v9291_v25  ;;  %v9334_v55 = vpop.f32.mrf.mxu0 }
 0x6d8   : > { %v13317_v40 = vpop.f32.mrf.mxu1  ;;  %v9875_v59 = vmul.f32 %v17007_v50, %v9334_v55 }
 0x6d9   : > { %v10014_v3 = vsel %vm8095_vm11, %v9874_v44, 0.0  ;;  %v13329_v35 = vpop.f32.mrf.mxu0 }
 0x6da   : > { %v10015_v33 = vrot.slane %v10014_v3, 4  ;;  %v10021_v13 = vsel %vm8095_vm11, %v9875_v59, 0.0  ;;  %v9294_v16 = vpop.f32.mrf.mxu1 }
 0x6db   : > { %v10022_v22 = vrot.slane %v10021_v13, 4  ;;  %v9337_v18 = vpop.f32.mrf.mxu0 }
 0x6dc   : > { %v10016_v63 = vadd.f32 %v10015_v33, %v10014_v3  ;;  %v13318_v9 = vpop.f32.mrf.mxu1 }
 0x6dd   : > { %v10023_v56 = vadd.f32 %v10022_v22, %v10021_v13  ;;  %v13330_v26 = vpop.f32.mrf.mxu0 }
 0x6de   : > { %v10017_v32 = vrot.slane %v10016_v63, 2 }
 0x6df   : > { %v10024_v6 = vrot.slane %v10023_v56, 2 }
 0x6e0   : > { %v10018_v21 = vadd.f32 %v10017_v32, %v10016_v63 }
 0x6e1   : > { %v10025_v24 = vadd.f32 %v10024_v6, %v10023_v56 }
 0x6e2   : > { %v10019_v38 = vrot.slane %v10018_v21, 1 }
 0x6e3   : > { %v10026_v17 = vrot.slane %v10025_v24, 1 }
 0x6e4   : > { %v10020_v51 = vadd.f32 %v10019_v38, %v10018_v21 }
 0x6e5   : > { %v10027_v30 = vadd.f32 %v10026_v17, %v10025_v24 }
 0x6e6   : > { %v10130_v41 = vpack.c.bf16 %v10020_v51, %v10020_v51 }
 0x6e7   : > { %v10131_v0 = vpack.c.bf16 %v10027_v30, %v10027_v30 }
 0x6e8   : > { %v10200_v34 = vunpack.c.l.b16 %v10130_v41 }
 0x6e9   : > { %v10201_v28 = vunpack.c.l.b16 %v10131_v0 }
 0x6ea   : > { %v10229_v23 = vsel %vm5538_vm8, %v10200_v34, %v10228_v61 }
 0x6eb   : > { %v10230_v45 = vsel %vm5541_vm9, %v10201_v28, %v10229_v23  ;;  %v13654_v28 = vld [vmem:[%s17274_s9 + $0x8] sm:$0xff]   ;;  %v13655_v23 = vld [vmem:[%s17274_s9] sm:$0xff]  }
 0x6ec   : > { %13501 = vmatprep.subr.msk.bf16.mxu1 %vm6334_vm4, %v13654_v28 }
 0x6f6   : > { %v9377_v49 = vpop.f32.mrf.mxu1 }
 0x6f7   : > { %v9876_v57 = vmul.f32 %v17007_v50, %v9377_v49  ;;  %v9420_v10 = vpop.f32.mrf.mxu0  ;;  %v10261_v49 = vsel %vm6334_vm4, %v13655_v23, 0 }
 0x6f8   : > { %v13341_v8 = vpop.f32.mrf.mxu1  ;;  %v9877_v12 = vmul.f32 %v17007_v50, %v9420_v10 }
 0x6f9   : > { %v10028_v29 = vsel %vm8095_vm11, %v9876_v57, 0.0  ;;  %v13353_v58 = vpop.f32.mrf.mxu0 }
 0x6fa   : > { %v10029_v53 = vrot.slane %v10028_v29, 4  ;;  %v10035_v4 = vsel %vm8095_vm11, %v9877_v12, 0.0  ;;  %v9380_v31 = vpop.f32.mrf.mxu1 }
 0x6fb   : > { %v10036_v39 = vrot.slane %v10035_v4, 4  ;;  %v9423_v60 = vpop.f32.mrf.mxu0 }
 0x6fc   : > { %v10030_v14 = vadd.f32 %v10029_v53, %v10028_v29  ;;  %v13342_v20 = vpop.f32.mrf.mxu1 }
 0x6fd   : > { %v10037_v43 = vadd.f32 %v10036_v39, %v10035_v4  ;;  %v13354_v1 = vpop.f32.mrf.mxu0 }
 0x6fe   : > { %v10031_v62 = vrot.slane %v10030_v14, 2 }
 0x6ff   : > { %v10038_v11 = vrot.slane %v10037_v43, 2 }
 0x700   : > { %v10032_v19 = vadd.f32 %v10031_v62, %v10030_v14 }
 0x701   : > { %v10039_v2 = vadd.f32 %v10038_v11, %v10037_v43 }
 0x702   : > { %v10033_v42 = vrot.slane %v10032_v19, 1 }
 0x703   : > { %v10040_v27 = vrot.slane %v10039_v2, 1 }
 0x704   : > { %v10034_v46 = vadd.f32 %v10033_v42, %v10032_v19 }
 0x705   : > { %v10041_v37 = vadd.f32 %v10040_v27, %v10039_v2 }
 0x706   : > { %v10132_v52 = vpack.c.bf16 %v10034_v46, %v10034_v46 }
 0x707   : > { %v10133_v7 = vpack.c.bf16 %v10041_v37, %v10041_v37 }
 0x708   : > { %v10202_v48 = vunpack.c.l.b16 %v10132_v52 }
 0x709   : > { %v10203_v5 = vunpack.c.l.b16 %v10133_v7 }
 0x70a   : > { %v10231_v36 = vsel %vm5544_vm14, %v10202_v48, %v10230_v45  ;;  %v10264_v45 = vsel %vm6334_vm4, %v13654_v28, 0 }
 0x70b   : > { %v10232_v15 = vsel %vm5547_vm15, %v10203_v5, %v10231_v36  ;;  %13476 = vmatpush3.bf16.xpose.msra.mxu1 %v10264_v45 }
 0x70c   : > { %13502 = vmatprep.subr.msk.bf16.mxu1 %vm6334_vm4, %v13655_v23 }
 0x70d   : > { %v9463_v61 = vpop.f32.mrf.mxu1 }
 0x70e   : > { %v9878_v47 = vmul.f32 %v17007_v50, %v9463_v61  ;;  %v9506_v54 = vpop.f32.mrf.mxu0 }
 0x70f   : > { %v13365_v25 = vpop.f32.mrf.mxu1  ;;  %v9879_v44 = vmul.f32 %v17007_v50, %v9506_v54 }
 0x710   : > { %v10042_v55 = vsel %vm8095_vm11, %v9878_v47, 0.0  ;;  %v13377_v40 = vpop.f32.mrf.mxu0 }
 0x711   : > { %v10043_v59 = vrot.slane %v10042_v55, 4  ;;  %v10049_v3 = vsel %vm8095_vm11, %v9879_v44, 0.0  ;;  %v9466_v35 = vpop.f32.mrf.mxu1 }
 0x712   : > { %v10050_v33 = vrot.slane %v10049_v3, 4  ;;  %v9509_v13 = vpop.f32.mrf.mxu0 }
 0x713   : > { %v10044_v16 = vadd.f32 %v10043_v59, %v10042_v55  ;;  %v13366_v22 = vpop.f32.mrf.mxu1  ;;  %13478 = vmatpush3.bf16.xpose.msra.mxu1 %v10261_v49 }
 0x714   : > { %v10051_v18 = vadd.f32 %v10050_v33, %v10049_v3  ;;  %v13378_v63 = vpop.f32.mrf.mxu0 }
 0x715   : > { %v10045_v9 = vrot.slane %v10044_v16, 2 }
 0x716   : > { %v10052_v56 = vrot.slane %v10051_v18, 2 }
 0x717   : > { %v10046_v26 = vadd.f32 %v10045_v9, %v10044_v16 }
 0x718   : > { %v10053_v32 = vadd.f32 %v10052_v56, %v10051_v18 }
 0x719   : > { %v10047_v6 = vrot.slane %v10046_v26, 1 }
 0x71a   : > { %v10054_v21 = vrot.slane %v10053_v32, 1 }
 0x71b   : > { %v10048_v24 = vadd.f32 %v10047_v6, %v10046_v26 }
 0x71c   : > { %v10055_v38 = vadd.f32 %v10054_v21, %v10053_v32 }
 0x71d   : > { %v10134_v17 = vpack.c.bf16 %v10048_v24, %v10048_v24 }
 0x71e   : > { %v10135_v51 = vpack.c.bf16 %v10055_v38, %v10055_v38 }
 0x71f   : > { %v10204_v30 = vunpack.c.l.b16 %v10134_v17 }
 0x720   : > { %v10205_v41 = vunpack.c.l.b16 %v10135_v51 }
 0x721   : > { %v10233_v0 = vsel %vm5550_vm7, %v10204_v30, %v10232_v15 }
 0x722   : > { %v17042_v34 = vsel %vm5553_vm10, %v10205_v41, %v10233_v0 }
 0x72d   : > { %v9549_v57 = vpop.f32.mrf.mxu1 }
 0x72e   : > { %v9880_v10 = vmul.f32 %v17007_v50, %v9549_v57  ;;  %v9592_v8 = vpop.f32.mrf.mxu0 }
 0x72f   : > { %v13389_v12 = vpop.f32.mrf.mxu1  ;;  %v9881_v29 = vmul.f32 %v17007_v50, %v9592_v8 }
 0x730   : > { %v10056_v58 = vsel %vm8095_vm11, %v9880_v10, 0.0  ;;  %v13401_v53 = vpop.f32.mrf.mxu0 }
 0x731   : > { %v10057_v4 = vrot.slane %v10056_v58, 4  ;;  %v10063_v31 = vsel %vm8095_vm11, %v9881_v29, 0.0  ;;  %v9552_v39 = vpop.f32.mrf.mxu1 }
 0x732   : > { %v10064_v60 = vrot.slane %v10063_v31, 4  ;;  %v9595_v14 = vpop.f32.mrf.mxu0 }
 0x733   : > { %v10058_v20 = vadd.f32 %v10057_v4, %v10056_v58  ;;  %v13390_v43 = vpop.f32.mrf.mxu1 }
 0x734   : > { %v10065_v1 = vadd.f32 %v10064_v60, %v10063_v31  ;;  %v13402_v62 = vpop.f32.mrf.mxu0 }
 0x735   : > { %v10059_v11 = vrot.slane %v10058_v20, 2 }
 0x736   : > { %v10066_v19 = vrot.slane %v10065_v1, 2 }
 0x737   : > { %v10060_v2 = vadd.f32 %v10059_v11, %v10058_v20 }
 0x738   : > { %v10067_v42 = vadd.f32 %v10066_v19, %v10065_v1 }
 0x739   : > { %v10061_v27 = vrot.slane %v10060_v2, 1 }
 0x73a   : > { %v10068_v46 = vrot.slane %v10067_v42, 1 }
 0x73b   : > { %v10062_v37 = vadd.f32 %v10061_v27, %v10060_v2 }
 0x73c   : > { %v10069_v52 = vadd.f32 %v10068_v46, %v10067_v42 }
 0x73d   : > { %v10136_v7 = vpack.c.bf16 %v10062_v37, %v10062_v37 }
 0x73e   : > { %v10137_v48 = vpack.c.bf16 %v10069_v52, %v10069_v52 }
 0x73f   : > { %v10206_v5 = vunpack.c.l.b16 %v10136_v7 }
 0x740   : > { %v10207_v36 = vunpack.c.l.b16 %v10137_v48 }
 0x742   : > { %v17059_v15 = vsel %vm5535_vm3, %v10207_v36, %v10206_v5 }
 0x74d   : > { %v9635_v61 = vpop.f32.mrf.mxu1 }
 0x74e   : > { %v9678_v47 = vpop.f32.mrf.mxu0  ;;  %v9882_v22 = vmul.f32 %v17007_v50, %v9635_v61 }
 0x74f   : > { %v13413_v54 = vpop.f32.mrf.mxu1  ;;  %v9883_v56 = vmul.f32 %v17007_v50, %v9678_v47 }
 0x750   : > { %v13425_v25 = vpop.f32.mrf.mxu0  ;;  %v10070_v26 = vsel %vm8095_vm11, %v9882_v22, 0.0 }
 0x751   : > { %v9638_v44 = vpop.f32.mrf.mxu1  ;;  %v10071_v6 = vrot.slane %v10070_v26, 4  ;;  %v10077_v21 = vsel %vm8095_vm11, %v9883_v56, 0.0 }
 0x752   : > { %v9681_v55 = vpop.f32.mrf.mxu0  ;;  %v10078_v17 = vrot.slane %v10077_v21, 4 }
 0x753   : > { %v13414_v40 = vpop.f32.mrf.mxu1  ;;  %v10072_v51 = vadd.f32 %v10071_v6, %v10070_v26 }
 0x754   : > { %v13426_v59 = vpop.f32.mrf.mxu0  ;;  %v10079_v0 = vadd.f32 %v10078_v17, %v10077_v21 }
 0x755   : > { %v10073_v23 = vrot.slane %v10072_v51, 2 }
 0x756   : > { %v10080_v49 = vrot.slane %v10079_v0, 2 }
 0x757   : > { %v10074_v10 = vadd.f32 %v10073_v23, %v10072_v51 }
 0x758   : > { %v10081_v12 = vadd.f32 %v10080_v49, %v10079_v0  ;;  %v13801_v0 = vld [vmem:[%s14259_s30] sm:$0x1]  ;;  %v13804_v49 = vld [vmem:[%s14259_s30 + $0x3] sm:$0x1] }
 0x759   : > { %v10075_v58 = vrot.slane %v10074_v10, 1 }
 0x75a   : > { %v10082_v4 = vrot.slane %v10081_v12, 1 }
 0x75b   : > { %v10076_v39 = vadd.f32 %v10075_v58, %v10074_v10  ;;  %v13805_v10 = vld [vmem:[%s14259_s30 + $0x4] sm:$0x1]  ;;  %v13808_v58 = vld [vmem:[%s14259_s30 + $0x7] sm:$0x1] }
 0x75c   : > { %v10083_v11 = vadd.f32 %v10082_v4, %v10081_v12  ;;  %v13810_v4 = vld [vmem:[%s14259_s30 + $0x11] sm:$0x1] }
 0x75d   : > { %v10138_v27 = vpack.c.bf16 %v10076_v39, %v10076_v39  ;;  %v13811_v39 = vld [vmem:[%s14259_s30 + $0x12] sm:$0x1] }
 0x75e   : > { %v10139_v47 = vpack.c.bf16 %v10083_v11, %v10083_v11  ;;  %v13816_v11 = vld [vmem:[%s14259_s30 + $0x17] sm:$0x1] }
 0x76d   : > { %v9721_v3 = vpop.f32.mrf.mxu1 }
 0x76e   : > { %v9764_v35 = vpop.f32.mrf.mxu0  ;;  %v9884_v32 = vmul.f32 %v17007_v50, %v9721_v3 }
 0x76f   : > { %v13437_v33 = vpop.f32.mrf.mxu1  ;;  %v9885_v24 = vmul.f32 %v17007_v50, %v9764_v35  ;;  %v10209_v35 = vunpack.c.l.b16 %v10139_v47  ;;  %v13821_v47 = vld [vmem:[%s14259_s30 + $0xc] sm:$0x1] }
 0x770   : > { %v13449_v13 = vpop.f32.mrf.mxu0  ;;  %v10084_v38 = vsel %vm8095_vm11, %v9884_v32, 0.0 }
 0x771   : > { %v9724_v16 = vpop.f32.mrf.mxu1  ;;  %v10085_v30 = vrot.slane %v10084_v38, 4  ;;  %v10091_v41 = vsel %vm8095_vm11, %v9885_v24, 0.0 }
 0x772   : > { %v9767_v18 = vpop.f32.mrf.mxu0  ;;  %v10092_v28 = vrot.slane %v10091_v41, 4 }
 0x773   : > { %v13438_v63 = vpop.f32.mrf.mxu1  ;;  %v10086_v45 = vadd.f32 %v10085_v30, %v10084_v38 }
 0x774   : > { %v13450_v9 = vpop.f32.mrf.mxu0  ;;  %v10093_v57 = vadd.f32 %v10092_v28, %v10091_v41  ;;  %v13802_v28 = vld [vmem:[%s14259_s30 + $0x1] sm:$0x1] }
 0x775   : > { %v10087_v8 = vrot.slane %v10086_v45, 2  ;;  %v10359_v23 = vcombine.low %v13801_v0, %v13802_v28  ;;  %v11561_v28 = vld [vmem:[%s17275_s10] ss:$0 sm:$0xff] }
 0x776   : > { %v10094_v29 = vrot.slane %v10093_v57, 2 }
 0x777   : > { %v10088_v53 = vadd.f32 %v10087_v8, %v10086_v45  ;;  %v13803_v45 = vld [vmem:[%s14259_s30 + $0x2] sm:$0x1]  ;;  %v13806_v8 = vld [vmem:[%s14259_s30 + $0x5] sm:$0x1] }
 0x778   : > { %v10095_v31 = vadd.f32 %v10094_v29, %v10093_v57  ;;  %v10360_v57 = vcombine.low %v13803_v45, %v13804_v49  ;;  %v10361_v12 = vcombine.low %v13805_v10, %v13806_v8  ;;  %v13807_v29 = vld [vmem:[%s14259_s30 + $0x6] sm:$0x1] }
 0x779   : > { %v10089_v60 = vrot.slane %v10088_v53, 1 }
 0x77a   : > { %v10096_v19 = vrot.slane %v10095_v31, 1 }
 0x77b   : > { %v10090_v46 = vadd.f32 %v10089_v60, %v10088_v53  ;;  %v13809_v53 = vld [vmem:[%s14259_s30 + $0x10] sm:$0x1]  ;;  %v13812_v60 = vld [vmem:[%s14259_s30 + $0x13] sm:$0x1] }
 0x77c   : > { %v10097_v54 = vadd.f32 %v10096_v19, %v10095_v31  ;;  %v10457_v31 = vcombine.low %v13809_v53, %v13810_v4 }
 0x77d   : > { %v10140_v55 = vpack.c.bf16 %v10090_v46, %v10090_v46 }
 0x77e   : > { %v10141_v33 = vpack.c.bf16 %v10097_v54, %v10097_v54  ;;  %v13822_v54 = vld [vmem:[%s14259_s30 + $0xd] sm:$0x1] }
 0x77f   : > { %v10210_v22 = vunpack.c.l.b16 %v10140_v55 }
 0x780   : > { %v10211_v26 = vunpack.c.l.b16 %v10141_v33  ;;  %v13825_v33 = vld [vmem:[%s14259_s30 + $0x18] sm:$0x1] }
 0x78d   : > { %v9807_v14 = vpop.f32.mrf.mxu1 }
 0x78e   : > { %v9886_v20 = vmul.f32 %v17007_v50, %v9807_v14  ;;  %v9850_v43 = vpop.f32.mrf.mxu0  ;;  %v10458_v14 = vcombine.low %v13811_v39, %v13812_v60 }
 0x78f   : > { %v13461_v1 = vpop.f32.mrf.mxu1  ;;  %v9887_v62 = vmul.f32 %v17007_v50, %v9850_v43  ;;  %v10208_v50 = vunpack.c.l.b16 %v10138_v27  ;;  %v13814_v43 = vld [vmem:[%s14259_s30 + $0x15] sm:$0x1] }
 0x790   : > { %v10098_v2 = vsel %vm8095_vm11, %v9886_v20, 0.0  ;;  %v13473_v42 = vpop.f32.mrf.mxu0  ;;  %v13813_v20 = vld [vmem:[%s14259_s30 + $0x14] sm:$0x1] }
 0x791   : > { %v10099_v37 = vrot.slane %v10098_v2, 4  ;;  %v10105_v52 = vsel %vm8095_vm11, %v9887_v62, 0.0  ;;  %v9810_v7 = vpop.f32.mrf.mxu1  ;;  %v10236_v16 = vsel %vm5538_vm8, %v10208_v50, %v17059_v15  ;;  %v10459_v1 = vcombine.low %v13813_v20, %v13814_v43  ;;  %v13815_v62 = vld [vmem:[%s14259_s30 + $0x16] sm:$0x1]  ;;  %v13824_v50 = vld [vmem:[%s14259_s30 + $0xf] sm:$0x1] }
 0x792   : > { %v10106_v48 = vrot.slane %v10105_v52, 4  ;;  %v9853_v5 = vpop.f32.mrf.mxu0  ;;  %v10237_v56 = vsel %vm5541_vm9, %v10209_v35, %v10236_v16  ;;  %v10460_v19 = vcombine.low %v13815_v62, %v13816_v11  ;;  %v13818_v7 = vld [vmem:[%s14259_s30 + $0x8] sm:$0x1] }
 0x793   : > { %v10100_v36 = vadd.f32 %v10099_v37, %v10098_v2  ;;  %v13462_v61 = vpop.f32.mrf.mxu1  ;;  %v10238_v6 = vsel %vm5544_vm14, %v10210_v22, %v10237_v56  ;;  %v17743_v2 = vld [vmem:[#allocation78_spill] sm:$0xff]  ;;  %v13819_v5 = vld [vmem:[%s14259_s30 + $0xa] sm:$0x1]  ;;  %v13827_v22 = vld [vmem:[%s14259_s30 + $0x1a] sm:$0x1] }
 0x794   : > { %v10107_v25 = vadd.f32 %v10106_v48, %v10105_v52  ;;  %v13474_v44 = vpop.f32.mrf.mxu0  ;;  %v10239_v15 = vsel %vm5547_vm15, %v10211_v26, %v10238_v6  ;;  %v10369_v42 = vrot.slane %v10359_v23, %v17743_v2  ;;  %v10376_v27 = vrot.slane %v10360_v57, %v17743_v2  ;;  %v13817_v52 = vld [vmem:[%s14259_s30 + $0x9] sm:$0x1]  ;;  %v13830_v56 = vld [vmem:[%s14259_s30 + $0x1d] sm:$0x1]  ;;  %v13832_v6 = vld [vmem:[%s14259_s30 + $0x1f] sm:$0x1] }
 0x795   : > { %v10101_v40 = vrot.slane %v10100_v36, 2  ;;  %v10383_v46 = vrot.slane %v10361_v12, %v17743_v2  ;;  %v10408_v48 = vcombine.low %v13818_v7, %v13817_v52  ;;  %v13823_v44 = vld [vmem:[%s14259_s30 + $0xe] sm:$0x1]  ;;  %v10488_v35 = vrot.slane %v10460_v19, %v17743_v2 }
 0x796   : > { %v10108_v59 = vrot.slane %v10107_v25, 2  ;;  %v10411_v55 = vcombine.low %v13823_v44, %v13824_v50 }
 0x797   : > { %v10102_v3 = vadd.f32 %v10101_v40, %v10100_v36  ;;  %v13820_v36 = vld [vmem:[%s14259_s30 + $0xb] sm:$0x1]  ;;  %v10467_v40 = vrot.slane %v10457_v31, %v17743_v2 }
 0x798   : > { %v10109_v13 = vadd.f32 %v10108_v59, %v10107_v25  ;;  %v10409_v61 = vcombine.low %v13819_v5, %v13820_v36  ;;  %v10410_v25 = vcombine.low %v13821_v47, %v13822_v54  ;;  %v10474_v59 = vrot.slane %v10458_v14, %v17743_v2 }
 0x799   : > { %v10103_v18 = vrot.slane %v10102_v3, 1 }
 0x79a   : > { %v10110_v63 = vrot.slane %v10109_v13, 1 }
 0x79b   : > { %v10104_v9 = vadd.f32 %v10103_v18, %v10102_v3  ;;  %v10481_v3 = vrot.slane %v10459_v1, %v17743_v2  ;;  %v13828_v18 = vld [vmem:[%s14259_s30 + $0x1b] sm:$0x1] }
 0x79c   : > { %v10111_v32 = vadd.f32 %v10110_v63, %v10109_v13  ;;  %v13826_v13 = vld [vmem:[%s14259_s30 + $0x19] sm:$0x1]  ;;  %v10507_v63 = vcombine.low %v13827_v22, %v13828_v18 }
 0x79d   : > { %v10142_v21 = vpack.c.bf16 %v10104_v9, %v10104_v9  ;;  %v10506_v16 = vcombine.low %v13825_v33, %v13826_v13  ;;  %v13829_v9 = vld [vmem:[%s14259_s30 + $0x1c] sm:$0x1]  ;;  %v10490_v0 = vcombine.low %v10481_v3, %v10488_v35 }
 0x79e   : > { %v10143_v24 = vpack.c.bf16 %v10111_v32, %v10111_v32  ;;  %v10508_v26 = vcombine.low %v13829_v9, %v13830_v56  ;;  %v13831_v32 = vld [vmem:[%s14259_s30 + $0x1e] sm:$0x1]  ;;  %v10523_v45 = vrot.slane %v10507_v63, %v17743_v2 }
 0x79f   : > { %v10212_v38 = vunpack.c.l.b16 %v10142_v21  ;;  %v10509_v21 = vcombine.low %v13831_v32, %v13832_v6  ;;  %v10516_v23 = vrot.slane %v10506_v16, %v17743_v2  ;;  %v10504_v31 = vrot.slane %v10490_v0, %v17743_v2 }
 0x7a0   : > { %v10213_v17 = vunpack.c.l.b16 %v10143_v24  ;;  %v10391_v24 = vcombine.low %v10369_v42, %v10376_v27  ;;  %v10530_v49 = vrot.slane %v10508_v26, %v17743_v2 }
 0x7a1   : > { %v10240_v51 = vsel %vm5550_vm7, %v10212_v38, %v10239_v15  ;;  %v10418_v15 = vrot.slane %v10408_v48, %v17743_v2  ;;  %v10537_v57 = vrot.slane %v10509_v21, %v17743_v2  ;;  %v10538_v39 = vcombine.low %v10516_v23, %v10523_v45  ;;  %v13656_v45 = vld [vmem:[%s17276_s11 + $0x8] sm:$0xff]  }
 0x7a2   : > { %v10241_v30 = vsel %vm5553_vm10, %v10213_v17, %v10240_v51  ;;  %v10425_v17 = vrot.slane %v10409_v61, %v17743_v2  ;;  %v10432_v51 = vrot.slane %v10410_v25, %v17743_v2  ;;  %v10399_v8 = vrot.slane %v10391_v24, %v17743_v2  ;;  %13503 = vmatprep.subr.msk.bf16.mxu0 %vm1449_vm0, %v13656_v45 }
 0x7a3   : > { %v10243_v41 = vpack.c.b16 %v10241_v30, %v17042_v34  ;;  %v10362_v34 = vcombine.low %v13807_v29, %v13808_v58  ;;  %v10439_v30 = vrot.slane %v10411_v55, %v17743_v2  ;;  %v10539_v60 = vcombine.low %v10530_v49, %v10537_v57  ;;  %v13657_v49 = vld [vmem:[%s17276_s11] sm:$0xff]  }
 0x7a4   : > { %v10440_v29 = vcombine.low %v10418_v15, %v10425_v17  ;;  %v10660_v57 = vsel %vm1449_vm0, %v13656_v45, 0  ;;  %vm10955_vm7 = vcmask 253952  }
 0x7a5   : > { %13480 = vmatmul.mubr.msk.bf16.vlgmr.msra.gmra.mxu1 %vm6334_vm4, %v10243_v41  ;;  %v10390_v37 = vrot.slane %v10362_v34, %v17743_v2  ;;  %v10489_v41 = vcombine.low %v10467_v40, %v10474_v59  ;;  %v10441_v58 = vcombine.low %v10432_v51, %v10439_v30  ;;  %v10553_v52 = vrot.slane %v10539_v60, %v17743_v2 }
 0x7a6   : > { %v10448_v62 = vrot.slane %v10440_v29, %v17743_v2  ;;  %13484 = vmatpush3.bf16.xpose.msra.mxu0 %v10660_v57 }
 0x7a7   : > { %v10392_v38 = vcombine.low %v10383_v46, %v10390_v37  ;;  %v10497_v4 = vrot.slane %v10489_v41, %v17743_v2  ;;  %v10455_v11 = vrot.slane %v10441_v58, %v17743_v2  ;;  %v10546_v37 = vrot.slane %v10538_v39, %v17743_v2  ;;  %13504 = vmatprep.subr.msk.bf16.mxu0 %vm1449_vm0, %v13657_v49 }
 0x7a9   : > { %v10406_v12 = vrot.slane %v10392_v38, %v17743_v2  ;;  %v10505_v46 = vcombine.low %v10497_v4, %v10504_v31  ;;  %v10456_v47 = vcombine.low %v10448_v62, %v10455_v11  ;;  %v10554_v50 = vcombine.low %v10546_v37, %v10553_v52  ;;  %v11566_v62 = vld [vmem:[%s17277_s12] ss:$0 sm:$0xff] }
 0x7aa   : > { %v11567_v37 = vld [vmem:[%s17278_s13] ss:$0 sm:$0xff] }
 0x7ab   : > { %v10407_v1 = vcombine.low %v10399_v8, %v10406_v12 }
 0x865   : > { %v13481_v10 = vpop.f32.mrf.mxu1 }
 0x866   : > { %v10309_v34 = vadd.f32 %v13481_v10, %v11561_v28  ;;  %v10657_v10 = vsel %vm1449_vm0, %v13657_v49, 0 }
 0x867   : > { %v10300_v53 = vpop.f32.mrf.mxu1  ;;  %13486 = vmatpush3.bf16.xpose.msra.mxu0 %v10657_v10 }
 0x868   : > { %v10321_v14 = vmul.f32 0.01, %v10309_v34  ;;  %v10301_v20 = vadd.f32 %v11561_v28, %v10300_v53  ;;  %vm10317_vm4 = vcmp.ge.f32.partialorder %v10309_v34, 0.0 }
 0x869   : > { %v13482_v43 = vpop.f32.mrf.mxu1 }
 0x86a   : > { %vm10315_vm3 = vcmp.ge.f32.partialorder %v10301_v20, 0.0  ;;  %v10319_v19 = vmul.f32 0.01, %v10301_v20  ;;  %v10312_v42 = vadd.f32 %v13482_v43, %v11561_v28  ;;  %v10325_v36 = vsel %vm10317_vm4, %v10309_v34, %v10321_v14 }
 0x86b   : > { %v10303_v27 = vpop.f32.mrf.mxu1  ;;  %v10561_v44 = vadd.f32 %v10505_v46, %v10325_v36 }
 0x86c   : > { %v10322_v7 = vmul.f32 0.01, %v10312_v42  ;;  %v10304_v48 = vadd.f32 %v11561_v28, %v10303_v27  ;;  %v10323_v5 = vsel %vm10315_vm3, %v10301_v20, %v10319_v19  ;;  %vm10318_vm8 = vcmp.ge.f32.partialorder %v10312_v42, 0.0 }
 0x86d   : > { %v10559_v61 = vadd.f32 %v10407_v1, %v10323_v5  ;;  %v10569_v35 = vsel %vm1449_vm0, %v10561_v44, 0.0 }
 0x86e   : > { %vm10316_vm9 = vcmp.ge.f32.partialorder %v10304_v48, 0.0  ;;  %v10320_v54 = vmul.f32 0.01, %v10304_v48  ;;  %v10326_v40 = vsel %vm10318_vm8, %v10312_v42, %v10322_v7 }
 0x86f   : > { %v10563_v25 = vsel %vm1449_vm0, %v10559_v61, 0.0  ;;  %v10562_v33 = vadd.f32 %v10554_v50, %v10326_v40 }
 0x870   : > { %10564 = vadd.xlane.f32.xlu0 %v10563_v25  ;;  %v10324_v55 = vsel %vm10316_vm9, %v10304_v48, %v10320_v54 }
 0x871   : > { %v10560_v59 = vadd.f32 %v10456_v47, %v10324_v55  ;;  %v10572_v13 = vsel %vm1449_vm0, %v10562_v33, 0.0 }
 0x873   : > { %v10566_v3 = vsel %vm1449_vm0, %v10560_v59, 0.0 }
 0x874   : > { %10567 = vadd.xlane.f32.xlu1 %v10566_v3  ;;  %10570 = vadd.xlane.f32.xlu0 %v10569_v35 }
 0x878   : > { %10573 = vadd.xlane.f32.xlu1 %v10572_v13 }
 0x8f9   : > { %v10565_v16 = vpop.xlane.xlu0 %10564 }
 0x8fa   : > { %v10576_v22 = vmul.f32 0.03125, %v10565_v16 }
 0x8fc   : > { %v10580_v18 = vsub.f32 %v10559_v61, %v10576_v22 }
 0x8fd   : > { %v10568_v63 = vpop.xlane.xlu1 %10567  ;;  %v10571_v9 = vpop.xlane.xlu0 %10570 }
 0x8fe   : > { %v10577_v56 = vmul.f32 0.03125, %v10568_v63  ;;  %v10578_v26 = vmul.f32 0.03125, %v10571_v9  ;;  %v10584_v32 = vmul.f32 %v10580_v18, %v10580_v18 }
 0x900   : > { %v10581_v6 = vsub.f32 %v10560_v59, %v10577_v56  ;;  %v10582_v21 = vsub.f32 %v10561_v44, %v10578_v26  ;;  %v10588_v24 = vsel %vm1449_vm0, %v10584_v32, 0.0 }
 0x901   : > { %v10574_v38 = vpop.xlane.xlu1 %10573  ;;  %10589 = vadd.xlane.f32.xlu0 %v10588_v24 }
 0x902   : > { %v10579_v15 = vmul.f32 0.03125, %v10574_v38  ;;  %v10585_v17 = vmul.f32 %v10581_v6, %v10581_v6  ;;  %v10586_v51 = vmul.f32 %v10582_v21, %v10582_v21 }
 0x904   : > { %v10583_v30 = vsub.f32 %v10562_v33, %v10579_v15  ;;  %v10591_v41 = vsel %vm1449_vm0, %v10585_v17, 0.0  ;;  %v10594_v0 = vsel %vm1449_vm0, %v10586_v51, 0.0 }
 0x905   : > { %10592 = vadd.xlane.f32.xlu1 %v10591_v41  ;;  %10595 = vadd.xlane.f32.xlu0 %v10594_v0 }
 0x906   : > { %v10587_v28 = vmul.f32 %v10583_v30, %v10583_v30 }
 0x908   : > { %v10597_v23 = vsel %vm1449_vm0, %v10587_v28, 0.0 }
 0x909   : > { %10598 = vadd.xlane.f32.xlu1 %v10597_v23 }
 0x98a   : > { %v10590_v8 = vpop.xlane.xlu0 %10589 }
 0x98b   : > { %v10600_v12 = vmul.f32 0.03125, %v10590_v8 }
 0x98d   : > { %v10604_v29 = vadd.f32 1e-05, %v10600_v12 }
 0x98e   : > { %v10593_v58 = vpop.xlane.xlu1 %10592  ;;  %v10596_v34 = vpop.xlane.xlu0 %10595 }
 0x98f   : > { %13786 = vrsqrt.f32 %v10604_v29  ;;  %v10601_v53 = vmul.f32 0.03125, %v10593_v58  ;;  %v10602_v4 = vmul.f32 0.03125, %v10596_v34 }
 0x991   : > { %v10605_v31 = vadd.f32 1e-05, %v10601_v53  ;;  %v10606_v39 = vadd.f32 1e-05, %v10602_v4 }
 0x992   : > { %v10599_v60 = vpop.xlane.xlu1 %10598 }
 0x993   : > { %13788 = vrsqrt.f32 %v10605_v31  ;;  %v10603_v14 = vmul.f32 0.03125, %v10599_v60 }
 0x994   : > { %13790 = vrsqrt.f32 %v10606_v39 }
 0x995   : > { %v10607_v20 = vadd.f32 1e-05, %v10603_v14 }
 0x997   : > { %13792 = vrsqrt.f32 %v10607_v20 }
 0x99c   : > { %v13787_v43 = vpop.eup %13786 }
 0x99d   : > { %v10612_v1 = vmul.f32 %v13787_v43, %v10580_v18 }
 0x99f   : > { %v10623_v27 = vmul.f32 %v11566_v62, %v10612_v1 }
 0x9a0   : > { %v13789_v11 = vpop.eup %13788 }
 0x9a1   : > { %v13791_v19 = vpop.eup %13790  ;;  %v10613_v42 = vmul.f32 %v13789_v11, %v10581_v6  ;;  %v10634_v36 = vadd.f32 %v11567_v37, %v10623_v27 }
 0x9a2   : > { %v10614_v46 = vmul.f32 %v13791_v19, %v10582_v21 }
 0x9a3   : > { %v10624_v52 = vmul.f32 %v11566_v62, %v10613_v42 }
 0x9a4   : > { %v13793_v7 = vpop.eup %13792  ;;  %v10625_v5 = vmul.f32 %v11566_v62, %v10614_v46 }
 0x9a5   : > { %v10615_v48 = vmul.f32 %v13793_v7, %v10583_v30  ;;  %v10635_v61 = vadd.f32 %v11567_v37, %v10624_v52 }
 0x9a6   : > { %v10636_v25 = vadd.f32 %v11567_v37, %v10625_v5 }
 0x9a7   : > { %v10626_v47 = vmul.f32 %v11566_v62, %v10615_v48  ;;  %v10638_v54 = vpack.c.bf16 %v10635_v61, %v10634_v36 }
 0x9a9   : > { %v10637_v44 = vadd.f32 %v11567_v37, %v10626_v47  ;;  %13487 = vmatprep.mubr.msk.bf16.mxu0 %vm1449_vm0, %v10638_v54 }
 0x9ab   : > { %v10639_v50 = vpack.c.bf16 %v10637_v44, %v10636_v25 }
 0x9ad   : > { %13488 = vmatmul.mubr.msk.bf16.vlgmr.msra.gmra.mxu0 %vm1449_vm0, %v10639_v50 }
 0xa6d   : > { %v13489_v55 = vpop.f32.mrf.mxu0 }
 0xa6e   : > { %vm10713_vm14 = vcmp.ge.f32.partialorder %v13489_v55, 0.0  ;;  %v10717_v40 = vmul.f32 0.01, %v13489_v55 }
 0xa6f   : > { %v10696_v59 = vpop.f32.mrf.mxu0 }
 0xa70   : > { %v10721_v3 = vsel %vm10713_vm14, %v13489_v55, %v10717_v40  ;;  %vm10711_vm15 = vcmp.ge.f32.partialorder %v10696_v59, 0.0  ;;  %v10715_v35 = vmul.f32 0.01, %v10696_v59 }
 0xa71   : > { %v10825_v33 = vcombine.high %v10721_v3, %v10721_v3  ;;  %v10832_v13 = vrot.slane %v10721_v3, %v17743_v2  ;;  %v13490_v16 = vpop.f32.mrf.mxu0 }
 0xa72   : > { %v10719_v22 = vsel %vm10711_vm15, %v10696_v59, %v10715_v35  ;;  %vm10714_vm0 = vcmp.ge.f32.partialorder %v13490_v16, 0.0  ;;  %v10718_v18 = vmul.f32 0.01, %v13490_v16 }
 0xa73   : > { %v10839_v63 = vrot.slane %v10825_v33, %v17743_v2  ;;  %v10840_v9 = vcombine.high %v10832_v13, %v10832_v13  ;;  %v10848_v56 = vrot.slane %v10832_v13, %v17743_v2  ;;  %v10727_v26 = vcombine.high %v10719_v22, %v10719_v22  ;;  %v10699_v32 = vpop.f32.mrf.mxu0 }
 0xa74   : > { %v10734_v6 = vrot.slane %v10719_v22, %v17743_v2  ;;  %v10722_v21 = vsel %vm10714_vm0, %v13490_v16, %v10718_v18  ;;  %vm10712_vm10 = vcmp.ge.f32.partialorder %v10699_v32, 0.0  ;;  %v10716_v24 = vmul.f32 0.01, %v10699_v32 }
 0xa75   : > { %v10841_v38 = vcombine.high %v10839_v63, %v10839_v63  ;;  %v10855_v15 = vrot.slane %v10839_v63, %v17743_v2  ;;  %v10862_v17 = vrot.slane %v10840_v9, %v17743_v2  ;;  %v10870_v51 = vcombine.high %v10848_v56, %v10848_v56  ;;  %10972 = vst.msk [vmem:[%s17172_s28 + $0x10] sm:$0x1] %vm10955_vm7, %v10848_v56 }
 0xa76   : > { %v10741_v30 = vrot.slane %v10727_v26, %v17743_v2  ;;  %v10742_v41 = vcombine.high %v10734_v6, %v10734_v6  ;;  %v10750_v0 = vrot.slane %v10734_v6, %v17743_v2  ;;  %v10874_v28 = vcombine.high %v10722_v21, %v10722_v21 }
 0xa77   : > { %v10869_v23 = vrot.slane %v10841_v38, %v17743_v2  ;;  %v10871_v45 = vcombine.high %v10855_v15, %v10855_v15  ;;  %v10872_v49 = vcombine.high %v10862_v17, %v10862_v17  ;;  %10973 = vst.msk [vmem:[%s17172_s28 + $0x11] sm:$0x1] %vm10955_vm7, %v10862_v17  ;;  %10974 = vst.msk [vmem:[%s17172_s28 + $0x12] sm:$0x1] %vm10955_vm7, %v10870_v51 }
 0xa78   : > { %10976 = vst.msk [vmem:[%s17172_s28 + $0x14] sm:$0x1] %vm10955_vm7, %v10855_v15  ;;  %v10881_v57 = vrot.slane %v10722_v21, %v17743_v2  ;;  %v10743_v10 = vcombine.high %v10741_v30, %v10741_v30  ;;  %v10757_v8 = vrot.slane %v10741_v30, %v17743_v2  ;;  %v10764_v12 = vrot.slane %v10742_v41, %v17743_v2 }
 0xa79   : > { %v10772_v29 = vcombine.high %v10750_v0, %v10750_v0  ;;  %10956 = vst.msk [vmem:[%s17172_s28] sm:$0x1] %vm10955_vm7, %v10750_v0  ;;  %v10873_v58 = vcombine.high %v10869_v23, %v10869_v23  ;;  %10975 = vst.msk [vmem:[%s17172_s28 + $0x13] sm:$0x1] %vm10955_vm7, %v10872_v49  ;;  %v10888_v34 = vrot.slane %v10874_v28, %v17743_v2 }
 0xa7a   : > { %10977 = vst.msk [vmem:[%s17172_s28 + $0x15] sm:$0x1] %vm10955_vm7, %v10869_v23  ;;  %10978 = vst.msk [vmem:[%s17172_s28 + $0x16] sm:$0x1] %vm10955_vm7, %v10871_v45  ;;  %v10889_v53 = vcombine.high %v10881_v57, %v10881_v57  ;;  %v10897_v4 = vrot.slane %v10881_v57, %v17743_v2  ;;  %v10771_v31 = vrot.slane %v10743_v10, %v17743_v2 }
 0xa7b   : > { %v10773_v39 = vcombine.high %v10757_v8, %v10757_v8  ;;  %v10774_v60 = vcombine.high %v10764_v12, %v10764_v12  ;;  %10957 = vst.msk [vmem:[%s17172_s28 + $0x1] sm:$0x1] %vm10955_vm7, %v10764_v12  ;;  %10958 = vst.msk [vmem:[%s17172_s28 + $0x2] sm:$0x1] %vm10955_vm7, %v10772_v29  ;;  %v10720_v14 = vsel %vm10712_vm10, %v10699_v32, %v10716_v24 }
 0xa7c   : > { %10960 = vst.msk [vmem:[%s17172_s28 + $0x4] sm:$0x1] %vm10955_vm7, %v10757_v8  ;;  %10979 = vst.msk [vmem:[%s17172_s28 + $0x17] sm:$0x1] %vm10955_vm7, %v10873_v58  ;;  %v10890_v20 = vcombine.high %v10888_v34, %v10888_v34  ;;  %v10904_v43 = vrot.slane %v10888_v34, %v17743_v2  ;;  %v10911_v1 = vrot.slane %v10889_v53, %v17743_v2 }
 0xa7d   : > { %v10919_v62 = vcombine.high %v10897_v4, %v10897_v4  ;;  %10980 = vst.msk [vmem:[%s17172_s28 + $0x18] sm:$0x1] %vm10955_vm7, %v10897_v4  ;;  %v10775_v11 = vcombine.high %v10771_v31, %v10771_v31  ;;  %10959 = vst.msk [vmem:[%s17172_s28 + $0x3] sm:$0x1] %vm10955_vm7, %v10774_v60  ;;  %v10776_v19 = vcombine.high %v10720_v14, %v10720_v14 }
 0xa7e   : > { %10961 = vst.msk [vmem:[%s17172_s28 + $0x5] sm:$0x1] %vm10955_vm7, %v10771_v31  ;;  %10962 = vst.msk [vmem:[%s17172_s28 + $0x6] sm:$0x1] %vm10955_vm7, %v10773_v39  ;;  %v10783_v42 = vrot.slane %v10720_v14, %v17743_v2  ;;  %v10918_v27 = vrot.slane %v10890_v20, %v17743_v2  ;;  %v10920_v46 = vcombine.high %v10904_v43, %v10904_v43 }
 0xa7f   : > { %v10921_v37 = vcombine.high %v10911_v1, %v10911_v1  ;;  %10981 = vst.msk [vmem:[%s17172_s28 + $0x19] sm:$0x1] %vm10955_vm7, %v10911_v1  ;;  %10982 = vst.msk [vmem:[%s17172_s28 + $0x1a] sm:$0x1] %vm10955_vm7, %v10919_v62  ;;  %v10790_v52 = vrot.slane %v10776_v19, %v17743_v2 }
 0xa80   : > { %10984 = vst.msk [vmem:[%s17172_s28 + $0x1c] sm:$0x1] %vm10955_vm7, %v10904_v43  ;;  %10963 = vst.msk [vmem:[%s17172_s28 + $0x7] sm:$0x1] %vm10955_vm7, %v10775_v11  ;;  %v10791_v7 = vcombine.high %v10783_v42, %v10783_v42  ;;  %v10799_v48 = vrot.slane %v10783_v42, %v17743_v2  ;;  %v10922_v5 = vcombine.high %v10918_v27, %v10918_v27 }
 0xa81   : > { %10983 = vst.msk [vmem:[%s17172_s28 + $0x1b] sm:$0x1] %vm10955_vm7, %v10921_v37  ;;  %10985 = vst.msk [vmem:[%s17172_s28 + $0x1d] sm:$0x1] %vm10955_vm7, %v10918_v27  ;;  %v10792_v36 = vcombine.high %v10790_v52, %v10790_v52  ;;  %v10806_v61 = vrot.slane %v10790_v52, %v17743_v2 }
 0xa82   : > { %10986 = vst.msk [vmem:[%s17172_s28 + $0x1e] sm:$0x1] %vm10955_vm7, %v10920_v46  ;;  %v10813_v47 = vrot.slane %v10791_v7, %v17743_v2  ;;  %v10821_v54 = vcombine.high %v10799_v48, %v10799_v48  ;;  %10964 = vst.msk [vmem:[%s17172_s28 + $0x8] sm:$0x1] %vm10955_vm7, %v10799_v48 }
 0xa83   : > { %10987 = vst.msk [vmem:[%s17172_s28 + $0x1f] sm:$0x1] %vm10955_vm7, %v10922_v5  ;;  %v10820_v25 = vrot.slane %v10792_v36, %v17743_v2  ;;  %v10822_v44 = vcombine.high %v10806_v61, %v10806_v61  ;;  %10968 = vst.msk [vmem:[%s17172_s28 + $0xc] sm:$0x1] %vm10955_vm7, %v10806_v61 }
 0xa84   : > { %v10823_v50 = vcombine.high %v10813_v47, %v10813_v47  ;;  %10965 = vst.msk [vmem:[%s17172_s28 + $0x9] sm:$0x1] %vm10955_vm7, %v10813_v47  ;;  %10966 = vst.msk [vmem:[%s17172_s28 + $0xa] sm:$0x1] %vm10955_vm7, %v10821_v54 }
 0xa85   : > { %v10824_v55 = vcombine.high %v10820_v25, %v10820_v25  ;;  %10969 = vst.msk [vmem:[%s17172_s28 + $0xd] sm:$0x1] %vm10955_vm7, %v10820_v25  ;;  %10970 = vst.msk [vmem:[%s17172_s28 + $0xe] sm:$0x1] %vm10955_vm7, %v10822_v44 }
 0xa86   : > { %10967 = vst.msk [vmem:[%s17172_s28 + $0xb] sm:$0x1] %vm10955_vm7, %v10823_v50 }
 0xa87   : > { %10971 = vst.msk [vmem:[%s17172_s28 + $0xf] sm:$0x1] %vm10955_vm7, %v10824_v55 }
 0xa88 PF: > { %s24_s29 = sadd.s32 1, %s13839_s29  }
 0xa89   : > { %p21_p4 = scmp.ge.s32.totalorder %s24_s29, 4  }
 0xa8b   :  { %23 = sbr.rel (!%p21_p4) target bundleno = 1 (0x1), region = 112 }

</bundles_post_ra>
